<compile_context>
chip_gen: v5e
topology: v5e:2x2
jax: 0.10.0
libtpu: 0.0.40
codegen_flags: <defaults>
</compile_context>

<pallas_src>
import functools

import jax
import jax.numpy as jnp
from jax import lax
from jax.experimental import pallas as pl
from jax.experimental.pallas import tpu as pltpu


def se_basic_block_kernel(
    x_ref,      # (BT, H, W*C) f32   lane-dense input tile (NHWC, W & C merged)
    wb1_ref,    # (3, W*C, W*C) bf16 conv1 banded weights (one matrix per ky)
    wb2_ref,    # (3, W*C, W*C) bf16 conv2 banded weights
    s1_ref,     # (1, W*C) f32 folded BN1 scale, tiled across W
    b1_ref,     # (1, W*C) f32 folded BN1 bias,  tiled across W
    s2_ref,     # (1, W*C) f32 folded BN2 scale
    b2_ref,     # (1, W*C) f32 folded BN2 bias
    fw1_ref,    # (C, R) f32 SE fc1 weight (pre-transposed)
    fb1_ref,    # (1, R) f32 SE fc1 bias
    fw2_ref,    # (R, C) f32 SE fc2 weight (pre-transposed)
    fb2_ref,    # (1, C) f32 SE fc2 bias
    out_ref,    # (BT, H, W*C) f32 lane-dense output tile
    pad_ref,    # scratch VMEM (BT, H+2, W*C) bf16: vertically padded activation
    *, C,
):
    BT, H, WC = x_ref.shape
    W = WC // C
    M = BT * H

    # Zero only the two halo rows (the interior is fully overwritten before any
    # read).  Re-done every grid step (a few KB) so the kernel stays correct
    # under any grid split / TensorCore assignment.
    pad_ref[:, 0:1, :] = jnp.zeros((BT, 1, WC), jnp.bfloat16)
    pad_ref[:, H + 1:H + 2, :] = jnp.zeros((BT, 1, WC), jnp.bfloat16)

    def conv3x3(act3, wb_ref):
        # act3: (BT, H, W*C) f32 lane-dense.  One aligned full-width bf16 write
        # of the interior, then three lane-dense MXU matmuls (one per kernel
        # row); horizontal taps + SAME padding live in the banded weight, so no
        # im2col / tap gathering is needed.
        pad_ref[:, 1:H + 1, :] = act3.astype(jnp.bfloat16)
        acc = jnp.dot(pad_ref[:, 0:H, :].reshape(M, WC), wb_ref[0],
                      preferred_element_type=jnp.float32)
        for ky in (1, 2):
            acc = acc + jnp.dot(pad_ref[:, ky:ky + H, :].reshape(M, WC),
                                wb_ref[ky], preferred_element_type=jnp.float32)
        return acc                                             # (M, W*C) f32

    x = x_ref[...]                                             # (BT, H, W*C)

    # conv1 -> bn1 -> relu   (elementwise in f32 on 512-lane-dense vregs)
    a1 = jnp.maximum(conv3x3(x, wb1_ref) * s1_ref[...] + b1_ref[...], 0.0)

    # conv2 -> bn2
    o2 = conv3x3(a1.reshape(BT, H, WC), wb2_ref) * s2_ref[...] + b2_ref[...]

    # --- Squeeze-and-Excitation ---
    # Global average pool without leaving the lane-dense layout: sublane-reduce
    # over H, then fold the W channel blocks together with log2(W) lane rolls.
    rs = jnp.sum(o2.reshape(BT, H, WC), axis=1)                # (BT, W*C)
    shift = WC // 2
    while shift >= C:                                          # static unroll
        rs = rs + pltpu.roll(rs, shift=shift, axis=1)
        shift //= 2
    y = rs[:, :C] * (1.0 / (H * W))                            # (BT, C)

    h = jnp.maximum(
        jnp.dot(y, fw1_ref[...], preferred_element_type=jnp.float32)
        + fb1_ref[...], 0.0)                                   # (BT, R)
    se = jax.nn.sigmoid(
        jnp.dot(h, fw2_ref[...], preferred_element_type=jnp.float32)
        + fb2_ref[...])                                        # (BT, C)
    se_dense = jnp.tile(se, (1, W))                            # (BT, W*C)

    # channel scale, identity residual (stride=1, downsample=None), final relu.
    res = o2.reshape(BT, H, WC) * se_dense[:, None, :] + x
    out_ref[...] = jnp.maximum(res, 0.0).astype(out_ref.dtype)


def _band_conv_weights(w_hwio, W, C):
    """(3, 3, C, C) HWIO conv weight -> (3, W*C, W*C) bf16 block-banded
    matrices (one per kernel row ky):
        m[ky, wi*C + ci, wo*C + co] = w[ky, wi - wo + 1, ci, co]  if |wi-wo|<=1
    Out-of-range taps are simply dropped, which implements the SAME zero
    padding, so a 3x3 conv becomes three lane-dense (rows, W*C) @ (W*C, W*C)
    matmuls.  (Pre-expansion is fine at this W*C; cache it in a real model.)"""
    m = jnp.zeros((3, W, C, W, C), jnp.float32)
    for kx in range(3):
        for wo in range(W):
            wi = wo + kx - 1
            if 0 <= wi < W:
                m = m.at[:, wi, :, wo, :].set(w_hwio[:, kx])
    return m.reshape(3, W * C, W * C).astype(jnp.bfloat16)


def se_basic_block(x, params, *, batch_tile=None):
    """x: (B, H, W, C) float32 NHWC. Returns (B, H, W, C) float32."""
    B, H, W, C = x.shape
    w1, w2, s1, b1, s2, b2, fw1_t, fb1, fw2_t, fb2 = params
    R = fw1_t.shape[1]
    WC = W * C
    assert WC % 128 == 0, "W*C must be a multiple of 128 for lane-dense tiles"
    assert W & (W - 1) == 0, "W must be a power of two (log-roll SE pooling)"

    if batch_tile is None:
        # keep >= 4 grid steps (>= 2 per v7x TensorCore) while fattening steps.
        batch_tile = 1
        for bt in (8, 4, 2):
            if B % bt == 0 and B // bt >= 4:
                batch_tile = bt
                break
    BT = batch_tile
    assert B % BT == 0, "batch must be divisible by the batch tile"

    # Host-side parameter prep (parameter-only; cache in a real model).
    wb1 = _band_conv_weights(w1, W, C)               # (3, WC, WC) bf16
    wb2 = _band_conv_weights(w2, W, C)
    s1d = jnp.tile(s1.reshape(1, C), (1, W))         # BN scale/bias tiled over W
    b1d = jnp.tile(b1.reshape(1, C), (1, W))
    s2d = jnp.tile(s2.reshape(1, C), (1, W))
    b2d = jnp.tile(b2.reshape(1, C), (1, W))
    fb1v, fb2v = fb1.reshape(1, R), fb2.reshape(1, C)
    x_dense = x.reshape(B, H, WC)                    # lane-dense input (free)

    const = lambda shape: pl.BlockSpec(shape, lambda b: (0,) * len(shape))
    # NOTE: the constant-index operands could be single-buffered via
    # pipeline_mode=pl.Buffered(1) to save ~3 MiB of VMEM; left at the default
    # double buffering since total VMEM use is far below the scoped limit.
    grid_spec = pltpu.PrefetchScalarGridSpec(
        num_scalar_prefetch=0,
        grid=(B // BT,),                   # >= 4 and even -> balanced TC split
        in_specs=[
            pl.BlockSpec((BT, H, WC), lambda b: (b, 0, 0)),   # x (lane-dense)
            const((3, WC, WC)),                               # conv1 banded w
            const((3, WC, WC)),                               # conv2 banded w
            const((1, WC)), const((1, WC)),                   # bn1 scale/bias
            const((1, WC)), const((1, WC)),                   # bn2 scale/bias
            const((C, R)), const((1, R)),                     # SE fc1
            const((R, C)), const((1, C)),                     # SE fc2
        ],
        out_specs=pl.BlockSpec((BT, H, WC), lambda b: (b, 0, 0)),
        scratch_shapes=[
            pltpu.VMEM((BT, H + 2, WC), jnp.bfloat16),   # padded activation
        ],
    )
    out_wide = pl.pallas_call(
        functools.partial(se_basic_block_kernel, C=C),
        out_shape=jax.ShapeDtypeStruct((B, H, WC), jnp.float32),
        grid_spec=grid_spec,
        compiler_params=pltpu.CompilerParams(
            dimension_semantics=("parallel",),
            vmem_limit_bytes=32 * 1024 * 1024,
        ),
    )(x_dense, wb1, wb2, s1d, b1d, s2d, b2d, fw1_t, fb1v, fw2_t, fb2v)
    return out_wide.reshape(B, H, W, C)      # free wrapper reshape back to NHWC


def reference(x, params, *, matmul_dtype=jnp.float32):
    """Pure-JAX reference (NHWC). matmul_dtype=bfloat16 mirrors the kernel's
    bf16 MXU operands (f32 accumulation); float32 is the exact module."""
    w1, w2, s1, b1, s2, b2, fw1_t, fb1, fw2_t, fb2 = params
    dn = ("NHWC", "HWIO", "NHWC")

    def conv(a, w):
        return lax.conv_general_dilated(
            a.astype(matmul_dtype), w.astype(matmul_dtype), (1, 1), "SAME",
            dimension_numbers=dn, preferred_element_type=jnp.float32)

    o = conv(x, w1)
    o = jnp.maximum(o * s1 + b1, 0.0)
    o = conv(o, w2)
    o = o * s2 + b2
    y = o.mean(axis=(1, 2))                              # (B, C)
    h = jnp.maximum(y @ fw1_t + fb1, 0.0)
    s = jax.nn.sigmoid(h @ fw2_t + fb2)
    o = o * s[:, None, None, :]
    return jnp.maximum(o + x, 0.0)


def make_params(key, C, R):
    ks = jax.random.split(key, 14)
    eps = 1e-5
    w1 = 0.1 * jax.random.normal(ks[0], (3, 3, C, C), jnp.float32)
    w2 = 0.1 * jax.random.normal(ks[1], (3, 3, C, C), jnp.float32)
    # BatchNorm (eval mode): fold gamma/beta/running stats to scale/bias
    g1 = 1.0 + 0.1 * jax.random.normal(ks[2], (C,), jnp.float32)
    be1 = 0.1 * jax.random.normal(ks[3], (C,), jnp.float32)
    m1 = 0.1 * jax.random.normal(ks[4], (C,), jnp.float32)
    v1 = 1.0 + 0.1 * jax.random.uniform(ks[5], (C,), jnp.float32)
    g2 = 1.0 + 0.1 * jax.random.normal(ks[6], (C,), jnp.float32)
    be2 = 0.1 * jax.random.normal(ks[7], (C,), jnp.float32)
    m2 = 0.1 * jax.random.normal(ks[8], (C,), jnp.float32)
    v2 = 1.0 + 0.1 * jax.random.uniform(ks[9], (C,), jnp.float32)
    s1 = g1 / jnp.sqrt(v1 + eps)
    b1 = be1 - m1 * s1
    s2 = g2 / jnp.sqrt(v2 + eps)
    b2 = be2 - m2 * s2
    # SE: nn.Linear(C, R) -> ReLU -> nn.Linear(R, C) -> Sigmoid (weights pre-T)
    fw1_t = 0.1 * jax.random.normal(ks[10], (C, R), jnp.float32)
    fb1 = 0.05 * jax.random.normal(ks[11], (R,), jnp.float32)
    fw2_t = 0.1 * jax.random.normal(ks[12], (R, C), jnp.float32)
    fb2 = 0.05 * jax.random.normal(ks[13], (C,), jnp.float32)
    return (w1, w2, s1, b1, s2, b2, fw1_t, fb1, fw2_t, fb2)


if __name__ == "__main__":
    # SEBasicBlock(inplanes=32, planes=32, stride=1, downsample=None, reduction=16)
    # (in this repo's SELayer the hidden width is literally `reduction`, so R=16)
    B, H, W, C, R = 4, 16, 16, 32, 16
    key = jax.random.PRNGKey(0)
    kx, kp = jax.random.split(key)
    x = jax.random.normal(kx, (B, H, W, C), jnp.float32)
    params = make_params(kp, C, R)

    out = jax.block_until_ready(se_basic_block(x, params))
    ref_lo = reference(x, params, matmul_dtype=jnp.bfloat16)  # kernel numerics
    ref_hi = reference(x, params, matmul_dtype=jnp.float32)   # exact module

    assert out.shape == (B, H, W, C)
    err_lo = float(jnp.max(jnp.abs(out - ref_lo)))
    err_hi = float(jnp.max(jnp.abs(out - ref_hi)))
    assert err_lo < 2e-2, f"mismatch vs bf16-matmul reference: {err_lo}"
    assert err_hi < 1.5e-1, f"mismatch vs f32 reference: {err_hi}"
    print("KERNEL_OK")
</pallas_src>

<mosaic_0001>
module attributes {stable_mosaic.version = 11 : i64} {
  func.func @se_basic_block_kernel(%arg0: i32, %arg1: memref<1x16x512xf32, #tpu.memory_space<vmem>>, %arg2: memref<3x512x512xbf16, #tpu.memory_space<vmem>>, %arg3: memref<3x512x512xbf16, #tpu.memory_space<vmem>>, %arg4: memref<1x512xf32, #tpu.memory_space<vmem>>, %arg5: memref<1x512xf32, #tpu.memory_space<vmem>>, %arg6: memref<1x512xf32, #tpu.memory_space<vmem>>, %arg7: memref<1x512xf32, #tpu.memory_space<vmem>>, %arg8: memref<32x16xf32, #tpu.memory_space<vmem>>, %arg9: memref<1x16xf32, #tpu.memory_space<vmem>>, %arg10: memref<16x32xf32, #tpu.memory_space<vmem>>, %arg11: memref<1x32xf32, #tpu.memory_space<vmem>>, %arg12: memref<1x16x512xf32, #tpu.memory_space<vmem>>, %arg13: memref<1x18x512xbf16, #tpu.memory_space<vmem>>) attributes {dimension_semantics = [#tpu.dimension_semantics<parallel>], iteration_bounds = array<i64: 4>, scalar_prefetch = 0 : i64, scratch_operands = 1 : i64, tpu.core_type = #tpu.core_type<tc>, window_params = [{transform_indices = @transform_0, window_bounds = array<i64: 1, 16, 512>}, {pipeline_mode = #tpu.pipeline_mode<synchronous>, transform_indices = @transform_1, window_bounds = array<i64: 3, 512, 512>}, {pipeline_mode = #tpu.pipeline_mode<synchronous>, transform_indices = @transform_2, window_bounds = array<i64: 3, 512, 512>}, {pipeline_mode = #tpu.pipeline_mode<synchronous>, transform_indices = @transform_3, window_bounds = array<i64: 1, 512>}, {pipeline_mode = #tpu.pipeline_mode<synchronous>, transform_indices = @transform_4, window_bounds = array<i64: 1, 512>}, {pipeline_mode = #tpu.pipeline_mode<synchronous>, transform_indices = @transform_5, window_bounds = array<i64: 1, 512>}, {pipeline_mode = #tpu.pipeline_mode<synchronous>, transform_indices = @transform_6, window_bounds = array<i64: 1, 512>}, {pipeline_mode = #tpu.pipeline_mode<synchronous>, transform_indices = @transform_7, window_bounds = array<i64: 32, 16>}, {pipeline_mode = #tpu.pipeline_mode<synchronous>, transform_indices = @transform_8, window_bounds = array<i64: 1, 16>}, {pipeline_mode = #tpu.pipeline_mode<synchronous>, transform_indices = @transform_9, window_bounds = array<i64: 16, 32>}, {pipeline_mode = #tpu.pipeline_mode<synchronous>, transform_indices = @transform_10, window_bounds = array<i64: 1, 32>}, {transform_indices = @transform_11, window_bounds = array<i64: 1, 16, 512>}]} {
    %cst = arith.constant 0.000000e+00 : bf16
    %0 = vector.broadcast %cst : bf16 to vector<1x1x512xbf16>
    %c0 = arith.constant 0 : index
    %c0_0 = arith.constant 0 : index
    %c0_1 = arith.constant 0 : index
    %1 = vector.load %arg13[%c0, %c0_0, %c0_1] : memref<1x18x512xbf16, #tpu.memory_space<vmem>>, vector<1x1x512xbf16>
    tpu.vector_store %arg13[%c0, %c0_0, %c0_1], %0 {strides = array<i32>} : memref<1x18x512xbf16, #tpu.memory_space<vmem>>, vector<1x1x512xbf16>,
    %cst_2 = arith.constant 0.000000e+00 : bf16
    %2 = vector.broadcast %cst_2 : bf16 to vector<1x1x512xbf16>
    %c0_3 = arith.constant 0 : index
    %c17 = arith.constant 17 : index
    %c0_4 = arith.constant 0 : index
    %3 = vector.load %arg13[%c0_3, %c17, %c0_4] : memref<1x18x512xbf16, #tpu.memory_space<vmem>>, vector<1x1x512xbf16>
    tpu.vector_store %arg13[%c0_3, %c17, %c0_4], %2 {strides = array<i32>} : memref<1x18x512xbf16, #tpu.memory_space<vmem>>, vector<1x1x512xbf16>,
    %c0_5 = arith.constant 0 : index
    %c0_6 = arith.constant 0 : index
    %c0_7 = arith.constant 0 : index
    %4 = vector.load %arg1[%c0_5, %c0_6, %c0_7] : memref<1x16x512xf32, #tpu.memory_space<vmem>>, vector<1x16x512xf32>
    %5 = arith.truncf %4 : vector<1x16x512xf32> to vector<1x16x512xbf16>
    %c0_8 = arith.constant 0 : index
    %c1 = arith.constant 1 : index
    %c0_9 = arith.constant 0 : index
    %6 = vector.load %arg13[%c0_8, %c1, %c0_9] : memref<1x18x512xbf16, #tpu.memory_space<vmem>>, vector<1x16x512xbf16>
    tpu.vector_store %arg13[%c0_8, %c1, %c0_9], %5 {strides = array<i32>} : memref<1x18x512xbf16, #tpu.memory_space<vmem>>, vector<1x16x512xbf16>,
    %c0_10 = arith.constant 0 : index
    %c0_11 = arith.constant 0 : index
    %c0_12 = arith.constant 0 : index
    %7 = vector.load %arg13[%c0_10, %c0_11, %c0_12] : memref<1x18x512xbf16, #tpu.memory_space<vmem>>, vector<1x16x512xbf16>
    %8 = vector.shape_cast %7 : vector<1x16x512xbf16> to vector<16x512xbf16>
    %c0_13 = arith.constant 0 : index
    %c0_14 = arith.constant 0 : index
    %c0_15 = arith.constant 0 : index
    %9 = vector.load %arg2[%c0_13, %c0_14, %c0_15] : memref<3x512x512xbf16, #tpu.memory_space<vmem>>, vector<1x512x512xbf16>
    %10 = vector.shape_cast %9 : vector<1x512x512xbf16> to vector<512x512xbf16>
    %cst_16 = arith.constant dense<0.000000e+00> : vector<16x512xf32>
    %11 = tpu.matmul %8, %10, %cst_16 {dimension_numbers = #tpu.dot_dimension_numbers<[1], [0], [0], [1], [0, 0, 1, 1], [], []>} : vector<16x512xbf16>, vector<512x512xbf16>, vector<16x512xf32> -> vector<16x512xf32>
    %c0_17 = arith.constant 0 : index
    %c1_18 = arith.constant 1 : index
    %c0_19 = arith.constant 0 : index
    %12 = vector.load %arg13[%c0_17, %c1_18, %c0_19] : memref<1x18x512xbf16, #tpu.memory_space<vmem>>, vector<1x16x512xbf16>
    %13 = vector.shape_cast %12 : vector<1x16x512xbf16> to vector<16x512xbf16>
    %c1_20 = arith.constant 1 : index
    %c0_21 = arith.constant 0 : index
    %c0_22 = arith.constant 0 : index
    %14 = vector.load %arg2[%c1_20, %c0_21, %c0_22] : memref<3x512x512xbf16, #tpu.memory_space<vmem>>, vector<1x512x512xbf16>
    %15 = vector.shape_cast %14 : vector<1x512x512xbf16> to vector<512x512xbf16>
    %cst_23 = arith.constant dense<0.000000e+00> : vector<16x512xf32>
    %16 = tpu.matmul %13, %15, %cst_23 {dimension_numbers = #tpu.dot_dimension_numbers<[1], [0], [0], [1], [0, 0, 1, 1], [], []>} : vector<16x512xbf16>, vector<512x512xbf16>, vector<16x512xf32> -> vector<16x512xf32>
    %17 = arith.addf %11, %16 : vector<16x512xf32>
    %c0_24 = arith.constant 0 : index
    %c2 = arith.constant 2 : index
    %c0_25 = arith.constant 0 : index
    %18 = vector.load %arg13[%c0_24, %c2, %c0_25] : memref<1x18x512xbf16, #tpu.memory_space<vmem>>, vector<1x16x512xbf16>
    %19 = vector.shape_cast %18 : vector<1x16x512xbf16> to vector<16x512xbf16>
    %c2_26 = arith.constant 2 : index
    %c0_27 = arith.constant 0 : index
    %c0_28 = arith.constant 0 : index
    %20 = vector.load %arg2[%c2_26, %c0_27, %c0_28] : memref<3x512x512xbf16, #tpu.memory_space<vmem>>, vector<1x512x512xbf16>
    %21 = vector.shape_cast %20 : vector<1x512x512xbf16> to vector<512x512xbf16>
    %cst_29 = arith.constant dense<0.000000e+00> : vector<16x512xf32>
    %22 = tpu.matmul %19, %21, %cst_29 {dimension_numbers = #tpu.dot_dimension_numbers<[1], [0], [0], [1], [0, 0, 1, 1], [], []>} : vector<16x512xbf16>, vector<512x512xbf16>, vector<16x512xf32> -> vector<16x512xf32>
    %23 = arith.addf %17, %22 : vector<16x512xf32>
    %c0_30 = arith.constant 0 : index
    %c0_31 = arith.constant 0 : index
    %24 = vector.load %arg4[%c0_30, %c0_31] : memref<1x512xf32, #tpu.memory_space<vmem>>, vector<1x512xf32>
    %25 = vector.broadcast %24 : vector<1x512xf32> to vector<16x512xf32>
    %26 = arith.mulf %23, %25 : vector<16x512xf32>
    %c0_32 = arith.constant 0 : index
    %c0_33 = arith.constant 0 : index
    %27 = vector.load %arg5[%c0_32, %c0_33] : memref<1x512xf32, #tpu.memory_space<vmem>>, vector<1x512xf32>
    %28 = vector.broadcast %27 : vector<1x512xf32> to vector<16x512xf32>
    %29 = arith.addf %26, %28 : vector<16x512xf32>
    %cst_34 = arith.constant 0.000000e+00 : f32
    %30 = vector.broadcast %cst_34 : f32 to vector<16x512xf32>
    %31 = arith.maximumf %29, %30 : vector<16x512xf32>
    %32 = vector.shape_cast %31 : vector<16x512xf32> to vector<1x16x512xf32>
    %33 = arith.truncf %32 : vector<1x16x512xf32> to vector<1x16x512xbf16>
    %c0_35 = arith.constant 0 : index
    %c1_36 = arith.constant 1 : index
    %c0_37 = arith.constant 0 : index
    %34 = vector.load %arg13[%c0_35, %c1_36, %c0_37] : memref<1x18x512xbf16, #tpu.memory_space<vmem>>, vector<1x16x512xbf16>
    tpu.vector_store %arg13[%c0_35, %c1_36, %c0_37], %33 {strides = array<i32>} : memref<1x18x512xbf16, #tpu.memory_space<vmem>>, vector<1x16x512xbf16>,
    %c0_38 = arith.constant 0 : index
    %c0_39 = arith.constant 0 : index
    %c0_40 = arith.constant 0 : index
    %35 = vector.load %arg13[%c0_38, %c0_39, %c0_40] : memref<1x18x512xbf16, #tpu.memory_space<vmem>>, vector<1x16x512xbf16>
    %36 = vector.shape_cast %35 : vector<1x16x512xbf16> to vector<16x512xbf16>
    %c0_41 = arith.constant 0 : index
    %c0_42 = arith.constant 0 : index
    %c0_43 = arith.constant 0 : index
    %37 = vector.load %arg3[%c0_41, %c0_42, %c0_43] : memref<3x512x512xbf16, #tpu.memory_space<vmem>>, vector<1x512x512xbf16>
    %38 = vector.shape_cast %37 : vector<1x512x512xbf16> to vector<512x512xbf16>
    %cst_44 = arith.constant dense<0.000000e+00> : vector<16x512xf32>
    %39 = tpu.matmul %36, %38, %cst_44 {dimension_numbers = #tpu.dot_dimension_numbers<[1], [0], [0], [1], [0, 0, 1, 1], [], []>} : vector<16x512xbf16>, vector<512x512xbf16>, vector<16x512xf32> -> vector<16x512xf32>
    %c0_45 = arith.constant 0 : index
    %c1_46 = arith.constant 1 : index
    %c0_47 = arith.constant 0 : index
    %40 = vector.load %arg13[%c0_45, %c1_46, %c0_47] : memref<1x18x512xbf16, #tpu.memory_space<vmem>>, vector<1x16x512xbf16>
    %41 = vector.shape_cast %40 : vector<1x16x512xbf16> to vector<16x512xbf16>
    %c1_48 = arith.constant 1 : index
    %c0_49 = arith.constant 0 : index
    %c0_50 = arith.constant 0 : index
    %42 = vector.load %arg3[%c1_48, %c0_49, %c0_50] : memref<3x512x512xbf16, #tpu.memory_space<vmem>>, vector<1x512x512xbf16>
    %43 = vector.shape_cast %42 : vector<1x512x512xbf16> to vector<512x512xbf16>
    %cst_51 = arith.constant dense<0.000000e+00> : vector<16x512xf32>
    %44 = tpu.matmul %41, %43, %cst_51 {dimension_numbers = #tpu.dot_dimension_numbers<[1], [0], [0], [1], [0, 0, 1, 1], [], []>} : vector<16x512xbf16>, vector<512x512xbf16>, vector<16x512xf32> -> vector<16x512xf32>
    %45 = arith.addf %39, %44 : vector<16x512xf32>
    %c0_52 = arith.constant 0 : index
    %c2_53 = arith.constant 2 : index
    %c0_54 = arith.constant 0 : index
    %46 = vector.load %arg13[%c0_52, %c2_53, %c0_54] : memref<1x18x512xbf16, #tpu.memory_space<vmem>>, vector<1x16x512xbf16>
    %47 = vector.shape_cast %46 : vector<1x16x512xbf16> to vector<16x512xbf16>
    %c2_55 = arith.constant 2 : index
    %c0_56 = arith.constant 0 : index
    %c0_57 = arith.constant 0 : index
    %48 = vector.load %arg3[%c2_55, %c0_56, %c0_57] : memref<3x512x512xbf16, #tpu.memory_space<vmem>>, vector<1x512x512xbf16>
    %49 = vector.shape_cast %48 : vector<1x512x512xbf16> to vector<512x512xbf16>
    %cst_58 = arith.constant dense<0.000000e+00> : vector<16x512xf32>
    %50 = tpu.matmul %47, %49, %cst_58 {dimension_numbers = #tpu.dot_dimension_numbers<[1], [0], [0], [1], [0, 0, 1, 1], [], []>} : vector<16x512xbf16>, vector<512x512xbf16>, vector<16x512xf32> -> vector<16x512xf32>
    %51 = arith.addf %45, %50 : vector<16x512xf32>
    %c0_59 = arith.constant 0 : index
    %c0_60 = arith.constant 0 : index
    %52 = vector.load %arg6[%c0_59, %c0_60] : memref<1x512xf32, #tpu.memory_space<vmem>>, vector<1x512xf32>
    %53 = vector.broadcast %52 : vector<1x512xf32> to vector<16x512xf32>
    %54 = arith.mulf %51, %53 : vector<16x512xf32>
    %c0_61 = arith.constant 0 : index
    %c0_62 = arith.constant 0 : index
    %55 = vector.load %arg7[%c0_61, %c0_62] : memref<1x512xf32, #tpu.memory_space<vmem>>, vector<1x512xf32>
    %56 = vector.broadcast %55 : vector<1x512xf32> to vector<16x512xf32>
    %57 = arith.addf %54, %56 : vector<16x512xf32>
    %58 = vector.shape_cast %57 : vector<16x512xf32> to vector<1x16x512xf32>
    %cst_63 = arith.constant dense<0.000000e+00> : vector<1x512xf32>
    %59 = vector.multi_reduction <add>, %58, %cst_63 [1] : vector<1x16x512xf32> to vector<1x512xf32>
    %c256_i32 = arith.constant 256 : i32
    %60 = tpu.dynamic_rotate %59 by %c256_i32 dim 1 : vector<1x512xf32>, i32 -> vector<1x512xf32>
    %61 = arith.addf %59, %60 : vector<1x512xf32>
    %c128_i32 = arith.constant 128 : i32
    %62 = tpu.dynamic_rotate %61 by %c128_i32 dim 1 : vector<1x512xf32>, i32 -> vector<1x512xf32>
    %63 = arith.addf %61, %62 : vector<1x512xf32>
    %c64_i32 = arith.constant 64 : i32
    %64 = tpu.dynamic_rotate %63 by %c64_i32 dim 1 : vector<1x512xf32>, i32 -> vector<1x512xf32>
    %65 = arith.addf %63, %64 : vector<1x512xf32>
    %c32_i32 = arith.constant 32 : i32
    %66 = tpu.dynamic_rotate %65 by %c32_i32 dim 1 : vector<1x512xf32>, i32 -> vector<1x512xf32>
    %67 = arith.addf %65, %66 : vector<1x512xf32>
    %68 = vector.extract_strided_slice %67 {offsets = [0, 0], sizes = [1, 32], strides = [1, 1]} : vector<1x512xf32> to vector<1x32xf32>
    %cst_64 = arith.constant 3.906250e-03 : f32
    %69 = vector.broadcast %cst_64 : f32 to vector<1x32xf32>
    %70 = arith.mulf %68, %69 : vector<1x32xf32>
    %c0_65 = arith.constant 0 : index
    %c0_66 = arith.constant 0 : index
    %71 = vector.load %arg8[%c0_65, %c0_66] : memref<32x16xf32, #tpu.memory_space<vmem>>, vector<32x16xf32>
    %cst_67 = arith.constant dense<0.000000e+00> : vector<1x16xf32>
    %72 = tpu.matmul %70, %71, %cst_67 {dimension_numbers = #tpu.dot_dimension_numbers<[1], [0], [0], [1], [0, 0, 1, 1], [], []>} : vector<1x32xf32>, vector<32x16xf32>, vector<1x16xf32> -> vector<1x16xf32>
    %c0_68 = arith.constant 0 : index
    %c0_69 = arith.constant 0 : index
    %73 = vector.load %arg9[%c0_68, %c0_69] : memref<1x16xf32, #tpu.memory_space<vmem>>, vector<1x16xf32>
    %74 = arith.addf %72, %73 : vector<1x16xf32>
    %cst_70 = arith.constant 0.000000e+00 : f32
    %75 = vector.broadcast %cst_70 : f32 to vector<1x16xf32>
    %76 = arith.maximumf %74, %75 : vector<1x16xf32>
    %c0_71 = arith.constant 0 : index
    %c0_72 = arith.constant 0 : index
    %77 = vector.load %arg10[%c0_71, %c0_72] : memref<16x32xf32, #tpu.memory_space<vmem>>, vector<16x32xf32>
    %cst_73 = arith.constant dense<0.000000e+00> : vector<1x32xf32>
    %78 = tpu.matmul %76, %77, %cst_73 {dimension_numbers = #tpu.dot_dimension_numbers<[1], [0], [0], [1], [0, 0, 1, 1], [], []>} : vector<1x16xf32>, vector<16x32xf32>, vector<1x32xf32> -> vector<1x32xf32>
    %c0_74 = arith.constant 0 : index
    %c0_75 = arith.constant 0 : index
    %79 = vector.load %arg11[%c0_74, %c0_75] : memref<1x32xf32, #tpu.memory_space<vmem>>, vector<1x32xf32>
    %80 = arith.addf %78, %79 : vector<1x32xf32>
    %81 = arith.negf %80 : vector<1x32xf32>
    %82 = math.exp %81 : vector<1x32xf32>
    %cst_76 = arith.constant 1.000000e+00 : f32
    %83 = vector.broadcast %cst_76 : f32 to vector<1x32xf32>
    %84 = arith.addf %83, %82 : vector<1x32xf32>
    %85 = arith.divf %83, %84 : vector<1x32xf32>
    %86 = tpu.concatenate %85, %85, %85, %85, %85, %85, %85, %85, %85, %85, %85, %85, %85, %85, %85, %85 in 1 : vector<1x32xf32>, vector<1x32xf32>, vector<1x32xf32>, vector<1x32xf32>, vector<1x32xf32>, vector<1x32xf32>, vector<1x32xf32>, vector<1x32xf32>, vector<1x32xf32>, vector<1x32xf32>, vector<1x32xf32>, vector<1x32xf32>, vector<1x32xf32>, vector<1x32xf32>, vector<1x32xf32>, vector<1x32xf32> -> vector<1x512xf32>
    %87 = vector.shape_cast %57 : vector<16x512xf32> to vector<1x16x512xf32>
    %88 = vector.shape_cast %86 : vector<1x512xf32> to vector<1x1x512xf32>
    %89 = vector.broadcast %88 : vector<1x1x512xf32> to vector<1x16x512xf32>
    %90 = arith.mulf %87, %89 : vector<1x16x512xf32>
    %91 = arith.addf %90, %4 : vector<1x16x512xf32>
    %cst_77 = arith.constant 0.000000e+00 : f32
    %92 = vector.broadcast %cst_77 : f32 to vector<1x16x512xf32>
    %93 = arith.maximumf %91, %92 : vector<1x16x512xf32>
    %c0_78 = arith.constant 0 : index
    %c0_79 = arith.constant 0 : index
    %c0_80 = arith.constant 0 : index
    %94 = vector.load %arg12[%c0_78, %c0_79, %c0_80] : memref<1x16x512xf32, #tpu.memory_space<vmem>>, vector<1x16x512xf32>
    tpu.vector_store %arg12[%c0_78, %c0_79, %c0_80], %93 {strides = array<i32>} : memref<1x16x512xf32, #tpu.memory_space<vmem>>, vector<1x16x512xf32>,
    return
  }
  func.func @transform_0(%arg0: i32) -> (i32, i32, i32) {
    %c0_i32 = arith.constant 0 : i32
    %c0_i32_0 = arith.constant 0 : i32
    %c0_i32_1 = arith.constant 0 : i32
    return %arg0, %c0_i32, %c0_i32_0 : i32, i32, i32
  }
  func.func @transform_1(%arg0: i32) -> (i32, i32, i32) {
    %c0_i32 = arith.constant 0 : i32
    %c0_i32_0 = arith.constant 0 : i32
    %c0_i32_1 = arith.constant 0 : i32
    %c0_i32_2 = arith.constant 0 : i32
    return %c0_i32, %c0_i32_0, %c0_i32_1 : i32, i32, i32
  }
  func.func @transform_2(%arg0: i32) -> (i32, i32, i32) {
    %c0_i32 = arith.constant 0 : i32
    %c0_i32_0 = arith.constant 0 : i32
    %c0_i32_1 = arith.constant 0 : i32
    %c0_i32_2 = arith.constant 0 : i32
    return %c0_i32, %c0_i32_0, %c0_i32_1 : i32, i32, i32
  }
  func.func @transform_3(%arg0: i32) -> (i32, i32) {
    %c0_i32 = arith.constant 0 : i32
    %c0_i32_0 = arith.constant 0 : i32
    %c0_i32_1 = arith.constant 0 : i32
    return %c0_i32, %c0_i32_0 : i32, i32
  }
  func.func @transform_4(%arg0: i32) -> (i32, i32) {
    %c0_i32 = arith.constant 0 : i32
    %c0_i32_0 = arith.constant 0 : i32
    %c0_i32_1 = arith.constant 0 : i32
    return %c0_i32, %c0_i32_0 : i32, i32
  }
  func.func @transform_5(%arg0: i32) -> (i32, i32) {
    %c0_i32 = arith.constant 0 : i32
    %c0_i32_0 = arith.constant 0 : i32
    %c0_i32_1 = arith.constant 0 : i32
    return %c0_i32, %c0_i32_0 : i32, i32
  }
  func.func @transform_6(%arg0: i32) -> (i32, i32) {
    %c0_i32 = arith.constant 0 : i32
    %c0_i32_0 = arith.constant 0 : i32
    %c0_i32_1 = arith.constant 0 : i32
    return %c0_i32, %c0_i32_0 : i32, i32
  }
  func.func @transform_7(%arg0: i32) -> (i32, i32) {
    %c0_i32 = arith.constant 0 : i32
    %c0_i32_0 = arith.constant 0 : i32
    %c0_i32_1 = arith.constant 0 : i32
    return %c0_i32, %c0_i32_0 : i32, i32
  }
  func.func @transform_8(%arg0: i32) -> (i32, i32) {
    %c0_i32 = arith.constant 0 : i32
    %c0_i32_0 = arith.constant 0 : i32
    %c0_i32_1 = arith.constant 0 : i32
    return %c0_i32, %c0_i32_0 : i32, i32
  }
  func.func @transform_9(%arg0: i32) -> (i32, i32) {
    %c0_i32 = arith.constant 0 : i32
    %c0_i32_0 = arith.constant 0 : i32
    %c0_i32_1 = arith.constant 0 : i32
    return %c0_i32, %c0_i32_0 : i32, i32
  }
  func.func @transform_10(%arg0: i32) -> (i32, i32) {
    %c0_i32 = arith.constant 0 : i32
    %c0_i32_0 = arith.constant 0 : i32
    %c0_i32_1 = arith.constant 0 : i32
    return %c0_i32, %c0_i32_0 : i32, i32
  }
  func.func @transform_11(%arg0: i32) -> (i32, i32, i32) {
    %c0_i32 = arith.constant 0 : i32
    %c0_i32_0 = arith.constant 0 : i32
    %c0_i32_1 = arith.constant 0 : i32
    return %arg0, %c0_i32, %c0_i32_0 : i32, i32, i32
  }
}

</mosaic_0001>

<bundles_post_ra>
// kernel: tpu_custom_call.1
= control target key start
LH: loop header
LB: loop body
LE: loop exit
PB: predicated region body
PF: predicated region fallthrough
CT: control target
= control target key end

     0   :  { %s12785_s0 = inlined_call_operand.hbm [shape: f32[4,16,512], index: 0, kind: input, shape index: {}]   ;;  %s12786_s1 = inlined_call_operand.hbm [shape: bf16[3,512,512], index: 1, kind: input, shape index: {}]   ;;  %s12787_s2 = inlined_call_operand.hbm [shape: bf16[3,512,512], index: 2, kind: input, shape index: {}]   ;;  %s12788_s3 = inlined_call_operand.hbm [shape: f32[1,512], index: 3, kind: input, shape index: {}]   ;;  %s12789_s4 = inlined_call_operand.hbm [shape: f32[1,512], index: 4, kind: input, shape index: {}]   ;;  %s12790_s5 = inlined_call_operand.hbm [shape: f32[1,512], index: 5, kind: input, shape index: {}]   ;;  %s12791_s6 = inlined_call_operand.hbm [shape: f32[1,512], index: 6, kind: input, shape index: {}]   ;;  %s12792_s7 = inlined_call_operand.vmem [shape: f32[32,16], index: 7, kind: input, shape index: {}]   ;;  %s12793_s8 = inlined_call_operand.hbm [shape: f32[1,16], index: 8, kind: input, shape index: {}]   ;;  %s12794_s9 = inlined_call_operand.hbm [shape: f32[16,32], index: 9, kind: input, shape index: {}]   ;;  %s12795_s10 = inlined_call_operand.hbm [shape: f32[1,32], index: 10, kind: input, shape index: {}]   ;;  %s12796_s11 = inlined_call_operand.hbm [shape: f32[4,16,512], index: 11, kind: output, shape index: {}]  }
   0x1   :  { %12799 = sst [smem:[#allocation28_spill]] %s12786_s1 }
   0x2   :  { %12800 = sst [smem:[#allocation29_spill]] %s12787_s2 }
   0x3   :  { %12801 = sst [smem:[#allocation30_spill]] %s12788_s3 }
   0x4   :  { %12802 = sst [smem:[#allocation31_spill]] %s12789_s4 }
   0x5   :  { %12803 = sst [smem:[#allocation32_spill]] %s12790_s5 }
   0x6   :  { %12804 = sst [smem:[#allocation33_spill]] %s12796_s11 }
   0x7   :  { %16 = vsyncpa [#allocation4], 0 }
   0x8   :  { %18 = vsyncpa [#allocation4 + $0x1], 0 }
   0x9   :  { %19 = vsyncpa [#allocation7], 0 }
   0xa   :  { %20 = vsyncpa [#allocation10], 0 }
   0xb   :  { %21 = vsyncpa [#allocation13], 0 }
   0xc   :  { %22 = vsyncpa [#allocation16], 0 }
   0xd   :  { %23 = vsyncpa [#allocation19], 0 }
   0xe   :  { %24 = vsyncpa [#allocation5], 0 }
   0xf   :  { %26 = vsyncpa [#allocation5 + $0x1], 0  ;;  %s11828_s17 = smov 0   ;;  %s11830_s18 = smov 0  }
  0x10   :  { %s11832_s19 = smov 0   ;;  %s11834_s20 = smov 0  }
  0x11 LB: > { %s12805_s1 = sld [smem:[#allocation28_spill]]  ;;  %s11852_s24 = sadd.s32 4294967295, %s11747_s20   ;;  %s11747_s20 = sphi %s11834_s20, %s12834_s20   ;;  %s11743_s19 = sphi %s11832_s19, %s12833_s19   ;;  %s11739_s18 = sphi %s11830_s18, %s12832_s18   ;;  %s11735_s17 = sphi %s11828_s17, %s12831_s17  }
  0x12   : > { %p7325_p0 = scmp.ge.s32.totalorder %s11747_s20, 1  ;;  %p53_p1 = scmp.eq.s32.totalorder %s11852_s24, 0 }
  0x13   : > { %p299_p2 = scmp.lt.s32.totalorder %s11747_s20, 5  ;;  %s11749_s26 = smov [#allocation6]  }
  0x14   : > { %s312_s27 = sshll.u32 %s11749_s26, 4  ;;  %s12807_s3 = sld [smem:[#allocation30_spill]]  ;;  %s313_s27 = int_to_ptr.vmem [resolvable:$true] %s312_s27 }
  0x15   : > { %p11857_p3 = pnand %p7325_p0, %p299_p2  ;;  %s12809_s5 = sld [smem:[#allocation32_spill]] }
  0x16   : > { %s11750_s16 = smov [#allocation9]   ;;  %s11751_s22 = smov 256  }
  0x17   : > { %s310_s23 = sshll.u32 %s12805_s1, 4  ;;  %p11241_p4 = pneg %p11857_p3  ;;  %s311_s23 = int_to_ptr.hbm [resolvable:$true] %s310_s23 }
  0x18   : > { %s341_s21 = sshll.u32 %s11750_s16, 4  ;;  %s11752_s26 = smov 16   ;;  %s342_s21 = int_to_ptr.vmem [resolvable:$true] %s341_s21 }
  0x19   : > { %p11868_p5 = pnand %p11241_p4, %p53_p1  ;;  %s390_s1 = sshll.u32 %s12793_s8, 4  ;;  %s391_s1 = int_to_ptr.hbm [resolvable:$true] %s390_s1 }
  0x1a   : > { %s339_s30 = sshll.u32 %s12807_s3, 4  ;;  %s11753_s3 = smov [#allocation12]   ;;  %s340_s30 = int_to_ptr.hbm [resolvable:$true] %s339_s30 }
  0x1b   : > { %s363_s15 = sshll.u32 %s12809_s5, 4  ;;  %s365_s11 = sshll.u32 %s11753_s3, 4  ;;  %s364_s15 = int_to_ptr.hbm [resolvable:$true] %s363_s15  ;;  %s366_s11 = int_to_ptr.vmem [resolvable:$true] %s365_s11 }
  0x1c   : > { %11244 = dma.hbm_to_vmem [thread:$0]  (!%p11868_p5), %s311_s23, 49152, %s313_s27, [#allocation7], %s11751_s22, %s11751_s22, %s11752_s26  }
  0x1d   : > { %11250 = dma.hbm_to_vmem [thread:$0]  (!%p11868_p5), %s340_s30, 64, %s342_s21, [#allocation10]  }
  0x1e   : > { %11256 = dma.hbm_to_vmem [thread:$0]  (!%p11868_p5), %s364_s15, 64, %s366_s11, [#allocation13]  }
  0x1f   : > { %s11754_s13 = smov [#allocation15]   ;;  %s12810_s2 = sld [smem:[#allocation29_spill]] }
  0x20   : > { %s392_s14 = sshll.u32 %s11754_s13, 4  ;;  %s12811_s4 = sld [smem:[#allocation31_spill]]  ;;  %s393_s14 = int_to_ptr.vmem [resolvable:$true] %s392_s14 }
  0x21   : > { %11262 = dma.hbm_to_vmem [thread:$0]  (!%p11868_p5), %s391_s1, 16, %s393_s14, [#allocation16]  }
  0x22   : > { %s11755_s3 = smov [#allocation8]   ;;  %s11756_s11 = smov [#allocation11]  }
  0x23   : > { %s326_s28 = sshll.u32 %s11755_s3, 4  ;;  %s353_s15 = sshll.u32 %s11756_s11, 4  ;;  %s327_s28 = int_to_ptr.vmem [resolvable:$true] %s326_s28  ;;  %s354_s15 = int_to_ptr.vmem [resolvable:$true] %s353_s15 }
  0x24   : > { %s375_s13 = sshll.u32 %s12791_s6, 4  ;;  %s401_s16 = sshll.u32 %s12794_s9, 4  ;;  %s376_s13 = int_to_ptr.hbm [resolvable:$true] %s375_s13  ;;  %s402_s16 = int_to_ptr.hbm [resolvable:$true] %s401_s16 }
  0x25   : > { %s324_s23 = sshll.u32 %s12810_s2, 4  ;;  %s11757_s27 = smov [#allocation14]   ;;  %s325_s23 = int_to_ptr.hbm [resolvable:$true] %s324_s23 }
  0x26   : > { %s351_s21 = sshll.u32 %s12811_s4, 4  ;;  %s377_s30 = sshll.u32 %s11757_s27, 4  ;;  %s352_s21 = int_to_ptr.hbm [resolvable:$true] %s351_s21  ;;  %s378_s30 = int_to_ptr.vmem [resolvable:$true] %s377_s30 }
  0x27   : > { %11247 = dma.hbm_to_vmem [thread:$0]  (!%p11868_p5), %s325_s23, 49152, %s327_s28, [#allocation7], %s11751_s22, %s11751_s22, %s11752_s26  }
  0x28   : > { %11253 = dma.hbm_to_vmem [thread:$0]  (!%p11868_p5), %s352_s21, 64, %s354_s15, [#allocation10]  }
  0x29   : > { %11259 = dma.hbm_to_vmem [thread:$0]  (!%p11868_p5), %s376_s13, 64, %s378_s30, [#allocation13]  }
  0x2a   : > { %s11758_s22 = smov [#allocation17]   ;;  %s11759_s23 = smov 128  }
  0x2b   : > { %s403_s26 = sshll.u32 %s11758_s22, 4  ;;  %s11760_s21 = smov 8   ;;  %s404_s26 = int_to_ptr.vmem [resolvable:$true] %s403_s26 }
  0x2c   : > { %11265 = dma.hbm_to_vmem [thread:$0]  (!%p11868_p5), %s402_s16, 256, %s404_s26, [#allocation16], %s11759_s23, %s11759_s23, %s11760_s21  }
  0x2d   : > { %s416_s11 = sshll.u32 %s12795_s10, 4  ;;  %s11761_s15 = smov [#allocation18]   ;;  %s417_s11 = int_to_ptr.hbm [resolvable:$true] %s416_s11 }
  0x2e   : > { %s418_s5 = sshll.u32 %s11761_s15, 4  ;;  %s7324_s29 = sadd.s32 4294967294, %s11747_s20   ;;  %s419_s5 = int_to_ptr.vmem [resolvable:$true] %s418_s5 }
  0x2f   : > { %11268 = dma.hbm_to_vmem [thread:$0]  (!%p11868_p5), %s417_s11, 16, %s419_s5, [#allocation19]  }
  0x30   : > { %s11913_s13 = sadd.s32 1, %s11747_s20   ;;  %s39_s1 = sadd.s32 1, %s11743_s19 }
  0x31   : > { %s36_s14 = ssub.s32 %s11747_s20, %s11913_s13  ;;  %p46_p6 = scmp.ne.s32.totalorder %s11743_s19, %s11739_s18 }
  0x32   : > { %p37_p7 = scmp.eq.s32.totalorder %s36_s14, 0  ;;  %p47_p8 = scmp.eq.s32.totalorder %s11747_s20, 0 }
  0x33   : > { %p52_p9 = scmp.ne.s32.totalorder %s11739_s18, %s11735_s17  ;;  %p286_p10 = scmp.eq.s32.totalorder %s11852_s24, 3 }
  0x34   : > { %s11925_s16 = scalar_select %p37_p7, %s11743_s19, %s39_s1  }
  0x35   : > { %p11927_p11 = por %p47_p8, %p46_p6  ;;  %p11933_p12 = por %p53_p1, %p52_p9 }
  0x36   : > { %p11937_p13 = por %p286_p10, %p46_p6  ;;  %p292_p0 = scmp.eq.s32.totalorder %s7324_s29, 3 }
  0x37   : > { %p11286_p2 = scmp.lt.s32.totalorder %s11747_s20, 4  ;;  %s429_s22 = sand.u32 1, %s11743_s19  }
  0x38   : > { %p11943_p4 = por %p292_p0, %p52_p9  ;;  %s7336_s23 = sshll.u32 %s429_s22, 6 }
  0x39   : > { %s10431_s21 = sshll.u32 %s11747_s20, 6  ;;  %s433_s5 = scalar_lea.vmem [#allocation3], %s7336_s23 }
  0x3a   : > { %s438_s11 = scalar_lea.hbm %s12785_s0, %s10431_s21  ;;  %s441_s1 = sshll.u32 %s433_s5, 4  ;;  %s442_s1 = int_to_ptr.vmem [resolvable:$true] %s441_s1 }
  0x3b   : > { %s439_s15 = sshll.u32 %s438_s11, 4  ;;  %p11953_p5 = pnand %p11286_p2, %p11927_p11  ;;  %s440_s15 = int_to_ptr.hbm [resolvable:$true] %s439_s15 }
  0x3c   : > { %s430_s14 = scalar_lea.sflag [#allocation4], %s429_s22  ;;  %s11631_s2 = sshra.s32 %s440_s15, 4  ;;  %s11632_s2 = int_to_ptr.hbm [resolvable:$true] %s11631_s2 }
  0x3d   : > { %s11633_s4 = scalar_lea.hbm %s11632_s2, 64  ;;  %p11635_p7 = pneg %p11953_p5 }
  0x3e   : > { %p11634_p6 = scmp.ne.s32.totalorder %s11632_s2, %s11633_s4  ;;  %s11638_s3 = scalar_lea.hbm %s12785_s0, 256 }
  0x3f   : > { %p11639_p10 = scmp.lt.s32.totalorder %s11632_s2, %s12785_s0  ;;  %p11640_p11 = scmp.lt.s32.totalorder %s11638_s3, %s11633_s4 }
  0x40   : > { %p11636_p8 = pnand %p11635_p7, %p11634_p6 }
  0x41   : > { %p11641_p0 = por %p11640_p11, %p11639_p10 }
  0x42   : > { %p11637_p9 = pneg %p11636_p8 }
  0x44   : > { %p11642_p2 = pnand %p11641_p0, %p11637_p9 }
  0x46   : > { %11645 = shalt.err (!%p11642_p2)
}
  0x47   : > { %s11762_s22 = smov 512   ;;  %s11763_s11 = smov 32  }
  0x48   : > { %11272 = dma.hbm_to_vmem [thread:$0]  (!%p11953_p5), %s440_s15, 1024, %s442_s1, %s430_s14, %s11762_s22, %s11762_s22, %s11763_s11  }
  0x49   : > { %453 = sbr.rel (%p11857_p3) target bundleno = 1816 (0x718), region = 64  ;;  %s11970_s5 = sand.u32 (!%p11857_p3), 1, %s11739_s18  }
  0x4a   : > { %s7340_s2 = sshll.u32 (!%p11857_p3), %s11970_s5, 6  ;;  %s456_s4 = scalar_lea.sflag (!%p11857_p3), [#allocation4], %s11970_s5 }
  0x4b   : > { %s11976_s21 = scalar_lea.vmem (!%p11857_p3), [#allocation3], %s7340_s2 }
  0x4e   : > { %11706 = dma.done.wait (%p11933_p12), %s456_s4, 1024  }
  0x4f   : > { %11708 = vsyncadd (%p11933_p12), %s456_s4, 4294966272 }
  0x50   : > { %11710 = dma.done.wait (%p53_p1), [#allocation7], 98304  }
  0x51   : > { %11712 = vsyncadd (%p53_p1), [#allocation7], 4294868992 }
  0x52   : > { %11714 = dma.done.wait (%p53_p1), [#allocation10], 128  }
  0x53   : > { %11716 = vsyncadd (%p53_p1), [#allocation10], 4294967168 }
  0x54   : > { %11718 = dma.done.wait (%p53_p1), [#allocation13], 128  }
  0x55   : > { %11720 = vsyncadd (%p53_p1), [#allocation13], 4294967168 }
  0x56   : > { %11722 = dma.done.wait (%p53_p1), [#allocation16], 272  }
  0x57   : > { %11724 = vsyncadd (%p53_p1), [#allocation16], 4294967024 }
  0x58   : > { %11726 = dma.done.wait (%p53_p1), [#allocation19], 16  }
  0x59   : > { %11728 = vsyncadd (%p53_p1), [#allocation19], 4294967280  ;;  %v7465_v0 = vld [vmem:[#allocation6 + $0x4e0] sm:$0xf]  ;;  %v10590_v1 = vld [vmem:[#allocation6 + $0x4ec] sm:$0xf0] }
  0x5a   : > { %v7593_v2 = vld [vmem:[#allocation6 + $0x5e0] sm:$0xf]  ;;  %v7466_v3 = vor.u32 %v10590_v1, %v7465_v0  ;;  %v10622_v4 = vld [vmem:[#allocation6 + $0x5ec] sm:$0xf0]  ;;  %vm545_vm0 = vcmask 1040384   ;;  %vm548_vm1 = vcmask 1044484  }
  0x5b   : > { %v7721_v5 = vld [vmem:[#allocation6 + $0x6e0] sm:$0xf]  ;;  %v10654_v6 = vld [vmem:[#allocation6 + $0x6ec] sm:$0xf0]  ;;  %v7594_v7 = vor.u32 %v10622_v4, %v7593_v2  ;;  %vm546_vm2 = vsmask.f32 256 }
  0x5c   : > { %v7722_v8 = vor.u32 %v10654_v6, %v7721_v5  ;;  %v7849_v9 = vld [vmem:[#allocation6 + $0x7e0] sm:$0xf]  ;;  %v10686_v10 = vld [vmem:[#allocation6 + $0x7ec] sm:$0xf0]  ;;  %1624 = vmatpush.bf16.msra.mxu0 %v7466_v3  ;;  %vm549_vm3 = vsmask.f32 4352  ;;  %vm547_vm4 = vmand %vm545_vm0, %vm546_vm2 }
  0x5d   : > { %v7449_v11 = vld [vmem:[#allocation6 + $0x4c0] sm:$0xf]  ;;  %v7850_v12 = vor.u32 %v10686_v10, %v7849_v9  ;;  %v10586_v13 = vld [vmem:[#allocation6 + $0x4cc] sm:$0xf0]  ;;  %1638 = vmatpush.bf16.msra.mxu1 %v7594_v7  ;;  %vm558_vm5 = vsmask.f32 7938  ;;  %vm550_vm6 = vmand %vm548_vm1, %vm549_vm3 }
  0x5e   : > { %v7577_v14 = vld [vmem:[#allocation6 + $0x5c0] sm:$0xf]  ;;  %v10618_v15 = vld [vmem:[#allocation6 + $0x5cc] sm:$0xf0]  ;;  %1652 = vmatpush.bf16.msra.mxu2 %v7722_v8  ;;  %v7450_v16 = vor.u32 %v10586_v13, %v7449_v11  ;;  %vm560_vm7 = vsmask.f32 7954  ;;  %vm12028_vm8 = vmor %vm550_vm6, %vm547_vm4 }
  0x5f   : > { %v7578_v17 = vor.u32 %v10618_v15, %v7577_v14  ;;  %v7705_v18 = vld [vmem:[#allocation6 + $0x6c0] sm:$0xf]  ;;  %v10650_v19 = vld [vmem:[#allocation6 + $0x6cc] sm:$0xf0]  ;;  %1666 = vmatpush.bf16.msra.mxu3 %v7850_v12  ;;  %vm12050_vm9 = vmand %vm545_vm0, %vm558_vm5  ;;  %vm623_vm11 = vcmask 1043456   ;;  %vm625_vm13 = vcmask 1047556  }
  0x60   : > { %v7833_v20 = vld [vmem:[#allocation6 + $0x7c0] sm:$0xf]  ;;  %v7706_v21 = vor.u32 %v10650_v19, %v7705_v18  ;;  %v10682_v22 = vld [vmem:[#allocation6 + $0x7cc] sm:$0xf0]  ;;  %1625 = vmatpush.bf16.msra.mxu0 %v7450_v16  ;;  %vm12070_vm10 = vmand %vm548_vm1, %vm560_vm7  ;;  %vm581_vm14 = vsmask.f32 4368 }
  0x61   : > { %v7433_v23 = vld [vmem:[#allocation6 + $0x4a0] sm:$0xf]  ;;  %v10582_v24 = vld [vmem:[#allocation6 + $0x4ac] sm:$0xf0]  ;;  %v7834_v25 = vor.u32 %v10682_v22, %v7833_v20  ;;  %1639 = vmatpush.bf16.msra.mxu1 %v7578_v17  ;;  %vm562_vm12 = vmor %vm12070_vm10, %vm12050_vm9  ;;  %vm2857_vm4 = vcmask 1046528   ;;  %s11764_s25 = smov 64  }
  0x62   : > { %v7561_v26 = vld [vmem:[#allocation6 + $0x5a0] sm:$0xf]  ;;  %v10614_v27 = vld [vmem:[#allocation6 + $0x5ac] sm:$0xf0]  ;;  %v7434_v29 = vor.u32 %v10582_v24, %v7433_v23  ;;  %1653 = vmatpush.bf16.msra.mxu2 %v7706_v21  ;;  %vm12099_vm15 = vmand %vm623_vm11, %vm558_vm5  ;;  %s11765_s3 = smov 32   ;;  %vm7030_vm5 = vcmask 261120  }
  0x63   : > { %v7689_v28 = vld [vmem:[#allocation6 + $0x6a0] sm:$0xf]  ;;  %v10646_v30 = vld [vmem:[#allocation6 + $0x6ac] sm:$0xf0]  ;;  %v7562_v33 = vor.u32 %v10614_v27, %v7561_v26  ;;  %1667 = vmatpush.bf16.msra.mxu3 %v7834_v25  ;;  %vm626_vm0 = vmand %vm625_vm13, %vm560_vm7  ;;  %vm7058_vm6 = vcmask 130048   ;;  %s11766_s22 = smov 96  }
  0x64   : > { %v7817_v31 = vld [vmem:[#allocation6 + $0x7a0] sm:$0xf]  ;;  %v10678_v32 = vld [vmem:[#allocation6 + $0x7ac] sm:$0xf0]  ;;  %v7690_v34 = vor.u32 %v10646_v30, %v7689_v28  ;;  %1626 = vmatpush.bf16.msra.mxu0 %v7434_v29  ;;  %v10588_v28 = vld [vmem:[#allocation6 + $0x4e4] sm:$0xf] }
  0x65   : > { %v7417_v35 = vld [vmem:[#allocation6 + $0x480] sm:$0xf]  ;;  %v10578_v36 = vld [vmem:[#allocation6 + $0x48c] sm:$0xf0]  ;;  %v7818_v38 = vor.u32 %v10678_v32, %v7817_v31  ;;  %1640 = vmatpush.bf16.msra.mxu1 %v7562_v33  ;;  %v7467_v29 = vld [vmem:[#allocation6 + $0x4f0] sm:$0xf0] }
  0x66   : > { %v7545_v37 = vld [vmem:[#allocation6 + $0x580] sm:$0xf]  ;;  %v10610_v39 = vld [vmem:[#allocation6 + $0x58c] sm:$0xf0]  ;;  %v7418_v44 = vor.u32 %v10578_v36, %v7417_v35  ;;  %1654 = vmatpush.bf16.msra.mxu2 %v7690_v34  ;;  %v10620_v30 = vld [vmem:[#allocation6 + $0x5e4] sm:$0xf] }
  0x67   : > { %v7673_v40 = vld [vmem:[#allocation6 + $0x680] sm:$0xf]  ;;  %v10642_v41 = vld [vmem:[#allocation6 + $0x68c] sm:$0xf0]  ;;  %v7546_v45 = vor.u32 %v10610_v39, %v7545_v37  ;;  %1668 = vmatpush.bf16.msra.mxu3 %v7818_v38  ;;  %v7595_v32 = vld [vmem:[#allocation6 + $0x5f0] sm:$0xf0] }
  0x68   : > { %v7801_v42 = vld [vmem:[#allocation6 + $0x780] sm:$0xf]  ;;  %v10674_v43 = vld [vmem:[#allocation6 + $0x78c] sm:$0xf0]  ;;  %v7674_v46 = vor.u32 %v10642_v41, %v7673_v40  ;;  %1627 = vmatpush.bf16.msra.mxu0 %v7418_v44  ;;  %v10652_v33 = vld [vmem:[#allocation6 + $0x6e4] sm:$0xf]  ;;  %v7470_v40 = vor.u32 %v10588_v28, %v7467_v29  ;;  %v7598_v41 = vor.u32 %v10620_v30, %v7595_v32 }
  0x69   : > { %v7401_v47 = vld [vmem:[#allocation6 + $0x460] sm:$0xf]  ;;  %v10574_v48 = vld [vmem:[#allocation6 + $0x46c] sm:$0xf0]  ;;  %v7802_v50 = vor.u32 %v10674_v43, %v7801_v42  ;;  %1641 = vmatpush.bf16.msra.mxu1 %v7546_v45  ;;  %v7723_v34 = vld [vmem:[#allocation6 + $0x6f0] sm:$0xf0] }
  0x6a   : > { %v7529_v49 = vld [vmem:[#allocation6 + $0x560] sm:$0xf]  ;;  %v10606_v51 = vld [vmem:[#allocation6 + $0x56c] sm:$0xf0]  ;;  %v7402_v56 = vor.u32 %v10574_v48, %v7401_v47  ;;  %1655 = vmatpush.bf16.msra.mxu2 %v7674_v46  ;;  %v10684_v37 = vld [vmem:[#allocation6 + $0x7e4] sm:$0xf]  ;;  %v7726_v42 = vor.u32 %v10652_v33, %v7723_v34 }
  0x6b   : > { %v7657_v52 = vld [vmem:[#allocation6 + $0x660] sm:$0xf]  ;;  %v10638_v53 = vld [vmem:[#allocation6 + $0x66c] sm:$0xf0]  ;;  %v7530_v57 = vor.u32 %v10606_v51, %v7529_v49  ;;  %1669 = vmatpush.bf16.msra.mxu3 %v7802_v50  ;;  %v7851_v38 = vld [vmem:[#allocation6 + $0x7f0] sm:$0xf0] }
  0x6c   : > { %v7785_v54 = vld [vmem:[#allocation6 + $0x760] sm:$0xf]  ;;  %v10670_v55 = vld [vmem:[#allocation6 + $0x76c] sm:$0xf0]  ;;  %v7658_v58 = vor.u32 %v10638_v53, %v7657_v52  ;;  %1628 = vmatpush.bf16.msra.mxu0 %v7402_v56  ;;  %v10584_v43 = vld [vmem:[#allocation6 + $0x4c4] sm:$0xf]  ;;  %v7854_v46 = vor.u32 %v10684_v37, %v7851_v38 }
  0x6d   : > { %v7385_v59 = vld [vmem:[#allocation6 + $0x440] sm:$0xf]  ;;  %v10570_v60 = vld [vmem:[#allocation6 + $0x44c] sm:$0xf0]  ;;  %v7786_v62 = vor.u32 %v10670_v55, %v7785_v54  ;;  %1642 = vmatpush.bf16.msra.mxu1 %v7530_v57  ;;  %v7451_v44 = vld [vmem:[#allocation6 + $0x4d0] sm:$0xf0] }
  0x6e   : > { %v7513_v61 = vld [vmem:[#allocation6 + $0x540] sm:$0xf]  ;;  %v10602_v63 = vld [vmem:[#allocation6 + $0x54c] sm:$0xf0]  ;;  %v7386_v4 = vor.u32 %v10570_v60, %v7385_v59  ;;  %1656 = vmatpush.bf16.msra.mxu2 %v7658_v58  ;;  %v10616_v45 = vld [vmem:[#allocation6 + $0x5c4] sm:$0xf]  ;;  %v7454_v52 = vor.u32 %v10584_v43, %v7451_v44 }
  0x6f   : > { %v7641_v0 = vld [vmem:[#allocation6 + $0x640] sm:$0xf]  ;;  %v10634_v1 = vld [vmem:[#allocation6 + $0x64c] sm:$0xf0]  ;;  %v7514_v5 = vor.u32 %v10602_v63, %v7513_v61  ;;  %1670 = vmatpush.bf16.msra.mxu3 %v7786_v62  ;;  %v7579_v47 = vld [vmem:[#allocation6 + $0x5d0] sm:$0xf0] }
  0x70   : > { %v7769_v2 = vld [vmem:[#allocation6 + $0x740] sm:$0xf]  ;;  %v10666_v3 = vld [vmem:[#allocation6 + $0x74c] sm:$0xf0]  ;;  %v7642_v6 = vor.u32 %v10634_v1, %v7641_v0  ;;  %1629 = vmatpush.bf16.msra.mxu0 %v7386_v4  ;;  %v10648_v48 = vld [vmem:[#allocation6 + $0x6c4] sm:$0xf]  ;;  %v7582_v56 = vor.u32 %v10616_v45, %v7579_v47 }
  0x71   : > { %v7369_v7 = vld [vmem:[#allocation6 + $0x420] sm:$0xf]  ;;  %v10566_v8 = vld [vmem:[#allocation6 + $0x42c] sm:$0xf0]  ;;  %v7770_v10 = vor.u32 %v10666_v3, %v7769_v2  ;;  %1643 = vmatpush.bf16.msra.mxu1 %v7514_v5  ;;  %v7707_v49 = vld [vmem:[#allocation6 + $0x6d0] sm:$0xf0] }
  0x72   : > { %v7497_v9 = vld [vmem:[#allocation6 + $0x520] sm:$0xf]  ;;  %v10598_v11 = vld [vmem:[#allocation6 + $0x52c] sm:$0xf0]  ;;  %v7370_v16 = vor.u32 %v10566_v8, %v7369_v7  ;;  %1657 = vmatpush.bf16.msra.mxu2 %v7642_v6  ;;  %v10680_v50 = vld [vmem:[#allocation6 + $0x7c4] sm:$0xf]  ;;  %v7710_v57 = vor.u32 %v10648_v48, %v7707_v49 }
  0x73   : > { %v7625_v12 = vld [vmem:[#allocation6 + $0x620] sm:$0xf]  ;;  %v10630_v13 = vld [vmem:[#allocation6 + $0x62c] sm:$0xf0]  ;;  %v7498_v19 = vor.u32 %v10598_v11, %v7497_v9  ;;  %1671 = vmatpush.bf16.msra.mxu3 %v7770_v10  ;;  %v7835_v51 = vld [vmem:[#allocation6 + $0x7d0] sm:$0xf0] }
  0x74   : > { %v7753_v14 = vld [vmem:[#allocation6 + $0x720] sm:$0xf]  ;;  %v10662_v15 = vld [vmem:[#allocation6 + $0x72c] sm:$0xf0]  ;;  %v7626_v20 = vor.u32 %v10630_v13, %v7625_v12  ;;  %1630 = vmatpush.bf16.msra.mxu0 %v7370_v16  ;;  %v10580_v53 = vld [vmem:[#allocation6 + $0x4a4] sm:$0xf]  ;;  %v7838_v61 = vor.u32 %v10680_v50, %v7835_v51 }
  0x75   : > { %v7353_v17 = vld [vmem:[#allocation6 + $0x400] sm:$0xf]  ;;  %v10562_v18 = vld [vmem:[#allocation6 + $0x40c] sm:$0xf0]  ;;  %v7754_v24 = vor.u32 %v10662_v15, %v7753_v14  ;;  %1644 = vmatpush.bf16.msra.mxu1 %v7498_v19  ;;  %v7435_v54 = vld [vmem:[#allocation6 + $0x4b0] sm:$0xf0] }
  0x76   : > { %v7481_v21 = vld [vmem:[#allocation6 + $0x500] sm:$0xf]  ;;  %v10594_v22 = vld [vmem:[#allocation6 + $0x50c] sm:$0xf0]  ;;  %v7354_v31 = vor.u32 %v10562_v18, %v7353_v17  ;;  %1658 = vmatpush.bf16.msra.mxu2 %v7626_v20  ;;  %v10612_v55 = vld [vmem:[#allocation6 + $0x5a4] sm:$0xf]  ;;  %v7438_v4 = vor.u32 %v10580_v53, %v7435_v54 }
  0x77   : > { %v7609_v23 = vld [vmem:[#allocation6 + $0x600] sm:$0xf]  ;;  %v10626_v25 = vld [vmem:[#allocation6 + $0x60c] sm:$0xf0]  ;;  %v7482_v35 = vor.u32 %v10594_v22, %v7481_v21  ;;  %1672 = vmatpush.bf16.msra.mxu3 %v7754_v24  ;;  %v7563_v58 = vld [vmem:[#allocation6 + $0x5b0] sm:$0xf0] }
  0x78   : > { %v7737_v26 = vld [vmem:[#allocation6 + $0x700] sm:$0xf]  ;;  %v10658_v27 = vld [vmem:[#allocation6 + $0x70c] sm:$0xf0]  ;;  %v7610_v36 = vor.u32 %v10626_v25, %v7609_v23  ;;  %1631 = vmatpush.bf16.msra.mxu0 %v7354_v31  ;;  %v10644_v59 = vld [vmem:[#allocation6 + $0x6a4] sm:$0xf]  ;;  %v7566_v9 = vor.u32 %v10612_v55, %v7563_v58 }
  0x79   : > { %v7738_v39 = vor.u32 %v10658_v27, %v7737_v26  ;;  %1645 = vmatpush.bf16.msra.mxu1 %v7482_v35  ;;  %v7691_v60 = vld [vmem:[#allocation6 + $0x6b0] sm:$0xf0]  ;;  %v10676_v62 = vld [vmem:[#allocation6 + $0x7a4] sm:$0xf]  ;;  %v552_v11 = vld [vmem:[#allocation2 + $0x18] sm:$0x11] }
  0x7a   : > { %1659 = vmatpush.bf16.msra.mxu2 %v7610_v36  ;;  %v7819_v63 = vld [vmem:[#allocation6 + $0x7b0] sm:$0xf0]  ;;  %v12002_v0 = vld [vmem:[#allocation6 + $0x484] sm:$0xf]  ;;  %v7694_v10 = vor.u32 %v10644_v59, %v7691_v60  ;;  %v570_v20 = vld [vmem:[%s11976_s21 + $0x8] sm:$0xff]  ;;  %v553_v27 = vsel %vm12028_vm8, 0, %v552_v11 }
  0x7b   : > { %1673 = vmatpush.bf16.msra.mxu3 %v7738_v39  ;;  %v12004_v1 = vld [vmem:[#allocation6 + $0x490] sm:$0xf0]  ;;  %v12006_v2 = vld [vmem:[#allocation6 + $0x584] sm:$0xf]  ;;  %v7822_v13 = vor.u32 %v10676_v62, %v7819_v63  ;;  %v572_v30 = vld [vmem:[%s11976_s21 + $0x18] sm:$0xff]  ;;  %vm7112_vm11 = vcmask 523264  }
  0x7c   : > { %1680 = vmatpush.bf16.msrb.mxu0 %v7470_v40  ;;  %v12008_v3 = vld [vmem:[#allocation6 + $0x590] sm:$0xf0]  ;;  %v12010_v5 = vld [vmem:[#allocation6 + $0x684] sm:$0xf]  ;;  %v7422_v16 = vor.u32 %v12002_v0, %v12004_v1  ;;  %554 = vst [vmem:[#allocation2 + $0x18] sm:$0x11] %v553_v27  ;;  %vm12120_vm1 = vmor %vm546_vm2, %vm581_vm14 }
  0x7d   : > { %1694 = vmatpush.bf16.msrb.mxu1 %v7598_v41  ;;  %v12012_v6 = vld [vmem:[#allocation6 + $0x690] sm:$0xf0]  ;;  %v12014_v7 = vld [vmem:[#allocation6 + $0x784] sm:$0xf]  ;;  %v7550_v22 = vor.u32 %v12006_v2, %v12008_v3  ;;  %v576_v40 = vld [vmem:[%s11976_s21 + $0x38] sm:$0xff]  ;;  %s11200_s11 = sshll.u32 %s11852_s24, 6 }
  0x7e   : > { %1708 = vmatpush.bf16.msrb.mxu2 %v7726_v42  ;;  %v12016_v8 = vld [vmem:[#allocation6 + $0x790] sm:$0xf0]  ;;  %v569_v15 = vld [vmem:[%s11976_s21] sm:$0xff]  ;;  %v7678_v33 = vor.u32 %v12010_v5, %v12012_v6  ;;  %v574_v58 = vld [vmem:[%s11976_s21 + $0x28] sm:$0xff]  ;;  %vm931_vm2 = vsmask.f32 7424 }
  0x7f   : > { %1722 = vmatpush.bf16.msrb.mxu3 %v7854_v46  ;;  %v555_v12 = vld [vmem:[#allocation2 + $0x20] sm:$0x11]  ;;  %v12024_v17 = vld [vmem:[#allocation6 + $0x464] sm:$0xf]  ;;  %v577_v32 = vpack.c.bf16 %v570_v20, %v569_v15  ;;  %v7806_v34 = vor.u32 %v12014_v7, %v12016_v8  ;;  %vm12133_vm3 = vmor %vm626_vm0, %vm12099_vm15  ;;  %s12830_s12 = sld [smem:[#allocation33_spill]]  ;;  %s543_s1 = scalar_lea.vmem [#allocation20], %s7340_s2 }
  0x80   : > { %1681 = vmatpush.bf16.msrb.mxu0 %v7454_v52  ;;  %v566_v14 = vld [vmem:[#allocation2] sm:$0x11]  ;;  %v12036_v23 = vld [vmem:[#allocation6 + $0x564] sm:$0xf]  ;;  %v556_v28 = vsel %vm12028_vm8, 0, %v555_v12  ;;  %s7162_s24 = sshll.u32 %s543_s1, 4  ;;  %s7163_s24 = int_to_ptr.vmem [resolvable:$true] %s7162_s24 }
  0x81   : > { %1695 = vmatpush.bf16.msrb.mxu1 %v7582_v56  ;;  %v12026_v18 = vld [vmem:[#allocation6 + $0x470] sm:$0xf0]  ;;  %v12040_v25 = vld [vmem:[#allocation6 + $0x664] sm:$0xf]  ;;  %557 = vst [vmem:[#allocation2 + $0x20] sm:$0x11] %v556_v28 }
  0x82   : > { %1709 = vmatpush.bf16.msrb.mxu2 %v7710_v57  ;;  %v571_v21 = vld [vmem:[%s11976_s21 + $0x10] sm:$0xff]  ;;  %v12060_v35 = vld [vmem:[#allocation6 + $0x764] sm:$0xf]  ;;  %v584_v45 = vshrl.u32 %v577_v32, 16  ;;  %v587_v46 = vshll.u32 %v577_v32, 16  ;;  %v567_v49 = vsel %vm562_vm12, 0, %v566_v14  ;;  %v7406_v53 = vor.u32 %v12024_v17, %v12026_v18 }
  0x83   : > { %1723 = vmatpush.bf16.msrb.mxu3 %v7838_v61  ;;  %v12038_v24 = vld [vmem:[#allocation6 + $0x570] sm:$0xf0]  ;;  %v12064_v37 = vld [vmem:[#allocation6 + $0x444] sm:$0xf]  ;;  %v578_v41 = vpack.c.bf16 %v572_v30, %v571_v21  ;;  %568 = vst [vmem:[#allocation2] sm:$0x11] %v567_v49 }
  0x84   : > { %1682 = vmatpush.bf16.msrb.mxu0 %v7438_v4  ;;  %v12042_v26 = vld [vmem:[#allocation6 + $0x670] sm:$0xf0]  ;;  %v12075_v42 = vld [vmem:[#allocation6 + $0x544] sm:$0xf]  ;;  %v12095_v54 = vrot.slane %v584_v45, 7  ;;  %v7534_v59 = vor.u32 %v12036_v23, %v12038_v24  ;;  %v628_v21 = vld [vmem:[#allocation2 + $0x18] sm:$0xff] }
  0x85   : > { %v575_v31 = vld [vmem:[%s11976_s21 + $0x30] sm:$0xff]  ;;  %1696 = vmatpush.bf16.msrb.mxu1 %v7566_v9  ;;  %v12083_v47 = vld [vmem:[#allocation6 + $0x644] sm:$0xf]  ;;  %v591_v50 = vshrl.u32 %v578_v41, 16  ;;  %v594_v51 = vshll.u32 %v578_v41, 16  ;;  %v7662_v60 = vor.u32 %v12040_v25, %v12042_v26  ;;  %s7161_s15 = scalar_lea.hbm %s12830_s12, %s11200_s11  ;;  %s11681_s27 = scalar_lea.hbm %s12830_s12, 256 }
  0x86   : > { %1710 = vmatpush.bf16.msrb.mxu2 %v7694_v10  ;;  %v12062_v36 = vld [vmem:[#allocation6 + $0x770] sm:$0xf0]  ;;  %v580_v44 = vpack.c.bf16 %v576_v40, %v575_v31  ;;  %v573_v52 = vld [vmem:[%s11976_s21 + $0x20] sm:$0xff]  ;;  %v589_v4 = vor.u32 %v587_v46, %v12095_v54  ;;  %v563_v15 = vld [vmem:[#allocation2 + $0x8] sm:$0x11]  ;;  %s7164_s29 = sshll.u32 %s7161_s15, 4  ;;  %s7165_s29 = int_to_ptr.hbm [resolvable:$true] %s7164_s29 }
  0x87   : > { %v12066_v38 = vld [vmem:[#allocation6 + $0x450] sm:$0xf0]  ;;  %1724 = vmatpush.bf16.msrb.mxu3 %v7822_v13  ;;  %v12108_v61 = vld [vmem:[#allocation6 + $0x744] sm:$0xf]  ;;  %v593_v63 = vrot.slane %v591_v50, 7  ;;  %v579_v0 = vpack.c.bf16 %v574_v58, %v573_v52  ;;  %v7790_v1 = vor.u32 %v12060_v35, %v12062_v36  ;;  %v564_v23 = vsel %vm562_vm12, 0, %v563_v15 }
  0x88   : > { %v12077_v43 = vld [vmem:[#allocation6 + $0x550] sm:$0xf0]  ;;  %1683 = vmatpush.bf16.msrb.mxu0 %v7422_v16  ;;  %v608_v55 = vshrl.u32 %v580_v44, 16  ;;  %v611_v56 = vshll.u32 %v580_v44, 16  ;;  %v7390_v2 = vor.u32 %v12064_v37, %v12066_v38  ;;  %v12125_v6 = vld [vmem:[#allocation6 + $0x424] sm:$0xf]  ;;  %v629_v25 = vsel %vm12133_vm3, %v589_v4, %v628_v21 }
  0x89   : > { %v12085_v48 = vld [vmem:[#allocation6 + $0x650] sm:$0xf0]  ;;  %1697 = vmatpush.bf16.msrb.mxu1 %v7550_v22  ;;  %v7518_v8 = vor.u32 %v12075_v42, %v12077_v43  ;;  %v596_v9 = vor.u32 %v594_v51, %v593_v63  ;;  %v606_v10 = vrot.slane %v593_v63, 4  ;;  %v12137_v12 = vld [vmem:[#allocation6 + $0x524] sm:$0xf]  ;;  %v599_v16 = vshrl.u32 %v579_v0, 16 }
  0x8a   : > { %1711 = vmatpush.bf16.msrb.mxu2 %v7678_v33  ;;  %v12110_v62 = vld [vmem:[#allocation6 + $0x750] sm:$0xf0]  ;;  %v610_v5 = vrot.slane %v608_v55, 7  ;;  %v12141_v14 = vld [vmem:[#allocation6 + $0x624] sm:$0xf]  ;;  %v7646_v17 = vor.u32 %v12083_v47, %v12085_v48  ;;  %v602_v28 = vshll.u32 %v579_v0, 16  ;;  %v911_v52 = vunpack.c.l.b16 %v629_v25 }
  0x8b   : > { %1725 = vmatpush.bf16.msrb.mxu3 %v7806_v34  ;;  %v12127_v7 = vld [vmem:[#allocation6 + $0x430] sm:$0xf0]  ;;  %v7774_v24 = vor.u32 %v12108_v61, %v12110_v62  ;;  %565 = vst [vmem:[#allocation2 + $0x8] sm:$0x11] %v564_v23  ;;  %v601_v27 = vrot.slane %v599_v16, 7  ;;  %v597_v33 = vrot.slane %v12095_v54, 4 }
  0x8c   : > { %v12139_v13 = vld [vmem:[#allocation6 + $0x530] sm:$0xf0]  ;;  %1684 = vmatpush.bf16.msrb.mxu0 %v7406_v53  ;;  %v613_v18 = vor.u32 %v611_v56, %v610_v5  ;;  %v616_v20 = vrot.slane %v610_v5, 4  ;;  %630 = vst [vmem:[#allocation2 + $0x18] sm:$0xff] %v629_v25  ;;  %v7374_v31 = vor.u32 %v12125_v6, %v12127_v7  ;;  %v10660_v32 = vld [vmem:[#allocation6 + $0x724] sm:$0xf]  ;;  %v912_v53 = vunpack.c.h.b16 %v629_v25 }
  0x8d   : > { %v7627_v22 = vld [vmem:[#allocation6 + $0x630] sm:$0xf0]  ;;  %1698 = vmatpush.bf16.msrb.mxu1 %v7534_v59  ;;  %v7502_v41 = vor.u32 %v12137_v12, %v12139_v13  ;;  %v604_v43 = vor.u32 %v602_v28, %v601_v27  ;;  %v10560_v44 = vld [vmem:[#allocation6 + $0x404] sm:$0xf]  ;;  %v615_v48 = vrot.slane %v601_v27, 4  ;;  %vm7114_vm12 = vcmask 785408  }
  0x8e   : > { %1712 = vmatpush.bf16.msrb.mxu2 %v7662_v60  ;;  %v631_v26 = vld [vmem:[#allocation2 + $0x20] sm:$0xff]  ;;  %v12156_v30 = vsel %vm12120_vm1, %v606_v10, %v613_v18  ;;  %v7630_v42 = vor.u32 %v12141_v14, %v7627_v22  ;;  %v10592_v49 = vld [vmem:[#allocation6 + $0x504] sm:$0xf]  ;;  %v7729_v21 = vld [vmem:[#allocation6 + $0x6e8] sm:$0xf]  ;;  %s11675_s14 = sshra.s32 %s7165_s29, 4  ;;  %s11676_s14 = int_to_ptr.hbm [resolvable:$true] %s11675_s14 }
  0x8f   : > { %1726 = vmatpush.bf16.msrb.mxu3 %v7790_v1  ;;  %v632_v29 = vsel %vm12133_vm3, %v596_v9, %v631_v26  ;;  %v639_v34 = vld [vmem:[#allocation2] sm:$0x11]  ;;  %v917_v36 = vunpack.c.l.b16 %v12156_v30  ;;  %v918_v38 = vunpack.c.h.b16 %v12156_v30  ;;  %v12180_v51 = vsel %vm12120_vm1, %v597_v33, %v604_v43  ;;  %v10624_v55 = vld [vmem:[#allocation6 + $0x604] sm:$0xf]  ;;  %v7857_v25 = vld [vmem:[#allocation6 + $0x7e8] sm:$0xf]  ;;  %p11682_p5 = scmp.lt.s32.totalorder %s11676_s14, %s12830_s12 }
  0x90   : > { %633 = vst [vmem:[#allocation2 + $0x20] sm:$0xff] %v632_v29  ;;  %v913_v35 = vunpack.c.l.b16 %v632_v29  ;;  %v914_v37 = vunpack.c.h.b16 %v632_v29  ;;  %v7755_v39 = vld [vmem:[#allocation6 + $0x730] sm:$0xf0]  ;;  %1685 = vmatpush.bf16.msrb.mxu0 %v7390_v2  ;;  %v640_v40 = vsel %vm12028_vm8, %v616_v20, %v639_v34  ;;  %v10656_v58 = vld [vmem:[#allocation6 + $0x704] sm:$0xf]  ;;  %v915_v63 = vunpack.c.l.b16 %v12180_v51  ;;  %s11677_s2 = scalar_lea.hbm %s11676_s14, 64 }
  0x91   : > { %v7355_v45 = vld [vmem:[#allocation6 + $0x410] sm:$0xf0]  ;;  %1699 = vmatpush.bf16.msrb.mxu1 %v7518_v8  ;;  %641 = vst [vmem:[#allocation2] sm:$0x11] %v640_v40  ;;  %v7758_v50 = vor.u32 %v10660_v32, %v7755_v39  ;;  %v916_v0 = vunpack.c.h.b16 %v12180_v51  ;;  %v10687_v26 = vld [vmem:[#allocation6 + $0x7f4] sm:$0xf0]  ;;  %p11678_p1 = scmp.ne.s32.totalorder %s11676_s14, %s11677_s2  ;;  %p11683_p6 = scmp.lt.s32.totalorder %s11681_s27, %s11677_s2 }
  0x92   : > { %1713 = vmatpush.bf16.msrb.mxu2 %v7646_v17  ;;  %v12172_v46 = vpack.c.b16 %v917_v36, %v913_v35  ;;  %v12176_v47 = vpack.c.b16 %v918_v38, %v914_v37  ;;  %v7483_v54 = vld [vmem:[#allocation6 + $0x510] sm:$0xf0]  ;;  %v7358_v57 = vor.u32 %v10560_v44, %v7355_v45  ;;  %v636_v62 = vld [vmem:[#allocation2 + $0x8] sm:$0x11]  ;;  %v12190_v5 = vpack.c.b16 %v915_v63, %v911_v52  ;;  %v7473_v45 = vld [vmem:[#allocation6 + $0x4e8] sm:$0xf] }
  0x93   : > { %1727 = vmatpush.bf16.msrb.mxu3 %v7774_v24  ;;  %v7611_v56 = vld [vmem:[#allocation6 + $0x610] sm:$0xf0]  ;;  %v637_v1 = vsel %vm12028_vm8, %v615_v48, %v636_v62  ;;  %v7486_v2 = vor.u32 %v10592_v49, %v7483_v54  ;;  %v12194_v6 = vpack.c.b16 %v916_v0, %v912_v53  ;;  %v10655_v24 = vld [vmem:[#allocation6 + $0x6f4] sm:$0xf0]  ;;  %v7601_v49 = vld [vmem:[#allocation6 + $0x5e8] sm:$0xf]  ;;  %p11679_p3 = pnand %p11678_p1, %p11937_p13  ;;  %p11684_p7 = por %p11683_p6, %p11682_p5 }
  0x94   : > { %v7739_v59 = vld [vmem:[#allocation6 + $0x710] sm:$0xf0]  ;;  %v959_v60 = vshll.u32 %v12172_v46, 16  ;;  %v971_v61 = vshll.u32 %v12176_v47, 16  ;;  %1686 = vmatpush.bf16.msrb.mxu0 %v7374_v31  ;;  %v7614_v4 = vor.u32 %v10624_v55, %v7611_v56  ;;  %638 = vst [vmem:[#allocation2 + $0x8] sm:$0x11] %v637_v1 }
  0x95   : > { %1700 = vmatpush.bf16.msrb.mxu1 %v7502_v41  ;;  %v7742_v7 = vor.u32 %v10656_v58, %v7739_v59  ;;  %v957_v9 = vshrl.u32 %v12172_v46, 16  ;;  %v969_v12 = vshrl.u32 %v12176_v47, 16  ;;  %v935_v16 = vshll.u32 %v12190_v5, 16  ;;  %v10591_v48 = vld [vmem:[#allocation6 + $0x4f4] sm:$0xf0]  ;;  %p11680_p12 = pneg %p11679_p3 }
  0x96   : > { %1714 = vmatpush.bf16.msrb.mxu2 %v7630_v42  ;;  %v961_v10 = vrot.slane %v959_v60, 1  ;;  %v973_v13 = vrot.slane %v971_v61, 1  ;;  %v947_v17 = vshll.u32 %v12194_v6, 16  ;;  %v933_v31 = vshrl.u32 %v12190_v5, 16  ;;  %v10623_v53 = vld [vmem:[#allocation6 + $0x5f4] sm:$0xf0] }
  0x97   : > { %1728 = vmatpush.bf16.msrb.mxu3 %v7758_v50  ;;  %v945_v32 = vshrl.u32 %v12194_v6, 16  ;;  %v937_v34 = vrot.slane %v935_v16, 1  ;;  %v7730_v41 = vor.u32 %v10655_v24, %v7729_v21  ;;  %v7858_v42 = vor.u32 %v10687_v26, %v7857_v25  ;;  %v7713_v54 = vld [vmem:[#allocation6 + $0x6c8] sm:$0xf]  ;;  %v10651_v55 = vld [vmem:[#allocation6 + $0x6d4] sm:$0xf0]  ;;  %p11685_p8 = pnand %p11684_p7, %p11680_p12 }
  0x98   : > { %v775_v8 = vld [vmem:[#allocation2] sm:$0x11]  ;;  %1687 = vmatpush.bf16.msrb.mxu0 %v7358_v57  ;;  %v962_v22 = vor.u32 %v961_v10, %v957_v9  ;;  %v974_v23 = vor.u32 %v973_v13, %v969_v12  ;;  %v949_v37 = vrot.slane %v947_v17, 1  ;;  %v7841_v60 = vld [vmem:[#allocation6 + $0x7c8] sm:$0xf]  ;;  %v7714_v12 = vor.u32 %v10651_v55, %v7713_v54 }
  0x99   : > { %v921_v14 = vunpack.c.l.b16 %v775_v8  ;;  %v922_v15 = vunpack.c.h.b16 %v775_v8  ;;  %1701 = vmatpush.bf16.msrb.mxu1 %v7486_v2  ;;  %v938_v56 = vor.u32 %v937_v34, %v933_v31  ;;  %v10683_v61 = vld [vmem:[#allocation6 + $0x7d4] sm:$0xf0]  ;;  %v7474_v2 = vor.u32 %v10591_v48, %v7473_v45  ;;  %v7585_v9 = vld [vmem:[#allocation6 + $0x5c8] sm:$0xf]  ;;  %v10957_v11 = vld [vmem:[#allocation8 + $0x46c] sm:$0xf] }
  0x9a   : > { %1715 = vmatpush.bf16.msrb.mxu2 %v7614_v4  ;;  %v950_v58 = vor.u32 %v949_v37, %v945_v32  ;;  %v7602_v4 = vor.u32 %v10623_v53, %v7601_v49  ;;  %v10587_v8 = vld [vmem:[#allocation6 + $0x4d4] sm:$0xf0]  ;;  %v7842_v13 = vor.u32 %v10683_v61, %v7841_v60  ;;  %v7825_v21 = vld [vmem:[#allocation6 + $0x7a8] sm:$0xf] }
  0x9b   : > { %1729 = vmatpush.bf16.msrb.mxu3 %v7742_v7  ;;  %v12200_v18 = vpack.c.b16 %v921_v14, %v921_v14  ;;  %v12202_v20 = vpack.c.b16 %v922_v15, %v922_v15  ;;  %v774_v29 = vld [vmem:[#allocation2 + $0x8] sm:$0x11]  ;;  %v7457_v7 = vld [vmem:[#allocation6 + $0x4c8] sm:$0xf] }
  0x9c   : > { %v919_v33 = vunpack.c.l.b16 %v774_v29  ;;  %v920_v35 = vunpack.c.h.b16 %v774_v29  ;;  %v10619_v10 = vld [vmem:[#allocation6 + $0x5d4] sm:$0xf0]  ;;  %v7697_v14 = vld [vmem:[#allocation6 + $0x6a8] sm:$0xf] }
  0x9d   : > { %v964_v27 = vshll.u32 %v12200_v18, 16  ;;  %v976_v28 = vshll.u32 %v12202_v20, 16  ;;  %v10647_v17 = vld [vmem:[#allocation6 + $0x6b4] sm:$0xf0]  ;;  %v7586_v24 = vor.u32 %v10619_v10, %v7585_v9  ;;  %v7441_v25 = vld [vmem:[#allocation6 + $0x4a8] sm:$0xf] }
  0x9e   : > { %v12208_v43 = vpack.c.b16 %v919_v33, %v919_v33  ;;  %v12210_v44 = vpack.c.b16 %v920_v35, %v920_v35  ;;  %v10583_v26 = vld [vmem:[#allocation6 + $0x4b4] sm:$0xf0]  ;;  %v7698_v29 = vor.u32 %v10647_v17, %v7697_v14  ;;  %v7681_v32 = vld [vmem:[#allocation6 + $0x688] sm:$0xf] }
  0x9f   : > { %v966_v39 = vrot.slane %v964_v27, 1  ;;  %v978_v40 = vrot.slane %v976_v28, 1  ;;  %v7569_v27 = vld [vmem:[#allocation6 + $0x5a8] sm:$0xf]  ;;  %v10615_v28 = vld [vmem:[#allocation6 + $0x5b4] sm:$0xf0]  ;;  %v7442_v37 = vor.u32 %v10583_v26, %v7441_v25 }
  0xa0   : > { %v940_v57 = vshll.u32 %v12208_v43, 16  ;;  %v952_v59 = vshll.u32 %v12210_v44, 16  ;;  %v10643_v33 = vld [vmem:[#allocation6 + $0x694] sm:$0xf0]  ;;  %v7809_v34 = vld [vmem:[#allocation6 + $0x788] sm:$0xf] }
  0xa1   : > { %v12213_v50 = vsel %vm931_vm2, %v962_v22, %v966_v39  ;;  %v12216_v52 = vsel %vm931_vm2, %v974_v23, %v978_v40  ;;  %v10679_v22 = vld [vmem:[#allocation6 + $0x7b4] sm:$0xf0]  ;;  %v7458_v23 = vor.u32 %v10587_v8, %v7457_v7  ;;  %v7570_v39 = vor.u32 %v10615_v28, %v7569_v27  ;;  %v7425_v40 = vld [vmem:[#allocation6 + $0x488] sm:$0xf] }
  0xa2   : > { %1660 = vmatmul.bf16.vlgmr.msra.gmra.mxu2 %v12213_v50  ;;  %1674 = vmatmul.bf16.vlgmr.msra.gmra.mxu3 %v12216_v52  ;;  %v942_v62 = vrot.slane %v940_v57, 1  ;;  %v954_v1 = vrot.slane %v952_v59, 1  ;;  %v7826_v31 = vor.u32 %v10679_v22, %v7825_v21  ;;  %v10675_v35 = vld [vmem:[#allocation6 + $0x794] sm:$0xf0]  ;;  %v7682_v48 = vor.u32 %v10643_v33, %v7681_v32  ;;  %v7665_v53 = vld [vmem:[#allocation6 + $0x668] sm:$0xf] }
  0xa3   : > { %1764 = vmatpush.bf16.msra.mxu2 %v7730_v41  ;;  %1778 = vmatpush.bf16.msra.mxu3 %v7858_v42  ;;  %v10579_v41 = vld [vmem:[#allocation6 + $0x494] sm:$0xf0]  ;;  %v7553_v42 = vld [vmem:[#allocation6 + $0x588] sm:$0xf]  ;;  %v7810_v49 = vor.u32 %v10675_v35, %v7809_v34 }
  0xa4   : > { %v12223_v15 = vsel %vm931_vm2, %v938_v56, %v942_v62  ;;  %v12226_v16 = vsel %vm931_vm2, %v950_v58, %v954_v1  ;;  %v10611_v45 = vld [vmem:[#allocation6 + $0x594] sm:$0xf0]  ;;  %v7793_v55 = vld [vmem:[#allocation6 + $0x768] sm:$0xf]  ;;  %v7426_v57 = vor.u32 %v10579_v41, %v7425_v40 }
  0xa5   : > { %1632 = vmatmul.bf16.vlgmr.msra.gmra.mxu0 %v12223_v15  ;;  %1646 = vmatmul.bf16.vlgmr.msra.gmra.mxu1 %v12226_v16  ;;  %v10639_v54 = vld [vmem:[#allocation6 + $0x674] sm:$0xf0]  ;;  %v7554_v58 = vor.u32 %v10611_v45, %v7553_v42  ;;  %v7409_v59 = vld [vmem:[#allocation6 + $0x468] sm:$0xf]  ;;  %v10653_v45 = vld [vmem:[#allocation6 + $0x6ec] sm:$0xf] }
  0xa6   : > { %1736 = vmatpush.bf16.msra.mxu0 %v7474_v2  ;;  %1750 = vmatpush.bf16.msra.mxu1 %v7602_v4  ;;  %v10671_v56 = vld [vmem:[#allocation6 + $0x774] sm:$0xf0]  ;;  %v7537_v61 = vld [vmem:[#allocation6 + $0x568] sm:$0xf]  ;;  %v7666_v1 = vor.u32 %v10639_v54, %v7665_v53  ;;  %v7859_v53 = vld [vmem:[#allocation6 + $0x7f8] sm:$0xf0] }
  0xa7   : > { %1765 = vmatpush.bf16.msra.mxu2 %v7714_v12  ;;  %1779 = vmatpush.bf16.msra.mxu3 %v7842_v13  ;;  %v10575_v60 = vld [vmem:[#allocation6 + $0x474] sm:$0xf0]  ;;  %v7794_v2 = vor.u32 %v10671_v56, %v7793_v55  ;;  %v7649_v4 = vld [vmem:[#allocation6 + $0x648] sm:$0xf] }
  0xa8   : > { %v10607_v62 = vld [vmem:[#allocation6 + $0x574] sm:$0xf0]  ;;  %v7777_v8 = vld [vmem:[#allocation6 + $0x748] sm:$0xf]  ;;  %v7410_v10 = vor.u32 %v10575_v60, %v7409_v59 }
  0xa9   : > { %v10635_v7 = vld [vmem:[#allocation6 + $0x654] sm:$0xf0]  ;;  %v7538_v12 = vor.u32 %v10607_v62, %v7537_v61  ;;  %v7393_v13 = vld [vmem:[#allocation6 + $0x448] sm:$0xf]  ;;  %v10589_v62 = vld [vmem:[#allocation6 + $0x4ec] sm:$0xf] }
  0xaa   : > { %1737 = vmatpush.bf16.msra.mxu0 %v7458_v23  ;;  %1751 = vmatpush.bf16.msra.mxu1 %v7586_v24  ;;  %v10667_v9 = vld [vmem:[#allocation6 + $0x754] sm:$0xf0]  ;;  %v7521_v17 = vld [vmem:[#allocation6 + $0x548] sm:$0xf]  ;;  %v7650_v22 = vor.u32 %v10635_v7, %v7649_v4  ;;  %v7603_v4 = vld [vmem:[#allocation6 + $0x5f8] sm:$0xf0] }
  0xab   : > { %1766 = vmatpush.bf16.msra.mxu2 %v7698_v29  ;;  %1780 = vmatpush.bf16.msra.mxu3 %v7826_v31  ;;  %v10571_v14 = vld [vmem:[#allocation6 + $0x454] sm:$0xf0]  ;;  %v7778_v23 = vor.u32 %v10667_v9, %v7777_v8  ;;  %v7633_v24 = vld [vmem:[#allocation6 + $0x628] sm:$0xf]  ;;  %v10649_v9 = vld [vmem:[#allocation6 + $0x6cc] sm:$0xf] }
  0xac   : > { %v10603_v21 = vld [vmem:[#allocation6 + $0x554] sm:$0xf0]  ;;  %v7761_v26 = vld [vmem:[#allocation6 + $0x728] sm:$0xf]  ;;  %v7394_v28 = vor.u32 %v10571_v14, %v7393_v13  ;;  %v7843_v13 = vld [vmem:[#allocation6 + $0x7d8] sm:$0xf0] }
  0xad   : > { %v10631_v25 = vld [vmem:[#allocation6 + $0x634] sm:$0xf0]  ;;  %v7522_v29 = vor.u32 %v10603_v21, %v7521_v17  ;;  %v7377_v31 = vld [vmem:[#allocation6 + $0x428] sm:$0xf] }
  0xae   : > { %1738 = vmatpush.bf16.msra.mxu0 %v7442_v37  ;;  %1752 = vmatpush.bf16.msra.mxu1 %v7570_v39  ;;  %v10663_v27 = vld [vmem:[#allocation6 + $0x734] sm:$0xf0]  ;;  %v7505_v33 = vld [vmem:[#allocation6 + $0x528] sm:$0xf]  ;;  %v7634_v35 = vor.u32 %v10631_v25, %v7633_v24  ;;  %v7459_v24 = vld [vmem:[#allocation6 + $0x4d8] sm:$0xf0] }
  0xaf   : > { %1767 = vmatpush.bf16.msra.mxu2 %v7682_v48  ;;  %1781 = vmatpush.bf16.msra.mxu3 %v7810_v49  ;;  %v10567_v32 = vld [vmem:[#allocation6 + $0x434] sm:$0xf0]  ;;  %v7762_v37 = vor.u32 %v10663_v27, %v7761_v26  ;;  %v7617_v39 = vld [vmem:[#allocation6 + $0x608] sm:$0xf]  ;;  %v7731_v48 = vld [vmem:[#allocation6 + $0x6f8] sm:$0xf0] }
  0xb0   : > { %v10599_v34 = vld [vmem:[#allocation6 + $0x534] sm:$0xf0]  ;;  %v7745_v41 = vld [vmem:[#allocation6 + $0x708] sm:$0xf]  ;;  %v10685_v49 = vld [vmem:[#allocation6 + $0x7ec] sm:$0xf]  ;;  %v7378_v54 = vor.u32 %v10567_v32, %v7377_v31  ;;  %v7734_v7 = vor.u32 %v10653_v45, %v7731_v48 }
  0xb1   : > { %v10627_v40 = vld [vmem:[#allocation6 + $0x614] sm:$0xf0]  ;;  %v7506_v55 = vor.u32 %v10599_v34, %v7505_v33  ;;  %v7361_v56 = vld [vmem:[#allocation6 + $0x408] sm:$0xf]  ;;  %v7862_v8 = vor.u32 %v10685_v49, %v7859_v53  ;;  %v10617_v25 = vld [vmem:[#allocation6 + $0x5cc] sm:$0xf] }
  0xb2   : > { %1716 = vmatmul.bf16.vlgmr.msrb.gmra.mxu2 %v12213_v50  ;;  %1730 = vmatmul.bf16.vlgmr.msrb.gmra.mxu3 %v12216_v52  ;;  %v10659_v42 = vld [vmem:[#allocation6 + $0x714] sm:$0xf0]  ;;  %v7618_v60 = vor.u32 %v10627_v40, %v7617_v39  ;;  %v7587_v26 = vld [vmem:[#allocation6 + $0x5d8] sm:$0xf0]  ;;  %v10677_v32 = vld [vmem:[#allocation6 + $0x7ac] sm:$0xf] }
  0xb3   : > { %1739 = vmatpush.bf16.msra.mxu0 %v7426_v57  ;;  %1753 = vmatpush.bf16.msra.mxu1 %v7554_v58  ;;  %v10563_v57 = vld [vmem:[#allocation6 + $0x414] sm:$0xf0]  ;;  %v7489_v58 = vld [vmem:[#allocation6 + $0x508] sm:$0xf]  ;;  %v7746_v61 = vor.u32 %v10659_v42, %v7745_v41  ;;  %v7699_v31 = vld [vmem:[#allocation6 + $0x6b8] sm:$0xf0] }
  0xb4   : > { %1768 = vmatpush.bf16.msra.mxu2 %v7666_v1  ;;  %1782 = vmatpush.bf16.msra.mxu3 %v7794_v2  ;;  %v10595_v59 = vld [vmem:[#allocation6 + $0x514] sm:$0xf0]  ;;  %v7475_v1 = vld [vmem:[#allocation6 + $0x4f8] sm:$0xf0]  ;;  %v10621_v2 = vld [vmem:[#allocation6 + $0x5ec] sm:$0xf]  ;;  %v7362_v14 = vor.u32 %v10563_v57, %v7361_v56 }
  0xb5   : > { %1688 = vmatmul.bf16.vlgmr.msrb.gmra.mxu0 %v12223_v15  ;;  %1702 = vmatmul.bf16.vlgmr.msrb.gmra.mxu1 %v12226_v16  ;;  %v7490_v17 = vor.u32 %v10595_v59, %v7489_v58  ;;  %v7478_v21 = vor.u32 %v10589_v62, %v7475_v1  ;;  %v7827_v33 = vld [vmem:[#allocation6 + $0x7b8] sm:$0xf0]  ;;  %v10613_v40 = vld [vmem:[#allocation6 + $0x5ac] sm:$0xf] }
  0xb6   : > { %v7443_v39 = vld [vmem:[#allocation6 + $0x4b8] sm:$0xf0]  ;;  %v7830_v45 = vor.u32 %v10677_v32, %v7827_v33  ;;  %v10641_v48 = vld [vmem:[#allocation6 + $0x68c] sm:$0xf] }
  0xb7   : > { %1740 = vmatpush.bf16.msra.mxu0 %v7410_v10  ;;  %1754 = vmatpush.bf16.msra.mxu1 %v7538_v12  ;;  %v7715_v10 = vld [vmem:[#allocation6 + $0x6d8] sm:$0xf0]  ;;  %v10681_v12 = vld [vmem:[#allocation6 + $0x7cc] sm:$0xf] }
  0xb8   : > { %1769 = vmatpush.bf16.msra.mxu2 %v7650_v22  ;;  %1783 = vmatpush.bf16.msra.mxu3 %v7778_v23  ;;  %v7606_v22 = vor.u32 %v10621_v2, %v7603_v4  ;;  %v10585_v23 = vld [vmem:[#allocation6 + $0x4cc] sm:$0xf]  ;;  %v7718_v27 = vor.u32 %v10649_v9, %v7715_v10  ;;  %v7571_v41 = vld [vmem:[#allocation6 + $0x5b8] sm:$0xf0] }
  0xb9   : > { %v7462_v34 = vor.u32 %v10585_v23, %v7459_v24  ;;  %v7683_v49 = vld [vmem:[#allocation6 + $0x698] sm:$0xf0]  ;;  %v10673_v53 = vld [vmem:[#allocation6 + $0x78c] sm:$0xf]  ;;  %v7574_v56 = vor.u32 %v10613_v40, %v7571_v41 }
  0xba   : > { %v10577_v57 = vld [vmem:[#allocation6 + $0x48c] sm:$0xf]  ;;  %v7427_v58 = vld [vmem:[#allocation6 + $0x498] sm:$0xf0] }
  0xbb   : > { %1741 = vmatpush.bf16.msra.mxu0 %v7394_v28  ;;  %1755 = vmatpush.bf16.msra.mxu1 %v7522_v29  ;;  %v7846_v28 = vor.u32 %v10681_v12, %v7843_v13  ;;  %v10645_v29 = vld [vmem:[#allocation6 + $0x6ac] sm:$0xf]  ;;  %v7667_v2 = vld [vmem:[#allocation6 + $0x678] sm:$0xf0] }
  0xbc   : > { %1770 = vmatpush.bf16.msra.mxu2 %v7634_v35  ;;  %1784 = vmatpush.bf16.msra.mxu3 %v7762_v37  ;;  %v7590_v35 = vor.u32 %v10617_v25, %v7587_v26  ;;  %v10581_v37 = vld [vmem:[#allocation6 + $0x4ac] sm:$0xf]  ;;  %v7702_v42 = vor.u32 %v10645_v29, %v7699_v31  ;;  %v7411_v12 = vld [vmem:[#allocation6 + $0x478] sm:$0xf0] }
  0xbd   : > { %v10609_v59 = vld [vmem:[#allocation6 + $0x58c] sm:$0xf]  ;;  %v7651_v23 = vld [vmem:[#allocation6 + $0x658] sm:$0xf0] }
  0xbe   : > { %v10637_v1 = vld [vmem:[#allocation6 + $0x66c] sm:$0xf]  ;;  %v7779_v25 = vld [vmem:[#allocation6 + $0x758] sm:$0xf0] }
  0xbf   : > { %1742 = vmatpush.bf16.msra.mxu0 %v7378_v54  ;;  %1756 = vmatpush.bf16.msra.mxu1 %v7506_v55  ;;  %v7811_v54 = vld [vmem:[#allocation6 + $0x798] sm:$0xf0]  ;;  %v7446_v55 = vor.u32 %v10581_v37, %v7443_v39  ;;  %v10669_v4 = vld [vmem:[#allocation6 + $0x76c] sm:$0xf] }
  0xc0   : > { %1771 = vmatpush.bf16.msra.mxu2 %v7618_v60  ;;  %1785 = vmatpush.bf16.msra.mxu3 %v7746_v61  ;;  %v7555_v60 = vld [vmem:[#allocation6 + $0x598] sm:$0xf0]  ;;  %v7686_v61 = vor.u32 %v10641_v48, %v7683_v49  ;;  %v7814_v62 = vor.u32 %v10673_v53, %v7811_v54  ;;  %v10573_v10 = vld [vmem:[#allocation6 + $0x46c] sm:$0xf] }
  0xc1   : > { %v7558_v9 = vor.u32 %v10609_v59, %v7555_v60  ;;  %v10605_v13 = vld [vmem:[#allocation6 + $0x56c] sm:$0xf]  ;;  %v7414_v26 = vor.u32 %v10573_v10, %v7411_v12  ;;  %v7395_v29 = vld [vmem:[#allocation6 + $0x458] sm:$0xf0]  ;;  %v8233_v60 = vld [vmem:[#allocation6 + $0x2e0] sm:$0xf] }
  0xc2   : > { %v10665_v24 = vld [vmem:[#allocation6 + $0x74c] sm:$0xf]  ;;  %v7523_v32 = vld [vmem:[#allocation6 + $0x558] sm:$0xf0] }
  0xc3   : > { %1743 = vmatpush.bf16.msra.mxu0 %v7362_v14  ;;  %1757 = vmatpush.bf16.msra.mxu1 %v7490_v17  ;;  %v7539_v14 = vld [vmem:[#allocation6 + $0x578] sm:$0xf0]  ;;  %v7670_v17 = vor.u32 %v10637_v1, %v7667_v2  ;;  %v10601_v31 = vld [vmem:[#allocation6 + $0x54c] sm:$0xf]  ;;  %v10558_v1 = vld [vmem:[#allocation6 + $0x3ec] sm:$0xf0] }
  0xc4   : > { %1820 = vmatpush.bf16.msrb.mxu2 %v7734_v7  ;;  %1834 = vmatpush.bf16.msrb.mxu3 %v7862_v8  ;;  %v7795_v7 = vld [vmem:[#allocation6 + $0x778] sm:$0xf0]  ;;  %v7430_v8 = vor.u32 %v10577_v57, %v7427_v58  ;;  %v10661_v39 = vld [vmem:[#allocation6 + $0x72c] sm:$0xf] }
  0xc5   : > { %1772 = vmatmul.bf16.vlgmr.msra.gmra.mxu2 %v12213_v50  ;;  %1786 = vmatmul.bf16.vlgmr.msra.gmra.mxu3 %v12216_v52  ;;  %v7635_v37 = vld [vmem:[#allocation6 + $0x638] sm:$0xf0]  ;;  %v10597_v49 = vld [vmem:[#allocation6 + $0x52c] sm:$0xf] }
  0xc6   : > { %1744 = vmatmul.bf16.vlgmr.msra.gmra.mxu0 %v12223_v15  ;;  %1758 = vmatmul.bf16.vlgmr.msra.gmra.mxu1 %v12226_v16  ;;  %v7763_v40 = vld [vmem:[#allocation6 + $0x738] sm:$0xf0]  ;;  %v10657_v58 = vld [vmem:[#allocation6 + $0x70c] sm:$0xf] }
  0xc7   : > { %1792 = vmatpush.bf16.msrb.mxu0 %v7478_v21  ;;  %1806 = vmatpush.bf16.msrb.mxu1 %v7606_v22  ;;  %v7798_v21 = vor.u32 %v10669_v4, %v7795_v7  ;;  %v10633_v22 = vld [vmem:[#allocation6 + $0x64c] sm:$0xf]  ;;  %v7379_v48 = vld [vmem:[#allocation6 + $0x438] sm:$0xf0] }
  0xc8   : > { %1821 = vmatpush.bf16.msrb.mxu2 %v7718_v27  ;;  %1835 = vmatpush.bf16.msrb.mxu3 %v7846_v28  ;;  %v7542_v27 = vor.u32 %v10605_v13, %v7539_v14  ;;  %v10569_v28 = vld [vmem:[#allocation6 + $0x44c] sm:$0xf]  ;;  %v7654_v33 = vor.u32 %v10633_v22, %v7651_v23  ;;  %v7507_v53 = vld [vmem:[#allocation6 + $0x538] sm:$0xf0]  ;;  %v7977_v14 = vld [vmem:[#allocation6 + $0xe0] sm:$0xf] }
  0xc9   : > { %v7398_v41 = vor.u32 %v10569_v28, %v7395_v29  ;;  %v7619_v57 = vld [vmem:[#allocation6 + $0x618] sm:$0xf0]  ;;  %v7510_v4 = vor.u32 %v10597_v49, %v7507_v53  ;;  %v10561_v7 = vld [vmem:[#allocation6 + $0x40c] sm:$0xf]  ;;  %v10494_v22 = vld [vmem:[#allocation6 + $0x1ec] sm:$0xf0] }
  0xca   : > { %v7747_v59 = vld [vmem:[#allocation6 + $0x718] sm:$0xf0]  ;;  %v10554_v28 = vld [vmem:[#allocation6 + $0x3cc] sm:$0xf0] }
  0xcb   : > { %1793 = vmatpush.bf16.msrb.mxu0 %v7462_v34  ;;  %1807 = vmatpush.bf16.msrb.mxu1 %v7590_v35  ;;  %v7782_v34 = vor.u32 %v10665_v24, %v7779_v25  ;;  %v10629_v35 = vld [vmem:[#allocation6 + $0x62c] sm:$0xf]  ;;  %v7491_v10 = vld [vmem:[#allocation6 + $0x518] sm:$0xf0]  ;;  %v7750_v13 = vor.u32 %v10657_v58, %v7747_v59  ;;  %v8217_v25 = vld [vmem:[#allocation6 + $0x2c0] sm:$0xf] }
  0xcc   : > { %1822 = vmatpush.bf16.msrb.mxu2 %v7702_v42  ;;  %1836 = vmatpush.bf16.msrb.mxu3 %v7830_v45  ;;  %v7526_v42 = vor.u32 %v10601_v31, %v7523_v32  ;;  %v10565_v45 = vld [vmem:[#allocation6 + $0x42c] sm:$0xf]  ;;  %v7638_v54 = vor.u32 %v10629_v35, %v7635_v37  ;;  %v10458_v35 = vld [vmem:[#allocation6 + $0xcc] sm:$0xf0]  ;;  %v8089_v37 = vld [vmem:[#allocation6 + $0x1c0] sm:$0xf] }
  0xcd   : > { %v7382_v2 = vor.u32 %v10565_v45, %v7379_v48  ;;  %v10518_v45 = vld [vmem:[#allocation6 + $0x2ac] sm:$0xf0]  ;;  %v8329_v48 = vld [vmem:[#allocation6 + $0x3a0] sm:$0xf] }
  0xce   : > { %v10550_v49 = vld [vmem:[#allocation6 + $0x3ac] sm:$0xf0] }
  0xcf   : > { %1794 = vmatpush.bf16.msrb.mxu0 %v7446_v55  ;;  %1808 = vmatpush.bf16.msrb.mxu1 %v7574_v56  ;;  %v7766_v55 = vor.u32 %v10661_v39, %v7763_v40  ;;  %v10625_v56 = vld [vmem:[#allocation6 + $0x60c] sm:$0xf]  ;;  %v10490_v39 = vld [vmem:[#allocation6 + $0x1cc] sm:$0xf0] }
  0xd0   : > { %1823 = vmatpush.bf16.msrb.mxu2 %v7686_v61  ;;  %1837 = vmatpush.bf16.msrb.mxu3 %v7814_v62  ;;  %v10526_v61 = vld [vmem:[#allocation6 + $0x2ec] sm:$0xf0]  ;;  %v8361_v62 = vld [vmem:[#allocation6 + $0x3e0] sm:$0xf]  ;;  %v7622_v12 = vor.u32 %v10625_v56, %v7619_v57 }
  0xd1   : > { %v8234_v23 = vor.u32 %v10526_v61, %v8233_v60  ;;  %v8362_v24 = vor.u32 %v10558_v1, %v8361_v62  ;;  %v10454_v56 = vld [vmem:[#allocation6 + $0xac] sm:$0xf0]  ;;  %v8073_v57 = vld [vmem:[#allocation6 + $0x1a0] sm:$0xf]  ;;  %v8330_v60 = vor.u32 %v10550_v49, %v8329_v48 }
  0xd2   : > { %v10486_v58 = vld [vmem:[#allocation6 + $0x1ac] sm:$0xf0]  ;;  %v8185_v61 = vld [vmem:[#allocation6 + $0x280] sm:$0xf] }
  0xd3   : > { %1795 = vmatpush.bf16.msrb.mxu0 %v7430_v8  ;;  %1809 = vmatpush.bf16.msrb.mxu1 %v7558_v9  ;;  %v7363_v8 = vld [vmem:[#allocation6 + $0x418] sm:$0xf0]  ;;  %v10593_v9 = vld [vmem:[#allocation6 + $0x50c] sm:$0xf]  ;;  %v10514_v62 = vld [vmem:[#allocation6 + $0x28c] sm:$0xf0] }
  0xd4   : > { %1824 = vmatpush.bf16.msrb.mxu2 %v7670_v17  ;;  %1838 = vmatpush.bf16.msrb.mxu3 %v7798_v21  ;;  %v10462_v17 = vld [vmem:[#allocation6 + $0xec] sm:$0xf0]  ;;  %v8105_v21 = vld [vmem:[#allocation6 + $0x1e0] sm:$0xf]  ;;  %v7366_v29 = vor.u32 %v10561_v7, %v7363_v8  ;;  %v7494_v31 = vor.u32 %v10593_v9, %v7491_v10  ;;  %v8074_v7 = vor.u32 %v10486_v58, %v8073_v57 }
  0xd5   : > { %v7978_v32 = vor.u32 %v10462_v17, %v7977_v14  ;;  %v8313_v1 = vld [vmem:[#allocation6 + $0x380] sm:$0xf]  ;;  %v10450_v9 = vld [vmem:[#allocation6 + $0x8c] sm:$0xf0] }
  0xd6   : > { %v7929_v8 = vld [vmem:[#allocation6 + $0x80] sm:$0xf]  ;;  %v10502_v48 = vld [vmem:[#allocation6 + $0x22c] sm:$0xf0] }
  0xd7   : > { %1796 = vmatpush.bf16.msrb.mxu0 %v7414_v26  ;;  %1810 = vmatpush.bf16.msrb.mxu1 %v7542_v27  ;;  %v10522_v26 = vld [vmem:[#allocation6 + $0x2cc] sm:$0xf0]  ;;  %v8345_v27 = vld [vmem:[#allocation6 + $0x3c0] sm:$0xf] }
  0xd8   : > { %1825 = vmatpush.bf16.msrb.mxu2 %v7654_v33  ;;  %1839 = vmatpush.bf16.msrb.mxu3 %v7782_v34  ;;  %v8106_v33 = vor.u32 %v10494_v22, %v8105_v21  ;;  %v7961_v34 = vld [vmem:[#allocation6 + $0xc0] sm:$0xf]  ;;  %v8218_v40 = vor.u32 %v10522_v26, %v8217_v25  ;;  %v10478_v25 = vld [vmem:[#allocation6 + $0x16c] sm:$0xf0] }
  0xd9   : > { %v7962_v53 = vor.u32 %v10458_v35, %v7961_v34  ;;  %v8057_v10 = vld [vmem:[#allocation6 + $0x180] sm:$0xf]  ;;  %v10438_v57 = vld [vmem:[#allocation6 + $0x2c] sm:$0xf0] }
  0xda   : > { %v8169_v17 = vld [vmem:[#allocation6 + $0x260] sm:$0xf] }
  0xdb   : > { %1797 = vmatpush.bf16.msrb.mxu0 %v7398_v41  ;;  %1811 = vmatpush.bf16.msrb.mxu1 %v7526_v42  ;;  %v8346_v41 = vor.u32 %v10554_v28, %v8345_v27  ;;  %v8201_v42 = vld [vmem:[#allocation6 + $0x2a0] sm:$0xf] }
  0xdc   : > { %1826 = vmatpush.bf16.msrb.mxu2 %v7638_v54  ;;  %1840 = vmatpush.bf16.msrb.mxu3 %v7766_v55  ;;  %v8090_v54 = vor.u32 %v10490_v39, %v8089_v37  ;;  %v7945_v55 = vld [vmem:[#allocation6 + $0xa0] sm:$0xf]  ;;  %v8202_v59 = vor.u32 %v10518_v45, %v8201_v42  ;;  %v10442_v37 = vld [vmem:[#allocation6 + $0x4c] sm:$0xf0] }
  0xdd   : > { %v8297_v21 = vld [vmem:[#allocation6 + $0x360] sm:$0xf] }
  0xde   : > { %v7913_v22 = vld [vmem:[#allocation6 + $0x60] sm:$0xf] }
  0xdf   : > { %1798 = vmatpush.bf16.msrb.mxu0 %v7382_v2  ;;  %1812 = vmatpush.bf16.msrb.mxu1 %v7510_v4  ;;  %v10546_v2 = vld [vmem:[#allocation6 + $0x38c] sm:$0xf0]  ;;  %v7946_v4 = vor.u32 %v10454_v56, %v7945_v55  ;;  %v8153_v28 = vld [vmem:[#allocation6 + $0x240] sm:$0xf] }
  0xe0   : > { %1827 = vmatpush.bf16.msrb.mxu2 %v7622_v12  ;;  %1841 = vmatpush.bf16.msrb.mxu3 %v7750_v13  ;;  %v10482_v12 = vld [vmem:[#allocation6 + $0x18c] sm:$0xf0]  ;;  %v8186_v13 = vor.u32 %v10514_v62, %v8185_v61  ;;  %v8314_v14 = vor.u32 %v10546_v2, %v8313_v1  ;;  %v7897_v35 = vld [vmem:[#allocation6 + $0x40] sm:$0xf] }
  0xe1   : > { %v8025_v39 = vld [vmem:[#allocation6 + $0x140] sm:$0xf]  ;;  %v10498_v1 = vld [vmem:[#allocation6 + $0x20c] sm:$0xf0] }
  0xe2   : > { %v8137_v45 = vld [vmem:[#allocation6 + $0x220] sm:$0xf] }
  0xe3   : > { %1799 = vmatpush.bf16.msrb.mxu0 %v7366_v29  ;;  %1813 = vmatpush.bf16.msrb.mxu1 %v7494_v31  ;;  %v10506_v29 = vld [vmem:[#allocation6 + $0x24c] sm:$0xf0]  ;;  %v8281_v31 = vld [vmem:[#allocation6 + $0x340] sm:$0xf] }
  0xe4   : > { %2520 = vmatpush.bf16.msra.mxu2 %v8234_v23  ;;  %2534 = vmatpush.bf16.msra.mxu3 %v8362_v24  ;;  %v10446_v23 = vld [vmem:[#allocation6 + $0x6c] sm:$0xf0]  ;;  %v8041_v24 = vld [vmem:[#allocation6 + $0x160] sm:$0xf] }
  0xe5   : > { %1828 = vmatmul.bf16.vlgmr.msrb.gmra.mxu2 %v12213_v50  ;;  %1842 = vmatmul.bf16.vlgmr.msrb.gmra.mxu3 %v12216_v52  ;;  %v10542_v50 = vld [vmem:[#allocation6 + $0x36c] sm:$0xf0]  ;;  %v8058_v52 = vor.u32 %v10482_v12, %v8057_v10  ;;  %v8042_v34 = vor.u32 %v10478_v25, %v8041_v24  ;;  %v8265_v49 = vld [vmem:[#allocation6 + $0x320] sm:$0xf]  ;;  %v8363_v10 = vld [vmem:[#allocation6 + $0x3f0] sm:$0xf0] }
  0xe6   : > { %1800 = vmatmul.bf16.vlgmr.msrb.gmra.mxu0 %v12223_v15  ;;  %1814 = vmatmul.bf16.vlgmr.msrb.gmra.mxu1 %v12226_v16  ;;  %v10510_v15 = vld [vmem:[#allocation6 + $0x26c] sm:$0xf0]  ;;  %v7930_v16 = vor.u32 %v10450_v9, %v7929_v8  ;;  %v8298_v27 = vor.u32 %v10542_v50, %v8297_v21  ;;  %v7881_v56 = vld [vmem:[#allocation6 + $0x20] sm:$0xf]  ;;  %v8235_v8 = vld [vmem:[#allocation6 + $0x2f0] sm:$0xf0] }
  0xe7   : > { %2492 = vmatpush.bf16.msra.mxu0 %v7978_v32  ;;  %2506 = vmatpush.bf16.msra.mxu1 %v8106_v33  ;;  %v8170_v26 = vor.u32 %v10510_v15, %v8169_v17  ;;  %v10538_v32 = vld [vmem:[#allocation6 + $0x34c] sm:$0xf0]  ;;  %v7914_v33 = vor.u32 %v10446_v23, %v7913_v22  ;;  %v8009_v58 = vld [vmem:[#allocation6 + $0x120] sm:$0xf]  ;;  %v10556_v9 = vld [vmem:[#allocation6 + $0x3e4] sm:$0xf]  ;;  %v7882_v12 = vor.u32 %v10438_v57, %v7881_v56 }
  0xe8   : > { %2521 = vmatpush.bf16.msra.mxu2 %v8218_v40  ;;  %2535 = vmatpush.bf16.msra.mxu3 %v8346_v41  ;;  %v10474_v40 = vld [vmem:[#allocation6 + $0x14c] sm:$0xf0]  ;;  %v8154_v41 = vor.u32 %v10506_v29, %v8153_v28  ;;  %v8282_v42 = vor.u32 %v10538_v32, %v8281_v31  ;;  %v8121_v62 = vld [vmem:[#allocation6 + $0x200] sm:$0xf]  ;;  %v7979_v22 = vld [vmem:[#allocation6 + $0xf0] sm:$0xf0] }
  0xe9   : > { %v8026_v55 = vor.u32 %v10474_v40, %v8025_v39  ;;  %v8249_v2 = vld [vmem:[#allocation6 + $0x300] sm:$0xf]  ;;  %v10434_v17 = vld [vmem:[#allocation6 + $0xc] sm:$0xf0]  ;;  %v8122_v50 = vor.u32 %v10498_v1, %v8121_v62  ;;  %v10492_v23 = vld [vmem:[#allocation6 + $0x1e4] sm:$0xf] }
  0xea   : > { %v7993_v15 = vld [vmem:[#allocation6 + $0x100] sm:$0xf]  ;;  %v10466_v21 = vld [vmem:[#allocation6 + $0x10c] sm:$0xf0]  ;;  %v8107_v24 = vld [vmem:[#allocation6 + $0x1f0] sm:$0xf0] }
  0xeb   : > { %2493 = vmatpush.bf16.msra.mxu0 %v7962_v53  ;;  %2507 = vmatpush.bf16.msra.mxu1 %v8090_v54  ;;  %v10534_v53 = vld [vmem:[#allocation6 + $0x32c] sm:$0xf0]  ;;  %v7898_v54 = vor.u32 %v10442_v37, %v7897_v35  ;;  %v7994_v28 = vor.u32 %v10466_v21, %v7993_v15  ;;  %v10456_v29 = vld [vmem:[#allocation6 + $0xc4] sm:$0xf]  ;;  %v8347_v37 = vld [vmem:[#allocation6 + $0x3d0] sm:$0xf0] }
  0xec   : > { %2522 = vmatpush.bf16.msra.mxu2 %v8202_v59  ;;  %2536 = vmatpush.bf16.msra.mxu3 %v8330_v60  ;;  %v10470_v59 = vld [vmem:[#allocation6 + $0x12c] sm:$0xf0]  ;;  %v8138_v60 = vor.u32 %v10502_v48, %v8137_v45  ;;  %v8266_v61 = vor.u32 %v10534_v53, %v8265_v49  ;;  %v10520_v31 = vld [vmem:[#allocation6 + $0x2c4] sm:$0xf]  ;;  %v7963_v39 = vld [vmem:[#allocation6 + $0xd0] sm:$0xf0] }
  0xed   : > { %v10552_v35 = vld [vmem:[#allocation6 + $0x3c4] sm:$0xf]  ;;  %v7966_v53 = vor.u32 %v10456_v29, %v7963_v39  ;;  %v8331_v57 = vld [vmem:[#allocation6 + $0x3b0] sm:$0xf0] }
  0xee   : > { %v10488_v40 = vld [vmem:[#allocation6 + $0x1c4] sm:$0xf]  ;;  %v8350_v45 = vor.u32 %v10552_v35, %v8347_v37  ;;  %v8155_v35 = vld [vmem:[#allocation6 + $0x250] sm:$0xf0] }
  0xef   : > { %2494 = vmatpush.bf16.msra.mxu0 %v7946_v4  ;;  %2508 = vmatpush.bf16.msra.mxu1 %v8074_v7  ;;  %v10530_v4 = vld [vmem:[#allocation6 + $0x30c] sm:$0xf0]  ;;  %v10524_v7 = vld [vmem:[#allocation6 + $0x2e4] sm:$0xf]  ;;  %v8283_v39 = vld [vmem:[#allocation6 + $0x350] sm:$0xf0] }
  0xf0   : > { %2523 = vmatpush.bf16.msra.mxu2 %v8186_v13  ;;  %2537 = vmatpush.bf16.msra.mxu3 %v8314_v14  ;;  %v8010_v13 = vor.u32 %v10470_v59, %v8009_v58  ;;  %v7865_v14 = vld [vmem:[#allocation6] sm:$0xf]  ;;  %v8238_v25 = vor.u32 %v10524_v7, %v8235_v8  ;;  %v10452_v48 = vld [vmem:[#allocation6 + $0xa4] sm:$0xf]  ;;  %v7947_v58 = vld [vmem:[#allocation6 + $0xb0] sm:$0xf0] }
  0xf1   : > { %v10516_v49 = vld [vmem:[#allocation6 + $0x2a4] sm:$0xf]  ;;  %v8187_v8 = vld [vmem:[#allocation6 + $0x290] sm:$0xf0] }
  0xf2   : > { %v10548_v56 = vld [vmem:[#allocation6 + $0x3a4] sm:$0xf] }
  0xf3   : > { %2495 = vmatpush.bf16.msra.mxu0 %v7930_v16  ;;  %2509 = vmatpush.bf16.msra.mxu1 %v8058_v52  ;;  %v8250_v16 = vor.u32 %v10530_v4, %v8249_v2  ;;  %v10460_v52 = vld [vmem:[#allocation6 + $0xe4] sm:$0xf]  ;;  %v8334_v62 = vor.u32 %v10548_v56, %v8331_v57  ;;  %v7950_v4 = vor.u32 %v10452_v48, %v7947_v58  ;;  %v8139_v56 = vld [vmem:[#allocation6 + $0x230] sm:$0xf0] }
  0xf4   : > { %2524 = vmatpush.bf16.msra.mxu2 %v8170_v26  ;;  %2538 = vmatpush.bf16.msra.mxu3 %v8298_v27  ;;  %v8366_v26 = vor.u32 %v10556_v9, %v8363_v10  ;;  %v7866_v27 = vor.u32 %v10434_v17, %v7865_v14  ;;  %v7982_v32 = vor.u32 %v10460_v52, %v7979_v22  ;;  %v10484_v59 = vld [vmem:[#allocation6 + $0x1a4] sm:$0xf]  ;;  %v8315_v10 = vld [vmem:[#allocation6 + $0x390] sm:$0xf0] }
  0xf5   : > { %v10448_v1 = vld [vmem:[#allocation6 + $0x84] sm:$0xf]  ;;  %v8059_v14 = vld [vmem:[#allocation6 + $0x190] sm:$0xf0] }
  0xf6   : > { %v10512_v2 = vld [vmem:[#allocation6 + $0x284] sm:$0xf]  ;;  %v8171_v22 = vld [vmem:[#allocation6 + $0x270] sm:$0xf0] }
  0xf7   : > { %2496 = vmatpush.bf16.msra.mxu0 %v7914_v33  ;;  %2510 = vmatpush.bf16.msra.mxu1 %v8042_v34  ;;  %v8110_v33 = vor.u32 %v10492_v23, %v8107_v24  ;;  %v8219_v34 = vld [vmem:[#allocation6 + $0x2d0] sm:$0xf0]  ;;  %v10544_v9 = vld [vmem:[#allocation6 + $0x384] sm:$0xf]  ;;  %v8190_v17 = vor.u32 %v10512_v2, %v8187_v8 }
  0xf8   : > { %2525 = vmatpush.bf16.msra.mxu2 %v8154_v41  ;;  %2539 = vmatpush.bf16.msra.mxu3 %v8282_v42  ;;  %v8091_v41 = vld [vmem:[#allocation6 + $0x1d0] sm:$0xf0]  ;;  %v8222_v42 = vor.u32 %v10520_v31, %v8219_v34  ;;  %v8318_v15 = vor.u32 %v10544_v9, %v8315_v10  ;;  %v10444_v21 = vld [vmem:[#allocation6 + $0x64] sm:$0xf] }
  0xf9   : > { %v10540_v23 = vld [vmem:[#allocation6 + $0x364] sm:$0xf]  ;;  %v8299_v24 = vld [vmem:[#allocation6 + $0x370] sm:$0xf0] }
  0xfa   : > { %v8302_v29 = vor.u32 %v10540_v23, %v8299_v24  ;;  %v10440_v31 = vld [vmem:[#allocation6 + $0x44] sm:$0xf]  ;;  %v8267_v58 = vld [vmem:[#allocation6 + $0x330] sm:$0xf0]  ;;  %v10527_v24 = vld [vmem:[#allocation6 + $0x2f4] sm:$0xf0] }
  0xfb   : > { %2497 = vmatpush.bf16.msra.mxu0 %v7898_v54  ;;  %2511 = vmatpush.bf16.msra.mxu1 %v8026_v55  ;;  %v8094_v54 = vor.u32 %v10488_v40, %v8091_v41  ;;  %v8203_v55 = vld [vmem:[#allocation6 + $0x2b0] sm:$0xf0]  ;;  %v10536_v37 = vld [vmem:[#allocation6 + $0x344] sm:$0xf] }
  0xfc   : > { %2526 = vmatpush.bf16.msra.mxu2 %v8138_v60  ;;  %2540 = vmatpush.bf16.msra.mxu3 %v8266_v61  ;;  %v8075_v60 = vld [vmem:[#allocation6 + $0x1b0] sm:$0xf0]  ;;  %v8206_v61 = vor.u32 %v10516_v49, %v8203_v55  ;;  %v10472_v41 = vld [vmem:[#allocation6 + $0x144] sm:$0xf]  ;;  %v8286_v48 = vor.u32 %v10536_v37, %v8283_v39  ;;  %v8097_v37 = vld [vmem:[#allocation6 + $0x1c8] sm:$0xf] }
  0xfd   : > { %v8078_v7 = vor.u32 %v10484_v59, %v8075_v60  ;;  %v7899_v40 = vld [vmem:[#allocation6 + $0x50] sm:$0xf0]  ;;  %v10436_v49 = vld [vmem:[#allocation6 + $0x24] sm:$0xf]  ;;  %v10491_v39 = vld [vmem:[#allocation6 + $0x1d4] sm:$0xf0] }
  0xfe   : > { %v10532_v57 = vld [vmem:[#allocation6 + $0x324] sm:$0xf]  ;;  %v7883_v59 = vld [vmem:[#allocation6 + $0x30] sm:$0xf0] }
  0xff   : > { %2498 = vmatpush.bf16.msra.mxu0 %v7882_v12  ;;  %2512 = vmatpush.bf16.msra.mxu1 %v8010_v13  ;;  %v7931_v12 = vld [vmem:[#allocation6 + $0x90] sm:$0xf0]  ;;  %v10480_v13 = vld [vmem:[#allocation6 + $0x184] sm:$0xf]  ;;  %v7886_v9 = vor.u32 %v10436_v49, %v7883_v59  ;;  %v8098_v49 = vor.u32 %v10491_v39, %v8097_v37  ;;  %v8209_v59 = vld [vmem:[#allocation6 + $0x2a8] sm:$0xf] }
 0x100   : > { %2527 = vmatpush.bf16.msra.mxu2 %v8122_v50  ;;  %2541 = vmatpush.bf16.msra.mxu3 %v8250_v16  ;;  %v10508_v50 = vld [vmem:[#allocation6 + $0x264] sm:$0xf]  ;;  %v7934_v16 = vor.u32 %v10448_v1, %v7931_v12  ;;  %v8062_v52 = vor.u32 %v10480_v13, %v8059_v14  ;;  %v8270_v1 = vor.u32 %v10532_v57, %v8267_v58  ;;  %v8123_v12 = vld [vmem:[#allocation6 + $0x210] sm:$0xf0]  ;;  %v8081_v57 = vld [vmem:[#allocation6 + $0x1a8] sm:$0xf] }
 0x101   : > { %v10468_v60 = vld [vmem:[#allocation6 + $0x124] sm:$0xf]  ;;  %v8251_v14 = vld [vmem:[#allocation6 + $0x310] sm:$0xf0]  ;;  %v10487_v58 = vld [vmem:[#allocation6 + $0x1b4] sm:$0xf0] }
 0x102   : > { %v10432_v2 = vld [vmem:[#allocation6 + $0x4] sm:$0xf] }
 0x103   : > { %2499 = vmatpush.bf16.msra.mxu0 %v7866_v27  ;;  %2513 = vmatpush.bf16.msra.mxu1 %v7994_v28  ;;  %v8043_v27 = vld [vmem:[#allocation6 + $0x170] sm:$0xf0]  ;;  %v8174_v28 = vor.u32 %v10508_v50, %v8171_v22  ;;  %v10496_v8 = vld [vmem:[#allocation6 + $0x204] sm:$0xf]  ;;  %v8113_v50 = vld [vmem:[#allocation6 + $0x1e8] sm:$0xf] }
 0x104   : > { %2576 = vmatpush.bf16.msrb.mxu2 %v8238_v25  ;;  %2590 = vmatpush.bf16.msrb.mxu3 %v8366_v26  ;;  %v7915_v25 = vld [vmem:[#allocation6 + $0x70] sm:$0xf0]  ;;  %v10476_v26 = vld [vmem:[#allocation6 + $0x164] sm:$0xf]  ;;  %v8126_v22 = vor.u32 %v10496_v8, %v8123_v12  ;;  %v10483_v12 = vld [vmem:[#allocation6 + $0x194] sm:$0xf0] }
 0x105   : > { %2528 = vmatmul.bf16.vlgmr.msra.gmra.mxu2 %v12172_v46  ;;  %2542 = vmatmul.bf16.vlgmr.msra.gmra.mxu3 %v12176_v47  ;;  %v8046_v34 = vor.u32 %v10476_v26, %v8043_v27  ;;  %v10528_v13 = vld [vmem:[#allocation6 + $0x304] sm:$0xf]  ;;  %v10559_v26 = vld [vmem:[#allocation6 + $0x3f4] sm:$0xf0] }
 0x106   : > { %2500 = vmatmul.bf16.vlgmr.msra.gmra.mxu0 %v12190_v5  ;;  %2514 = vmatmul.bf16.vlgmr.msra.gmra.mxu1 %v12194_v6  ;;  %v8254_v23 = vor.u32 %v10528_v13, %v8251_v14  ;;  %v8193_v13 = vld [vmem:[#allocation6 + $0x288] sm:$0xf]  ;;  %v10515_v14 = vld [vmem:[#allocation6 + $0x294] sm:$0xf0] }
 0x107   : > { %2548 = vmatpush.bf16.msrb.mxu0 %v7982_v32  ;;  %2562 = vmatpush.bf16.msrb.mxu1 %v8110_v33  ;;  %v10504_v32 = vld [vmem:[#allocation6 + $0x244] sm:$0xf]  ;;  %v7918_v33 = vor.u32 %v10444_v21, %v7915_v25  ;;  %v10463_v21 = vld [vmem:[#allocation6 + $0xf4] sm:$0xf0]  ;;  %v8369_v25 = vld [vmem:[#allocation6 + $0x3e8] sm:$0xf] }
 0x108   : > { %2577 = vmatpush.bf16.msrb.mxu2 %v8222_v42  ;;  %2591 = vmatpush.bf16.msrb.mxu3 %v8350_v45  ;;  %v8027_v42 = vld [vmem:[#allocation6 + $0x150] sm:$0xf0]  ;;  %v8158_v45 = vor.u32 %v10504_v32, %v8155_v35  ;;  %v7969_v32 = vld [vmem:[#allocation6 + $0xc8] sm:$0xf]  ;;  %v8370_v35 = vor.u32 %v10559_v26, %v8369_v25  ;;  %v8194_v26 = vor.u32 %v10515_v14, %v8193_v13  ;;  %v10503_v13 = vld [vmem:[#allocation6 + $0x234] sm:$0xf0] }
 0x109   : > { %v8030_v55 = vor.u32 %v10472_v41, %v8027_v42  ;;  %v10523_v41 = vld [vmem:[#allocation6 + $0x2d4] sm:$0xf0]  ;;  %v8353_v42 = vld [vmem:[#allocation6 + $0x3c8] sm:$0xf] }
 0x10a   : > { %v8273_v14 = vld [vmem:[#allocation6 + $0x328] sm:$0xf] }
 0x10b   : > { %2549 = vmatpush.bf16.msrb.mxu0 %v7966_v53  ;;  %2563 = vmatpush.bf16.msrb.mxu1 %v8094_v54  ;;  %v10500_v53 = vld [vmem:[#allocation6 + $0x224] sm:$0xf]  ;;  %v7902_v54 = vor.u32 %v10440_v31, %v7899_v40  ;;  %v8225_v40 = vld [vmem:[#allocation6 + $0x2c8] sm:$0xf] }
 0x10c   : > { %2578 = vmatpush.bf16.msrb.mxu2 %v8206_v61  ;;  %2592 = vmatpush.bf16.msrb.mxu3 %v8334_v62  ;;  %v8011_v61 = vld [vmem:[#allocation6 + $0x130] sm:$0xf0]  ;;  %v8142_v62 = vor.u32 %v10500_v53, %v8139_v56  ;;  %v7953_v53 = vld [vmem:[#allocation6 + $0xa8] sm:$0xf] }
 0x10d   : > { %v8014_v10 = vor.u32 %v10468_v60, %v8011_v61  ;;  %v10519_v60 = vld [vmem:[#allocation6 + $0x2b4] sm:$0xf0]  ;;  %v8337_v61 = vld [vmem:[#allocation6 + $0x3a8] sm:$0xf] }
 0x10e   : > { %v8210_v8 = vor.u32 %v10519_v60, %v8209_v59 }
 0x10f   : > { %2550 = vmatpush.bf16.msrb.mxu0 %v7950_v4  ;;  %2564 = vmatpush.bf16.msrb.mxu1 %v8078_v7  ;;  %v7867_v4 = vld [vmem:[#allocation6 + $0x10] sm:$0xf0]  ;;  %v10464_v7 = vld [vmem:[#allocation6 + $0x104] sm:$0xf] }
 0x110   : > { %2579 = vmatpush.bf16.msrb.mxu2 %v8190_v17  ;;  %2593 = vmatpush.bf16.msrb.mxu3 %v8318_v15  ;;  %v7995_v17 = vld [vmem:[#allocation6 + $0x110] sm:$0xf0]  ;;  %v7985_v15 = vld [vmem:[#allocation6 + $0xe8] sm:$0xf]  ;;  %v7870_v27 = vor.u32 %v10432_v2, %v7867_v4  ;;  %v8082_v2 = vor.u32 %v10487_v58, %v8081_v57  ;;  %v10539_v58 = vld [vmem:[#allocation6 + $0x354] sm:$0xf0] }
 0x111   : > { %v7937_v4 = vld [vmem:[#allocation6 + $0x88] sm:$0xf] }
 0x112   : > { %v8289_v57 = vld [vmem:[#allocation6 + $0x348] sm:$0xf] }
 0x113   : > { %2551 = vmatpush.bf16.msrb.mxu0 %v7934_v16  ;;  %2565 = vmatpush.bf16.msrb.mxu1 %v8062_v52  ;;  %v10495_v16 = vld [vmem:[#allocation6 + $0x1f4] sm:$0xf0]  ;;  %v8241_v52 = vld [vmem:[#allocation6 + $0x2e8] sm:$0xf] }
 0x114   : > { %2580 = vmatpush.bf16.msrb.mxu2 %v8174_v28  ;;  %2594 = vmatpush.bf16.msrb.mxu3 %v8302_v29  ;;  %v7998_v28 = vor.u32 %v10464_v7, %v7995_v17  ;;  %v7986_v29 = vor.u32 %v10463_v21, %v7985_v15  ;;  %v8114_v31 = vor.u32 %v10495_v16, %v8113_v50  ;;  %v10451_v7 = vld [vmem:[#allocation6 + $0x94] sm:$0xf0]  ;;  %v8321_v17 = vld [vmem:[#allocation6 + $0x388] sm:$0xf] }
 0x115   : > { %v10547_v15 = vld [vmem:[#allocation6 + $0x394] sm:$0xf0]  ;;  %v7938_v16 = vor.u32 %v10451_v7, %v7937_v4  ;;  %v8290_v7 = vor.u32 %v10539_v58, %v8289_v57  ;;  %v10457_v58 = vld [vmem:[#allocation6 + $0xcc] sm:$0xf] }
 0x117   : > { %2552 = vmatpush.bf16.msrb.mxu0 %v7918_v33  ;;  %2566 = vmatpush.bf16.msrb.mxu1 %v8046_v34  ;;  %v10459_v33 = vld [vmem:[#allocation6 + $0xd4] sm:$0xf0]  ;;  %v8242_v34 = vor.u32 %v10527_v24, %v8241_v52 }
 0x118   : > { %2581 = vmatpush.bf16.msrb.mxu2 %v8158_v45  ;;  %2595 = vmatpush.bf16.msrb.mxu3 %v8286_v48  ;;  %v10555_v45 = vld [vmem:[#allocation6 + $0x3d4] sm:$0xf0]  ;;  %v7970_v48 = vor.u32 %v10459_v33, %v7969_v32 }
 0x119   : > { %v8354_v56 = vor.u32 %v10555_v45, %v8353_v42  ;;  %v10511_v33 = vld [vmem:[#allocation6 + $0x274] sm:$0xf0] }
 0x11a   : > { %v10443_v42 = vld [vmem:[#allocation6 + $0x54] sm:$0xf0] }
 0x11b   : > { %2553 = vmatpush.bf16.msrb.mxu0 %v7902_v54  ;;  %2567 = vmatpush.bf16.msrb.mxu1 %v8030_v55  ;;  %v10455_v54 = vld [vmem:[#allocation6 + $0xb4] sm:$0xf0]  ;;  %v8226_v55 = vor.u32 %v10523_v41, %v8225_v40  ;;  %v7905_v41 = vld [vmem:[#allocation6 + $0x48] sm:$0xf] }
 0x11c   : > { %2582 = vmatpush.bf16.msrb.mxu2 %v8142_v62  ;;  %2596 = vmatpush.bf16.msrb.mxu3 %v8270_v1  ;;  %v10551_v62 = vld [vmem:[#allocation6 + $0x3b4] sm:$0xf0]  ;;  %v7954_v1 = vor.u32 %v10455_v54, %v7953_v53  ;;  %v8033_v53 = vld [vmem:[#allocation6 + $0x148] sm:$0xf] }
 0x11d   : > { %v10475_v54 = vld [vmem:[#allocation6 + $0x154] sm:$0xf0] }
 0x11f   : > { %2554 = vmatpush.bf16.msrb.mxu0 %v7886_v9  ;;  %2568 = vmatpush.bf16.msrb.mxu1 %v8014_v10  ;;  %v8338_v9 = vor.u32 %v10551_v62, %v8337_v61  ;;  %v8065_v10 = vld [vmem:[#allocation6 + $0x188] sm:$0xf]  ;;  %v7906_v61 = vor.u32 %v10443_v42, %v7905_v41  ;;  %v8034_v62 = vor.u32 %v10475_v54, %v8033_v53  ;;  %v10557_v41 = vld [vmem:[#allocation6 + $0x3ec] sm:$0xf]  ;;  %v8371_v42 = vld [vmem:[#allocation6 + $0x3f8] sm:$0xf0] }
 0x120   : > { %2583 = vmatpush.bf16.msrb.mxu2 %v8126_v22  ;;  %2597 = vmatpush.bf16.msrb.mxu3 %v8254_v23  ;;  %v8066_v52 = vor.u32 %v10483_v12, %v8065_v10  ;;  %v7921_v22 = vld [vmem:[#allocation6 + $0x68] sm:$0xf]  ;;  %v10447_v23 = vld [vmem:[#allocation6 + $0x74] sm:$0xf0] }
 0x121   : > { %v7922_v39 = vor.u32 %v10447_v23, %v7921_v22  ;;  %v8145_v10 = vld [vmem:[#allocation6 + $0x228] sm:$0xf]  ;;  %v10467_v23 = vld [vmem:[#allocation6 + $0x114] sm:$0xf0] }
 0x122   : > { %v1633_v21 = vpop.f32.mrf.mxu0  ;;  %v1647_v50 = vpop.f32.mrf.mxu1  ;;  %v8001_v22 = vld [vmem:[#allocation6 + $0x108] sm:$0xf] }
 0x123   : > { %2555 = vmatpush.bf16.msrb.mxu0 %v7870_v27  ;;  %2569 = vmatpush.bf16.msrb.mxu1 %v7998_v28  ;;  %v1648_v24 = vadd.f32 %v1647_v50, %v1633_v21  ;;  %v8322_v27 = vor.u32 %v10547_v15, %v8321_v17  ;;  %v8049_v28 = vld [vmem:[#allocation6 + $0x168] sm:$0xf]  ;;  %v10535_v17 = vld [vmem:[#allocation6 + $0x334] sm:$0xf0] }
 0x124   : > { %2632 = vmatpush.bf16.msra.mxu2 %v8242_v34  ;;  %2646 = vmatpush.bf16.msra.mxu3 %v8370_v35  ;;  %v8305_v34 = vld [vmem:[#allocation6 + $0x368] sm:$0xf]  ;;  %v10543_v35 = vld [vmem:[#allocation6 + $0x374] sm:$0xf0] }
 0x125   : > { %2584 = vmatmul.bf16.vlgmr.msrb.gmra.mxu2 %v12172_v46  ;;  %2598 = vmatmul.bf16.vlgmr.msrb.gmra.mxu3 %v12176_v47  ;;  %v1661_v25 = vpop.f32.mrf.mxu2  ;;  %v1675_v32 = vpop.f32.mrf.mxu3  ;;  %v7873_v15 = vld [vmem:[#allocation6 + $0x8] sm:$0xf] }
 0x126   : > { %2556 = vmatmul.bf16.vlgmr.msrb.gmra.mxu0 %v12190_v5  ;;  %2570 = vmatmul.bf16.vlgmr.msrb.gmra.mxu1 %v12194_v6  ;;  %v1662_v37 = vadd.f32 %v1661_v25, %v1648_v24  ;;  %v8146_v24 = vor.u32 %v10503_v13, %v8145_v10  ;;  %v8274_v25 = vor.u32 %v10535_v17, %v8273_v14  ;;  %v8227_v10 = vld [vmem:[#allocation6 + $0x2d8] sm:$0xf0]  ;;  %v10553_v13 = vld [vmem:[#allocation6 + $0x3cc] sm:$0xf] }
 0x127   : > { %2604 = vmatpush.bf16.msra.mxu0 %v7986_v29  ;;  %2618 = vmatpush.bf16.msra.mxu1 %v8114_v31  ;;  %v10479_v29 = vld [vmem:[#allocation6 + $0x174] sm:$0xf0]  ;;  %v8177_v31 = vld [vmem:[#allocation6 + $0x268] sm:$0xf]  ;;  %v8355_v14 = vld [vmem:[#allocation6 + $0x3d8] sm:$0xf0] }
 0x128   : > { %2633 = vmatpush.bf16.msra.mxu2 %v8226_v55  ;;  %2647 = vmatpush.bf16.msra.mxu3 %v8354_v56  ;;  %v8050_v40 = vor.u32 %v10479_v29, %v8049_v28  ;;  %v12250_v45 = vadd.f32 %v1675_v32, %v1662_v37  ;;  %v8161_v55 = vld [vmem:[#allocation6 + $0x248] sm:$0xf]  ;;  %v10507_v56 = vld [vmem:[#allocation6 + $0x254] sm:$0xf0]  ;;  %v7987_v32 = vld [vmem:[#allocation6 + $0xf8] sm:$0xf0] }
 0x129   : > { %v8162_v4 = vor.u32 %v10507_v56, %v8161_v55  ;;  %v8257_v28 = vld [vmem:[#allocation6 + $0x308] sm:$0xf]  ;;  %v10531_v29 = vld [vmem:[#allocation6 + $0x314] sm:$0xf0] }
 0x12a   : > { %v12252_v59 = vpop.f32.mrf.mxu0  ;;  %v12254_v60 = vpop.f32.mrf.mxu1  ;;  %v8258_v54 = vor.u32 %v10531_v29, %v8257_v28  ;;  %v8211_v28 = vld [vmem:[#allocation6 + $0x2b8] sm:$0xf0]  ;;  %v10549_v29 = vld [vmem:[#allocation6 + $0x3ac] sm:$0xf] }
 0x12b   : > { %2605 = vmatpush.bf16.msra.mxu0 %v7970_v48  ;;  %2619 = vmatpush.bf16.msra.mxu1 %v8098_v49  ;;  %v8178_v48 = vor.u32 %v10511_v33, %v8177_v31  ;;  %v8306_v49 = vor.u32 %v10543_v35, %v8305_v34  ;;  %v10461_v31 = vld [vmem:[#allocation6 + $0xec] sm:$0xf]  ;;  %v8115_v34 = vld [vmem:[#allocation6 + $0x1f8] sm:$0xf0] }
 0x12c   : > { %2634 = vmatpush.bf16.msra.mxu2 %v8210_v8  ;;  %2648 = vmatpush.bf16.msra.mxu3 %v8338_v9  ;;  %v8017_v8 = vld [vmem:[#allocation6 + $0x128] sm:$0xf]  ;;  %v10471_v9 = vld [vmem:[#allocation6 + $0x134] sm:$0xf0]  ;;  %v10493_v33 = vld [vmem:[#allocation6 + $0x1ec] sm:$0xf]  ;;  %v7990_v56 = vor.u32 %v10461_v31, %v7987_v32 }
 0x12d   : > { %v12256_v12 = vpop.f32.mrf.mxu2  ;;  %v12258_v21 = vpop.f32.mrf.mxu3  ;;  %v10525_v35 = vld [vmem:[#allocation6 + $0x2ec] sm:$0xf]  ;;  %v8118_v57 = vor.u32 %v10493_v33, %v8115_v34  ;;  %v8339_v31 = vld [vmem:[#allocation6 + $0x3b8] sm:$0xf0] }
 0x12f   : > { %2606 = vmatpush.bf16.msra.mxu0 %v7954_v1  ;;  %2620 = vmatpush.bf16.msra.mxu1 %v8082_v2  ;;  %v7889_v1 = vld [vmem:[#allocation6 + $0x28] sm:$0xf]  ;;  %v10439_v2 = vld [vmem:[#allocation6 + $0x34] sm:$0xf0] }
 0x130   : > { %2635 = vmatpush.bf16.msra.mxu2 %v8194_v26  ;;  %2649 = vmatpush.bf16.msra.mxu3 %v8322_v27  ;;  %v7890_v50 = vor.u32 %v10439_v2, %v7889_v1  ;;  %v8129_v26 = vld [vmem:[#allocation6 + $0x208] sm:$0xf]  ;;  %v10499_v27 = vld [vmem:[#allocation6 + $0x214] sm:$0xf0]  ;;  %v8374_v2 = vor.u32 %v10557_v41, %v8371_v42  ;;  %v8342_v41 = vor.u32 %v10549_v29, %v8339_v31  ;;  %v10481_v42 = vld [vmem:[#allocation6 + $0x18c] sm:$0xf] }
 0x131   : > { %v8130_v53 = vor.u32 %v10499_v27, %v8129_v26  ;;  %v8083_v26 = vld [vmem:[#allocation6 + $0x1b8] sm:$0xf0]  ;;  %v10517_v27 = vld [vmem:[#allocation6 + $0x2ac] sm:$0xf] }
 0x132   : > { %v10505_v29 = vld [vmem:[#allocation6 + $0x24c] sm:$0xf]  ;;  %v8163_v31 = vld [vmem:[#allocation6 + $0x258] sm:$0xf0] }
 0x133   : > { %2607 = vmatpush.bf16.msra.mxu0 %v7938_v16  ;;  %2621 = vmatpush.bf16.msra.mxu1 %v8066_v52  ;;  %v8018_v16 = vor.u32 %v10471_v9, %v8017_v8  ;;  %v10435_v52 = vld [vmem:[#allocation6 + $0x14] sm:$0xf0]  ;;  %v10521_v8 = vld [vmem:[#allocation6 + $0x2cc] sm:$0xf] }
 0x134   : > { %2636 = vmatpush.bf16.msra.mxu2 %v8178_v48  ;;  %2650 = vmatpush.bf16.msra.mxu3 %v8306_v49  ;;  %v7874_v37 = vor.u32 %v10435_v52, %v7873_v15  ;;  %v1689_v48 = vpop.f32.mrf.mxu0  ;;  %v1703_v49 = vpop.f32.mrf.mxu1  ;;  %v10453_v52 = vld [vmem:[#allocation6 + $0xac] sm:$0xf] }
 0x135   : > { %v1704_v55 = vadd.f32 %v1703_v49, %v1689_v48  ;;  %v1731_v17 = vpop.f32.mrf.mxu3  ;;  %v8067_v48 = vld [vmem:[#allocation6 + $0x198] sm:$0xf0]  ;;  %v10513_v49 = vld [vmem:[#allocation6 + $0x28c] sm:$0xf] }
 0x137   : > { %2608 = vmatpush.bf16.msra.mxu0 %v7922_v39  ;;  %2622 = vmatpush.bf16.msra.mxu1 %v8050_v40  ;;  %v8002_v39 = vor.u32 %v10467_v23, %v8001_v22  ;;  %v8243_v40 = vld [vmem:[#allocation6 + $0x2f8] sm:$0xf0]  ;;  %v8230_v23 = vor.u32 %v10521_v8, %v8227_v10  ;;  %v10509_v8 = vld [vmem:[#allocation6 + $0x26c] sm:$0xf] }
 0x138   : > { %2637 = vmatpush.bf16.msra.mxu2 %v8162_v4  ;;  %2651 = vmatpush.bf16.msra.mxu3 %v8290_v7  ;;  %v8246_v1 = vor.u32 %v10525_v35, %v8243_v40  ;;  %v10489_v4 = vld [vmem:[#allocation6 + $0x1cc] sm:$0xf]  ;;  %v8099_v7 = vld [vmem:[#allocation6 + $0x1d8] sm:$0xf0]  ;;  %v8214_v40 = vor.u32 %v10517_v27, %v8211_v28 }
 0x139   : > { %v7955_v22 = vld [vmem:[#allocation6 + $0xb8] sm:$0xf0]  ;;  %v10541_v10 = vld [vmem:[#allocation6 + $0x36c] sm:$0xf] }
 0x13a   : > { %v7958_v34 = vor.u32 %v10453_v52, %v7955_v22  ;;  %v10441_v22 = vld [vmem:[#allocation6 + $0x4c] sm:$0xf]  ;;  %v8035_v28 = vld [vmem:[#allocation6 + $0x158] sm:$0xf0] }
 0x13b   : > { %2609 = vmatpush.bf16.msra.mxu0 %v7906_v61  ;;  %2623 = vmatpush.bf16.msra.mxu1 %v8034_v62  ;;  %v7971_v61 = vld [vmem:[#allocation6 + $0xd8] sm:$0xf0]  ;;  %v1717_v62 = vpop.f32.mrf.mxu2  ;;  %v10473_v27 = vld [vmem:[#allocation6 + $0x14c] sm:$0xf] }
 0x13c   : > { %2638 = vmatpush.bf16.msra.mxu2 %v8146_v24  ;;  %2652 = vmatpush.bf16.msra.mxu3 %v8274_v25  ;;  %v1718_v9 = vadd.f32 %v1717_v62, %v1704_v55  ;;  %v8358_v24 = vor.u32 %v10553_v13, %v8355_v14  ;;  %v10485_v25 = vld [vmem:[#allocation6 + $0x1ac] sm:$0xf]  ;;  %v12266_v32 = vpop.f32.mrf.mxu0  ;;  %v12268_v33 = vpop.f32.mrf.mxu1  ;;  %v8323_v55 = vld [vmem:[#allocation6 + $0x398] sm:$0xf0] }
 0x13d   : > { %v8086_v35 = vor.u32 %v10485_v25, %v8083_v26  ;;  %v7923_v62 = vld [vmem:[#allocation6 + $0x78] sm:$0xf0]  ;;  %v12272_v14 = vpop.f32.mrf.mxu3 }
 0x13e   : > { %v12260_v15 = vadd.f32 %v1731_v17, %v1718_v9  ;;  %v8179_v9 = vld [vmem:[#allocation6 + $0x278] sm:$0xf0] }
 0x13f   : > { %2610 = vmatpush.bf16.msra.mxu0 %v7890_v50  ;;  %2624 = vmatpush.bf16.msra.mxu1 %v8018_v16  ;;  %v7974_v50 = vor.u32 %v10457_v58, %v7971_v61  ;;  %v8102_v16 = vor.u32 %v10489_v4, %v8099_v7  ;;  %v10445_v61 = vld [vmem:[#allocation6 + $0x6c] sm:$0xf]  ;;  %v8051_v7 = vld [vmem:[#allocation6 + $0x178] sm:$0xf0]  ;;  %v8182_v25 = vor.u32 %v10509_v8, %v8179_v9 }
 0x140   : > { %2639 = vmatpush.bf16.msra.mxu2 %v8130_v53  ;;  %2653 = vmatpush.bf16.msra.mxu3 %v8258_v54  ;;  %v8195_v53 = vld [vmem:[#allocation6 + $0x298] sm:$0xf0]  ;;  %v10545_v54 = vld [vmem:[#allocation6 + $0x38c] sm:$0xf] }
 0x141   : > { %v10477_v4 = vld [vmem:[#allocation6 + $0x16c] sm:$0xf]  ;;  %v8307_v13 = vld [vmem:[#allocation6 + $0x378] sm:$0xf0] }
 0x142   : > { %v8054_v52 = vor.u32 %v10477_v4, %v8051_v7  ;;  %v8310_v26 = vor.u32 %v10541_v10, %v8307_v13  ;;  %v7875_v9 = vld [vmem:[#allocation6 + $0x18] sm:$0xf0]  ;;  %v10465_v10 = vld [vmem:[#allocation6 + $0x10c] sm:$0xf] }
 0x143   : > { %2611 = vmatpush.bf16.msra.mxu0 %v7874_v37  ;;  %2625 = vmatpush.bf16.msra.mxu1 %v8002_v39  ;;  %v10449_v37 = vld [vmem:[#allocation6 + $0x8c] sm:$0xf]  ;;  %v7939_v39 = vld [vmem:[#allocation6 + $0x98] sm:$0xf0]  ;;  %v12270_v58 = vpop.f32.mrf.mxu2 }
 0x144   : > { %2688 = vmatpush.bf16.msrb.mxu2 %v8246_v1  ;;  %2702 = vmatpush.bf16.msrb.mxu3 %v8374_v2  ;;  %v8198_v1 = vor.u32 %v10513_v49, %v8195_v53  ;;  %v8326_v2 = vor.u32 %v10545_v54, %v8323_v55  ;;  %v1745_v17 = vpop.f32.mrf.mxu0  ;;  %v10469_v53 = vld [vmem:[#allocation6 + $0x12c] sm:$0xf]  ;;  %v8019_v54 = vld [vmem:[#allocation6 + $0x138] sm:$0xf0] }
 0x145   : > { %2640 = vmatmul.bf16.vlgmr.msra.gmra.mxu2 %v12172_v46  ;;  %2654 = vmatmul.bf16.vlgmr.msra.gmra.mxu3 %v12176_v47  ;;  %v10501_v55 = vld [vmem:[#allocation6 + $0x22c] sm:$0xf]  ;;  %v8022_v8 = vor.u32 %v10469_v53, %v8019_v54  ;;  %v8003_v13 = vld [vmem:[#allocation6 + $0x118] sm:$0xf0] }
 0x146   : > { %2612 = vmatmul.bf16.vlgmr.msra.gmra.mxu0 %v12190_v5  ;;  %2626 = vmatmul.bf16.vlgmr.msra.gmra.mxu1 %v12194_v6 }
 0x147   : > { %2660 = vmatpush.bf16.msrb.mxu0 %v7990_v56  ;;  %2674 = vmatpush.bf16.msrb.mxu1 %v8118_v57  ;;  %v7942_v56 = vor.u32 %v10449_v37, %v7939_v39  ;;  %v8070_v57 = vor.u32 %v10481_v42, %v8067_v48  ;;  %v8038_v39 = vor.u32 %v10473_v27, %v8035_v28  ;;  %v10750_v27 = vld [vmem:[#allocation6 + $0x9ec] sm:$0xf0]  ;;  %v8745_v28 = vld [vmem:[#allocation6 + $0xae0] sm:$0xf] }
 0x148   : > { %2689 = vmatpush.bf16.msrb.mxu2 %v8230_v23  ;;  %2703 = vmatpush.bf16.msrb.mxu3 %v8358_v24  ;;  %v7907_v23 = vld [vmem:[#allocation6 + $0x58] sm:$0xf0]  ;;  %v8166_v48 = vor.u32 %v10505_v29, %v8163_v31  ;;  %v8006_v31 = vor.u32 %v10465_v10, %v8003_v13 }
 0x149   : > { %v7910_v37 = vor.u32 %v10441_v22, %v7907_v23  ;;  %v10529_v22 = vld [vmem:[#allocation6 + $0x30c] sm:$0xf]  ;;  %v8259_v23 = vld [vmem:[#allocation6 + $0x318] sm:$0xf0] }
 0x14b   : > { %2661 = vmatpush.bf16.msrb.mxu0 %v7974_v50  ;;  %2675 = vmatpush.bf16.msrb.mxu1 %v8102_v16  ;;  %v1759_v50 = vpop.f32.mrf.mxu1  ;;  %v7926_v16 = vor.u32 %v10445_v61, %v7923_v62  ;;  %v1773_v42 = vpop.f32.mrf.mxu2  ;;  %v10533_v61 = vld [vmem:[#allocation6 + $0x32c] sm:$0xf]  ;;  %v8275_v62 = vld [vmem:[#allocation6 + $0x338] sm:$0xf0] }
 0x14c   : > { %2690 = vmatpush.bf16.msrb.mxu2 %v8214_v40  ;;  %2704 = vmatpush.bf16.msrb.mxu3 %v8342_v41  ;;  %v1760_v24 = vadd.f32 %v1759_v50, %v1745_v17  ;;  %v10437_v40 = vld [vmem:[#allocation6 + $0x2c] sm:$0xf]  ;;  %v7891_v41 = vld [vmem:[#allocation6 + $0x38] sm:$0xf0]  ;;  %v8278_v50 = vor.u32 %v10533_v61, %v8275_v62  ;;  %v10778_v61 = vld [vmem:[#allocation6 + $0xacc] sm:$0xf0] }
 0x14d   : > { %v7894_v7 = vor.u32 %v10437_v40, %v7891_v41  ;;  %v8262_v40 = vor.u32 %v10529_v22, %v8259_v23  ;;  %v8857_v62 = vld [vmem:[#allocation6 + $0xbc0] sm:$0xf]  ;;  %v10806_v23 = vld [vmem:[#allocation6 + $0xbac] sm:$0xf0] }
 0x14e   : > { %v8841_v22 = vld [vmem:[#allocation6 + $0xba0] sm:$0xf] }
 0x14f   : > { %2662 = vmatpush.bf16.msrb.mxu0 %v7958_v34  ;;  %2676 = vmatpush.bf16.msrb.mxu1 %v8086_v35  ;;  %v10537_v34 = vld [vmem:[#allocation6 + $0x34c] sm:$0xf]  ;;  %v8291_v35 = vld [vmem:[#allocation6 + $0x358] sm:$0xf0] }
 0x150   : > { %2691 = vmatpush.bf16.msrb.mxu2 %v8198_v1  ;;  %2705 = vmatpush.bf16.msrb.mxu3 %v8326_v2  ;;  %v8294_v49 = vor.u32 %v10537_v34, %v8291_v35  ;;  %v1787_v1 = vpop.f32.mrf.mxu3  ;;  %v10433_v2 = vld [vmem:[#allocation6 + $0xc] sm:$0xf]  ;;  %v10782_v34 = vld [vmem:[#allocation6 + $0xaec] sm:$0xf0]  ;;  %v8873_v35 = vld [vmem:[#allocation6 + $0xbe0] sm:$0xf] }
 0x151   : > { %v7878_v29 = vor.u32 %v10433_v2, %v7875_v9  ;;  %v8746_v53 = vor.u32 %v10782_v34, %v8745_v28  ;;  %v10710_v9 = vld [vmem:[#allocation6 + $0x8ac] sm:$0xf0]  ;;  %v8441_v28 = vld [vmem:[#allocation6 + $0x880] sm:$0xf] }
 0x152   : > { %v10738_v34 = vld [vmem:[#allocation6 + $0x98c] sm:$0xf0] }
 0x153   : > { %2663 = vmatpush.bf16.msrb.mxu0 %v7942_v56  ;;  %2677 = vmatpush.bf16.msrb.mxu1 %v8070_v57  ;;  %v1774_v56 = vadd.f32 %v1773_v42, %v1760_v24  ;;  %v8147_v57 = vld [vmem:[#allocation6 + $0x238] sm:$0xf0]  ;;  %v8489_v24 = vld [vmem:[#allocation6 + $0x8e0] sm:$0xf] }
 0x154   : > { %2692 = vmatpush.bf16.msrb.mxu2 %v8182_v25  ;;  %2706 = vmatpush.bf16.msrb.mxu3 %v8310_v26  ;;  %v8150_v17 = vor.u32 %v10501_v55, %v8147_v57  ;;  %v10718_v25 = vld [vmem:[#allocation6 + $0x8ec] sm:$0xf0]  ;;  %v8617_v26 = vld [vmem:[#allocation6 + $0x9e0] sm:$0xf] }
 0x155   : > { %v12274_v4 = vadd.f32 %v1787_v1, %v1774_v56  ;;  %v8490_v41 = vor.u32 %v10718_v25, %v8489_v24  ;;  %v8618_v42 = vor.u32 %v10750_v27, %v8617_v26  ;;  %v8601_v55 = vld [vmem:[#allocation6 + $0x9c0] sm:$0xf]  ;;  %v10746_v56 = vld [vmem:[#allocation6 + $0x9cc] sm:$0xf0]  ;;  %v12278_v24 = vpop.f32.mrf.mxu0  ;;  %v12280_v25 = vpop.f32.mrf.mxu1 }
 0x156   : > { %v8729_v57 = vld [vmem:[#allocation6 + $0xac0] sm:$0xf]  ;;  %v10810_v1 = vld [vmem:[#allocation6 + $0xbcc] sm:$0xf0] }
 0x157   : > { %2664 = vmatpush.bf16.msrb.mxu0 %v7926_v16  ;;  %2678 = vmatpush.bf16.msrb.mxu1 %v8054_v52  ;;  %v10497_v16 = vld [vmem:[#allocation6 + $0x20c] sm:$0xf]  ;;  %v8131_v52 = vld [vmem:[#allocation6 + $0x218] sm:$0xf0]  ;;  %v8730_v10 = vor.u32 %v10778_v61, %v8729_v57  ;;  %v8858_v13 = vor.u32 %v10810_v1, %v8857_v62  ;;  %v10766_v61 = vld [vmem:[#allocation6 + $0xa6c] sm:$0xf0] }
 0x158   : > { %2693 = vmatpush.bf16.msrb.mxu2 %v8166_v48  ;;  %2707 = vmatpush.bf16.msrb.mxu3 %v8294_v49  ;;  %v8473_v48 = vld [vmem:[#allocation6 + $0x8c0] sm:$0xf]  ;;  %v10714_v49 = vld [vmem:[#allocation6 + $0x8cc] sm:$0xf0]  ;;  %v12286_v57 = vpop.f32.mrf.mxu3 }
 0x159   : > { %v8474_v2 = vor.u32 %v10714_v49, %v8473_v48  ;;  %v10702_v48 = vld [vmem:[#allocation6 + $0x86c] sm:$0xf0]  ;;  %v8809_v62 = vld [vmem:[#allocation6 + $0xb60] sm:$0xf] }
 0x15a   : > { %v10798_v1 = vld [vmem:[#allocation6 + $0xb6c] sm:$0xf0] }
 0x15b   : > { %2665 = vmatpush.bf16.msrb.mxu0 %v7910_v37  ;;  %2679 = vmatpush.bf16.msrb.mxu1 %v8038_v39  ;;  %v10814_v37 = vld [vmem:[#allocation6 + $0xbec] sm:$0xf0]  ;;  %v8134_v39 = vor.u32 %v10497_v16, %v8131_v52  ;;  %v8713_v16 = vld [vmem:[#allocation6 + $0xaa0] sm:$0xf] }
 0x15c   : > { %2694 = vmatpush.bf16.msrb.mxu2 %v8150_v17  ;;  %2708 = vmatpush.bf16.msrb.mxu3 %v8278_v50  ;;  %v8874_v54 = vor.u32 %v10814_v37, %v8873_v35  ;;  %v8585_v17 = vld [vmem:[#allocation6 + $0x9a0] sm:$0xf]  ;;  %v10742_v50 = vld [vmem:[#allocation6 + $0x9ac] sm:$0xf0] }
 0x15d   : > { %v10774_v52 = vld [vmem:[#allocation6 + $0xaac] sm:$0xf0]  ;;  %v8586_v27 = vor.u32 %v10742_v50, %v8585_v17  ;;  %v8697_v35 = vld [vmem:[#allocation6 + $0xa80] sm:$0xf] }
 0x15e   : > { %v10770_v37 = vld [vmem:[#allocation6 + $0xa8c] sm:$0xf0]  ;;  %v8537_v50 = vld [vmem:[#allocation6 + $0x940] sm:$0xf] }
 0x15f   : > { %2666 = vmatpush.bf16.msrb.mxu0 %v7894_v7  ;;  %2680 = vmatpush.bf16.msrb.mxu1 %v8022_v8  ;;  %v8602_v7 = vor.u32 %v10746_v56, %v8601_v55  ;;  %v8457_v8 = vld [vmem:[#allocation6 + $0x8a0] sm:$0xf]  ;;  %v8698_v49 = vor.u32 %v10770_v37, %v8697_v35  ;;  %v10734_v55 = vld [vmem:[#allocation6 + $0x96c] sm:$0xf0] }
 0x160   : > { %2695 = vmatpush.bf16.msrb.mxu2 %v8134_v39  ;;  %2709 = vmatpush.bf16.msrb.mxu3 %v8262_v40  ;;  %v8458_v26 = vor.u32 %v10710_v9, %v8457_v8  ;;  %v8825_v39 = vld [vmem:[#allocation6 + $0xb80] sm:$0xf]  ;;  %v10802_v40 = vld [vmem:[#allocation6 + $0xb8c] sm:$0xf0] }
 0x161   : > { %v8681_v56 = vld [vmem:[#allocation6 + $0xa60] sm:$0xf]  ;;  %v10698_v17 = vld [vmem:[#allocation6 + $0x84c] sm:$0xf0] }
 0x163   : > { %2667 = vmatpush.bf16.msrb.mxu0 %v7878_v29  ;;  %2681 = vmatpush.bf16.msrb.mxu1 %v8006_v31  ;;  %v10706_v29 = vld [vmem:[#allocation6 + $0x88c] sm:$0xf0]  ;;  %v8569_v31 = vld [vmem:[#allocation6 + $0x980] sm:$0xf] }
 0x164   : > { %3542 = vmatpush.bf16.msra.mxu2 %v8746_v53  ;;  %3556 = vmatpush.bf16.msra.mxu3 %v8874_v54  ;;  %v8826_v53 = vor.u32 %v10802_v40, %v8825_v39  ;;  %v8553_v54 = vld [vmem:[#allocation6 + $0x960] sm:$0xf]  ;;  %v10726_v40 = vld [vmem:[#allocation6 + $0x92c] sm:$0xf0] }
 0x165   : > { %2696 = vmatmul.bf16.vlgmr.msrb.gmra.mxu2 %v12172_v46  ;;  %2710 = vmatmul.bf16.vlgmr.msrb.gmra.mxu3 %v12176_v47  ;;  %v8714_v46 = vor.u32 %v10774_v52, %v8713_v16  ;;  %v8442_v47 = vor.u32 %v10706_v29, %v8441_v28  ;;  %v8682_v16 = vor.u32 %v10766_v61, %v8681_v56  ;;  %v8793_v28 = vld [vmem:[#allocation6 + $0xb40] sm:$0xf]  ;;  %v10794_v29 = vld [vmem:[#allocation6 + $0xb4c] sm:$0xf0] }
 0x166   : > { %2668 = vmatmul.bf16.vlgmr.msrb.gmra.mxu0 %v12190_v5  ;;  %2682 = vmatmul.bf16.vlgmr.msrb.gmra.mxu1 %v12194_v6  ;;  %v8842_v5 = vor.u32 %v10806_v23, %v8841_v22  ;;  %v8570_v6 = vor.u32 %v10738_v34, %v8569_v31  ;;  %v8810_v52 = vor.u32 %v10798_v1, %v8809_v62  ;;  %v10730_v22 = vld [vmem:[#allocation6 + $0x94c] sm:$0xf0]  ;;  %v8665_v23 = vld [vmem:[#allocation6 + $0xa40] sm:$0xf]  ;;  %v2716_v34 = vld [vmem:[#allocation2 + $0x18] sm:$0xee] }
 0x167   : > { %3514 = vmatpush.bf16.msra.mxu0 %v8490_v41  ;;  %3528 = vmatpush.bf16.msra.mxu1 %v8618_v42  ;;  %v12284_v41 = vpop.f32.mrf.mxu2  ;;  %v8425_v42 = vld [vmem:[#allocation6 + $0x860] sm:$0xf]  ;;  %v8538_v37 = vor.u32 %v10730_v22, %v8537_v50  ;;  %v10690_v1 = vld [vmem:[#allocation6 + $0x80c] sm:$0xf0] }
 0x168   : > { %3543 = vmatpush.bf16.msra.mxu2 %v8730_v10  ;;  %3557 = vmatpush.bf16.msra.mxu3 %v8858_v13  ;;  %v8426_v9 = vor.u32 %v10702_v48, %v8425_v42  ;;  %v8554_v10 = vor.u32 %v10734_v55, %v8553_v54  ;;  %v8409_v13 = vld [vmem:[#allocation6 + $0x840] sm:$0xf]  ;;  %v10790_v55 = vld [vmem:[#allocation6 + $0xb2c] sm:$0xf0]  ;;  %v1843_v56 = vpop.f32.mrf.mxu3 }
 0x169   : > { %v8410_v35 = vor.u32 %v10698_v17, %v8409_v13  ;;  %v8521_v39 = vld [vmem:[#allocation6 + $0x920] sm:$0xf]  ;;  %v10722_v13 = vld [vmem:[#allocation6 + $0x90c] sm:$0xf0] }
 0x16a   : > { %v8777_v54 = vld [vmem:[#allocation6 + $0xb20] sm:$0xf]  ;;  %v10786_v22 = vld [vmem:[#allocation6 + $0xb0c] sm:$0xf0] }
 0x16b   : > { %3515 = vmatpush.bf16.msra.mxu0 %v8474_v2  ;;  %3529 = vmatpush.bf16.msra.mxu1 %v8602_v7  ;;  %v1801_v2 = vpop.f32.mrf.mxu0  ;;  %v1815_v7 = vpop.f32.mrf.mxu1  ;;  %v8377_v62 = vld [vmem:[#allocation6 + $0x800] sm:$0xf] }
 0x16c   : > { %3544 = vmatpush.bf16.msra.mxu2 %v8714_v46  ;;  %3558 = vmatpush.bf16.msra.mxu3 %v8842_v5  ;;  %v1816_v8 = vadd.f32 %v1815_v7, %v1801_v2  ;;  %v8393_v46 = vld [vmem:[#allocation6 + $0x820] sm:$0xf]  ;;  %v10694_v5 = vld [vmem:[#allocation6 + $0x82c] sm:$0xf0] }
 0x16d   : > { %v8505_v2 = vld [vmem:[#allocation6 + $0x900] sm:$0xf]  ;;  %v8394_v50 = vor.u32 %v10694_v5, %v8393_v46 }
 0x16e   : > { %v8633_v17 = vld [vmem:[#allocation6 + $0xa00] sm:$0xf] }
 0x16f   : > { %3516 = vmatpush.bf16.msra.mxu0 %v8458_v26  ;;  %3530 = vmatpush.bf16.msra.mxu1 %v8586_v27  ;;  %v2717_v26 = vld [vmem:[#allocation2 + $0x20] sm:$0xee]  ;;  %v1829_v31 = vpop.f32.mrf.mxu2 }
 0x170   : > { %3545 = vmatpush.bf16.msra.mxu2 %v8698_v49  ;;  %3559 = vmatpush.bf16.msra.mxu3 %v8826_v53  ;;  %v10762_v27 = vld [vmem:[#allocation6 + $0xa4c] sm:$0xf0]  ;;  %v2851_v42 = vunpack.c.l.b16 %v2717_v26  ;;  %v8794_v49 = vor.u32 %v10794_v29, %v8793_v28  ;;  %v2852_v61 = vunpack.c.h.b16 %v2717_v26  ;;  %v8778_v28 = vor.u32 %v10790_v55, %v8777_v54  ;;  %v8491_v29 = vld [vmem:[#allocation6 + $0x8f0] sm:$0xf0] }
 0x171   : > { %v8666_v48 = vor.u32 %v10762_v27, %v8665_v23  ;;  %v10758_v53 = vld [vmem:[#allocation6 + $0xa2c] sm:$0xf0]  ;;  %v10716_v23 = vld [vmem:[#allocation6 + $0x8e4] sm:$0xf]  ;;  %v8475_v54 = vld [vmem:[#allocation6 + $0x8d0] sm:$0xf0] }
 0x172   : > { %v2855_v26 = vpack.c.b16 %v917_v36, %v2851_v42  ;;  %v10780_v36 = vld [vmem:[#allocation6 + $0xae4] sm:$0xf]  ;;  %v8494_v42 = vor.u32 %v10716_v23, %v8491_v29 }
 0x173   : > { %3517 = vmatpush.bf16.msra.mxu0 %v8442_v47  ;;  %3531 = vmatpush.bf16.msra.mxu1 %v8570_v6  ;;  %v8649_v47 = vld [vmem:[#allocation6 + $0xa20] sm:$0xf]  ;;  %v1830_v6 = vadd.f32 %v1829_v31, %v1816_v8  ;;  %v10754_v8 = vld [vmem:[#allocation6 + $0xa0c] sm:$0xf0]  ;;  %v10748_v31 = vld [vmem:[#allocation6 + $0x9e4] sm:$0xf] }
 0x174   : > { %3546 = vmatpush.bf16.msra.mxu2 %v8682_v16  ;;  %3560 = vmatpush.bf16.msra.mxu3 %v8810_v52  ;;  %v8522_v16 = vor.u32 %v10726_v40, %v8521_v39  ;;  %v8761_v52 = vld [vmem:[#allocation6 + $0xb00] sm:$0xf]  ;;  %v8650_v27 = vor.u32 %v10758_v53, %v8649_v47  ;;  %v8634_v39 = vor.u32 %v10754_v8, %v8633_v17  ;;  %v8747_v40 = vld [vmem:[#allocation6 + $0xaf0] sm:$0xf0]  ;;  %v2864_v30 = vrot.slane %v2855_v26, 1  ;;  %v12302_v17 = vpop.f32.mrf.mxu0 }
 0x175   : > { %v12288_v7 = vadd.f32 %v1843_v56, %v1830_v6  ;;  %v2856_v6 = vpack.c.b16 %v918_v38, %v2852_v61  ;;  %v8762_v47 = vor.u32 %v10786_v22, %v8761_v52  ;;  %v8875_v53 = vld [vmem:[#allocation6 + $0xbf0] sm:$0xf0]  ;;  %v2865_v38 = vrot.slane %v12200_v18, 1  ;;  %v10808_v8 = vld [vmem:[#allocation6 + $0xbc4] sm:$0xf] }
 0x176   : > { %v2859_v56 = vrot.slane %v12208_v43, 1  ;;  %v8731_v18 = vld [vmem:[#allocation6 + $0xad0] sm:$0xf0]  ;;  %v10708_v26 = vld [vmem:[#allocation6 + $0x8a4] sm:$0xf] }
 0x177   : > { %3518 = vmatpush.bf16.msra.mxu0 %v8426_v9  ;;  %3532 = vmatpush.bf16.msra.mxu1 %v8554_v10  ;;  %v2849_v9 = vunpack.c.l.b16 %v2716_v34  ;;  %v2850_v10 = vunpack.c.h.b16 %v2716_v34  ;;  %v8619_v34 = vld [vmem:[#allocation6 + $0x9f0] sm:$0xf0]  ;;  %v2867_v51 = vrot.slane %v2856_v6, 1  ;;  %v12307_v43 = vsel %vm2857_vm4, %v2864_v30, %v2865_v38  ;;  %v10772_v6 = vld [vmem:[#allocation6 + $0xaa4] sm:$0xf] }
 0x178   : > { %3547 = vmatpush.bf16.msra.mxu2 %v8666_v48  ;;  %3561 = vmatpush.bf16.msra.mxu3 %v8794_v49  ;;  %v8622_v48 = vor.u32 %v10748_v31, %v8619_v34  ;;  %v10812_v49 = vld [vmem:[#allocation6 + $0xbe4] sm:$0xf]  ;;  %v8587_v34 = vld [vmem:[#allocation6 + $0x9b0] sm:$0xf0] }
 0x179   : > { %v2853_v46 = vpack.c.b16 %v915_v63, %v2849_v9  ;;  %v2854_v5 = vpack.c.b16 %v916_v0, %v2850_v10  ;;  %v2868_v63 = vrot.slane %v12202_v20, 1  ;;  %v10712_v0 = vld [vmem:[#allocation6 + $0x8c4] sm:$0xf]  ;;  %v8603_v10 = vld [vmem:[#allocation6 + $0x9d0] sm:$0xf0] }
 0x17a   : > { %v10744_v9 = vld [vmem:[#allocation6 + $0x9c4] sm:$0xf]  ;;  %v8859_v20 = vld [vmem:[#allocation6 + $0xbd0] sm:$0xf0] }
 0x17b   : > { %3519 = vmatpush.bf16.msra.mxu0 %v8410_v35  ;;  %3533 = vmatpush.bf16.msra.mxu1 %v8538_v37  ;;  %v8378_v35 = vor.u32 %v10690_v1, %v8377_v62  ;;  %v8506_v37 = vor.u32 %v10722_v13, %v8505_v2  ;;  %v2858_v55 = vrot.slane %v2853_v46, 1  ;;  %v2861_v61 = vrot.slane %v2854_v5, 1  ;;  %v10776_v13 = vld [vmem:[#allocation6 + $0xac4] sm:$0xf]  ;;  %v8715_v46 = vld [vmem:[#allocation6 + $0xab0] sm:$0xf0] }
 0x17c   : > { %3548 = vmatpush.bf16.msra.mxu2 %v8650_v27  ;;  %3562 = vmatpush.bf16.msra.mxu3 %v8778_v28  ;;  %v2862_v62 = vrot.slane %v12210_v44, 1  ;;  %v8750_v1 = vor.u32 %v10780_v36, %v8747_v40  ;;  %v8878_v2 = vor.u32 %v10812_v49, %v8875_v53  ;;  %v12310_v44 = vsel %vm2857_vm4, %v2867_v51, %v2868_v63  ;;  %v8459_v27 = vld [vmem:[#allocation6 + $0x8b0] sm:$0xf0]  ;;  %v10740_v31 = vld [vmem:[#allocation6 + $0x9a4] sm:$0xf] }
 0x17d   : > { %v8606_v52 = vor.u32 %v10744_v9, %v8603_v10  ;;  %v12313_v22 = vsel %vm2857_vm4, %v2858_v55, %v2859_v56  ;;  %v8734_v28 = vor.u32 %v10776_v13, %v8731_v18  ;;  %v8862_v29 = vor.u32 %v10808_v8, %v8859_v20  ;;  %v10804_v5 = vld [vmem:[#allocation6 + $0xba4] sm:$0xf]  ;;  %v8571_v30 = vld [vmem:[#allocation6 + $0x990] sm:$0xf0] }
 0x17e   : > { %v12316_v23 = vsel %vm2857_vm4, %v2861_v61, %v2862_v62  ;;  %v8462_v36 = vor.u32 %v10708_v26, %v8459_v27  ;;  %v8590_v40 = vor.u32 %v10740_v31, %v8587_v34  ;;  %v10736_v53 = vld [vmem:[#allocation6 + $0x984] sm:$0xf]  ;;  %v8699_v51 = vld [vmem:[#allocation6 + $0xa90] sm:$0xf0] }
 0x17f   : > { %3520 = vmatpush.bf16.msra.mxu0 %v8394_v50  ;;  %3534 = vmatpush.bf16.msra.mxu1 %v8522_v16  ;;  %v12304_v50 = vpop.f32.mrf.mxu1  ;;  %v8478_v16 = vor.u32 %v10712_v0, %v8475_v54  ;;  %v10768_v38 = vld [vmem:[#allocation6 + $0xa84] sm:$0xf]  ;;  %v8827_v0 = vld [vmem:[#allocation6 + $0xb90] sm:$0xf0]  ;;  %v8574_v56 = vor.u32 %v10736_v53, %v8571_v30 }
 0x180   : > { %3549 = vmatpush.bf16.msra.mxu2 %v8634_v39  ;;  %3563 = vmatpush.bf16.msra.mxu3 %v8762_v47  ;;  %v12324_v39 = vpop.f32.mrf.mxu3  ;;  %v10704_v47 = vld [vmem:[#allocation6 + $0x884] sm:$0xf]  ;;  %v8702_v9 = vor.u32 %v10768_v38, %v8699_v51  ;;  %v8555_v18 = vld [vmem:[#allocation6 + $0x970] sm:$0xf0] }
 0x181   : > { %v10800_v63 = vld [vmem:[#allocation6 + $0xb84] sm:$0xf]  ;;  %v8683_v20 = vld [vmem:[#allocation6 + $0xa70] sm:$0xf0] }
 0x182   : > { %v10700_v62 = vld [vmem:[#allocation6 + $0x864] sm:$0xf]  ;;  %v8830_v10 = vor.u32 %v10800_v63, %v8827_v0  ;;  %v8411_v31 = vld [vmem:[#allocation6 + $0x850] sm:$0xf0] }
 0x183   : > { %3521 = vmatpush.bf16.msra.mxu0 %v8378_v35  ;;  %3535 = vmatpush.bf16.msra.mxu1 %v8506_v37  ;;  %v8843_v35 = vld [vmem:[#allocation6 + $0xbb0] sm:$0xf0]  ;;  %v12322_v37 = vpop.f32.mrf.mxu2  ;;  %v2501_v54 = vpop.f32.mrf.mxu0  ;;  %v10732_v13 = vld [vmem:[#allocation6 + $0x964] sm:$0xf] }
 0x184   : > { %3598 = vmatpush.bf16.msrb.mxu2 %v8750_v1  ;;  %3612 = vmatpush.bf16.msrb.mxu3 %v8878_v2  ;;  %v8846_v49 = vor.u32 %v10804_v5, %v8843_v35  ;;  %v8427_v1 = vld [vmem:[#allocation6 + $0x870] sm:$0xf0]  ;;  %v2502_v2 = vadd.f32 %v2501_v54, %v12250_v45  ;;  %v10764_v8 = vld [vmem:[#allocation6 + $0xa64] sm:$0xf] }
 0x185   : > { %3550 = vmatmul.bf16.vlgmr.msra.gmra.mxu2 %v12307_v43  ;;  %3564 = vmatmul.bf16.vlgmr.msra.gmra.mxu3 %v12310_v44  ;;  %v8430_v27 = vor.u32 %v10700_v62, %v8427_v1  ;;  %v8686_v34 = vor.u32 %v10764_v8, %v8683_v20  ;;  %v10728_v5 = vld [vmem:[#allocation6 + $0x944] sm:$0xf]  ;;  %v8539_v35 = vld [vmem:[#allocation6 + $0x950] sm:$0xf0] }
 0x186   : > { %3522 = vmatmul.bf16.vlgmr.msra.gmra.mxu0 %v12313_v22  ;;  %3536 = vmatmul.bf16.vlgmr.msra.gmra.mxu1 %v12316_v23  ;;  %v8542_v30 = vor.u32 %v10728_v5, %v8539_v35  ;;  %v10692_v38 = vld [vmem:[#allocation6 + $0x824] sm:$0xf]  ;;  %v8395_v51 = vld [vmem:[#allocation6 + $0x830] sm:$0xf0]  ;;  %v10783_v35 = vld [vmem:[#allocation6 + $0xaf4] sm:$0xf0] }
 0x187   : > { %3570 = vmatpush.bf16.msrb.mxu0 %v8494_v42  ;;  %3584 = vmatpush.bf16.msrb.mxu1 %v8622_v48  ;;  %v8443_v42 = vld [vmem:[#allocation6 + $0x890] sm:$0xf0]  ;;  %v8718_v48 = vor.u32 %v10772_v6, %v8715_v46  ;;  %v2515_v61 = vpop.f32.mrf.mxu1  ;;  %v10724_v54 = vld [vmem:[#allocation6 + $0x924] sm:$0xf] }
 0x188   : > { %3599 = vmatpush.bf16.msrb.mxu2 %v8734_v28  ;;  %3613 = vmatpush.bf16.msrb.mxu3 %v8862_v29  ;;  %v8446_v55 = vor.u32 %v10704_v47, %v8443_v42  ;;  %v2516_v26 = vadd.f32 %v2515_v61, %v2502_v2  ;;  %v8558_v28 = vor.u32 %v10732_v13, %v8555_v18  ;;  %v10696_v29 = vld [vmem:[#allocation6 + $0x844] sm:$0xf]  ;;  %v2543_v46 = vpop.f32.mrf.mxu3  ;;  %v8667_v47 = vld [vmem:[#allocation6 + $0xa50] sm:$0xf0] }
 0x189   : > { %v10792_v42 = vld [vmem:[#allocation6 + $0xb44] sm:$0xf]  ;;  %v8414_v53 = vor.u32 %v10696_v29, %v8411_v31  ;;  %v8651_v61 = vld [vmem:[#allocation6 + $0xa30] sm:$0xf0]  ;;  %v8497_v29 = vld [vmem:[#allocation6 + $0x8e8] sm:$0xf] }
 0x18a   : > { %v10788_v62 = vld [vmem:[#allocation6 + $0xb24] sm:$0xf]  ;;  %v8779_v1 = vld [vmem:[#allocation6 + $0xb30] sm:$0xf0]  ;;  %v10719_v31 = vld [vmem:[#allocation6 + $0x8f4] sm:$0xf0] }
 0x18b   : > { %3571 = vmatpush.bf16.msrb.mxu0 %v8478_v16  ;;  %3585 = vmatpush.bf16.msrb.mxu1 %v8606_v52  ;;  %v10796_v16 = vld [vmem:[#allocation6 + $0xb64] sm:$0xf]  ;;  %v8811_v52 = vld [vmem:[#allocation6 + $0xb70] sm:$0xf0]  ;;  %v2529_v45 = vpop.f32.mrf.mxu2 }
 0x18c   : > { %3600 = vmatpush.bf16.msrb.mxu2 %v8718_v48  ;;  %3614 = vmatpush.bf16.msrb.mxu3 %v8846_v49  ;;  %v8814_v6 = vor.u32 %v10796_v16, %v8811_v52  ;;  %v8795_v48 = vld [vmem:[#allocation6 + $0xb50] sm:$0xf0]  ;;  %v10688_v2 = vld [vmem:[#allocation6 + $0x804] sm:$0xf]  ;;  %v8782_v16 = vor.u32 %v10788_v62, %v8779_v1  ;;  %v10811_v62 = vld [vmem:[#allocation6 + $0xbd4] sm:$0xf0]  ;;  %v12329_v1 = vpop.f32.mrf.mxu0 }
 0x18d   : > { %v8798_v0 = vor.u32 %v10792_v42, %v8795_v48  ;;  %v8379_v13 = vld [vmem:[#allocation6 + $0x810] sm:$0xf0]  ;;  %v10720_v18 = vld [vmem:[#allocation6 + $0x904] sm:$0xf]  ;;  %v8498_v48 = vor.u32 %v10719_v31, %v8497_v29  ;;  %v10807_v29 = vld [vmem:[#allocation6 + $0xbb4] sm:$0xf0] }
 0x18e   : > { %v8507_v8 = vld [vmem:[#allocation6 + $0x910] sm:$0xf0]  ;;  %v10752_v52 = vld [vmem:[#allocation6 + $0xa04] sm:$0xf] }
 0x18f   : > { %3572 = vmatpush.bf16.msrb.mxu0 %v8462_v36  ;;  %3586 = vmatpush.bf16.msrb.mxu1 %v8590_v40  ;;  %v10760_v36 = vld [vmem:[#allocation6 + $0xa44] sm:$0xf]  ;;  %v2530_v40 = vadd.f32 %v2529_v45, %v2516_v26  ;;  %v8635_v26 = vld [vmem:[#allocation6 + $0xa10] sm:$0xf0]  ;;  %v8753_v45 = vld [vmem:[#allocation6 + $0xae8] sm:$0xf]  ;;  %v8510_v5 = vor.u32 %v10720_v18, %v8507_v8 }
 0x190   : > { %3601 = vmatpush.bf16.msrb.mxu2 %v8702_v9  ;;  %3615 = vmatpush.bf16.msrb.mxu3 %v8830_v10  ;;  %v8670_v63 = vor.u32 %v10760_v36, %v8667_v47  ;;  %v8398_v9 = vor.u32 %v10692_v38, %v8395_v51  ;;  %v8881_v36 = vld [vmem:[#allocation6 + $0xbe8] sm:$0xf]  ;;  %v8638_v47 = vor.u32 %v10752_v52, %v8635_v26  ;;  %v10715_v38 = vld [vmem:[#allocation6 + $0x8d4] sm:$0xf0] }
 0x191   : > { %v12327_v49 = vadd.f32 %v2543_v46, %v2530_v40  ;;  %v8382_v46 = vor.u32 %v10688_v2, %v8379_v13  ;;  %v10815_v40 = vld [vmem:[#allocation6 + $0xbf4] sm:$0xf0]  ;;  %v8754_v51 = vor.u32 %v10783_v35, %v8753_v45  ;;  %v12331_v2 = vpop.f32.mrf.mxu1  ;;  %v8465_v13 = vld [vmem:[#allocation6 + $0x8a8] sm:$0xf] }
 0x192   : > { %v10711_v18 = vld [vmem:[#allocation6 + $0x8b4] sm:$0xf0]  ;;  %v8721_v26 = vld [vmem:[#allocation6 + $0xaa8] sm:$0xf] }
 0x193   : > { %3573 = vmatpush.bf16.msrb.mxu0 %v8446_v55  ;;  %3587 = vmatpush.bf16.msrb.mxu1 %v8574_v56  ;;  %v8523_v55 = vld [vmem:[#allocation6 + $0x930] sm:$0xf0]  ;;  %v10756_v56 = vld [vmem:[#allocation6 + $0xa24] sm:$0xf]  ;;  %v10743_v52 = vld [vmem:[#allocation6 + $0x9b4] sm:$0xf0]  ;;  %v8466_v31 = vor.u32 %v10711_v18, %v8465_v13 }
 0x194   : > { %3602 = vmatpush.bf16.msrb.mxu2 %v8686_v34  ;;  %3616 = vmatpush.bf16.msrb.mxu3 %v8814_v6  ;;  %v8526_v10 = vor.u32 %v10724_v54, %v8523_v55  ;;  %v8654_v20 = vor.u32 %v10756_v56, %v8651_v61  ;;  %v8625_v34 = vld [vmem:[#allocation6 + $0x9e8] sm:$0xf]  ;;  %v10751_v6 = vld [vmem:[#allocation6 + $0x9f4] sm:$0xf0] }
 0x195   : > { %v10747_v54 = vld [vmem:[#allocation6 + $0x9d4] sm:$0xf0]  ;;  %v8737_v55 = vld [vmem:[#allocation6 + $0xac8] sm:$0xf] }
 0x196   : > { %v10779_v56 = vld [vmem:[#allocation6 + $0xad4] sm:$0xf0]  ;;  %v8865_v61 = vld [vmem:[#allocation6 + $0xbc8] sm:$0xf] }
 0x197   : > { %3574 = vmatpush.bf16.msrb.mxu0 %v8430_v27  ;;  %3588 = vmatpush.bf16.msrb.mxu1 %v8558_v28  ;;  %v10784_v27 = vld [vmem:[#allocation6 + $0xb04] sm:$0xf]  ;;  %v8763_v28 = vld [vmem:[#allocation6 + $0xb10] sm:$0xf0]  ;;  %v8738_v8 = vor.u32 %v10779_v56, %v8737_v55  ;;  %v10707_v45 = vld [vmem:[#allocation6 + $0x894] sm:$0xf0] }
 0x198   : > { %3603 = vmatpush.bf16.msrb.mxu2 %v8670_v63  ;;  %3617 = vmatpush.bf16.msrb.mxu3 %v8798_v0  ;;  %v8766_v42 = vor.u32 %v10784_v27, %v8763_v28  ;;  %v8882_v63 = vor.u32 %v10815_v40, %v8881_v36  ;;  %v8609_v0 = vld [vmem:[#allocation6 + $0x9c8] sm:$0xf]  ;;  %v10775_v27 = vld [vmem:[#allocation6 + $0xab4] sm:$0xf0] }
 0x199   : > { %v8849_v28 = vld [vmem:[#allocation6 + $0xba8] sm:$0xf]  ;;  %v10739_v40 = vld [vmem:[#allocation6 + $0x994] sm:$0xf0] }
 0x19a   : > { %v8850_v35 = vor.u32 %v10807_v29, %v8849_v28  ;;  %v8577_v36 = vld [vmem:[#allocation6 + $0x988] sm:$0xf]  ;;  %v10703_v56 = vld [vmem:[#allocation6 + $0x874] sm:$0xf0] }
 0x19b   : > { %3575 = vmatpush.bf16.msrb.mxu0 %v8414_v53  ;;  %3589 = vmatpush.bf16.msrb.mxu1 %v8542_v30  ;;  %v8626_v53 = vor.u32 %v10751_v6, %v8625_v34  ;;  %v8481_v30 = vld [vmem:[#allocation6 + $0x8c8] sm:$0xf] }
 0x19c   : > { %3604 = vmatpush.bf16.msrb.mxu2 %v8654_v20  ;;  %3618 = vmatpush.bf16.msrb.mxu3 %v8782_v16  ;;  %v8866_v20 = vor.u32 %v10811_v62, %v8865_v61  ;;  %v8593_v16 = vld [vmem:[#allocation6 + $0x9a8] sm:$0xf] }
 0x19d   : > { %v8594_v34 = vor.u32 %v10743_v52, %v8593_v16  ;;  %v8449_v6 = vld [vmem:[#allocation6 + $0x888] sm:$0xf]  ;;  %v10799_v16 = vld [vmem:[#allocation6 + $0xb74] sm:$0xf0] }
 0x19e   : > { %v8433_v55 = vld [vmem:[#allocation6 + $0x868] sm:$0xf] }
 0x19f   : > { %3576 = vmatpush.bf16.msrb.mxu0 %v8398_v9  ;;  %3590 = vmatpush.bf16.msrb.mxu1 %v8526_v10  ;;  %v8482_v9 = vor.u32 %v10715_v38, %v8481_v30  ;;  %v8610_v10 = vor.u32 %v10747_v54, %v8609_v0  ;;  %v10803_v30 = vld [vmem:[#allocation6 + $0xb94] sm:$0xf0]  ;;  %v8578_v0 = vor.u32 %v10739_v40, %v8577_v36  ;;  %v8689_v13 = vld [vmem:[#allocation6 + $0xa68] sm:$0xf] }
 0x1a0   : > { %3605 = vmatpush.bf16.msrb.mxu2 %v8638_v47  ;;  %3619 = vmatpush.bf16.msrb.mxu3 %v8766_v42  ;;  %v8705_v47 = vld [vmem:[#allocation6 + $0xa88] sm:$0xf]  ;;  %v12339_v42 = vpop.f32.mrf.mxu3  ;;  %v8434_v52 = vor.u32 %v10703_v56, %v8433_v55  ;;  %v10763_v36 = vld [vmem:[#allocation6 + $0xa54] sm:$0xf0] }
 0x1a1   : > { %v8801_v40 = vld [vmem:[#allocation6 + $0xb48] sm:$0xf]  ;;  %v10727_v55 = vld [vmem:[#allocation6 + $0x934] sm:$0xf0] }
 0x1a2   : > { %v8657_v56 = vld [vmem:[#allocation6 + $0xa28] sm:$0xf] }
 0x1a3   : > { %3577 = vmatpush.bf16.msrb.mxu0 %v8382_v46  ;;  %3591 = vmatpush.bf16.msrb.mxu1 %v8510_v5  ;;  %v12337_v46 = vpop.f32.mrf.mxu2  ;;  %v8722_v5 = vor.u32 %v10775_v27, %v8721_v26  ;;  %v2557_v38 = vpop.f32.mrf.mxu0  ;;  %v8417_v26 = vld [vmem:[#allocation6 + $0x848] sm:$0xf]  ;;  %v10699_v27 = vld [vmem:[#allocation6 + $0x854] sm:$0xf0] }
 0x1a4   : > { %3654 = vmatpush.bf16.msra.mxu2 %v8754_v51  ;;  %3668 = vmatpush.bf16.msra.mxu3 %v8882_v63  ;;  %v2558_v51 = vadd.f32 %v2557_v38, %v12260_v15  ;;  %v8450_v63 = vor.u32 %v10707_v45, %v8449_v6  ;;  %v2571_v54 = vpop.f32.mrf.mxu1  ;;  %v10731_v6 = vld [vmem:[#allocation6 + $0x954] sm:$0xf0]  ;;  %v8673_v45 = vld [vmem:[#allocation6 + $0xa48] sm:$0xf] }
 0x1a5   : > { %3606 = vmatmul.bf16.vlgmr.msrb.gmra.mxu2 %v12307_v43  ;;  %3620 = vmatmul.bf16.vlgmr.msrb.gmra.mxu3 %v12310_v44  ;;  %v8401_v38 = vld [vmem:[#allocation6 + $0x828] sm:$0xf] }
 0x1a6   : > { %3578 = vmatmul.bf16.vlgmr.msrb.gmra.mxu0 %v12313_v22  ;;  %3592 = vmatmul.bf16.vlgmr.msrb.gmra.mxu1 %v12316_v23  ;;  %v2572_v18 = vadd.f32 %v2571_v54, %v2558_v51  ;;  %v10695_v51 = vld [vmem:[#allocation6 + $0x834] sm:$0xf0]  ;;  %v8529_v54 = vld [vmem:[#allocation6 + $0x928] sm:$0xf] }
 0x1a7   : > { %3626 = vmatpush.bf16.msra.mxu0 %v8498_v48  ;;  %3640 = vmatpush.bf16.msra.mxu1 %v8626_v53  ;;  %v10771_v48 = vld [vmem:[#allocation6 + $0xa94] sm:$0xf0]  ;;  %v8833_v53 = vld [vmem:[#allocation6 + $0xb88] sm:$0xf] }
 0x1a8   : > { %3655 = vmatpush.bf16.msra.mxu2 %v8738_v8  ;;  %3669 = vmatpush.bf16.msra.mxu3 %v8866_v20  ;;  %v8706_v61 = vor.u32 %v10771_v48, %v8705_v47  ;;  %v8834_v62 = vor.u32 %v10803_v30, %v8833_v53  ;;  %v10767_v8 = vld [vmem:[#allocation6 + $0xa74] sm:$0xf0]  ;;  %v8817_v20 = vld [vmem:[#allocation6 + $0xb68] sm:$0xf]  ;;  %v8418_v53 = vor.u32 %v10699_v27, %v8417_v26 }
 0x1a9   : > { %v8690_v28 = vor.u32 %v10767_v8, %v8689_v13  ;;  %v8818_v29 = vor.u32 %v10799_v16, %v8817_v20  ;;  %v10795_v47 = vld [vmem:[#allocation6 + $0xb54] sm:$0xf0]  ;;  %v8402_v13 = vor.u32 %v10695_v51, %v8401_v38  ;;  %v8513_v20 = vld [vmem:[#allocation6 + $0x908] sm:$0xf] }
 0x1aa   : > { %v10691_v8 = vld [vmem:[#allocation6 + $0x814] sm:$0xf0]  ;;  %v8641_v26 = vld [vmem:[#allocation6 + $0xa08] sm:$0xf] }
 0x1ab   : > { %3627 = vmatpush.bf16.msra.mxu0 %v8482_v9  ;;  %3641 = vmatpush.bf16.msra.mxu1 %v8610_v10  ;;  %v8561_v9 = vld [vmem:[#allocation6 + $0x968] sm:$0xf]  ;;  %v10735_v10 = vld [vmem:[#allocation6 + $0x974] sm:$0xf0] }
 0x1ac   : > { %3656 = vmatpush.bf16.msra.mxu2 %v8722_v5  ;;  %3670 = vmatpush.bf16.msra.mxu3 %v8850_v35  ;;  %v8562_v15 = vor.u32 %v10735_v10, %v8561_v9  ;;  %v2599_v35 = vpop.f32.mrf.mxu3  ;;  %v10791_v9 = vld [vmem:[#allocation6 + $0xb34] sm:$0xf0]  ;;  %v8385_v10 = vld [vmem:[#allocation6 + $0x808] sm:$0xf] }
 0x1ad   : > { %v10723_v16 = vld [vmem:[#allocation6 + $0x914] sm:$0xf0] }
 0x1ae   : > { %v10755_v27 = vld [vmem:[#allocation6 + $0xa14] sm:$0xf0] }
 0x1af   : > { %3628 = vmatpush.bf16.msra.mxu0 %v8466_v31  ;;  %3642 = vmatpush.bf16.msra.mxu1 %v8594_v34  ;;  %v2585_v31 = vpop.f32.mrf.mxu2  ;;  %v8545_v34 = vld [vmem:[#allocation6 + $0x948] sm:$0xf] }
 0x1b0   : > { %3657 = vmatpush.bf16.msra.mxu2 %v8706_v61  ;;  %3671 = vmatpush.bf16.msra.mxu3 %v8834_v62  ;;  %v2586_v5 = vadd.f32 %v2585_v31, %v2572_v18  ;;  %v8546_v30 = vor.u32 %v10731_v6, %v8545_v34  ;;  %v10759_v61 = vld [vmem:[#allocation6 + $0xa34] sm:$0xf0]  ;;  %v8785_v62 = vld [vmem:[#allocation6 + $0xb28] sm:$0xf]  ;;  %v8530_v18 = vor.u32 %v10727_v55, %v8529_v54  ;;  %v10717_v31 = vld [vmem:[#allocation6 + $0x8ec] sm:$0xf] }
 0x1b1   : > { %v8499_v34 = vld [vmem:[#allocation6 + $0x8f8] sm:$0xf0]  ;;  %v10749_v6 = vld [vmem:[#allocation6 + $0x9ec] sm:$0xf] }
 0x1b2   : > { %v12342_v48 = vadd.f32 %v2599_v35, %v2586_v5  ;;  %v10781_v5 = vld [vmem:[#allocation6 + $0xaec] sm:$0xf]  ;;  %v8386_v35 = vor.u32 %v10691_v8, %v8385_v10  ;;  %v8502_v51 = vor.u32 %v10717_v31, %v8499_v34  ;;  %v8483_v54 = vld [vmem:[#allocation6 + $0x8d8] sm:$0xf0]  ;;  %v12344_v8 = vpop.f32.mrf.mxu0 }
 0x1b3   : > { %3629 = vmatpush.bf16.msra.mxu0 %v8450_v63  ;;  %3643 = vmatpush.bf16.msra.mxu1 %v8578_v0  ;;  %v8674_v63 = vor.u32 %v10763_v36, %v8673_v45  ;;  %v8802_v0 = vor.u32 %v10795_v47, %v8801_v40  ;;  %v8627_v45 = vld [vmem:[#allocation6 + $0x9f8] sm:$0xf0]  ;;  %v8514_v36 = vor.u32 %v10723_v16, %v8513_v20  ;;  %v10813_v47 = vld [vmem:[#allocation6 + $0xbec] sm:$0xf]  ;;  %v12346_v20 = vpop.f32.mrf.mxu1 }
 0x1b4   : > { %3658 = vmatpush.bf16.msra.mxu2 %v8690_v28  ;;  %3672 = vmatpush.bf16.msra.mxu3 %v8818_v29  ;;  %v8769_v28 = vld [vmem:[#allocation6 + $0xb08] sm:$0xf]  ;;  %v10787_v29 = vld [vmem:[#allocation6 + $0xb14] sm:$0xf0]  ;;  %v8755_v40 = vld [vmem:[#allocation6 + $0xaf8] sm:$0xf0] }
 0x1b5   : > { %v8770_v38 = vor.u32 %v10787_v29, %v8769_v28  ;;  %v8758_v55 = vor.u32 %v10781_v5, %v8755_v40  ;;  %v8739_v10 = vld [vmem:[#allocation6 + $0xad8] sm:$0xf0]  ;;  %v10741_v29 = vld [vmem:[#allocation6 + $0x9ac] sm:$0xf] }
 0x1b6   : > { %v8595_v31 = vld [vmem:[#allocation6 + $0x9b8] sm:$0xf0]  ;;  %v10773_v34 = vld [vmem:[#allocation6 + $0xaac] sm:$0xf] }
 0x1b7   : > { %3630 = vmatpush.bf16.msra.mxu0 %v8434_v52  ;;  %3644 = vmatpush.bf16.msra.mxu1 %v8562_v15  ;;  %v8658_v52 = vor.u32 %v10759_v61, %v8657_v56  ;;  %v8786_v15 = vor.u32 %v10791_v9, %v8785_v62  ;;  %v10745_v61 = vld [vmem:[#allocation6 + $0x9cc] sm:$0xf]  ;;  %v8611_v62 = vld [vmem:[#allocation6 + $0x9d8] sm:$0xf0] }
 0x1b8   : > { %3659 = vmatpush.bf16.msra.mxu2 %v8674_v63  ;;  %3673 = vmatpush.bf16.msra.mxu3 %v8802_v0  ;;  %v8630_v63 = vor.u32 %v10749_v6, %v8627_v45  ;;  %v10713_v0 = vld [vmem:[#allocation6 + $0x8cc] sm:$0xf]  ;;  %v8723_v6 = vld [vmem:[#allocation6 + $0xab8] sm:$0xf0] }
 0x1b9   : > { %v10777_v9 = vld [vmem:[#allocation6 + $0xacc] sm:$0xf]  ;;  %v8486_v16 = vor.u32 %v10713_v0, %v8483_v54  ;;  %v8851_v5 = vld [vmem:[#allocation6 + $0xbb8] sm:$0xf0]  ;;  %v12354_v54 = vpop.f32.mrf.mxu3 }
 0x1ba   : > { %v10805_v45 = vld [vmem:[#allocation6 + $0xbac] sm:$0xf] }
 0x1bb   : > { %3631 = vmatpush.bf16.msra.mxu0 %v8418_v53  ;;  %3645 = vmatpush.bf16.msra.mxu1 %v8546_v30  ;;  %v8883_v53 = vld [vmem:[#allocation6 + $0xbf8] sm:$0xf0]  ;;  %v8642_v30 = vor.u32 %v10755_v27, %v8641_v26  ;;  %v8742_v27 = vor.u32 %v10777_v9, %v8739_v10  ;;  %v10705_v40 = vld [vmem:[#allocation6 + $0x88c] sm:$0xf] }
 0x1bc   : > { %3660 = vmatpush.bf16.msra.mxu2 %v8658_v52  ;;  %3674 = vmatpush.bf16.msra.mxu3 %v8786_v15  ;;  %v8886_v56 = vor.u32 %v10813_v47, %v8883_v53  ;;  %v8614_v52 = vor.u32 %v10745_v61, %v8611_v62  ;;  %v10709_v15 = vld [vmem:[#allocation6 + $0x8ac] sm:$0xf]  ;;  %v8467_v26 = vld [vmem:[#allocation6 + $0x8b8] sm:$0xf0]  ;;  %v12352_v53 = vpop.f32.mrf.mxu2 }
 0x1bd   : > { %v8451_v47 = vld [vmem:[#allocation6 + $0x898] sm:$0xf0]  ;;  %v10769_v0 = vld [vmem:[#allocation6 + $0xa8c] sm:$0xf] }
 0x1be   : > { %v8835_v61 = vld [vmem:[#allocation6 + $0xb98] sm:$0xf0]  ;;  %v8454_v10 = vor.u32 %v10705_v40, %v8451_v47 }
 0x1bf   : > { %3632 = vmatpush.bf16.msra.mxu0 %v8402_v13  ;;  %3646 = vmatpush.bf16.msra.mxu1 %v8530_v18  ;;  %v10809_v13 = vld [vmem:[#allocation6 + $0xbcc] sm:$0xf]  ;;  %v8867_v18 = vld [vmem:[#allocation6 + $0xbd8] sm:$0xf0] }
 0x1c0   : > { %3661 = vmatpush.bf16.msra.mxu2 %v8642_v30  ;;  %3675 = vmatpush.bf16.msra.mxu3 %v8770_v38  ;;  %v8870_v28 = vor.u32 %v10809_v13, %v8867_v18  ;;  %v8726_v30 = vor.u32 %v10773_v34, %v8723_v6  ;;  %v8854_v38 = vor.u32 %v10805_v45, %v8851_v5  ;;  %v8691_v34 = vld [vmem:[#allocation6 + $0xa78] sm:$0xf0]  ;;  %v10797_v6 = vld [vmem:[#allocation6 + $0xb6c] sm:$0xf] }
 0x1c1   : > { %v8819_v45 = vld [vmem:[#allocation6 + $0xb78] sm:$0xf0] }
 0x1c2   : > { %v8822_v47 = vor.u32 %v10797_v6, %v8819_v45 }
 0x1c3   : > { %3633 = vmatpush.bf16.msra.mxu0 %v8386_v35  ;;  %3647 = vmatpush.bf16.msra.mxu1 %v8514_v36  ;;  %v8470_v35 = vor.u32 %v10709_v15, %v8467_v26  ;;  %v8598_v36 = vor.u32 %v10741_v29, %v8595_v31  ;;  %v2613_v62 = vpop.f32.mrf.mxu0  ;;  %v2627_v18 = vpop.f32.mrf.mxu1  ;;  %v10765_v29 = vld [vmem:[#allocation6 + $0xa6c] sm:$0xf] }
 0x1c4   : > { %3710 = vmatpush.bf16.msrb.mxu2 %v8758_v55  ;;  %3724 = vmatpush.bf16.msrb.mxu3 %v8886_v56  ;;  %v8707_v55 = vld [vmem:[#allocation6 + $0xa98] sm:$0xf0]  ;;  %v10801_v56 = vld [vmem:[#allocation6 + $0xb8c] sm:$0xf]  ;;  %v2614_v9 = vadd.f32 %v2613_v62, %v12274_v4  ;;  %v8694_v40 = vor.u32 %v10765_v29, %v8691_v34 }
 0x1c5   : > { %3662 = vmatmul.bf16.vlgmr.msra.gmra.mxu2 %v12307_v43  ;;  %3676 = vmatmul.bf16.vlgmr.msra.gmra.mxu3 %v12310_v44  ;;  %v8710_v15 = vor.u32 %v10769_v0, %v8707_v55  ;;  %v8838_v26 = vor.u32 %v10801_v56, %v8835_v61  ;;  %v8675_v56 = vld [vmem:[#allocation6 + $0xa58] sm:$0xf0]  ;;  %v10793_v61 = vld [vmem:[#allocation6 + $0xb4c] sm:$0xf] }
 0x1c6   : > { %3634 = vmatmul.bf16.vlgmr.msra.gmra.mxu0 %v12313_v22  ;;  %3648 = vmatmul.bf16.vlgmr.msra.gmra.mxu1 %v12316_v23  ;;  %v2628_v31 = vadd.f32 %v2627_v18, %v2614_v9  ;;  %v8803_v62 = vld [vmem:[#allocation6 + $0xb58] sm:$0xf0]  ;;  %v10693_v18 = vld [vmem:[#allocation6 + $0x82c] sm:$0xf] }
 0x1c7   : > { %3682 = vmatpush.bf16.msrb.mxu0 %v8502_v51  ;;  %3696 = vmatpush.bf16.msrb.mxu1 %v8630_v63  ;;  %v10737_v51 = vld [vmem:[#allocation6 + $0x98c] sm:$0xf]  ;;  %v8579_v63 = vld [vmem:[#allocation6 + $0x998] sm:$0xf0] }
 0x1c8   : > { %3711 = vmatpush.bf16.msrb.mxu2 %v8742_v27  ;;  %3725 = vmatpush.bf16.msrb.mxu3 %v8870_v28  ;;  %v8582_v13 = vor.u32 %v10737_v51, %v8579_v63  ;;  %v10733_v27 = vld [vmem:[#allocation6 + $0x96c] sm:$0xf]  ;;  %v8563_v28 = vld [vmem:[#allocation6 + $0x978] sm:$0xf0]  ;;  %v2655_v55 = vpop.f32.mrf.mxu3 }
 0x1c9   : > { %v8566_v4 = vor.u32 %v10733_v27, %v8563_v28  ;;  %v8547_v51 = vld [vmem:[#allocation6 + $0x958] sm:$0xf0]  ;;  %v10761_v63 = vld [vmem:[#allocation6 + $0xa4c] sm:$0xf] }
 0x1ca   : > { %v8531_v27 = vld [vmem:[#allocation6 + $0x938] sm:$0xf0]  ;;  %v10757_v28 = vld [vmem:[#allocation6 + $0xa2c] sm:$0xf] }
 0x1cb   : > { %3683 = vmatpush.bf16.msrb.mxu0 %v8486_v16  ;;  %3697 = vmatpush.bf16.msrb.mxu1 %v8614_v52  ;;  %v10701_v16 = vld [vmem:[#allocation6 + $0x86c] sm:$0xf]  ;;  %v8435_v52 = vld [vmem:[#allocation6 + $0x878] sm:$0xf0] }
 0x1cc   : > { %3712 = vmatpush.bf16.msrb.mxu2 %v8726_v30  ;;  %3726 = vmatpush.bf16.msrb.mxu3 %v8854_v38  ;;  %v8438_v5 = vor.u32 %v10701_v16, %v8435_v52  ;;  %v2641_v30 = vpop.f32.mrf.mxu2  ;;  %v10729_v38 = vld [vmem:[#allocation6 + $0x94c] sm:$0xf]  ;;  %v8403_v16 = vld [vmem:[#allocation6 + $0x838] sm:$0xf0]  ;;  %v8678_v52 = vor.u32 %v10761_v63, %v8675_v56 }
 0x1cd   : > { %v2642_v0 = vadd.f32 %v2641_v30, %v2628_v31  ;;  %v8659_v29 = vld [vmem:[#allocation6 + $0xa38] sm:$0xf0]  ;;  %v10789_v31 = vld [vmem:[#allocation6 + $0xb2c] sm:$0xf]  ;;  %v8406_v6 = vor.u32 %v10693_v18, %v8403_v16 }
 0x1ce   : > { %v8787_v34 = vld [vmem:[#allocation6 + $0xb38] sm:$0xf0]  ;;  %v10753_v30 = vld [vmem:[#allocation6 + $0xa0c] sm:$0xf] }
 0x1cf   : > { %3684 = vmatpush.bf16.msrb.mxu0 %v8470_v35  ;;  %3698 = vmatpush.bf16.msrb.mxu1 %v8598_v36  ;;  %v10697_v35 = vld [vmem:[#allocation6 + $0x84c] sm:$0xf]  ;;  %v8419_v36 = vld [vmem:[#allocation6 + $0x858] sm:$0xf0]  ;;  %v12357_v9 = vadd.f32 %v2655_v55, %v2642_v0 }
 0x1d0   : > { %3713 = vmatpush.bf16.msrb.mxu2 %v8710_v15  ;;  %3727 = vmatpush.bf16.msrb.mxu3 %v8838_v26  ;;  %v8806_v15 = vor.u32 %v10793_v61, %v8803_v62  ;;  %v10725_v26 = vld [vmem:[#allocation6 + $0x92c] sm:$0xf]  ;;  %v8771_v63 = vld [vmem:[#allocation6 + $0xb18] sm:$0xf0]  ;;  %v12359_v62 = vpop.f32.mrf.mxu0  ;;  %v12369_v18 = vpop.f32.mrf.mxu3 }
 0x1d1   : > { %v8534_v45 = vor.u32 %v10725_v26, %v8531_v27 }
 0x1d3   : > { %3685 = vmatpush.bf16.msrb.mxu0 %v8454_v10  ;;  %3699 = vmatpush.bf16.msrb.mxu1 %v8582_v13  ;;  %v8422_v10 = vor.u32 %v10697_v35, %v8419_v36  ;;  %v8550_v13 = vor.u32 %v10729_v38, %v8547_v51  ;;  %v8662_v35 = vor.u32 %v10757_v28, %v8659_v29  ;;  %v8643_v38 = vld [vmem:[#allocation6 + $0xa18] sm:$0xf0]  ;;  %v10785_v51 = vld [vmem:[#allocation6 + $0xb0c] sm:$0xf] }
 0x1d4   : > { %3714 = vmatpush.bf16.msrb.mxu2 %v8694_v40  ;;  %3728 = vmatpush.bf16.msrb.mxu3 %v8822_v47  ;;  %v8790_v36 = vor.u32 %v10789_v31, %v8787_v34  ;;  %v10721_v40 = vld [vmem:[#allocation6 + $0x90c] sm:$0xf]  ;;  %v8515_v47 = vld [vmem:[#allocation6 + $0x918] sm:$0xf0]  ;;  %v8646_v56 = vor.u32 %v10753_v30, %v8643_v38  ;;  %v8774_v61 = vor.u32 %v10785_v51, %v8771_v63  ;;  %v9129_v34 = vld [vmem:[#allocation8 + $0x5e0] sm:$0xf] }
 0x1d5   : > { %v8518_v55 = vor.u32 %v10721_v40, %v8515_v47  ;;  %v8969_v40 = vld [vmem:[#allocation8 + $0x4a0] sm:$0xf]  ;;  %v10966_v47 = vld [vmem:[#allocation8 + $0x4ac] sm:$0xf0] }
 0x1d6   : > { %v9097_v30 = vld [vmem:[#allocation8 + $0x5a0] sm:$0xf]  ;;  %v8970_v38 = vor.u32 %v10966_v47, %v8969_v40  ;;  %v10998_v51 = vld [vmem:[#allocation8 + $0x5ac] sm:$0xf0] }
 0x1d7   : > { %3686 = vmatpush.bf16.msrb.mxu0 %v8438_v5  ;;  %3700 = vmatpush.bf16.msrb.mxu1 %v8566_v4  ;;  %v10689_v5 = vld [vmem:[#allocation6 + $0x80c] sm:$0xf]  ;;  %v8387_v4 = vld [vmem:[#allocation6 + $0x818] sm:$0xf0]  ;;  %v9098_v63 = vor.u32 %v10998_v51, %v9097_v30  ;;  %v8905_v47 = vld [vmem:[#allocation8 + $0x420] sm:$0xf] }
 0x1d8   : > { %3715 = vmatpush.bf16.msrb.mxu2 %v8678_v52  ;;  %3729 = vmatpush.bf16.msrb.mxu3 %v8806_v15  ;;  %v8390_v0 = vor.u32 %v10689_v5, %v8387_v4  ;;  %v9113_v4 = vld [vmem:[#allocation8 + $0x5c0] sm:$0xf]  ;;  %v10950_v30 = vld [vmem:[#allocation8 + $0x42c] sm:$0xf0] }
 0x1d9   : > { %v8906_v51 = vor.u32 %v10950_v30, %v8905_v47 }
 0x1db   : > { %3687 = vmatpush.bf16.msrb.mxu0 %v8422_v10  ;;  %3701 = vmatpush.bf16.msrb.mxu1 %v8550_v13  ;;  %v12361_v10 = vpop.f32.mrf.mxu1  ;;  %v12367_v13 = vpop.f32.mrf.mxu2 }
 0x1dc   : > { %3716 = vmatpush.bf16.msrb.mxu2 %v8662_v35  ;;  %3730 = vmatpush.bf16.msrb.mxu3 %v8790_v36  ;;  %v11002_v35 = vld [vmem:[#allocation8 + $0x5cc] sm:$0xf0] }
 0x1df   : > { %3688 = vmatpush.bf16.msrb.mxu0 %v8406_v6  ;;  %3702 = vmatpush.bf16.msrb.mxu1 %v8534_v45  ;;  %v11006_v6 = vld [vmem:[#allocation8 + $0x5ec] sm:$0xf0] }
 0x1e0   : > { %3717 = vmatpush.bf16.msrb.mxu2 %v8646_v56  ;;  %3731 = vmatpush.bf16.msrb.mxu3 %v8774_v61  ;;  %v10970_v45 = vld [vmem:[#allocation8 + $0x4cc] sm:$0xf0]  ;;  %v9130_v5 = vor.u32 %v11006_v6, %v9129_v34  ;;  %v9081_v56 = vld [vmem:[#allocation8 + $0x580] sm:$0xf] }
 0x1e3   : > { %3689 = vmatpush.bf16.msrb.mxu0 %v8390_v0  ;;  %3703 = vmatpush.bf16.msrb.mxu1 %v8518_v55  ;;  %v2669_v16 = vpop.f32.mrf.mxu0  ;;  %v2683_v15 = vpop.f32.mrf.mxu1  ;;  %v8953_v0 = vld [vmem:[#allocation8 + $0x480] sm:$0xf]  ;;  %v10962_v55 = vld [vmem:[#allocation8 + $0x48c] sm:$0xf0] }
 0x1e4   : > { %3718 = vmatmul.bf16.vlgmr.msrb.gmra.mxu2 %v12307_v43  ;;  %3732 = vmatmul.bf16.vlgmr.msrb.gmra.mxu3 %v12310_v44  ;;  %v2670_v52 = vadd.f32 %v2669_v16, %v12288_v7  ;;  %v8985_v44 = vld [vmem:[#allocation8 + $0x4c0] sm:$0xf]  ;;  %v9114_v7 = vor.u32 %v11002_v35, %v9113_v4 }
 0x1e5   : > { %v8986_v36 = vor.u32 %v10970_v45, %v8985_v44  ;;  %v8921_v44 = vld [vmem:[#allocation8 + $0x440] sm:$0xf]  ;;  %v10954_v45 = vld [vmem:[#allocation8 + $0x44c] sm:$0xf0] }
 0x1e6   : > { %3690 = vmatmul.bf16.vlgmr.msrb.gmra.mxu0 %v12313_v22  ;;  %3704 = vmatmul.bf16.vlgmr.msrb.gmra.mxu1 %v12316_v23  ;;  %v2684_v26 = vadd.f32 %v2683_v15, %v2670_v52  ;;  %v9001_v22 = vld [vmem:[#allocation8 + $0x4e0] sm:$0xf]  ;;  %v10974_v23 = vld [vmem:[#allocation8 + $0x4ec] sm:$0xf0]  ;;  %v8954_v52 = vor.u32 %v10962_v55, %v8953_v0 }
 0x1e7   : > { %v9002_v43 = vor.u32 %v10974_v23, %v9001_v22  ;;  %4842 = vmatpush.bf16.msra.mxu1 %v9130_v5  ;;  %v10994_v15 = vld [vmem:[#allocation8 + $0x58c] sm:$0xf0]  ;;  %v9049_v5 = vld [vmem:[#allocation8 + $0x540] sm:$0xf] }
 0x1e8   : > { %v2697_v27 = vpop.f32.mrf.mxu2  ;;  %v2711_v29 = vpop.f32.mrf.mxu3  ;;  %v10990_v23 = vld [vmem:[#allocation8 + $0x56c] sm:$0xf0] }
 0x1e9   : > { %v2698_v28 = vadd.f32 %v2697_v27, %v2684_v26  ;;  %4828 = vmatpush.bf16.msra.mxu0 %v9002_v43  ;;  %v9082_v26 = vor.u32 %v10994_v15, %v9081_v56  ;;  %v8937_v27 = vld [vmem:[#allocation8 + $0x460] sm:$0xf]  ;;  %v10946_v15 = vld [vmem:[#allocation8 + $0x40c] sm:$0xf0] }
 0x1eb   : > { %v12372_v31 = vadd.f32 %v2711_v29, %v2698_v28  ;;  %4843 = vmatpush.bf16.msra.mxu1 %v9114_v7  ;;  %v12374_v61 = vpop.f32.mrf.mxu0  ;;  %v12376_v16 = vpop.f32.mrf.mxu1  ;;  %v10958_v28 = vld [vmem:[#allocation8 + $0x46c] sm:$0xf0]  ;;  %v9065_v29 = vld [vmem:[#allocation8 + $0x560] sm:$0xf] }
 0x1ec   : > { %v8938_v22 = vor.u32 %v10958_v28, %v8937_v27  ;;  %v9066_v6 = vor.u32 %v10990_v23, %v9065_v29  ;;  %v10986_v7 = vld [vmem:[#allocation8 + $0x54c] sm:$0xf0]  ;;  %v1650_v27 = vadd.f32 %v12254_v60, %v12252_v59  ;;  %v9003_v23 = vld [vmem:[#allocation8 + $0x4f0] sm:$0xf0]  ;;  %v1706_v60 = vadd.f32 %v12268_v33, %v12266_v32  ;;  %v12390_v33 = vld [vmem:[#allocation9] sm:$0xf] }
 0x1ed   : > { %4829 = vmatpush.bf16.msra.mxu0 %v8986_v36  ;;  %v8922_v36 = vor.u32 %v10954_v45, %v8921_v44  ;;  %v9050_v40 = vor.u32 %v10986_v7, %v9049_v5  ;;  %v10978_v29 = vld [vmem:[#allocation8 + $0x50c] sm:$0xf0]  ;;  %v11004_v5 = vld [vmem:[#allocation8 + $0x5e4] sm:$0xf]  ;;  %v8987_v59 = vld [vmem:[#allocation8 + $0x4d0] sm:$0xf0] }
 0x1ee   : > { %v1664_v30 = vadd.f32 %v12256_v12, %v1650_v27  ;;  %v10996_v12 = vld [vmem:[#allocation8 + $0x5a4] sm:$0xf]  ;;  %v1720_v27 = vadd.f32 %v12270_v58, %v1706_v60 }
 0x1ef   : > { %4844 = vmatpush.bf16.msra.mxu1 %v9098_v63  ;;  %v10982_v63 = vld [vmem:[#allocation8 + $0x52c] sm:$0xf0] }
 0x1f0   : > { %v12378_v34 = vpop.f32.mrf.mxu2  ;;  %v12380_v43 = vpop.f32.mrf.mxu3 }
 0x1f1   : > { %4830 = vmatpush.bf16.msra.mxu0 %v8970_v38  ;;  %v9033_v38 = vld [vmem:[#allocation8 + $0x520] sm:$0xf] }
 0x1f2   : > { %v9034_v56 = vor.u32 %v10982_v63, %v9033_v38  ;;  %v10968_v38 = vld [vmem:[#allocation8 + $0x4c4] sm:$0xf]  ;;  %v9115_v63 = vld [vmem:[#allocation8 + $0x5d0] sm:$0xf0] }
 0x1f3   : > { %4845 = vmatpush.bf16.msra.mxu1 %v9082_v26  ;;  %v9017_v26 = vld [vmem:[#allocation8 + $0x500] sm:$0xf] }
 0x1f4   : > { %v9018_v44 = vor.u32 %v10978_v29, %v9017_v26  ;;  %v1678_v26 = vadd.f32 %v12258_v21, %v1664_v30  ;;  %v8971_v29 = vld [vmem:[#allocation8 + $0x4b0] sm:$0xf0]  ;;  %v10960_v21 = vld [vmem:[#allocation8 + $0x484] sm:$0xf] }
 0x1f5   : > { %4831 = vmatpush.bf16.msra.mxu0 %v8954_v52  ;;  %v8889_v52 = vld [vmem:[#allocation8 + $0x400] sm:$0xf]  ;;  %v10992_v30 = vld [vmem:[#allocation8 + $0x584] sm:$0xf] }
 0x1f6   : > { %v8890_v28 = vor.u32 %v10946_v15, %v8889_v52  ;;  %v2504_v32 = vadd.f32 %v12329_v1, %v1678_v26  ;;  %v9083_v1 = vld [vmem:[#allocation8 + $0x590] sm:$0xf0] }
 0x1f7   : > { %4846 = vmatpush.bf16.msra.mxu1 %v9066_v6  ;;  %v8939_v26 = vld [vmem:[#allocation8 + $0x470] sm:$0xf0] }
 0x1f8   : > { %v2518_v60 = vadd.f32 %v12331_v2, %v2504_v32 }
 0x1f9   : > { %4832 = vmatpush.bf16.msra.mxu0 %v8938_v22  ;;  %v10972_v22 = vld [vmem:[#allocation8 + $0x4e4] sm:$0xf] }
 0x1fa   : > { %v9006_v45 = vor.u32 %v10972_v22, %v9003_v23 }
 0x1fb   : > { %4847 = vmatpush.bf16.msra.mxu1 %v9050_v40 }
 0x1fd   : > { %4833 = vmatpush.bf16.msra.mxu0 %v8922_v36  ;;  %v9131_v36 = vld [vmem:[#allocation8 + $0x5f0] sm:$0xf0] }
 0x1fe   : > { %v9134_v47 = vor.u32 %v11004_v5, %v9131_v36 }
 0x1ff   : > { %4848 = vmatpush.bf16.msra.mxu1 %v9034_v56 }
 0x201   : > { %4834 = vmatpush.bf16.msra.mxu0 %v8906_v51 }
 0x203   : > { %v3523_v4 = vpop.f32.mrf.mxu0  ;;  %v3537_v35 = vpop.f32.mrf.mxu1  ;;  %4849 = vmatpush.bf16.msra.mxu1 %v9018_v44  ;;  %v9099_v44 = vld [vmem:[#allocation8 + $0x5b0] sm:$0xf0] }
 0x204   : > { %v3538_v6 = vadd.f32 %v3537_v35, %v3523_v4  ;;  %v8990_v4 = vor.u32 %v10968_v38, %v8987_v59  ;;  %v11000_v35 = vld [vmem:[#allocation8 + $0x5c4] sm:$0xf]  ;;  %v9102_v5 = vor.u32 %v10996_v12, %v9099_v44  ;;  %v1734_v38 = vadd.f32 %v12272_v14, %v1720_v27  ;;  %v9067_v27 = vld [vmem:[#allocation8 + $0x570] sm:$0xf0] }
 0x205   : > { %4835 = vmatpush.bf16.msra.mxu0 %v8890_v28  ;;  %v9118_v56 = vor.u32 %v11000_v35, %v9115_v63  ;;  %v10964_v28 = vld [vmem:[#allocation8 + $0x4a4] sm:$0xf] }
 0x206   : > { %v8974_v23 = vor.u32 %v10964_v28, %v8971_v29  ;;  %v10988_v28 = vld [vmem:[#allocation8 + $0x564] sm:$0xf] }
 0x207   : > { %4898 = vmatpush.bf16.msrb.mxu1 %v9134_v47  ;;  %v8955_v47 = vld [vmem:[#allocation8 + $0x490] sm:$0xf0]  ;;  %v9070_v32 = vor.u32 %v10988_v28, %v9067_v27 }
 0x208   : > { %v3551_v0 = vpop.f32.mrf.mxu2  ;;  %v3565_v55 = vpop.f32.mrf.mxu3  ;;  %v8958_v59 = vor.u32 %v10960_v21, %v8955_v47  ;;  %v8923_v21 = vld [vmem:[#allocation8 + $0x450] sm:$0xf0] }
 0x209   : > { %4884 = vmatpush.bf16.msrb.mxu0 %v9006_v45  ;;  %v3552_v51 = vadd.f32 %v3551_v0, %v3538_v6 }
 0x20b   : > { %v3525_v7 = vpop.f32.mrf.mxu0  ;;  %v3539_v40 = vpop.f32.mrf.mxu1  ;;  %4899 = vmatpush.bf16.msrb.mxu1 %v9118_v56  ;;  %v3566_v22 = vadd.f32 %v3565_v55, %v3552_v51  ;;  %v3748_v55 = vperm.slane %v12390_v33, 0  ;;  %v9086_v51 = vor.u32 %v10992_v30, %v9083_v1  ;;  %v2532_v56 = vadd.f32 %v12337_v46, %v2518_v60 }
 0x20c   : > { %v3540_v0 = vadd.f32 %v3539_v40, %v3525_v7  ;;  %v12396_v7 = vld [vmem:[#allocation11] sm:$0xf] }
 0x20d   : > { %4885 = vmatpush.bf16.msrb.mxu0 %v8990_v4  ;;  %v3738_v58 = vadd.f32 %v3566_v22, %v12327_v49  ;;  %v2560_v4 = vadd.f32 %v12344_v8, %v1734_v38  ;;  %v10956_v49 = vld [vmem:[#allocation8 + $0x464] sm:$0xf]  ;;  %v3766_v12 = vperm.slane %v12396_v7, 0  ;;  %v2546_v46 = vadd.f32 %v12339_v42, %v2532_v56 }
 0x20e   : > { %v8942_v2 = vor.u32 %v10956_v49, %v8939_v26  ;;  %v10984_v38 = vld [vmem:[#allocation8 + $0x544] sm:$0xf] }
 0x20f   : > { %4900 = vmatpush.bf16.msrb.mxu1 %v9102_v5  ;;  %v3756_v29 = vmul.f32 %v3748_v55, %v3738_v58  ;;  %v9051_v58 = vld [vmem:[#allocation8 + $0x550] sm:$0xf0] }
 0x210   : > { %v3553_v52 = vpop.f32.mrf.mxu2  ;;  %v3567_v15 = vpop.f32.mrf.mxu3 }
 0x211   : > { %4886 = vmatpush.bf16.msrb.mxu0 %v8974_v23  ;;  %v3554_v40 = vadd.f32 %v3553_v52, %v3540_v0  ;;  %v3749_v23 = vperm.slane %v12390_v33, 1  ;;  %v2574_v0 = vadd.f32 %v12346_v20, %v2560_v4  ;;  %v3774_v47 = vadd.f32 %v3766_v12, %v3756_v29  ;;  %v8907_v4 = vld [vmem:[#allocation8 + $0x430] sm:$0xf0] }
 0x212   : > { %v9054_v20 = vor.u32 %v10984_v38, %v9051_v58 }
 0x213   : > { %4901 = vmatpush.bf16.msrb.mxu1 %v9086_v51  ;;  %v3568_v22 = vadd.f32 %v3567_v15, %v3554_v40  ;;  %v2588_v15 = vadd.f32 %v12352_v53, %v2574_v0  ;;  %v10948_v51 = vld [vmem:[#allocation8 + $0x424] sm:$0xf]  ;;  %v3782_v56 = vmax.f32 %v3774_v47, 0.0  ;;  %v9257_v0 = vld [vmem:[#allocation8 + $0x6e0] sm:$0xf] }
 0x214   : > { %v8910_v53 = vor.u32 %v10948_v51, %v8907_v4  ;;  %v11352_v51 = vld [vmem:[#allocation2 + $0x18] sm:$0xff] }
 0x215   : > { %4887 = vmatpush.bf16.msrb.mxu0 %v8958_v59  ;;  %v3742_v59 = vadd.f32 %v3568_v22, %v2546_v46  ;;  %v10944_v22 = vld [vmem:[#allocation8 + $0x404] sm:$0xf]  ;;  %v11038_v46 = vld [vmem:[#allocation8 + $0x6ec] sm:$0xf0] }
 0x217   : > { %4902 = vmatpush.bf16.msrb.mxu1 %v9070_v32  ;;  %v3760_v49 = vmul.f32 %v3748_v55, %v3742_v59  ;;  %v9019_v32 = vld [vmem:[#allocation8 + $0x510] sm:$0xf0]  ;;  %v11070_v55 = vld [vmem:[#allocation8 + $0x7ec] sm:$0xf0]  ;;  %v9241_v59 = vld [vmem:[#allocation8 + $0x6c0] sm:$0xf] }
 0x219   : > { %4888 = vmatpush.bf16.msrb.mxu0 %v8942_v2 }
 0x21b   : > { %4903 = vmatpush.bf16.msrb.mxu1 %v9054_v20  ;;  %v9369_v20 = vld [vmem:[#allocation8 + $0x7c0] sm:$0xf] }
 0x223   : > { %v3579_v6 = vpop.f32.mrf.mxu0  ;;  %v3593_v45 = vpop.f32.mrf.mxu1 }
 0x224   : > { %v3594_v36 = vadd.f32 %v3593_v45, %v3579_v6  ;;  %v3767_v45 = vperm.slane %v12396_v7, 1 }
 0x228   : > { %v3607_v35 = vpop.f32.mrf.mxu2  ;;  %v3621_v63 = vpop.f32.mrf.mxu3 }
 0x229   : > { %v3608_v14 = vadd.f32 %v3607_v35, %v3594_v36  ;;  %v10952_v36 = vld [vmem:[#allocation8 + $0x444] sm:$0xf] }
 0x22a   : > { %v8926_v30 = vor.u32 %v10952_v36, %v8923_v21  ;;  %v10980_v35 = vld [vmem:[#allocation8 + $0x524] sm:$0xf]  ;;  %v9385_v21 = vld [vmem:[#allocation8 + $0x7e0] sm:$0xf] }
 0x22b   : > { %v3622_v52 = vadd.f32 %v3621_v63, %v3608_v14  ;;  %v3581_v8 = vpop.f32.mrf.mxu0  ;;  %v3595_v44 = vpop.f32.mrf.mxu1  ;;  %v2602_v63 = vadd.f32 %v12354_v54, %v2588_v15  ;;  %v9035_v14 = vld [vmem:[#allocation8 + $0x530] sm:$0xf0]  ;;  %v9258_v15 = vor.u32 %v11038_v46, %v9257_v0  ;;  %v9386_v47 = vor.u32 %v11070_v55, %v9385_v21  ;;  %v11058_v46 = vld [vmem:[#allocation8 + $0x78c] sm:$0xf0]  ;;  %v9193_v55 = vld [vmem:[#allocation8 + $0x660] sm:$0xf] }
 0x22c   : > { %v3596_v5 = vadd.f32 %v3595_v44, %v3581_v8  ;;  %4889 = vmatpush.bf16.msrb.mxu0 %v8926_v30  ;;  %v9038_v29 = vor.u32 %v10980_v35, %v9035_v14  ;;  %v10976_v8 = vld [vmem:[#allocation8 + $0x504] sm:$0xf]  ;;  %v9353_v14 = vld [vmem:[#allocation8 + $0x7a0] sm:$0xf] }
 0x22d   : > { %v3739_v6 = vadd.f32 %v3622_v52, %v12342_v48  ;;  %v8891_v52 = vld [vmem:[#allocation8 + $0x410] sm:$0xf0]  ;;  %v9022_v36 = vor.u32 %v10976_v8, %v9019_v32  ;;  %4856 = vmatpush.bf16.msra.mxu2 %v9258_v15  ;;  %4870 = vmatpush.bf16.msra.mxu3 %v9386_v47  ;;  %v11022_v15 = vld [vmem:[#allocation8 + $0x66c] sm:$0xf0] }
 0x22e   : > { %4904 = vmatpush.bf16.msrb.mxu1 %v9038_v29  ;;  %v8894_v44 = vor.u32 %v10944_v22, %v8891_v52  ;;  %v11026_v22 = vld [vmem:[#allocation8 + $0x68c] sm:$0xf0]  ;;  %v9337_v52 = vld [vmem:[#allocation8 + $0x780] sm:$0xf] }
 0x22f   : > { %v3757_v1 = vmul.f32 %v3749_v23, %v3739_v6  ;;  %v3778_v6 = vadd.f32 %v3766_v12, %v3760_v49  ;;  %v11062_v49 = vld [vmem:[#allocation8 + $0x7ac] sm:$0xf0] }
 0x230   : > { %v3609_v60 = vpop.f32.mrf.mxu2  ;;  %v3623_v40 = vpop.f32.mrf.mxu3  ;;  %4890 = vmatpush.bf16.msrb.mxu0 %v8910_v53 }
 0x231   : > { %v3775_v42 = vadd.f32 %v3767_v45, %v3757_v1  ;;  %v3610_v48 = vadd.f32 %v3609_v60, %v3596_v5  ;;  %v11034_v1 = vld [vmem:[#allocation8 + $0x6cc] sm:$0xf0]  ;;  %v3786_v60 = vmax.f32 %v3778_v6, 0.0  ;;  %v9338_v6 = vor.u32 %v11058_v46, %v9337_v52 }
 0x232   : > { %4905 = vmatpush.bf16.msrb.mxu1 %v9022_v36  ;;  %v11046_v52 = vld [vmem:[#allocation8 + $0x72c] sm:$0xf0] }
 0x233   : > { %v3783_v26 = vmax.f32 %v3775_v42, 0.0  ;;  %v3624_v28 = vadd.f32 %v3623_v40, %v3610_v48  ;;  %v9242_v42 = vor.u32 %v11034_v1, %v9241_v59  ;;  %v11054_v59 = vld [vmem:[#allocation8 + $0x76c] sm:$0xf0] }
 0x234   : > { %4891 = vmatpush.bf16.msrb.mxu0 %v8894_v44 }
 0x235   : > { %v3790_v2 = vpack.c.bf16 %v3783_v26, %v3782_v56  ;;  %v3743_v27 = vadd.f32 %v3624_v28, %v2602_v63  ;;  %4857 = vmatpush.bf16.msra.mxu2 %v9242_v42  ;;  %v11030_v63 = vld [vmem:[#allocation8 + $0x6ac] sm:$0xf0]  ;;  %v9354_v26 = vor.u32 %v11062_v49, %v9353_v14 }
 0x237   : > { %v3795_v54 = vshrl.u32 %v3790_v2, 16  ;;  %v3761_v5 = vmul.f32 %v3749_v23, %v3743_v27  ;;  %v3798_v38 = vshll.u32 %v3790_v2, 16  ;;  %v11066_v23 = vld [vmem:[#allocation8 + $0x7cc] sm:$0xf0]  ;;  %v3841_v2 = vld [vmem:[#allocation2 + $0x8] sm:$0x11] }
 0x238   : > { %v9370_v48 = vor.u32 %v11066_v23, %v9369_v20  ;;  %v9209_v27 = vld [vmem:[#allocation8 + $0x680] sm:$0xf] }
 0x239   : > { %v3797_v30 = vrot.slane %v3795_v54, 7  ;;  %v3779_v58 = vadd.f32 %v3767_v45, %v3761_v5  ;;  %v9225_v45 = vld [vmem:[#allocation8 + $0x6a0] sm:$0xf]  ;;  %v9210_v0 = vor.u32 %v11026_v22, %v9209_v27  ;;  %v10975_v27 = vld [vmem:[#allocation8 + $0x4f4] sm:$0xf0] }
 0x23a   : > { %4871 = vmatpush.bf16.msra.mxu3 %v9370_v48  ;;  %v9226_v53 = vor.u32 %v11030_v63, %v9225_v45 }
 0x23b   : > { %v3800_v40 = vor.u32 %v3798_v38, %v3797_v30  ;;  %v3787_v12 = vmax.f32 %v3779_v58, 0.0  ;;  %v3808_v8 = vrot.slane %v3797_v30, 4  ;;  %v9194_v38 = vor.u32 %v11022_v15, %v9193_v55  ;;  %v9321_v58 = vld [vmem:[#allocation8 + $0x760] sm:$0xf] }
 0x23c   : > { %4858 = vmatpush.bf16.msra.mxu2 %v9226_v53  ;;  %v9322_v1 = vor.u32 %v11054_v59, %v9321_v58  ;;  %v1762_v58 = vadd.f32 %v12280_v25, %v12278_v24  ;;  %v10971_v25 = vld [vmem:[#allocation8 + $0x4d4] sm:$0xf0] }
 0x23d   : > { %v3834_v4 = vsel %vm12133_vm3, %v3800_v40, %v11352_v51  ;;  %v3792_v35 = vpack.c.bf16 %v3787_v12, %v3786_v60  ;;  %v9177_v40 = vld [vmem:[#allocation8 + $0x640] sm:$0xf]  ;;  %v11018_v12 = vld [vmem:[#allocation8 + $0x64c] sm:$0xf0] }
 0x23e   : > { %3835 = vst [vmem:[#allocation2 + $0x18] sm:$0xff] %v3834_v4  ;;  %4872 = vmatpush.bf16.msra.mxu3 %v9354_v26  ;;  %v4116_v47 = vunpack.c.l.b16 %v3834_v4  ;;  %v4117_v30 = vunpack.c.h.b16 %v3834_v4  ;;  %v9178_v48 = vor.u32 %v11018_v12, %v9177_v40  ;;  %v9305_v51 = vld [vmem:[#allocation8 + $0x740] sm:$0xf]  ;;  %v11050_v4 = vld [vmem:[#allocation8 + $0x74c] sm:$0xf0] }
 0x23f   : > { %v3810_v56 = vshrl.u32 %v3792_v35, 16  ;;  %v3813_v29 = vshll.u32 %v3792_v35, 16  ;;  %v9306_v63 = vor.u32 %v11050_v4, %v9305_v51  ;;  %v9161_v26 = vld [vmem:[#allocation8 + $0x620] sm:$0xf]  ;;  %v11010_v12 = vld [vmem:[#allocation8 + $0x60c] sm:$0xf0] }
 0x240   : > { %4859 = vmatpush.bf16.msra.mxu2 %v9210_v0  ;;  %v9145_v40 = vld [vmem:[#allocation8 + $0x600] sm:$0xf]  ;;  %v8993_v4 = vld [vmem:[#allocation8 + $0x4c8] sm:$0xf] }
 0x241   : > { %v3812_v28 = vrot.slane %v3810_v56, 7 }
 0x242   : > { %4873 = vmatpush.bf16.msra.mxu3 %v9338_v6  ;;  %v9137_v6 = vld [vmem:[#allocation8 + $0x5e8] sm:$0xf] }
 0x243   : > { %v3815_v44 = vor.u32 %v3813_v29, %v3812_v28  ;;  %v3826_v32 = vrot.slane %v3812_v28, 4  ;;  %v3635_v42 = vpop.f32.mrf.mxu0  ;;  %v3649_v23 = vpop.f32.mrf.mxu1  ;;  %v11014_v28 = vld [vmem:[#allocation8 + $0x62c] sm:$0xf0]  ;;  %v9289_v29 = vld [vmem:[#allocation8 + $0x720] sm:$0xf] }
 0x244   : > { %4860 = vmatpush.bf16.msra.mxu2 %v9194_v38  ;;  %v9162_v22 = vor.u32 %v11014_v28, %v9161_v26  ;;  %v9290_v38 = vor.u32 %v11046_v52, %v9289_v29  ;;  %v9121_v28 = vld [vmem:[#allocation8 + $0x5c8] sm:$0xf]  ;;  %v3650_v29 = vadd.f32 %v3649_v23, %v3635_v42  ;;  %v10967_v23 = vld [vmem:[#allocation8 + $0x4b4] sm:$0xf0] }
 0x245   : > { %v12412_v54 = vsel %vm12120_vm1, %v3808_v8, %v3815_v44  ;;  %v3842_v5 = vsel %vm12028_vm8, %v3826_v32, %v3841_v2  ;;  %v12428_v56 = vld [vmem:[#allocation2 + $0x18] sm:$0xee] }
 0x246   : > { %v4120_v36 = vunpack.c.l.b16 %v12412_v54  ;;  %v12798_v21 = vunpack.c.h.b16 %v12412_v54  ;;  %3843 = vst [vmem:[#allocation2 + $0x8] sm:$0x11] %v3842_v5  ;;  %4874 = vmatpush.bf16.msra.mxu3 %v9322_v1  ;;  %v9009_v2 = vld [vmem:[#allocation8 + $0x4e8] sm:$0xf]  ;;  %v6053_v8 = vunpack.c.l.b16 %v12428_v56  ;;  %v11007_v5 = vld [vmem:[#allocation8 + $0x5f4] sm:$0xf0] }
 0x247   : > { %v9138_v51 = vor.u32 %v11007_v5, %v9137_v6  ;;  %v9259_v6 = vld [vmem:[#allocation8 + $0x6f0] sm:$0xf0]  ;;  %v8977_v42 = vld [vmem:[#allocation8 + $0x4a8] sm:$0xf] }
 0x248   : > { %v12420_v20 = vpack.c.b16 %v4120_v36, %v4116_v47  ;;  %v12424_v60 = vpack.c.b16 %v12798_v21, %v4117_v30  ;;  %4861 = vmatpush.bf16.msra.mxu2 %v9178_v48  ;;  %v3663_v55 = vpop.f32.mrf.mxu2  ;;  %v12435_v15 = vpop.f32.mrf.mxu3  ;;  %v9010_v48 = vor.u32 %v10975_v27, %v9009_v2  ;;  %v11003_v21 = vld [vmem:[#allocation8 + $0x5d4] sm:$0xf0]  ;;  %v11036_v27 = vld [vmem:[#allocation8 + $0x6e4] sm:$0xf] }
 0x24a   : > { %v4139_v35 = vshll.u32 %v12420_v20, 16  ;;  %v4151_v45 = vshll.u32 %v12424_v60, 16  ;;  %4875 = vmatpush.bf16.msra.mxu3 %v9306_v63  ;;  %v4137_v47 = vshrl.u32 %v12420_v20, 16  ;;  %v4149_v30 = vshrl.u32 %v12424_v60, 16  ;;  %v11042_v63 = vld [vmem:[#allocation8 + $0x70c] sm:$0xf0] }
 0x24b   : > { %v3651_v52 = vpop.f32.mrf.mxu1 }
 0x24c   : > { %v4141_v32 = vrot.slane %v4139_v35, 1  ;;  %v4153_v46 = vrot.slane %v4151_v45, 1  ;;  %4862 = vmatpush.bf16.msra.mxu2 %v9162_v22  ;;  %v9146_v35 = vor.u32 %v11010_v12, %v9145_v40  ;;  %v9273_v45 = vld [vmem:[#allocation8 + $0x700] sm:$0xf]  ;;  %v3637_v22 = vpop.f32.mrf.mxu0  ;;  %v9122_v40 = vor.u32 %v11003_v21, %v9121_v28  ;;  %v10999_v12 = vld [vmem:[#allocation8 + $0x5b4] sm:$0xf0] }
 0x24d   : > { %v3979_v53 = vld [vmem:[#allocation2 + $0x8] sm:$0x11]  ;;  %v9274_v2 = vor.u32 %v11042_v63, %v9273_v45  ;;  %v9243_v63 = vld [vmem:[#allocation8 + $0x6d0] sm:$0xf0]  ;;  %v12829_v21 = vunpack.c.h.b16 %v12412_v54 }
 0x24e   : > { %v4124_v14 = vunpack.c.l.b16 %v3979_v53  ;;  %v4125_v49 = vunpack.c.h.b16 %v3979_v53  ;;  %4876 = vmatpush.bf16.msra.mxu3 %v9290_v38  ;;  %v6057_v53 = vpack.c.b16 %v4120_v36, %v6053_v8  ;;  %v4154_v26 = vor.u32 %v4153_v46, %v4149_v30  ;;  %v11068_v36 = vld [vmem:[#allocation8 + $0x7e4] sm:$0xf]  ;;  %v9387_v8 = vld [vmem:[#allocation8 + $0x7f0] sm:$0xf0] }
 0x24f   : > { %v1776_v46 = vadd.f32 %v12284_v41, %v1762_v58  ;;  %v9262_v30 = vor.u32 %v11036_v27, %v9259_v6  ;;  %v1818_v41 = vadd.f32 %v12304_v50, %v12302_v17  ;;  %v3664_v58 = vadd.f32 %v3663_v55, %v3650_v29  ;;  %v8961_v17 = vld [vmem:[#allocation8 + $0x488] sm:$0xf]  ;;  %v11028_v50 = vld [vmem:[#allocation8 + $0x6a4] sm:$0xf]  ;;  %v9227_v55 = vld [vmem:[#allocation8 + $0x6b0] sm:$0xf0] }
 0x250   : > { %v12431_v44 = vpack.c.b16 %v4124_v14, %v4124_v14  ;;  %v12433_v0 = vpack.c.b16 %v4125_v49, %v4125_v49  ;;  %v4142_v14 = vor.u32 %v4141_v32, %v4137_v47  ;;  %4863 = vmatpush.bf16.msra.mxu2 %v9146_v35  ;;  %v6054_v32 = vunpack.c.h.b16 %v12428_v56  ;;  %v9105_v47 = vld [vmem:[#allocation8 + $0x5a8] sm:$0xf]  ;;  %v11032_v35 = vld [vmem:[#allocation8 + $0x6c4] sm:$0xf]  ;;  %v10963_v29 = vld [vmem:[#allocation8 + $0x494] sm:$0xf0] }
 0x251   : > { %v6061_v45 = vrot.slane %v6057_v53, 1  ;;  %v3665_v53 = vpop.f32.mrf.mxu2  ;;  %v9106_v28 = vor.u32 %v10999_v12, %v9105_v47  ;;  %v9355_v27 = vld [vmem:[#allocation8 + $0x7b0] sm:$0xf0]  ;;  %v1832_v6 = vadd.f32 %v12322_v37, %v1818_v41  ;;  %v8962_v47 = vor.u32 %v10963_v29, %v8961_v17  ;;  %v8929_v29 = vld [vmem:[#allocation8 + $0x448] sm:$0xf] }
 0x252   : > { %v4144_v59 = vshll.u32 %v12431_v44, 16  ;;  %v4156_v1 = vshll.u32 %v12433_v0, 16  ;;  %v6062_v56 = vrot.slane %v12431_v44, 1  ;;  %4877 = vmatpush.bf16.msra.mxu3 %v9274_v2  ;;  %v1790_v44 = vadd.f32 %v12286_v57, %v1776_v46  ;;  %v11060_v2 = vld [vmem:[#allocation8 + $0x7a4] sm:$0xf] }
 0x253   : > { %v10995_v46 = vld [vmem:[#allocation8 + $0x594] sm:$0xf0]  ;;  %v9211_v12 = vld [vmem:[#allocation8 + $0x690] sm:$0xf0] }
 0x254   : > { %v4146_v49 = vrot.slane %v4144_v59, 1  ;;  %v4158_v24 = vrot.slane %v4156_v1, 1  ;;  %v9390_v59 = vor.u32 %v11068_v36, %v9387_v8  ;;  %v8994_v1 = vor.u32 %v10971_v25, %v8993_v4  ;;  %4912 = vmatpush.bf16.msrb.mxu2 %v9262_v30 }
 0x255   : > { %v6058_v4 = vpack.c.b16 %v12829_v21, %v6054_v32  ;;  %v8978_v25 = vor.u32 %v10967_v23, %v8977_v42  ;;  %v2616_v54 = vadd.f32 %v12359_v62, %v1790_v44  ;;  %v3652_v36 = vadd.f32 %v3651_v52, %v3637_v22  ;;  %v9089_v32 = vld [vmem:[#allocation8 + $0x588] sm:$0xf]  ;;  %v11056_v52 = vld [vmem:[#allocation8 + $0x784] sm:$0xf] }
 0x256   : > { %v12446_v5 = vsel %vm931_vm2, %v4142_v14, %v4146_v49  ;;  %v12449_v38 = vsel %vm931_vm2, %v4154_v26, %v4158_v24  ;;  %v11064_v14 = vld [vmem:[#allocation8 + $0x7c4] sm:$0xf]  ;;  %v9371_v49 = vld [vmem:[#allocation8 + $0x7d0] sm:$0xf0]  ;;  %4926 = vmatpush.bf16.msrb.mxu3 %v9390_v59  ;;  %v9246_v26 = vor.u32 %v11032_v35, %v9243_v63  ;;  %v12464_v24 = vpop.f32.mrf.mxu3  ;;  %v9230_v30 = vor.u32 %v11028_v50, %v9227_v55  ;;  %v8945_v22 = vld [vmem:[#allocation8 + $0x468] sm:$0xf] }
 0x257   : > { %4836 = vmatmul.bf16.vlgmr.msra.gmra.mxu0 %v12446_v5  ;;  %4850 = vmatmul.bf16.vlgmr.msra.gmra.mxu1 %v12449_v38  ;;  %v3678_v59 = vadd.f32 %v12435_v15, %v3664_v58  ;;  %v6064_v42 = vrot.slane %v6058_v4, 1  ;;  %v6065_v23 = vrot.slane %v12433_v0, 1  ;;  %v9090_v62 = vor.u32 %v10995_v46, %v9089_v32  ;;  %v9339_v35 = vld [vmem:[#allocation8 + $0x790] sm:$0xf0]  ;;  %v10959_v58 = vld [vmem:[#allocation8 + $0x474] sm:$0xf0] }
 0x258   : > { %4940 = vmatpush.bf16.msra.mxu0 %v9010_v48  ;;  %4954 = vmatpush.bf16.msra.mxu1 %v9138_v51  ;;  %v9374_v48 = vor.u32 %v11064_v14, %v9371_v49  ;;  %v12459_v51 = vsel %vm2857_vm4, %v6061_v45, %v6062_v56  ;;  %v1846_v15 = vadd.f32 %v12324_v39, %v1832_v6  ;;  %v9073_v0 = vld [vmem:[#allocation8 + $0x568] sm:$0xf]  ;;  %v10991_v63 = vld [vmem:[#allocation8 + $0x574] sm:$0xf0]  ;;  %v11020_v21 = vld [vmem:[#allocation8 + $0x664] sm:$0xf] }
 0x259   : > { %4913 = vmatpush.bf16.msrb.mxu2 %v9246_v26  ;;  %v12471_v45 = vsel %vm2857_vm4, %v6064_v42, %v6065_v23  ;;  %v2630_v56 = vadd.f32 %v12361_v10, %v2616_v54  ;;  %v3666_v41 = vadd.f32 %v3665_v53, %v3652_v36  ;;  %v3740_v49 = vadd.f32 %v3678_v59, %v12357_v9  ;;  %v9195_v4 = vld [vmem:[#allocation8 + $0x670] sm:$0xf0]  ;;  %v11052_v53 = vld [vmem:[#allocation8 + $0x764] sm:$0xf]  ;;  %v9057_v6 = vld [vmem:[#allocation8 + $0x548] sm:$0xf] }
 0x25a   : > { %4927 = vmatpush.bf16.msrb.mxu3 %v9374_v48  ;;  %v3750_v26 = vperm.slane %v12390_v33, 2  ;;  %v9342_v48 = vor.u32 %v11056_v52, %v9339_v35  ;;  %v2672_v39 = vadd.f32 %v12374_v61, %v1846_v15  ;;  %v9323_v50 = vld [vmem:[#allocation8 + $0x770] sm:$0xf0]  ;;  %v3768_v55 = vperm.slane %v12396_v7, 2  ;;  %v10987_v54 = vld [vmem:[#allocation8 + $0x554] sm:$0xf0] }
 0x25b   : > { %v2644_v44 = vadd.f32 %v12367_v13, %v2630_v56  ;;  %v8946_v9 = vor.u32 %v10959_v58, %v8945_v22  ;;  %v9198_v13 = vor.u32 %v11020_v21, %v9195_v4  ;;  %v11016_v32 = vld [vmem:[#allocation8 + $0x644] sm:$0xf]  ;;  %v9179_v46 = vld [vmem:[#allocation8 + $0x650] sm:$0xf0]  ;;  %v9041_v52 = vld [vmem:[#allocation8 + $0x528] sm:$0xf] }
 0x25c   : > { %4941 = vmatpush.bf16.msra.mxu0 %v8994_v1  ;;  %4955 = vmatpush.bf16.msra.mxu1 %v9122_v40  ;;  %v9358_v1 = vor.u32 %v11060_v2, %v9355_v27  ;;  %v11024_v40 = vld [vmem:[#allocation8 + $0x684] sm:$0xf]  ;;  %v3680_v2 = vadd.f32 %v12464_v24, %v3666_v41  ;;  %v10955_v27 = vld [vmem:[#allocation8 + $0x454] sm:$0xf0]  ;;  %v3758_v61 = vmul.f32 %v3750_v26, %v3740_v49  ;;  %v9307_v23 = vld [vmem:[#allocation8 + $0x750] sm:$0xf0] }
 0x25d   : > { %4914 = vmatpush.bf16.msrb.mxu2 %v9230_v30  ;;  %v9214_v14 = vor.u32 %v11024_v40, %v9211_v12  ;;  %v2658_v30 = vadd.f32 %v12369_v18, %v2644_v44  ;;  %v2686_v59 = vadd.f32 %v12376_v16, %v2672_v39  ;;  %v11048_v42 = vld [vmem:[#allocation8 + $0x744] sm:$0xf]  ;;  %v3769_v40 = vperm.slane %v12396_v7, 3  ;;  %v10951_v18 = vld [vmem:[#allocation8 + $0x434] sm:$0xf0] }
 0x25e   : > { %4928 = vmatpush.bf16.msrb.mxu3 %v9358_v1  ;;  %v8930_v12 = vor.u32 %v10955_v27, %v8929_v29  ;;  %v10983_v35 = vld [vmem:[#allocation8 + $0x534] sm:$0xf0]  ;;  %v9182_v15 = vor.u32 %v11016_v32, %v9179_v46  ;;  %v3776_v56 = vadd.f32 %v3768_v55, %v3758_v61  ;;  %v9310_v58 = vor.u32 %v11048_v42, %v9307_v23  ;;  %v9291_v21 = vld [vmem:[#allocation8 + $0x730] sm:$0xf0]  ;;  %v9011_v29 = vld [vmem:[#allocation8 + $0x4f8] sm:$0xf0] }
 0x25f   : > { %v2700_v16 = vadd.f32 %v12378_v34, %v2686_v59  ;;  %v3744_v22 = vadd.f32 %v3680_v2, %v2658_v30  ;;  %v11044_v34 = vld [vmem:[#allocation8 + $0x724] sm:$0xf]  ;;  %v9042_v39 = vor.u32 %v10983_v35, %v9041_v52  ;;  %v11005_v2 = vld [vmem:[#allocation8 + $0x5ec] sm:$0xf]  ;;  %v9139_v61 = vld [vmem:[#allocation8 + $0x5f8] sm:$0xf0] }
 0x260   : > { %4942 = vmatpush.bf16.msra.mxu0 %v8978_v25  ;;  %4956 = vmatpush.bf16.msra.mxu1 %v9106_v28  ;;  %v9074_v28 = vor.u32 %v10991_v63, %v9073_v0  ;;  %v11012_v0 = vld [vmem:[#allocation8 + $0x624] sm:$0xf]  ;;  %v9163_v63 = vld [vmem:[#allocation8 + $0x630] sm:$0xf0]  ;;  %v9142_v23 = vor.u32 %v11005_v2, %v9139_v61 }
 0x261   : > { %4915 = vmatpush.bf16.msrb.mxu2 %v9214_v14  ;;  %v9166_v27 = vor.u32 %v11012_v0, %v9163_v63  ;;  %v9147_v46 = vld [vmem:[#allocation8 + $0x610] sm:$0xf0]  ;;  %v11040_v30 = vld [vmem:[#allocation8 + $0x704] sm:$0xf] }
 0x262   : > { %4929 = vmatpush.bf16.msrb.mxu3 %v9342_v48  ;;  %v8897_v48 = vld [vmem:[#allocation8 + $0x408] sm:$0xf] }
 0x263   : > { %v3691_v8 = vpop.f32.mrf.mxu0  ;;  %v3705_v57 = vpop.f32.mrf.mxu1 }
 0x264   : > { %v3706_v37 = vadd.f32 %v3705_v57, %v3691_v8  ;;  %4943 = vmatpush.bf16.msra.mxu0 %v8962_v47  ;;  %4957 = vmatpush.bf16.msra.mxu1 %v9090_v62  ;;  %v3751_v8 = vperm.slane %v12390_v33, 3  ;;  %v9326_v57 = vor.u32 %v11052_v53, %v9323_v50  ;;  %v8913_v62 = vld [vmem:[#allocation8 + $0x428] sm:$0xf]  ;;  %v10979_v53 = vld [vmem:[#allocation8 + $0x514] sm:$0xf0]  ;;  %v2714_v50 = vadd.f32 %v12380_v43, %v2700_v16 }
 0x265   : > { %4916 = vmatpush.bf16.msrb.mxu2 %v9198_v13  ;;  %v8914_v49 = vor.u32 %v10951_v18, %v8913_v62  ;;  %v9275_v43 = vld [vmem:[#allocation8 + $0x710] sm:$0xf0]  ;;  %v11001_v18 = vld [vmem:[#allocation8 + $0x5cc] sm:$0xf]  ;;  %v9123_v16 = vld [vmem:[#allocation8 + $0x5d8] sm:$0xf0] }
 0x266   : > { %4930 = vmatpush.bf16.msrb.mxu3 %v9326_v57  ;;  %v11008_v57 = vld [vmem:[#allocation8 + $0x604] sm:$0xf]  ;;  %v9278_v52 = vor.u32 %v11040_v30, %v9275_v43  ;;  %v8979_v33 = vld [vmem:[#allocation8 + $0x4b8] sm:$0xf0] }
 0x267   : > { %v3719_v17 = vpop.f32.mrf.mxu2  ;;  %v3733_v10 = vpop.f32.mrf.mxu3  ;;  %4892 = vmatmul.bf16.vlgmr.msrb.gmra.mxu0 %v12446_v5  ;;  %4906 = vmatmul.bf16.vlgmr.msrb.gmra.mxu1 %v12449_v38 }
 0x268   : > { %v3720_v25 = vadd.f32 %v3719_v17, %v3706_v37  ;;  %4944 = vmatpush.bf16.msra.mxu0 %v8946_v9  ;;  %4958 = vmatpush.bf16.msra.mxu1 %v9074_v28  ;;  %v9058_v37 = vor.u32 %v10987_v54, %v9057_v6  ;;  %v10947_v17 = vld [vmem:[#allocation8 + $0x414] sm:$0xf0]  ;;  %v10973_v28 = vld [vmem:[#allocation8 + $0x4ec] sm:$0xf]  ;;  %v3784_v6 = vmax.f32 %v3776_v56, 0.0 }
 0x269   : > { %4917 = vmatpush.bf16.msrb.mxu2 %v9182_v15  ;;  %v8898_v32 = vor.u32 %v10947_v17, %v8897_v48  ;;  %v9014_v42 = vor.u32 %v10973_v28, %v9011_v29  ;;  %v9091_v17 = vld [vmem:[#allocation8 + $0x598] sm:$0xf0] }
 0x26a   : > { %v3734_v36 = vadd.f32 %v3733_v10, %v3720_v25  ;;  %v9025_v10 = vld [vmem:[#allocation8 + $0x508] sm:$0xf]  ;;  %v3762_v25 = vmul.f32 %v3750_v26, %v3744_v22  ;;  %4931 = vmatpush.bf16.msrb.mxu3 %v9310_v58  ;;  %v9150_v22 = vor.u32 %v11008_v57, %v9147_v46  ;;  %v10965_v58 = vld [vmem:[#allocation8 + $0x4ac] sm:$0xf]  ;;  %v8947_v28 = vld [vmem:[#allocation8 + $0x478] sm:$0xf0] }
 0x26b   : > { %v3693_v24 = vpop.f32.mrf.mxu0  ;;  %v3707_v1 = vpop.f32.mrf.mxu1  ;;  %v9026_v26 = vor.u32 %v10979_v53, %v9025_v10  ;;  %v8982_v48 = vor.u32 %v10965_v58, %v8979_v33  ;;  %v8931_v46 = vld [vmem:[#allocation8 + $0x458] sm:$0xf0]  ;;  %v10846_v58 = vld [vmem:[#allocation8 + $0xec] sm:$0xf0] }
 0x26c   : > { %v3741_v47 = vadd.f32 %v3734_v36, %v12372_v31  ;;  %v3708_v41 = vadd.f32 %v3707_v1, %v3693_v24  ;;  %4945 = vmatpush.bf16.msra.mxu0 %v8930_v12  ;;  %4959 = vmatpush.bf16.msra.mxu1 %v9058_v37  ;;  %v9294_v36 = vor.u32 %v11044_v34, %v9291_v21  ;;  %v8995_v12 = vld [vmem:[#allocation8 + $0x4d8] sm:$0xf0]  ;;  %v10961_v21 = vld [vmem:[#allocation8 + $0x48c] sm:$0xf] }
 0x26d   : > { %v3780_v1 = vadd.f32 %v3768_v55, %v3762_v25  ;;  %4918 = vmatpush.bf16.msrb.mxu2 %v9166_v27  ;;  %v3836_v55 = vld [vmem:[#allocation2 + $0x20] sm:$0xff] }
 0x26e   : > { %v3759_v31 = vmul.f32 %v3751_v8, %v3741_v47  ;;  %v10969_v47 = vld [vmem:[#allocation8 + $0x4cc] sm:$0xf]  ;;  %4932 = vmatpush.bf16.msrb.mxu3 %v9294_v36  ;;  %v8950_v36 = vor.u32 %v10957_v11, %v8947_v28 }
 0x26f   : > { %v3721_v14 = vpop.f32.mrf.mxu2  ;;  %v3735_v9 = vpop.f32.mrf.mxu3 }
 0x270   : > { %v3777_v4 = vadd.f32 %v3769_v40, %v3759_v31  ;;  %v3722_v44 = vadd.f32 %v3721_v14, %v3708_v41  ;;  %4946 = vmatpush.bf16.msra.mxu0 %v8914_v49  ;;  %4960 = vmatpush.bf16.msra.mxu1 %v9042_v39  ;;  %v8998_v31 = vor.u32 %v10969_v47, %v8995_v12  ;;  %v10997_v14 = vld [vmem:[#allocation8 + $0x5ac] sm:$0xf]  ;;  %v9107_v49 = vld [vmem:[#allocation8 + $0x5b8] sm:$0xf0] }
 0x271   : > { %v9126_v41 = vor.u32 %v11001_v18, %v9123_v16  ;;  %4919 = vmatpush.bf16.msrb.mxu2 %v9150_v22  ;;  %v9110_v34 = vor.u32 %v10997_v14, %v9107_v49  ;;  %v10993_v39 = vld [vmem:[#allocation8 + $0x58c] sm:$0xf]  ;;  %v8915_v12 = vld [vmem:[#allocation8 + $0x438] sm:$0xf0] }
 0x272   : > { %v3785_v54 = vmax.f32 %v3777_v4, 0.0  ;;  %v3736_v13 = vadd.f32 %v3735_v9, %v3722_v44  ;;  %4933 = vmatpush.bf16.msrb.mxu3 %v9278_v52  ;;  %v8963_v4 = vld [vmem:[#allocation8 + $0x498] sm:$0xf0]  ;;  %v9094_v9 = vor.u32 %v10993_v39, %v9091_v17  ;;  %v10949_v47 = vld [vmem:[#allocation8 + $0x42c] sm:$0xf] }
 0x273   : > { %v8966_v25 = vor.u32 %v10961_v21, %v8963_v4  ;;  %v10945_v18 = vld [vmem:[#allocation8 + $0x40c] sm:$0xf]  ;;  %v8899_v16 = vld [vmem:[#allocation8 + $0x418] sm:$0xf0]  ;;  %v9393_v39 = vld [vmem:[#allocation8 + $0x7e8] sm:$0xf] }
 0x274   : > { %v3791_v59 = vpack.c.bf16 %v3785_v54, %v3784_v6  ;;  %v3745_v24 = vadd.f32 %v3736_v13, %v2714_v50  ;;  %4947 = vmatpush.bf16.msra.mxu0 %v8898_v32  ;;  %4961 = vmatpush.bf16.msra.mxu1 %v9026_v26  ;;  %v3844_v50 = vld [vmem:[#allocation2] sm:$0x11]  ;;  %v10989_v6 = vld [vmem:[#allocation8 + $0x56c] sm:$0xf]  ;;  %v9075_v54 = vld [vmem:[#allocation8 + $0x578] sm:$0xf0]  ;;  %v8902_v49 = vor.u32 %v10945_v18, %v8899_v16 }
 0x275   : > { %v9078_v57 = vor.u32 %v10989_v6, %v9075_v54  ;;  %v10953_v32 = vld [vmem:[#allocation8 + $0x44c] sm:$0xf]  ;;  %v9027_v52 = vld [vmem:[#allocation8 + $0x518] sm:$0xf0]  ;;  %v11071_v17 = vld [vmem:[#allocation8 + $0x7f4] sm:$0xf0] }
 0x276   : > { %v3802_v37 = vshrl.u32 %v3791_v59, 16  ;;  %v3763_v62 = vmul.f32 %v3751_v8, %v3745_v24  ;;  %v3805_v15 = vshll.u32 %v3791_v59, 16  ;;  %v3788_v8 = vmax.f32 %v3780_v1, 0.0  ;;  %v10985_v59 = vld [vmem:[#allocation8 + $0x54c] sm:$0xf] }
 0x277   : > { %4948 = vmatmul.bf16.vlgmr.msra.gmra.mxu0 %v12446_v5  ;;  %4962 = vmatmul.bf16.vlgmr.msra.gmra.mxu1 %v12449_v38  ;;  %v9059_v24 = vld [vmem:[#allocation8 + $0x558] sm:$0xf0]  ;;  %v10977_v22 = vld [vmem:[#allocation8 + $0x50c] sm:$0xf]  ;;  %v9394_v54 = vor.u32 %v11071_v17, %v9393_v39  ;;  %v9481_v16 = vld [vmem:[#allocation8 + $0xa0] sm:$0xf] }
 0x278   : > { %v3804_v35 = vrot.slane %v3802_v37, 7  ;;  %v3781_v56 = vadd.f32 %v3769_v40, %v3763_v62  ;;  %4996 = vmatpush.bf16.msrb.mxu0 %v9014_v42  ;;  %5010 = vmatpush.bf16.msrb.mxu1 %v9142_v23  ;;  %v8934_v42 = vor.u32 %v10953_v32, %v8931_v46  ;;  %v9062_v23 = vor.u32 %v10985_v59, %v9059_v24  ;;  %v10981_v37 = vld [vmem:[#allocation8 + $0x52c] sm:$0xf]  ;;  %v9043_v62 = vld [vmem:[#allocation8 + $0x538] sm:$0xf0] }
 0x279   : > { %v9249_v24 = vld [vmem:[#allocation8 + $0x6c8] sm:$0xf] }
 0x27a   : > { %v3807_v0 = vor.u32 %v3805_v15, %v3804_v35  ;;  %v3789_v63 = vmax.f32 %v3781_v56, 0.0  ;;  %v3817_v29 = vrot.slane %v3804_v35, 4  ;;  %v8918_v56 = vor.u32 %v10949_v47, %v8915_v12 }
 0x27c   : > { %v3837_v7 = vsel %vm12133_vm3, %v3807_v0, %v3836_v55  ;;  %v3793_v40 = vpack.c.bf16 %v3789_v63, %v3788_v8  ;;  %4997 = vmatpush.bf16.msrb.mxu0 %v8998_v31  ;;  %5011 = vmatpush.bf16.msrb.mxu1 %v9126_v41  ;;  %v9046_v55 = vor.u32 %v10981_v37, %v9043_v62  ;;  %v9513_v41 = vld [vmem:[#allocation8 + $0xe0] sm:$0xf]  ;;  %v10878_v63 = vld [vmem:[#allocation8 + $0x1ec] sm:$0xf0] }
 0x27d   : > { %3838 = vst [vmem:[#allocation2 + $0x20] sm:$0xff] %v3837_v7  ;;  %v4118_v26 = vunpack.c.l.b16 %v3837_v7  ;;  %v4119_v3 = vunpack.c.h.b16 %v3837_v7  ;;  %v9641_v0 = vld [vmem:[#allocation8 + $0x1e0] sm:$0xf]  ;;  %v9030_v7 = vor.u32 %v10977_v22, %v9027_v52  ;;  %v10838_v22 = vld [vmem:[#allocation8 + $0xac] sm:$0xf0] }
 0x27e   : > { %v3819_v44 = vshrl.u32 %v3793_v40, 16  ;;  %v3822_v53 = vshll.u32 %v3793_v40, 16  ;;  %v9265_v40 = vld [vmem:[#allocation8 + $0x6e8] sm:$0xf]  ;;  %v9609_v52 = vld [vmem:[#allocation8 + $0x1a0] sm:$0xf] }
 0x280   : > { %v3821_v10 = vrot.slane %v3819_v44, 7  ;;  %4998 = vmatpush.bf16.msrb.mxu0 %v8982_v48  ;;  %5012 = vmatpush.bf16.msrb.mxu1 %v9110_v34  ;;  %v11039_v48 = vld [vmem:[#allocation8 + $0x6f4] sm:$0xf0] }
 0x281   : > { %v9266_v6 = vor.u32 %v11039_v48, %v9265_v40 }
 0x282   : > { %v3824_v2 = vor.u32 %v3822_v53, %v3821_v10  ;;  %v3827_v27 = vrot.slane %v3821_v10, 4  ;;  %v9514_v10 = vor.u32 %v10846_v58, %v9513_v41  ;;  %v9642_v53 = vor.u32 %v10878_v63, %v9641_v0  ;;  %v9465_v63 = vld [vmem:[#allocation8 + $0x80] sm:$0xf] }
 0x284   : > { %v12512_v13 = vsel %vm12120_vm1, %v3817_v29, %v3824_v2  ;;  %v3845_v61 = vsel %vm12028_vm8, %v3827_v27, %v3844_v50  ;;  %4999 = vmatpush.bf16.msrb.mxu0 %v8966_v25  ;;  %5013 = vmatpush.bf16.msrb.mxu1 %v9094_v9  ;;  %v5921_v14 = vld [vmem:[#allocation2 + $0x20] sm:$0xee]  ;;  %v9497_v50 = vld [vmem:[#allocation8 + $0xc0] sm:$0xf] }
 0x285   : > { %v4122_v30 = vunpack.c.l.b16 %v12512_v13  ;;  %v4123_v43 = vunpack.c.h.b16 %v12512_v13  ;;  %3846 = vst [vmem:[#allocation2] sm:$0x11] %v3845_v61  ;;  %v6055_v25 = vunpack.c.l.b16 %v5921_v14  ;;  %v6056_v9 = vunpack.c.h.b16 %v5921_v14  ;;  %v10842_v27 = vld [vmem:[#allocation8 + $0xcc] sm:$0xf0]  ;;  %v9625_v61 = vld [vmem:[#allocation8 + $0x1c0] sm:$0xf] }
 0x286   : > { %v10834_v14 = vld [vmem:[#allocation8 + $0x8c] sm:$0xf0] }
 0x287   : > { %v12520_v1 = vpack.c.b16 %v4122_v30, %v4118_v26  ;;  %v12524_v19 = vpack.c.b16 %v4123_v43, %v4119_v3  ;;  %v11035_v26 = vld [vmem:[#allocation8 + $0x6d4] sm:$0xf0]  ;;  %v9377_v3 = vld [vmem:[#allocation8 + $0x7c8] sm:$0xf]  ;;  %v6059_v47 = vpack.c.b16 %v4122_v30, %v6055_v25  ;;  %v6060_v12 = vpack.c.b16 %v4123_v43, %v6056_v9  ;;  %v10870_v30 = vld [vmem:[#allocation8 + $0x1ac] sm:$0xf0] }
 0x288   : > { %5000 = vmatpush.bf16.msrb.mxu0 %v8950_v36  ;;  %5014 = vmatpush.bf16.msrb.mxu1 %v9078_v57  ;;  %v10874_v36 = vld [vmem:[#allocation8 + $0x1cc] sm:$0xf0]  ;;  %v9250_v13 = vor.u32 %v11035_v26, %v9249_v24  ;;  %v9610_v0 = vor.u32 %v10870_v30, %v9609_v52  ;;  %v9466_v39 = vor.u32 %v10834_v14, %v9465_v63  ;;  %v9185_v24 = vld [vmem:[#allocation8 + $0x648] sm:$0xf]  ;;  %v11019_v26 = vld [vmem:[#allocation8 + $0x654] sm:$0xf0] }
 0x289   : > { %v4163_v35 = vshll.u32 %v12520_v1, 16  ;;  %v4175_v15 = vshll.u32 %v12524_v19, 16  ;;  %v4161_v11 = vshrl.u32 %v12520_v1, 16  ;;  %v4173_v29 = vshrl.u32 %v12524_v19, 16  ;;  %v10862_v25 = vld [vmem:[#allocation8 + $0x16c] sm:$0xf0] }
 0x28a   : > { %v9626_v18 = vor.u32 %v10874_v36, %v9625_v61  ;;  %v6070_v58 = vrot.slane %v6060_v12, 1  ;;  %v9433_v61 = vld [vmem:[#allocation8 + $0x40] sm:$0xf]  ;;  %v10826_v36 = vld [vmem:[#allocation8 + $0x4c] sm:$0xf0]  ;;  %v9186_v52 = vor.u32 %v11019_v26, %v9185_v24 }
 0x28b   : > { %v4165_v21 = vrot.slane %v4163_v35, 1  ;;  %v4177_v44 = vrot.slane %v4175_v15, 1  ;;  %v9233_v35 = vld [vmem:[#allocation8 + $0x6a8] sm:$0xf]  ;;  %v11031_v15 = vld [vmem:[#allocation8 + $0x6b4] sm:$0xf0] }
 0x28c   : > { %5001 = vmatpush.bf16.msrb.mxu0 %v8934_v42  ;;  %5015 = vmatpush.bf16.msrb.mxu1 %v9062_v23  ;;  %v3980_v31 = vld [vmem:[#allocation2] sm:$0x11]  ;;  %v11067_v42 = vld [vmem:[#allocation8 + $0x7d4] sm:$0xf0]  ;;  %v9498_v23 = vor.u32 %v10842_v27, %v9497_v50  ;;  %v9577_v50 = vld [vmem:[#allocation8 + $0x160] sm:$0xf] }
 0x28d   : > { %v4126_v33 = vunpack.c.l.b16 %v3980_v31  ;;  %v4127_v8 = vunpack.c.h.b16 %v3980_v31  ;;  %v4166_v57 = vor.u32 %v4165_v21, %v4161_v11  ;;  %v4178_v46 = vor.u32 %v4177_v44, %v4173_v29  ;;  %v11027_v21 = vld [vmem:[#allocation8 + $0x694] sm:$0xf0]  ;;  %v9417_v12 = vld [vmem:[#allocation8 + $0x20] sm:$0xf]  ;;  %v10844_v63 = vld [vmem:[#allocation8 + $0xe4] sm:$0xf] }
 0x28e   : > { %v9378_v43 = vor.u32 %v11067_v42, %v9377_v3  ;;  %v6067_v31 = vrot.slane %v6059_v47, 1  ;;  %v11059_v44 = vld [vmem:[#allocation8 + $0x794] sm:$0xf0]  ;;  %v9313_v3 = vld [vmem:[#allocation8 + $0x748] sm:$0xf] }
 0x28f   : > { %v12528_v34 = vpack.c.b16 %v4126_v33, %v4126_v33  ;;  %v12530_v4 = vpack.c.b16 %v4127_v8, %v4127_v8  ;;  %v9482_v8 = vor.u32 %v10838_v22, %v9481_v16  ;;  %v11023_v29 = vld [vmem:[#allocation8 + $0x674] sm:$0xf0]  ;;  %v9545_v16 = vld [vmem:[#allocation8 + $0x120] sm:$0xf]  ;;  %v10854_v22 = vld [vmem:[#allocation8 + $0x12c] sm:$0xf0] }
 0x290   : > { %5002 = vmatpush.bf16.msrb.mxu0 %v8918_v56  ;;  %5016 = vmatpush.bf16.msrb.mxu1 %v9046_v55  ;;  %v9361_v56 = vld [vmem:[#allocation8 + $0x7a8] sm:$0xf]  ;;  %v11063_v55 = vld [vmem:[#allocation8 + $0x7b4] sm:$0xf0]  ;;  %v11029_v24 = vld [vmem:[#allocation8 + $0x6ac] sm:$0xf] }
 0x291   : > { %v4168_v28 = vshll.u32 %v12528_v34, 16  ;;  %v4180_v2 = vshll.u32 %v12530_v4, 16  ;;  %v6068_v41 = vrot.slane %v12528_v34, 1  ;;  %v6071_v33 = vrot.slane %v12530_v4, 1  ;;  %v9217_v34 = vld [vmem:[#allocation8 + $0x688] sm:$0xf] }
 0x292   : > { %v9362_v48 = vor.u32 %v11063_v55, %v9361_v56  ;;  %v9345_v4 = vld [vmem:[#allocation8 + $0x788] sm:$0xf]  ;;  %v9218_v9 = vor.u32 %v11027_v21, %v9217_v34  ;;  %v11055_v27 = vld [vmem:[#allocation8 + $0x774] sm:$0xf0]  ;;  %v9546_v55 = vor.u32 %v10854_v22, %v9545_v16  ;;  %v10836_v26 = vld [vmem:[#allocation8 + $0xa4] sm:$0xf] }
 0x293   : > { %v4170_v32 = vrot.slane %v4168_v28, 1  ;;  %v4182_v59 = vrot.slane %v4180_v2, 1  ;;  %v12553_v40 = vsel %vm2857_vm4, %v6067_v31, %v6068_v41  ;;  %v9346_v11 = vor.u32 %v11059_v44, %v9345_v4  ;;  %v9201_v28 = vld [vmem:[#allocation8 + $0x668] sm:$0xf]  ;;  %v11051_v42 = vld [vmem:[#allocation8 + $0x754] sm:$0xf0] }
 0x294   : > { %5003 = vmatpush.bf16.msrb.mxu0 %v8902_v49  ;;  %5017 = vmatpush.bf16.msrb.mxu1 %v9030_v7  ;;  %v9593_v49 = vld [vmem:[#allocation8 + $0x180] sm:$0xf]  ;;  %v10866_v7 = vld [vmem:[#allocation8 + $0x18c] sm:$0xf0]  ;;  %v9329_v2 = vld [vmem:[#allocation8 + $0x768] sm:$0xf]  ;;  %v9314_v30 = vor.u32 %v11051_v42, %v9313_v3 }
 0x295   : > { %v12541_v37 = vsel %vm931_vm2, %v4166_v57, %v4170_v32  ;;  %v12544_v62 = vsel %vm931_vm2, %v4178_v46, %v4182_v59  ;;  %v9594_v17 = vor.u32 %v10866_v7, %v9593_v49  ;;  %v9561_v57 = vld [vmem:[#allocation8 + $0x140] sm:$0xf]  ;;  %v10858_v32 = vld [vmem:[#allocation8 + $0x14c] sm:$0xf0]  ;;  %v9202_v46 = vor.u32 %v11023_v29, %v9201_v28  ;;  %v9515_v7 = vld [vmem:[#allocation8 + $0xf0] sm:$0xf0] }
 0x296   : > { %4864 = vmatmul.bf16.vlgmr.msra.gmra.mxu2 %v12541_v37  ;;  %4878 = vmatmul.bf16.vlgmr.msra.gmra.mxu3 %v12544_v62  ;;  %v9330_v59 = vor.u32 %v11055_v27, %v9329_v2  ;;  %v9562_v47 = vor.u32 %v10858_v32, %v9561_v57  ;;  %v9401_v31 = vld [vmem:[#allocation8] sm:$0xf]  ;;  %v10818_v41 = vld [vmem:[#allocation8 + $0xc] sm:$0xf0]  ;;  %v9281_v34 = vld [vmem:[#allocation8 + $0x708] sm:$0xf] }
 0x297   : > { %4968 = vmatpush.bf16.msra.mxu2 %v9266_v6  ;;  %4982 = vmatpush.bf16.msra.mxu3 %v9394_v54  ;;  %v9578_v54 = vor.u32 %v10862_v25, %v9577_v50  ;;  %v11043_v21 = vld [vmem:[#allocation8 + $0x714] sm:$0xf0]  ;;  %v11037_v4 = vld [vmem:[#allocation8 + $0x6ec] sm:$0xf]  ;;  %v9402_v44 = vor.u32 %v10818_v41, %v9401_v31  ;;  %v9518_v50 = vor.u32 %v10844_v63, %v9515_v7  ;;  %v10840_v29 = vld [vmem:[#allocation8 + $0xc4] sm:$0xf] }
 0x298   : > { %5696 = vmatpush.bf16.msra.mxu0 %v9514_v10  ;;  %5710 = vmatpush.bf16.msra.mxu1 %v9642_v53  ;;  %v9449_v10 = vld [vmem:[#allocation8 + $0x60] sm:$0xf]  ;;  %v10830_v53 = vld [vmem:[#allocation8 + $0x6c] sm:$0xf0]  ;;  %v11033_v28 = vld [vmem:[#allocation8 + $0x6cc] sm:$0xf] }
 0x299   : > { %5004 = vmatmul.bf16.vlgmr.msrb.gmra.mxu0 %v12446_v5  ;;  %5018 = vmatmul.bf16.vlgmr.msrb.gmra.mxu1 %v12449_v38  ;;  %v12556_v5 = vsel %vm2857_vm4, %v6070_v58, %v6071_v33  ;;  %v9234_v38 = vor.u32 %v11031_v15, %v9233_v35  ;;  %v9450_v6 = vor.u32 %v10830_v53, %v9449_v10  ;;  %v9297_v35 = vld [vmem:[#allocation8 + $0x728] sm:$0xf]  ;;  %v11047_v15 = vld [vmem:[#allocation8 + $0x734] sm:$0xf0]  ;;  %v11069_v10 = vld [vmem:[#allocation8 + $0x7ec] sm:$0xf] }
 0x29a   : > { %v9153_v58 = vld [vmem:[#allocation8 + $0x608] sm:$0xf]  ;;  %v11011_v33 = vld [vmem:[#allocation8 + $0x614] sm:$0xf0]  ;;  %v9298_v49 = vor.u32 %v11047_v15, %v9297_v35  ;;  %v9395_v53 = vld [vmem:[#allocation8 + $0x7f8] sm:$0xf0] }
 0x29b   : > { %4969 = vmatpush.bf16.msra.mxu2 %v9250_v13  ;;  %4983 = vmatpush.bf16.msra.mxu3 %v9378_v43  ;;  %v9169_v13 = vld [vmem:[#allocation8 + $0x628] sm:$0xf]  ;;  %v11015_v43 = vld [vmem:[#allocation8 + $0x634] sm:$0xf0]  ;;  %v9398_v27 = vor.u32 %v11069_v10, %v9395_v53  ;;  %v11065_v57 = vld [vmem:[#allocation8 + $0x7cc] sm:$0xf] }
 0x29c   : > { %5697 = vmatpush.bf16.msra.mxu0 %v9498_v23  ;;  %5711 = vmatpush.bf16.msra.mxu1 %v9626_v18  ;;  %v9434_v23 = vor.u32 %v10826_v36, %v9433_v61  ;;  %v10822_v18 = vld [vmem:[#allocation8 + $0x2c] sm:$0xf0]  ;;  %v9170_v14 = vor.u32 %v11015_v43, %v9169_v13  ;;  %v9627_v61 = vld [vmem:[#allocation8 + $0x1d0] sm:$0xf0]  ;;  %v9251_v36 = vld [vmem:[#allocation8 + $0x6d8] sm:$0xf0] }
 0x29d   : > { %v9418_v56 = vor.u32 %v10822_v18, %v9417_v12  ;;  %v9379_v32 = vld [vmem:[#allocation8 + $0x7d8] sm:$0xf0]  ;;  %v9254_v3 = vor.u32 %v11033_v28, %v9251_v36  ;;  %v9611_v12 = vld [vmem:[#allocation8 + $0x1b0] sm:$0xf0]  ;;  %v11061_v16 = vld [vmem:[#allocation8 + $0x7ac] sm:$0xf] }
 0x29e   : > { %v9382_v42 = vor.u32 %v11065_v57, %v9379_v32  ;;  %v9235_v18 = vld [vmem:[#allocation8 + $0x6b8] sm:$0xf0]  ;;  %v11025_v13 = vld [vmem:[#allocation8 + $0x68c] sm:$0xf]  ;;  %v10832_v43 = vld [vmem:[#allocation8 + $0x84] sm:$0xf] }
 0x29f   : > { %4970 = vmatpush.bf16.msra.mxu2 %v9234_v38  ;;  %4984 = vmatpush.bf16.msra.mxu3 %v9362_v48  ;;  %v10876_v38 = vld [vmem:[#allocation8 + $0x1e4] sm:$0xf]  ;;  %v9643_v48 = vld [vmem:[#allocation8 + $0x1f0] sm:$0xf0]  ;;  %v9363_v22 = vld [vmem:[#allocation8 + $0x7b8] sm:$0xf0]  ;;  %v9238_v35 = vor.u32 %v11029_v24, %v9235_v18 }
 0x2a0   : > { %5698 = vmatpush.bf16.msra.mxu0 %v9482_v8  ;;  %5712 = vmatpush.bf16.msra.mxu1 %v9610_v0  ;;  %v9529_v8 = vld [vmem:[#allocation8 + $0x100] sm:$0xf]  ;;  %v10850_v0 = vld [vmem:[#allocation8 + $0x10c] sm:$0xf0]  ;;  %v9646_v25 = vor.u32 %v10876_v38, %v9643_v48  ;;  %v9366_v15 = vor.u32 %v11061_v16, %v9363_v22  ;;  %v9595_v31 = vld [vmem:[#allocation8 + $0x190] sm:$0xf0] }
 0x2a1   : > { %v9219_v41 = vld [vmem:[#allocation8 + $0x698] sm:$0xf0]  ;;  %v11021_v63 = vld [vmem:[#allocation8 + $0x66c] sm:$0xf]  ;;  %v9451_v38 = vld [vmem:[#allocation8 + $0x70] sm:$0xf0] }
 0x2a2   : > { %v10860_v48 = vld [vmem:[#allocation8 + $0x164] sm:$0xf]  ;;  %v11017_v10 = vld [vmem:[#allocation8 + $0x64c] sm:$0xf]  ;;  %v9563_v28 = vld [vmem:[#allocation8 + $0x150] sm:$0xf0] }
 0x2a3   : > { %4971 = vmatpush.bf16.msra.mxu2 %v9218_v9  ;;  %4985 = vmatpush.bf16.msra.mxu3 %v9346_v11  ;;  %v9154_v9 = vor.u32 %v11011_v33, %v9153_v58  ;;  %v9282_v11 = vor.u32 %v11043_v21, %v9281_v34  ;;  %v11057_v58 = vld [vmem:[#allocation8 + $0x78c] sm:$0xf]  ;;  %v9347_v33 = vld [vmem:[#allocation8 + $0x798] sm:$0xf0]  ;;  %v9579_v34 = vld [vmem:[#allocation8 + $0x170] sm:$0xf0] }
 0x2a4   : > { %5699 = vmatpush.bf16.msra.mxu0 %v9466_v39  ;;  %5713 = vmatpush.bf16.msra.mxu1 %v9594_v17  ;;  %v9530_v39 = vor.u32 %v10850_v0, %v9529_v8  ;;  %v9267_v17 = vld [vmem:[#allocation8 + $0x6f8] sm:$0xf0]  ;;  %v9350_v7 = vor.u32 %v11057_v58, %v9347_v33  ;;  %v10824_v53 = vld [vmem:[#allocation8 + $0x44] sm:$0xf]  ;;  %v9547_v24 = vld [vmem:[#allocation8 + $0x130] sm:$0xf0] }
 0x2a5   : > { %v9270_v2 = vor.u32 %v11037_v4, %v9267_v17  ;;  %v9203_v21 = vld [vmem:[#allocation8 + $0x678] sm:$0xf0]  ;;  %v11053_v4 = vld [vmem:[#allocation8 + $0x76c] sm:$0xf]  ;;  %v9582_v17 = vor.u32 %v10860_v48, %v9579_v34  ;;  %v10820_v36 = vld [vmem:[#allocation8 + $0x24] sm:$0xf] }
 0x2a6   : > { %4920 = vmatmul.bf16.vlgmr.msrb.gmra.mxu2 %v12541_v37  ;;  %4934 = vmatmul.bf16.vlgmr.msrb.gmra.mxu3 %v12544_v62  ;;  %v9155_v18 = vld [vmem:[#allocation8 + $0x618] sm:$0xf0]  ;;  %v11041_v16 = vld [vmem:[#allocation8 + $0x70c] sm:$0xf]  ;;  %v10816_v22 = vld [vmem:[#allocation8 + $0x4] sm:$0xf] }
 0x2a7   : > { %4972 = vmatpush.bf16.msra.mxu2 %v9202_v46  ;;  %4986 = vmatpush.bf16.msra.mxu3 %v9330_v59  ;;  %v9521_v58 = vld [vmem:[#allocation8 + $0xe8] sm:$0xf]  ;;  %v9753_v34 = vld [vmem:[#allocation8 + $0x2c0] sm:$0xf] }
 0x2a8   : > { %5700 = vmatpush.bf16.msra.mxu0 %v9450_v6  ;;  %5714 = vmatpush.bf16.msra.mxu1 %v9578_v54  ;;  %v9499_v6 = vld [vmem:[#allocation8 + $0xd0] sm:$0xf0]  ;;  %v10872_v54 = vld [vmem:[#allocation8 + $0x1c4] sm:$0xf] }
 0x2a9   : > { %v9502_v46 = vor.u32 %v10840_v29, %v9499_v6  ;;  %v9630_v59 = vor.u32 %v10872_v54, %v9627_v61  ;;  %v9187_v29 = vld [vmem:[#allocation8 + $0x658] sm:$0xf0]  ;;  %v11013_v61 = vld [vmem:[#allocation8 + $0x62c] sm:$0xf] }
 0x2aa   : > { %v9190_v57 = vor.u32 %v11017_v10, %v9187_v29  ;;  %v9505_v10 = vld [vmem:[#allocation8 + $0xc8] sm:$0xf]  ;;  %v10902_v29 = vld [vmem:[#allocation8 + $0x2ac] sm:$0xf0] }
 0x2ab   : > { %4973 = vmatpush.bf16.msra.mxu2 %v9186_v52  ;;  %4987 = vmatpush.bf16.msra.mxu3 %v9314_v30 }
 0x2ac   : > { %5701 = vmatpush.bf16.msra.mxu0 %v9434_v23  ;;  %5715 = vmatpush.bf16.msra.mxu1 %v9562_v47  ;;  %v9483_v23 = vld [vmem:[#allocation8 + $0xb0] sm:$0xf0]  ;;  %v10868_v47 = vld [vmem:[#allocation8 + $0x1a4] sm:$0xf] }
 0x2ad   : > { %v9486_v52 = vor.u32 %v10836_v26, %v9483_v23  ;;  %v9614_v30 = vor.u32 %v10868_v47, %v9611_v12  ;;  %v9171_v26 = vld [vmem:[#allocation8 + $0x638] sm:$0xf0]  ;;  %v11009_v12 = vld [vmem:[#allocation8 + $0x60c] sm:$0xf] }
 0x2af   : > { %4974 = vmatpush.bf16.msra.mxu2 %v9170_v14  ;;  %4988 = vmatpush.bf16.msra.mxu3 %v9298_v49  ;;  %v10828_v14 = vld [vmem:[#allocation8 + $0x64] sm:$0xf]  ;;  %v9222_v49 = vor.u32 %v11025_v13, %v9219_v41  ;;  %v9403_v13 = vld [vmem:[#allocation8 + $0x10] sm:$0xf0]  ;;  %v10942_v41 = vld [vmem:[#allocation8 + $0x3ec] sm:$0xf0] }
 0x2b0   : > { %5702 = vmatpush.bf16.msra.mxu0 %v9418_v56  ;;  %5716 = vmatpush.bf16.msra.mxu1 %v9546_v55  ;;  %v9467_v56 = vld [vmem:[#allocation8 + $0x90] sm:$0xf0]  ;;  %v10864_v55 = vld [vmem:[#allocation8 + $0x184] sm:$0xf]  ;;  %v9406_v33 = vor.u32 %v10816_v22, %v9403_v13  ;;  %v10867_v22 = vld [vmem:[#allocation8 + $0x194] sm:$0xf0] }
 0x2b1   : > { %v9470_v8 = vor.u32 %v10832_v43, %v9467_v56  ;;  %v9598_v0 = vor.u32 %v10864_v55, %v9595_v31  ;;  %v10848_v43 = vld [vmem:[#allocation8 + $0x104] sm:$0xf]  ;;  %v9769_v56 = vld [vmem:[#allocation8 + $0x2e0] sm:$0xf]  ;;  %v10910_v55 = vld [vmem:[#allocation8 + $0x2ec] sm:$0xf0] }
 0x2b2   : > { %v9897_v31 = vld [vmem:[#allocation8 + $0x3e0] sm:$0xf] }
 0x2b3   : > { %4975 = vmatpush.bf16.msra.mxu2 %v9154_v9  ;;  %4989 = vmatpush.bf16.msra.mxu3 %v9282_v11  ;;  %v9435_v9 = vld [vmem:[#allocation8 + $0x50] sm:$0xf0]  ;;  %v10856_v11 = vld [vmem:[#allocation8 + $0x144] sm:$0xf]  ;;  %v9898_v48 = vor.u32 %v10942_v41, %v9897_v31  ;;  %v9705_v13 = vld [vmem:[#allocation8 + $0x260] sm:$0xf] }
 0x2b4   : > { %5703 = vmatpush.bf16.msra.mxu0 %v9402_v44  ;;  %5717 = vmatpush.bf16.msra.mxu1 %v9530_v39  ;;  %v9331_v44 = vld [vmem:[#allocation8 + $0x778] sm:$0xf0]  ;;  %v9454_v39 = vor.u32 %v10828_v14, %v9451_v38  ;;  %v9438_v6 = vor.u32 %v10824_v53, %v9435_v9  ;;  %v9566_v54 = vor.u32 %v10856_v11, %v9563_v28  ;;  %v10879_v14 = vld [vmem:[#allocation8 + $0x1f4] sm:$0xf0]  ;;  %v9737_v28 = vld [vmem:[#allocation8 + $0x2a0] sm:$0xf] }
 0x2b5   : > { %v9770_v38 = vor.u32 %v10910_v55, %v9769_v56  ;;  %v10843_v53 = vld [vmem:[#allocation8 + $0xd4] sm:$0xf0]  ;;  %v9833_v56 = vld [vmem:[#allocation8 + $0x360] sm:$0xf]  ;;  %v10926_v55 = vld [vmem:[#allocation8 + $0x36c] sm:$0xf0] }
 0x2b6   : > { %4976 = vmatmul.bf16.vlgmr.msra.gmra.mxu2 %v12541_v37  ;;  %4990 = vmatmul.bf16.vlgmr.msra.gmra.mxu3 %v12544_v62  ;;  %v9457_v31 = vld [vmem:[#allocation8 + $0x68] sm:$0xf]  ;;  %v10831_v41 = vld [vmem:[#allocation8 + $0x74] sm:$0xf0] }
 0x2b7   : > { %5024 = vmatpush.bf16.msrb.mxu2 %v9270_v2  ;;  %5038 = vmatpush.bf16.msrb.mxu3 %v9398_v27  ;;  %v11049_v2 = vld [vmem:[#allocation8 + $0x74c] sm:$0xf]  ;;  %v9315_v27 = vld [vmem:[#allocation8 + $0x758] sm:$0xf0] }
 0x2b8   : > { %5752 = vmatpush.bf16.msrb.mxu0 %v9518_v50  ;;  %5766 = vmatpush.bf16.msrb.mxu1 %v9646_v25  ;;  %v9206_v50 = vor.u32 %v11021_v63, %v9203_v21  ;;  %v9334_v25 = vor.u32 %v11053_v4, %v9331_v44  ;;  %v9318_v32 = vor.u32 %v11049_v2, %v9315_v27  ;;  %v9649_v63 = vld [vmem:[#allocation8 + $0x1e8] sm:$0xf]  ;;  %v10906_v21 = vld [vmem:[#allocation8 + $0x2cc] sm:$0xf0] }
 0x2b9   : > { %5704 = vmatmul.bf16.vlgmr.msra.gmra.mxu0 %v12420_v20  ;;  %5718 = vmatmul.bf16.vlgmr.msra.gmra.mxu1 %v12424_v60  ;;  %v9650_v44 = vor.u32 %v10879_v14, %v9649_v63  ;;  %v9754_v9 = vor.u32 %v10906_v21, %v9753_v34  ;;  %v9506_v2 = vor.u32 %v10843_v53, %v9505_v10  ;;  %v9689_v63 = vld [vmem:[#allocation8 + $0x240] sm:$0xf]  ;;  %v10890_v14 = vld [vmem:[#allocation8 + $0x24c] sm:$0xf0]  ;;  %v9441_v34 = vld [vmem:[#allocation8 + $0x48] sm:$0xf] }
 0x2ba   : > { %v9690_v53 = vor.u32 %v10890_v14, %v9689_v63  ;;  %v10904_v63 = vld [vmem:[#allocation8 + $0x2c4] sm:$0xf]  ;;  %v9755_v14 = vld [vmem:[#allocation8 + $0x2d0] sm:$0xf0] }
 0x2bb   : > { %5025 = vmatpush.bf16.msrb.mxu2 %v9254_v3  ;;  %5039 = vmatpush.bf16.msrb.mxu3 %v9382_v42  ;;  %v11045_v3 = vld [vmem:[#allocation8 + $0x72c] sm:$0xf]  ;;  %v9299_v42 = vld [vmem:[#allocation8 + $0x738] sm:$0xf0] }
 0x2bc   : > { %5753 = vmatpush.bf16.msrb.mxu0 %v9502_v46  ;;  %5767 = vmatpush.bf16.msrb.mxu1 %v9630_v59  ;;  %v9419_v46 = vld [vmem:[#allocation8 + $0x30] sm:$0xf0]  ;;  %v10852_v59 = vld [vmem:[#allocation8 + $0x124] sm:$0xf] }
 0x2bd   : > { %v9422_v23 = vor.u32 %v10820_v36, %v9419_v46  ;;  %v9550_v47 = vor.u32 %v10852_v59, %v9547_v24  ;;  %v10839_v36 = vld [vmem:[#allocation8 + $0xb4] sm:$0xf0]  ;;  %v9738_v46 = vor.u32 %v10902_v29, %v9737_v28  ;;  %v9721_v24 = vld [vmem:[#allocation8 + $0x280] sm:$0xf] }
 0x2be   : > { %v9801_v29 = vld [vmem:[#allocation8 + $0x320] sm:$0xf] }
 0x2bf   : > { %5026 = vmatpush.bf16.msrb.mxu2 %v9238_v35  ;;  %5040 = vmatpush.bf16.msrb.mxu3 %v9366_v15  ;;  %v9531_v35 = vld [vmem:[#allocation8 + $0x110] sm:$0xf0]  ;;  %v9283_v15 = vld [vmem:[#allocation8 + $0x718] sm:$0xf0] }
 0x2c0   : > { %5754 = vmatpush.bf16.msrb.mxu0 %v9486_v52  ;;  %5768 = vmatpush.bf16.msrb.mxu1 %v9614_v30  ;;  %v9174_v52 = vor.u32 %v11013_v61, %v9171_v26  ;;  %v9302_v30 = vor.u32 %v11045_v3, %v9299_v42  ;;  %v9489_v61 = vld [vmem:[#allocation8 + $0xa8] sm:$0xf]  ;;  %v10898_v26 = vld [vmem:[#allocation8 + $0x28c] sm:$0xf0] }
 0x2c1   : > { %v9490_v3 = vor.u32 %v10839_v36, %v9489_v61  ;;  %v10855_v61 = vld [vmem:[#allocation8 + $0x134] sm:$0xf0]  ;;  %v9657_v36 = vld [vmem:[#allocation8 + $0x200] sm:$0xf] }
 0x2c3   : > { %5027 = vmatpush.bf16.msrb.mxu2 %v9222_v49  ;;  %5041 = vmatpush.bf16.msrb.mxu3 %v9350_v7  ;;  %v9158_v49 = vor.u32 %v11009_v12, %v9155_v18  ;;  %v9286_v7 = vor.u32 %v11041_v16, %v9283_v15  ;;  %v10835_v18 = vld [vmem:[#allocation8 + $0x94] sm:$0xf0]  ;;  %v9601_v16 = vld [vmem:[#allocation8 + $0x188] sm:$0xf] }
 0x2c4   : > { %5755 = vmatpush.bf16.msrb.mxu0 %v9470_v8  ;;  %5769 = vmatpush.bf16.msrb.mxu1 %v9598_v0  ;;  %v9534_v8 = vor.u32 %v10848_v43, %v9531_v35  ;;  %v10847_v0 = vld [vmem:[#allocation8 + $0xf4] sm:$0xf0]  ;;  %v10894_v43 = vld [vmem:[#allocation8 + $0x26c] sm:$0xf0]  ;;  %v9602_v15 = vor.u32 %v10867_v22, %v9601_v16  ;;  %v10908_v22 = vld [vmem:[#allocation8 + $0x2e4] sm:$0xf] }
 0x2c5   : > { %v9522_v4 = vor.u32 %v10847_v0, %v9521_v58  ;;  %v9585_v58 = vld [vmem:[#allocation8 + $0x168] sm:$0xf]  ;;  %v9834_v0 = vor.u32 %v10926_v55, %v9833_v56  ;;  %v10851_v16 = vld [vmem:[#allocation8 + $0x114] sm:$0xf0]  ;;  %v9523_v55 = vld [vmem:[#allocation8 + $0xf8] sm:$0xf0] }
 0x2c7   : > { %5028 = vmatpush.bf16.msrb.mxu2 %v9206_v50  ;;  %5042 = vmatpush.bf16.msrb.mxu3 %v9334_v25  ;;  %v9633_v50 = vld [vmem:[#allocation8 + $0x1c8] sm:$0xf]  ;;  %v10875_v25 = vld [vmem:[#allocation8 + $0x1d4] sm:$0xf0] }
 0x2c8   : > { %5756 = vmatpush.bf16.msrb.mxu0 %v9454_v39  ;;  %5770 = vmatpush.bf16.msrb.mxu1 %v9582_v17  ;;  %v9881_v39 = vld [vmem:[#allocation8 + $0x3c0] sm:$0xf]  ;;  %v10938_v17 = vld [vmem:[#allocation8 + $0x3cc] sm:$0xf0]  ;;  %v9634_v27 = vor.u32 %v10875_v25, %v9633_v50 }
 0x2c9   : > { %v9882_v11 = vor.u32 %v10938_v17, %v9881_v39  ;;  %v9569_v39 = vld [vmem:[#allocation8 + $0x148] sm:$0xf]  ;;  %v10859_v17 = vld [vmem:[#allocation8 + $0x154] sm:$0xf0]  ;;  %v9673_v25 = vld [vmem:[#allocation8 + $0x220] sm:$0xf] }
 0x2ca   : > { %v9570_v28 = vor.u32 %v10859_v17, %v9569_v39 }
 0x2cb   : > { %5029 = vmatpush.bf16.msrb.mxu2 %v9190_v57  ;;  %5043 = vmatpush.bf16.msrb.mxu3 %v9318_v32  ;;  %v9617_v57 = vld [vmem:[#allocation8 + $0x1a8] sm:$0xf]  ;;  %v10871_v32 = vld [vmem:[#allocation8 + $0x1b4] sm:$0xf0] }
 0x2cc   : > { %5757 = vmatpush.bf16.msrb.mxu0 %v9438_v6  ;;  %5771 = vmatpush.bf16.msrb.mxu1 %v9566_v54  ;;  %v9865_v6 = vld [vmem:[#allocation8 + $0x3a0] sm:$0xf]  ;;  %v10934_v54 = vld [vmem:[#allocation8 + $0x3ac] sm:$0xf0]  ;;  %v9618_v42 = vor.u32 %v10871_v32, %v9617_v57 }
 0x2cd   : > { %v9866_v59 = vor.u32 %v10934_v54, %v9865_v6  ;;  %v10823_v6 = vld [vmem:[#allocation8 + $0x34] sm:$0xf0]  ;;  %v9553_v54 = vld [vmem:[#allocation8 + $0x128] sm:$0xf] }
 0x2cf   : > { %5030 = vmatpush.bf16.msrb.mxu2 %v9174_v52  ;;  %5044 = vmatpush.bf16.msrb.mxu3 %v9302_v30  ;;  %v9722_v52 = vor.u32 %v10898_v26, %v9721_v24  ;;  %v10914_v24 = vld [vmem:[#allocation8 + $0x30c] sm:$0xf0] }
 0x2d0   : > { %5758 = vmatpush.bf16.msrb.mxu0 %v9422_v23  ;;  %5772 = vmatpush.bf16.msrb.mxu1 %v9550_v47  ;;  %v10930_v23 = vld [vmem:[#allocation8 + $0x38c] sm:$0xf0] }
 0x2d3   : > { %5031 = vmatpush.bf16.msrb.mxu2 %v9158_v49  ;;  %5045 = vmatpush.bf16.msrb.mxu3 %v9286_v7  ;;  %v9458_v49 = vor.u32 %v10831_v41, %v9457_v31  ;;  %v10877_v31 = vld [vmem:[#allocation8 + $0x1ec] sm:$0xf]  ;;  %v9651_v41 = vld [vmem:[#allocation8 + $0x1f8] sm:$0xf0] }
 0x2d4   : > { %5759 = vmatpush.bf16.msrb.mxu0 %v9406_v33  ;;  %5773 = vmatpush.bf16.msrb.mxu1 %v9534_v8  ;;  %v12568_v47 = vpop.f32.mrf.mxu0  ;;  %v12570_v12 = vpop.f32.mrf.mxu1  ;;  %v10863_v33 = vld [vmem:[#allocation8 + $0x174] sm:$0xf0]  ;;  %v9706_v8 = vor.u32 %v10894_v43, %v9705_v13  ;;  %v10940_v13 = vld [vmem:[#allocation8 + $0x3e4] sm:$0xf]  ;;  %v9899_v43 = vld [vmem:[#allocation8 + $0x3f0] sm:$0xf0] }
 0x2d5   : > { %v9586_v7 = vor.u32 %v10863_v33, %v9585_v58 }
 0x2d6   : > { %5032 = vmatmul.bf16.vlgmr.msrb.gmra.mxu2 %v12541_v37  ;;  %5046 = vmatmul.bf16.vlgmr.msrb.gmra.mxu3 %v12544_v62  ;;  %v9849_v37 = vld [vmem:[#allocation8 + $0x380] sm:$0xf]  ;;  %v9473_v62 = vld [vmem:[#allocation8 + $0x88] sm:$0xf] }
 0x2d7   : > { %5724 = vmatpush.bf16.msra.mxu2 %v9770_v38  ;;  %5738 = vmatpush.bf16.msra.mxu3 %v9898_v48  ;;  %v9850_v30 = vor.u32 %v10930_v23, %v9849_v37  ;;  %v9474_v35 = vor.u32 %v10835_v18, %v9473_v62  ;;  %v9817_v38 = vld [vmem:[#allocation8 + $0x340] sm:$0xf]  ;;  %v10922_v48 = vld [vmem:[#allocation8 + $0x34c] sm:$0xf0]  ;;  %v10819_v37 = vld [vmem:[#allocation8 + $0x14] sm:$0xf0] }
 0x2d8   : > { %5808 = vmatpush.bf16.msra.mxu0 %v9522_v4  ;;  %5822 = vmatpush.bf16.msra.mxu1 %v9650_v44  ;;  %v10827_v44 = vld [vmem:[#allocation8 + $0x54] sm:$0xf0]  ;;  %v9818_v50 = vor.u32 %v10922_v48, %v9817_v38  ;;  %v9537_v23 = vld [vmem:[#allocation8 + $0x108] sm:$0xf]  ;;  %v10936_v38 = vld [vmem:[#allocation8 + $0x3c4] sm:$0xf] }
 0x2d9   : > { %5760 = vmatmul.bf16.vlgmr.msrb.gmra.mxu0 %v12420_v20  ;;  %5774 = vmatmul.bf16.vlgmr.msrb.gmra.mxu1 %v12424_v60  ;;  %v9538_v33 = vor.u32 %v10851_v16, %v9537_v23  ;;  %v9883_v48 = vld [vmem:[#allocation8 + $0x3d0] sm:$0xf0]  ;;  %v9475_v23 = vld [vmem:[#allocation8 + $0x98] sm:$0xf0] }
 0x2db   : > { %5725 = vmatpush.bf16.msra.mxu2 %v9754_v9  ;;  %5739 = vmatpush.bf16.msra.mxu3 %v9882_v11  ;;  %v10886_v9 = vld [vmem:[#allocation8 + $0x22c] sm:$0xf0]  ;;  %v9442_v11 = vor.u32 %v10827_v44, %v9441_v34  ;;  %v10841_v34 = vld [vmem:[#allocation8 + $0xcc] sm:$0xf]  ;;  %v9635_v44 = vld [vmem:[#allocation8 + $0x1d8] sm:$0xf0] }
 0x2dc   : > { %5809 = vmatpush.bf16.msra.mxu0 %v9506_v2  ;;  %5823 = vmatpush.bf16.msra.mxu1 %v9634_v27  ;;  %v4839_v21 = vpop.f32.mrf.mxu0  ;;  %v4853_v4 = vpop.f32.mrf.mxu1  ;;  %v10918_v2 = vld [vmem:[#allocation8 + $0x32c] sm:$0xf0]  ;;  %v9425_v27 = vld [vmem:[#allocation8 + $0x28] sm:$0xf]  ;;  %v9674_v57 = vor.u32 %v10886_v9, %v9673_v25  ;;  %v10900_v25 = vld [vmem:[#allocation8 + $0x2a4] sm:$0xf] }
 0x2dd   : > { %v12572_v10 = vadd.f32 %v4853_v4, %v4839_v21  ;;  %v9802_v32 = vor.u32 %v10918_v2, %v9801_v29  ;;  %v9426_v26 = vor.u32 %v10823_v6, %v9425_v27  ;;  %v9507_v21 = vld [vmem:[#allocation8 + $0xd8] sm:$0xf0]  ;;  %v10873_v4 = vld [vmem:[#allocation8 + $0x1cc] sm:$0xf]  ;;  %v9739_v9 = vld [vmem:[#allocation8 + $0x2b0] sm:$0xf0] }
 0x2de   : > { %v9638_v29 = vor.u32 %v10873_v4, %v9635_v44  ;;  %v10932_v2 = vld [vmem:[#allocation8 + $0x3a4] sm:$0xf]  ;;  %v9867_v27 = vld [vmem:[#allocation8 + $0x3b0] sm:$0xf0]  ;;  %v10837_v6 = vld [vmem:[#allocation8 + $0xac] sm:$0xf] }
 0x2df   : > { %5726 = vmatpush.bf16.msra.mxu2 %v9738_v46  ;;  %5740 = vmatpush.bf16.msra.mxu3 %v9866_v59  ;;  %v10882_v46 = vld [vmem:[#allocation8 + $0x20c] sm:$0xf0]  ;;  %v9785_v59 = vld [vmem:[#allocation8 + $0x300] sm:$0xf]  ;;  %v10825_v4 = vld [vmem:[#allocation8 + $0x4c] sm:$0xf] }
 0x2e0   : > { %5810 = vmatpush.bf16.msra.mxu0 %v9490_v3  ;;  %5824 = vmatpush.bf16.msra.mxu1 %v9618_v42  ;;  %v9554_v3 = vor.u32 %v10855_v61, %v9553_v54  ;;  %v9409_v42 = vld [vmem:[#allocation8 + $0x8] sm:$0xf]  ;;  %v9786_v56 = vor.u32 %v10914_v24, %v9785_v59  ;;  %v9491_v54 = vld [vmem:[#allocation8 + $0xb8] sm:$0xf0]  ;;  %v10869_v61 = vld [vmem:[#allocation8 + $0x1ac] sm:$0xf] }
 0x2e1   : > { %v9410_v58 = vor.u32 %v10819_v37, %v9409_v42  ;;  %v9723_v59 = vld [vmem:[#allocation8 + $0x290] sm:$0xf0]  ;;  %v9494_v24 = vor.u32 %v10837_v6, %v9491_v54  ;;  %v10833_v37 = vld [vmem:[#allocation8 + $0x8c] sm:$0xf]  ;;  %v9443_v44 = vld [vmem:[#allocation8 + $0x58] sm:$0xf0] }
 0x2e2   : > { %v9851_v42 = vld [vmem:[#allocation8 + $0x390] sm:$0xf0]  ;;  %v10916_v54 = vld [vmem:[#allocation8 + $0x324] sm:$0xf] }
 0x2e3   : > { %5727 = vmatpush.bf16.msra.mxu2 %v9722_v52  ;;  %5741 = vmatpush.bf16.msra.mxu3 %v9850_v30  ;;  %v9771_v52 = vld [vmem:[#allocation8 + $0x2f0] sm:$0xf0] }
 0x2e4   : > { %5811 = vmatpush.bf16.msra.mxu0 %v9474_v35  ;;  %5825 = vmatpush.bf16.msra.mxu1 %v9602_v15  ;;  %v4893_v62 = vpop.f32.mrf.mxu0  ;;  %v4907_v18 = vpop.f32.mrf.mxu1  ;;  %v10845_v35 = vld [vmem:[#allocation8 + $0xec] sm:$0xf]  ;;  %v9658_v15 = vor.u32 %v10882_v46, %v9657_v36  ;;  %v9619_v36 = vld [vmem:[#allocation8 + $0x1b8] sm:$0xf0]  ;;  %v10896_v46 = vld [vmem:[#allocation8 + $0x284] sm:$0xf] }
 0x2e5   : > { %v12574_v30 = vadd.f32 %v4907_v18, %v4893_v62  ;;  %v10865_v62 = vld [vmem:[#allocation8 + $0x18c] sm:$0xf]  ;;  %v9603_v18 = vld [vmem:[#allocation8 + $0x198] sm:$0xf0] }
 0x2e7   : > { %5728 = vmatpush.bf16.msra.mxu2 %v9706_v8  ;;  %5742 = vmatpush.bf16.msra.mxu3 %v9834_v0  ;;  %v9774_v8 = vor.u32 %v10908_v22, %v9771_v52  ;;  %v9902_v0 = vor.u32 %v10940_v13, %v9899_v43  ;;  %v9726_v52 = vor.u32 %v10896_v46, %v9723_v59  ;;  %v10892_v43 = vld [vmem:[#allocation8 + $0x264] sm:$0xf]  ;;  %v9555_v46 = vld [vmem:[#allocation8 + $0x138] sm:$0xf0] }
 0x2e8   : > { %5812 = vmatpush.bf16.msra.mxu0 %v9458_v49  ;;  %5826 = vmatpush.bf16.msra.mxu1 %v9586_v7  ;;  %v9526_v49 = vor.u32 %v10845_v35, %v9523_v55  ;;  %v9654_v7 = vor.u32 %v10877_v31, %v9651_v41  ;;  %v9707_v35 = vld [vmem:[#allocation8 + $0x270] sm:$0xf0]  ;;  %v9606_v55 = vor.u32 %v10865_v62, %v9603_v18  ;;  %v10924_v31 = vld [vmem:[#allocation8 + $0x364] sm:$0xf]  ;;  %v10817_v18 = vld [vmem:[#allocation8 + $0xc] sm:$0xf] }
 0x2e9   : > { %v9835_v41 = vld [vmem:[#allocation8 + $0x370] sm:$0xf0]  ;;  %v10880_v59 = vld [vmem:[#allocation8 + $0x204] sm:$0xf] }
 0x2eb   : > { %5729 = vmatpush.bf16.msra.mxu2 %v9690_v53  ;;  %5743 = vmatpush.bf16.msra.mxu3 %v9818_v50  ;;  %v9758_v53 = vor.u32 %v10904_v63, %v9755_v14  ;;  %v9886_v50 = vor.u32 %v10936_v38, %v9883_v48  ;;  %v9710_v63 = vor.u32 %v10892_v43, %v9707_v35  ;;  %v10911_v43 = vld [vmem:[#allocation8 + $0x2f4] sm:$0xf0]  ;;  %v9905_v35 = vld [vmem:[#allocation8 + $0x3e8] sm:$0xf] }
 0x2ec   : > { %5813 = vmatpush.bf16.msra.mxu0 %v9442_v11  ;;  %5827 = vmatpush.bf16.msra.mxu1 %v9570_v28  ;;  %v4895_v39 = vpop.f32.mrf.mxu0  ;;  %v4909_v17 = vpop.f32.mrf.mxu1  ;;  %v9510_v28 = vor.u32 %v10841_v34, %v9507_v21  ;;  %v9838_v14 = vor.u32 %v10924_v31, %v9835_v41  ;;  %v10920_v34 = vld [vmem:[#allocation8 + $0x344] sm:$0xf]  ;;  %v9819_v21 = vld [vmem:[#allocation8 + $0x350] sm:$0xf0] }
 0x2ed   : > { %v12576_v11 = vadd.f32 %v4909_v17, %v4895_v39  ;;  %v10857_v39 = vld [vmem:[#allocation8 + $0x14c] sm:$0xf]  ;;  %v9571_v17 = vld [vmem:[#allocation8 + $0x158] sm:$0xf0] }
 0x2ee   : > { %v9574_v6 = vor.u32 %v10857_v39, %v9571_v17  ;;  %v11098_v39 = vld [vmem:[#allocation8 + $0x8cc] sm:$0xf0]  ;;  %v10137_v17 = vld [vmem:[#allocation8 + $0x9c0] sm:$0xf] }
 0x2ef   : > { %5730 = vmatpush.bf16.msra.mxu2 %v9674_v57  ;;  %5744 = vmatpush.bf16.msra.mxu3 %v9802_v32  ;;  %v9742_v57 = vor.u32 %v10900_v25, %v9739_v9  ;;  %v9870_v32 = vor.u32 %v10932_v2, %v9867_v27  ;;  %v9822_v9 = vor.u32 %v10920_v34, %v9819_v21  ;;  %v9889_v21 = vld [vmem:[#allocation8 + $0x3c8] sm:$0xf] }
 0x2f0   : > { %5814 = vmatpush.bf16.msra.mxu0 %v9426_v26  ;;  %5828 = vmatpush.bf16.msra.mxu1 %v9554_v3  ;;  %v9622_v26 = vor.u32 %v10869_v61, %v9619_v36  ;;  %v10928_v3 = vld [vmem:[#allocation8 + $0x384] sm:$0xf]  ;;  %v9446_v27 = vor.u32 %v10825_v4, %v9443_v44  ;;  %v9803_v61 = vld [vmem:[#allocation8 + $0x330] sm:$0xf0]  ;;  %v10821_v36 = vld [vmem:[#allocation8 + $0x2c] sm:$0xf] }
 0x2f1   : > { %v9854_v13 = vor.u32 %v10928_v3, %v9851_v42  ;;  %v9659_v3 = vld [vmem:[#allocation8 + $0x210] sm:$0xf0]  ;;  %v10912_v42 = vld [vmem:[#allocation8 + $0x304] sm:$0xf]  ;;  %v10939_v4 = vld [vmem:[#allocation8 + $0x3d4] sm:$0xf0] }
 0x2f2   : > { %v9662_v31 = vor.u32 %v10880_v59, %v9659_v3  ;;  %v10009_v44 = vld [vmem:[#allocation8 + $0x8c0] sm:$0xf] }
 0x2f3   : > { %5731 = vmatpush.bf16.msra.mxu2 %v9658_v15  ;;  %5745 = vmatpush.bf16.msra.mxu3 %v9786_v56  ;;  %v9478_v56 = vor.u32 %v10833_v37, %v9475_v23  ;;  %v9787_v37 = vld [vmem:[#allocation8 + $0x310] sm:$0xf0] }
 0x2f4   : > { %5815 = vmatpush.bf16.msra.mxu0 %v9410_v58  ;;  %5829 = vmatpush.bf16.msra.mxu1 %v9538_v33  ;;  %v4949_v16 = vpop.f32.mrf.mxu0  ;;  %v4963_v22 = vpop.f32.mrf.mxu1  ;;  %v10829_v58 = vld [vmem:[#allocation8 + $0x6c] sm:$0xf]  ;;  %v9459_v33 = vld [vmem:[#allocation8 + $0x78] sm:$0xf0]  ;;  %v9790_v41 = vor.u32 %v10912_v42, %v9787_v37  ;;  %v9857_v37 = vld [vmem:[#allocation8 + $0x388] sm:$0xf] }
 0x2f5   : > { %v12582_v15 = vadd.f32 %v4963_v22, %v4949_v16  ;;  %v9462_v38 = vor.u32 %v10829_v58, %v9459_v33  ;;  %v9411_v16 = vld [vmem:[#allocation8 + $0x18] sm:$0xf0]  ;;  %v10849_v22 = vld [vmem:[#allocation8 + $0x10c] sm:$0xf]  ;;  %v11102_v58 = vld [vmem:[#allocation8 + $0x8ec] sm:$0xf0] }
 0x2f6   : > { %5732 = vmatmul.bf16.vlgmr.msra.gmra.mxu2 %v12520_v1  ;;  %5746 = vmatmul.bf16.vlgmr.msra.gmra.mxu3 %v12524_v19  ;;  %v10153_v33 = vld [vmem:[#allocation8 + $0x9e0] sm:$0xf] }
 0x2f7   : > { %5780 = vmatpush.bf16.msrb.mxu2 %v9774_v8  ;;  %5794 = vmatpush.bf16.msrb.mxu3 %v9902_v0  ;;  %v10861_v8 = vld [vmem:[#allocation8 + $0x16c] sm:$0xf]  ;;  %v9587_v0 = vld [vmem:[#allocation8 + $0x178] sm:$0xf0] }
 0x2f8   : > { %5864 = vmatpush.bf16.msrb.mxu0 %v9526_v49  ;;  %5878 = vmatpush.bf16.msrb.mxu1 %v9654_v7  ;;  %v10888_v49 = vld [vmem:[#allocation8 + $0x244] sm:$0xf]  ;;  %v9691_v7 = vld [vmem:[#allocation8 + $0x250] sm:$0xf0]  ;;  %v9590_v48 = vor.u32 %v10861_v8, %v9587_v0  ;;  %v11134_v8 = vld [vmem:[#allocation8 + $0x9ec] sm:$0xf0]  ;;  %v9414_v0 = vor.u32 %v10817_v18, %v9411_v16 }
 0x2f9   : > { %5816 = vmatmul.bf16.vlgmr.msra.gmra.mxu0 %v12420_v20  ;;  %5830 = vmatmul.bf16.vlgmr.msra.gmra.mxu1 %v12424_v60  ;;  %v9694_v25 = vor.u32 %v10888_v49, %v9691_v7  ;;  %v9761_v7 = vld [vmem:[#allocation8 + $0x2c8] sm:$0xf]  ;;  %v10154_v34 = vor.u32 %v11134_v8, %v10153_v33  ;;  %v11090_v18 = vld [vmem:[#allocation8 + $0x88c] sm:$0xf0]  ;;  %v10105_v16 = vld [vmem:[#allocation8 + $0x980] sm:$0xf] }
 0x2fa   : > { %v9961_v33 = vld [vmem:[#allocation8 + $0x860] sm:$0xf]  ;;  %v11086_v8 = vld [vmem:[#allocation8 + $0x86c] sm:$0xf0] }
 0x2fb   : > { %5781 = vmatpush.bf16.msrb.mxu2 %v9758_v53  ;;  %5795 = vmatpush.bf16.msrb.mxu3 %v9886_v50 }
 0x2fc   : > { %5865 = vmatpush.bf16.msrb.mxu0 %v9510_v28  ;;  %5879 = vmatpush.bf16.msrb.mxu1 %v9638_v29  ;;  %v4951_v53 = vpop.f32.mrf.mxu0  ;;  %v4965_v50 = vpop.f32.mrf.mxu1  ;;  %v10884_v28 = vld [vmem:[#allocation8 + $0x224] sm:$0xf]  ;;  %v9675_v29 = vld [vmem:[#allocation8 + $0x230] sm:$0xf0] }
 0x2fd   : > { %v12584_v2 = vadd.f32 %v4965_v50, %v4951_v53  ;;  %v11130_v53 = vld [vmem:[#allocation8 + $0x9cc] sm:$0xf0] }
 0x2ff   : > { %5782 = vmatpush.bf16.msrb.mxu2 %v9742_v57  ;;  %5796 = vmatpush.bf16.msrb.mxu3 %v9870_v32  ;;  %v9427_v57 = vld [vmem:[#allocation8 + $0x38] sm:$0xf0]  ;;  %v10853_v32 = vld [vmem:[#allocation8 + $0x12c] sm:$0xf] }
 0x300   : > { %5866 = vmatpush.bf16.msrb.mxu0 %v9494_v24  ;;  %5880 = vmatpush.bf16.msrb.mxu1 %v9622_v26  ;;  %v9678_v24 = vor.u32 %v10884_v28, %v9675_v29  ;;  %v9806_v26 = vor.u32 %v10916_v54, %v9803_v61  ;;  %v9430_v23 = vor.u32 %v10821_v36, %v9427_v57  ;;  %v10903_v28 = vld [vmem:[#allocation8 + $0x2b4] sm:$0xf0]  ;;  %v9993_v61 = vld [vmem:[#allocation8 + $0x8a0] sm:$0xf]  ;;  %v11094_v36 = vld [vmem:[#allocation8 + $0x8ac] sm:$0xf0] }
 0x301   : > { %v9558_v62 = vor.u32 %v10853_v32, %v9555_v46  ;;  %v10010_v29 = vor.u32 %v11098_v39, %v10009_v44  ;;  %v10935_v54 = vld [vmem:[#allocation8 + $0x3b4] sm:$0xf0]  ;;  %v10121_v57 = vld [vmem:[#allocation8 + $0x9a0] sm:$0xf]  ;;  %v11126_v32 = vld [vmem:[#allocation8 + $0x9ac] sm:$0xf0]  ;;  %v9994_v3 = vor.u32 %v11094_v36, %v9993_v61  ;;  %v9962_v44 = vor.u32 %v11086_v8, %v9961_v33 }
 0x302   : > { %v10122_v42 = vor.u32 %v11126_v32, %v10121_v57  ;;  %v10887_v61 = vld [vmem:[#allocation8 + $0x234] sm:$0xf0]  ;;  %v9779_v33 = vld [vmem:[#allocation8 + $0x2f8] sm:$0xf0] }
 0x303   : > { %5783 = vmatpush.bf16.msrb.mxu2 %v9726_v52  ;;  %5797 = vmatpush.bf16.msrb.mxu3 %v9854_v13  ;;  %v9539_v52 = vld [vmem:[#allocation8 + $0x118] sm:$0xf0]  ;;  %v9777_v13 = vld [vmem:[#allocation8 + $0x2e8] sm:$0xf] }
 0x304   : > { %5867 = vmatpush.bf16.msrb.mxu0 %v9478_v56  ;;  %5881 = vmatpush.bf16.msrb.mxu1 %v9606_v55  ;;  %v10943_v56 = vld [vmem:[#allocation8 + $0x3f4] sm:$0xf0]  ;;  %v10025_v55 = vld [vmem:[#allocation8 + $0x8e0] sm:$0xf] }
 0x305   : > { %v9906_v49 = vor.u32 %v10943_v56, %v9905_v35  ;;  %v10895_v35 = vld [vmem:[#allocation8 + $0x274] sm:$0xf0] }
 0x307   : > { %5784 = vmatpush.bf16.msrb.mxu2 %v9710_v63  ;;  %5798 = vmatpush.bf16.msrb.mxu3 %v9838_v14  ;;  %v9542_v63 = vor.u32 %v10849_v22, %v9539_v52  ;;  %v9778_v14 = vor.u32 %v10911_v43, %v9777_v13  ;;  %v11122_v22 = vld [vmem:[#allocation8 + $0x98c] sm:$0xf0]  ;;  %v9713_v43 = vld [vmem:[#allocation8 + $0x268] sm:$0xf] }
 0x308   : > { %5868 = vmatpush.bf16.msrb.mxu0 %v9462_v38  ;;  %5882 = vmatpush.bf16.msrb.mxu1 %v9590_v48  ;;  %v10907_v38 = vld [vmem:[#allocation8 + $0x2d4] sm:$0xf0]  ;;  %v10026_v48 = vor.u32 %v11102_v58, %v10025_v55 }
 0x309   : > { %v9762_v50 = vor.u32 %v10907_v38, %v9761_v7  ;;  %v10927_v58 = vld [vmem:[#allocation8 + $0x374] sm:$0xf0]  ;;  %v9714_v38 = vor.u32 %v10895_v35, %v9713_v43  ;;  %v9913_v35 = vld [vmem:[#allocation8 + $0x800] sm:$0xf] }
 0x30b   : > { %5785 = vmatpush.bf16.msrb.mxu2 %v9694_v25  ;;  %5799 = vmatpush.bf16.msrb.mxu3 %v9822_v9  ;;  %v9890_v25 = vor.u32 %v10939_v4, %v9889_v21  ;;  %v9745_v9 = vld [vmem:[#allocation8 + $0x2a8] sm:$0xf]  ;;  %v10891_v21 = vld [vmem:[#allocation8 + $0x254] sm:$0xf0] }
 0x30c   : > { %5869 = vmatpush.bf16.msrb.mxu0 %v9446_v27  ;;  %5883 = vmatpush.bf16.msrb.mxu1 %v9574_v6  ;;  %v10138_v27 = vor.u32 %v11130_v53, %v10137_v17  ;;  %v9873_v6 = vld [vmem:[#allocation8 + $0x3a8] sm:$0xf]  ;;  %v9746_v46 = vor.u32 %v10903_v28, %v9745_v9  ;;  %v10923_v53 = vld [vmem:[#allocation8 + $0x354] sm:$0xf0]  ;;  %v10073_v9 = vld [vmem:[#allocation8 + $0x940] sm:$0xf] }
 0x30d   : > { %v9874_v59 = vor.u32 %v10935_v54, %v9873_v6  ;;  %v9825_v17 = vld [vmem:[#allocation8 + $0x348] sm:$0xf]  ;;  %v11114_v28 = vld [vmem:[#allocation8 + $0x94c] sm:$0xf0] }
 0x30e   : > { %v9826_v6 = vor.u32 %v10923_v53, %v9825_v17  ;;  %v9681_v54 = vld [vmem:[#allocation8 + $0x228] sm:$0xf]  ;;  %v10074_v32 = vor.u32 %v11114_v28, %v10073_v9  ;;  %v9763_v17 = vld [vmem:[#allocation8 + $0x2d8] sm:$0xf0]  ;;  %v11096_v28 = vld [vmem:[#allocation8 + $0x8c4] sm:$0xf] }
 0x30f   : > { %5786 = vmatpush.bf16.msrb.mxu2 %v9678_v24  ;;  %5800 = vmatpush.bf16.msrb.mxu3 %v9806_v26  ;;  %v9729_v24 = vld [vmem:[#allocation8 + $0x288] sm:$0xf]  ;;  %v10899_v26 = vld [vmem:[#allocation8 + $0x294] sm:$0xf0]  ;;  %v9891_v9 = vld [vmem:[#allocation8 + $0x3d8] sm:$0xf0] }
 0x310   : > { %5870 = vmatpush.bf16.msrb.mxu0 %v9430_v23  ;;  %5884 = vmatpush.bf16.msrb.mxu1 %v9558_v62  ;;  %v10931_v23 = vld [vmem:[#allocation8 + $0x394] sm:$0xf0]  ;;  %v9977_v62 = vld [vmem:[#allocation8 + $0x880] sm:$0xf]  ;;  %v9730_v52 = vor.u32 %v10899_v26, %v9729_v24  ;;  %v11078_v26 = vld [vmem:[#allocation8 + $0x82c] sm:$0xf0] }
 0x311   : > { %v9858_v13 = vor.u32 %v10931_v23, %v9857_v37  ;;  %v9978_v55 = vor.u32 %v11090_v18, %v9977_v62  ;;  %v9929_v24 = vld [vmem:[#allocation8 + $0x820] sm:$0xf]  ;;  %v9665_v37 = vld [vmem:[#allocation8 + $0x208] sm:$0xf]  ;;  %v9682_v18 = vor.u32 %v10887_v61, %v9681_v54  ;;  %v10139_v54 = vld [vmem:[#allocation8 + $0x9d0] sm:$0xf0] }
 0x313   : > { %5787 = vmatpush.bf16.msrb.mxu2 %v9662_v31  ;;  %5801 = vmatpush.bf16.msrb.mxu3 %v9790_v41  ;;  %v10106_v31 = vor.u32 %v11122_v22, %v10105_v16  ;;  %v9841_v41 = vld [vmem:[#allocation8 + $0x368] sm:$0xf]  ;;  %v10883_v22 = vld [vmem:[#allocation8 + $0x214] sm:$0xf0] }
 0x314   : > { %5871 = vmatpush.bf16.msrb.mxu0 %v9414_v0  ;;  %5885 = vmatpush.bf16.msrb.mxu1 %v9542_v63  ;;  %v10089_v0 = vld [vmem:[#allocation8 + $0x960] sm:$0xf]  ;;  %v11118_v63 = vld [vmem:[#allocation8 + $0x96c] sm:$0xf0] }
 0x315   : > { %v10090_v39 = vor.u32 %v11118_v63, %v10089_v0  ;;  %v10941_v0 = vld [vmem:[#allocation8 + $0x3ec] sm:$0xf]  ;;  %v9907_v63 = vld [vmem:[#allocation8 + $0x3f8] sm:$0xf0] }
 0x316   : > { %5788 = vmatmul.bf16.vlgmr.msrb.gmra.mxu2 %v12520_v1  ;;  %5802 = vmatmul.bf16.vlgmr.msrb.gmra.mxu3 %v12524_v19 }
 0x317   : > { %5836 = vmatpush.bf16.msra.mxu2 %v9778_v14  ;;  %5850 = vmatpush.bf16.msra.mxu3 %v9906_v49  ;;  %v4852_v14 = vadd.f32 %v12570_v12, %v12568_v47 }
 0x318   : > { %6717 = vmatpush.bf16.msra.mxu0 %v10026_v48  ;;  %6731 = vmatpush.bf16.msra.mxu1 %v10154_v34  ;;  %v9842_v48 = vor.u32 %v10927_v58, %v9841_v41  ;;  %v9697_v34 = vld [vmem:[#allocation8 + $0x248] sm:$0xf]  ;;  %v11106_v41 = vld [vmem:[#allocation8 + $0x90c] sm:$0xf0]  ;;  %v10909_v58 = vld [vmem:[#allocation8 + $0x2ec] sm:$0xf] }
 0x319   : > { %5872 = vmatmul.bf16.vlgmr.msrb.gmra.mxu0 %v12420_v20  ;;  %5886 = vmatmul.bf16.vlgmr.msrb.gmra.mxu1 %v12424_v60  ;;  %v5005_v20 = vpop.f32.mrf.mxu0  ;;  %v5019_v60 = vpop.f32.mrf.mxu1 }
 0x31a   : > { %v12590_v56 = vadd.f32 %v5019_v60, %v5005_v20  ;;  %v4865_v49 = vpop.f32.mrf.mxu2  ;;  %v4879_v7 = vpop.f32.mrf.mxu3  ;;  %v9793_v20 = vld [vmem:[#allocation8 + $0x308] sm:$0xf]  ;;  %v10915_v60 = vld [vmem:[#allocation8 + $0x314] sm:$0xf0] }
 0x31b   : > { %5837 = vmatpush.bf16.msra.mxu2 %v9762_v50  ;;  %5851 = vmatpush.bf16.msra.mxu3 %v9890_v25  ;;  %v4866_v4 = vadd.f32 %v4865_v49, %v4852_v14  ;;  %v9945_v50 = vld [vmem:[#allocation8 + $0x840] sm:$0xf]  ;;  %v11082_v25 = vld [vmem:[#allocation8 + $0x84c] sm:$0xf0]  ;;  %v11100_v14 = vld [vmem:[#allocation8 + $0x8e4] sm:$0xf]  ;;  %v9666_v49 = vor.u32 %v10883_v22, %v9665_v37 }
 0x31c   : > { %6718 = vmatpush.bf16.msra.mxu0 %v10010_v29  ;;  %6732 = vmatpush.bf16.msra.mxu1 %v10138_v27  ;;  %v9698_v27 = vor.u32 %v10891_v21, %v9697_v34  ;;  %v9946_v57 = vor.u32 %v11082_v25, %v9945_v50  ;;  %v10937_v25 = vld [vmem:[#allocation8 + $0x3cc] sm:$0xf]  ;;  %v9875_v37 = vld [vmem:[#allocation8 + $0x3b8] sm:$0xf0] }
 0x31d   : > { %v12594_v47 = vadd.f32 %v4879_v7, %v4866_v4  ;;  %v9794_v7 = vor.u32 %v10915_v60, %v9793_v20  ;;  %v9782_v4 = vor.u32 %v10909_v58, %v9779_v33  ;;  %v10897_v20 = vld [vmem:[#allocation8 + $0x28c] sm:$0xf]  ;;  %v9731_v60 = vld [vmem:[#allocation8 + $0x298] sm:$0xf0]  ;;  %v9979_v58 = vld [vmem:[#allocation8 + $0x890] sm:$0xf0] }
 0x31e   : > { %v11120_v33 = vld [vmem:[#allocation8 + $0x984] sm:$0xf] }
 0x31f   : > { %5838 = vmatpush.bf16.msra.mxu2 %v9746_v46  ;;  %5852 = vmatpush.bf16.msra.mxu3 %v9874_v59  ;;  %v9809_v46 = vld [vmem:[#allocation8 + $0x328] sm:$0xf]  ;;  %v10919_v59 = vld [vmem:[#allocation8 + $0x334] sm:$0xf0] }
 0x320   : > { %6719 = vmatpush.bf16.msra.mxu0 %v9994_v3  ;;  %6733 = vmatpush.bf16.msra.mxu1 %v10122_v42  ;;  %v10057_v3 = vld [vmem:[#allocation8 + $0x920] sm:$0xf]  ;;  %v11110_v42 = vld [vmem:[#allocation8 + $0x92c] sm:$0xf0]  ;;  %v9810_v16 = vor.u32 %v10919_v59, %v9809_v46  ;;  %v10901_v46 = vld [vmem:[#allocation8 + $0x2ac] sm:$0xf] }
 0x321   : > { %v5007_v12 = vpop.f32.mrf.mxu0  ;;  %v5021_v29 = vpop.f32.mrf.mxu1  ;;  %v10058_v43 = vor.u32 %v11110_v42, %v10057_v3  ;;  %v9747_v59 = vld [vmem:[#allocation8 + $0x2b8] sm:$0xf0]  ;;  %v10933_v42 = vld [vmem:[#allocation8 + $0x3ac] sm:$0xf] }
 0x322   : > { %v12596_v36 = vadd.f32 %v5021_v29, %v5007_v12  ;;  %v4867_v23 = vpop.f32.mrf.mxu2  ;;  %v4881_v62 = vpop.f32.mrf.mxu3  ;;  %v9878_v22 = vor.u32 %v10933_v42, %v9875_v37 }
 0x323   : > { %5839 = vmatpush.bf16.msra.mxu2 %v9730_v52  ;;  %5853 = vmatpush.bf16.msra.mxu3 %v9858_v13  ;;  %v4868_v52 = vadd.f32 %v4867_v23, %v12572_v10  ;;  %v9930_v13 = vor.u32 %v11078_v26, %v9929_v24  ;;  %v10155_v10 = vld [vmem:[#allocation8 + $0x9f0] sm:$0xf0]  ;;  %v11092_v23 = vld [vmem:[#allocation8 + $0x8a4] sm:$0xf] }
 0x324   : > { %6720 = vmatpush.bf16.msra.mxu0 %v9978_v55  ;;  %6734 = vmatpush.bf16.msra.mxu1 %v10106_v31  ;;  %v11074_v55 = vld [vmem:[#allocation8 + $0x80c] sm:$0xf0]  ;;  %v10041_v31 = vld [vmem:[#allocation8 + $0x900] sm:$0xf] }
 0x325   : > { %v12599_v8 = vadd.f32 %v4881_v62, %v4868_v52  ;;  %v9914_v34 = vor.u32 %v11074_v55, %v9913_v35  ;;  %v10042_v21 = vor.u32 %v11106_v41, %v10041_v31  ;;  %v11124_v62 = vld [vmem:[#allocation8 + $0x9a4] sm:$0xf]  ;;  %v9859_v35 = vld [vmem:[#allocation8 + $0x398] sm:$0xf0] }
 0x326   : > { %v11088_v55 = vld [vmem:[#allocation8 + $0x884] sm:$0xf] }
 0x327   : > { %5840 = vmatpush.bf16.msra.mxu2 %v9714_v38  ;;  %5854 = vmatpush.bf16.msra.mxu3 %v9842_v48  ;;  %v10027_v38 = vld [vmem:[#allocation8 + $0x8f0] sm:$0xf0]  ;;  %v11132_v48 = vld [vmem:[#allocation8 + $0x9e4] sm:$0xf] }
 0x328   : > { %6721 = vmatpush.bf16.msra.mxu0 %v9962_v44  ;;  %6735 = vmatpush.bf16.msra.mxu1 %v10090_v39  ;;  %v9910_v44 = vor.u32 %v10941_v0, %v9907_v63  ;;  %v10905_v39 = vld [vmem:[#allocation8 + $0x2cc] sm:$0xf]  ;;  %v10030_v53 = vor.u32 %v11100_v14, %v10027_v38  ;;  %v10158_v50 = vor.u32 %v11132_v48, %v10155_v10  ;;  %v10107_v0 = vld [vmem:[#allocation8 + $0x990] sm:$0xf0] }
 0x329   : > { %v9734_v38 = vor.u32 %v10897_v20, %v9731_v60  ;;  %v10893_v10 = vld [vmem:[#allocation8 + $0x26c] sm:$0xf] }
 0x32a   : > { %v4921_v12 = vpop.f32.mrf.mxu2  ;;  %v4935_v29 = vpop.f32.mrf.mxu3 }
 0x32b   : > { %5841 = vmatpush.bf16.msra.mxu2 %v9698_v27  ;;  %5855 = vmatpush.bf16.msra.mxu3 %v9826_v6  ;;  %v10011_v27 = vld [vmem:[#allocation8 + $0x8d0] sm:$0xf0]  ;;  %v11128_v6 = vld [vmem:[#allocation8 + $0x9c4] sm:$0xf]  ;;  %v4922_v61 = vadd.f32 %v4921_v12, %v12574_v30  ;;  %v10889_v12 = vld [vmem:[#allocation8 + $0x24c] sm:$0xf] }
 0x32c   : > { %6722 = vmatpush.bf16.msra.mxu0 %v9946_v57  ;;  %6736 = vmatpush.bf16.msra.mxu1 %v10074_v32  ;;  %v9766_v57 = vor.u32 %v10905_v39, %v9763_v17  ;;  %v9894_v32 = vor.u32 %v10937_v25, %v9891_v9  ;;  %v10014_v26 = vor.u32 %v11096_v28, %v10011_v27  ;;  %v9995_v30 = vld [vmem:[#allocation8 + $0x8b0] sm:$0xf0]  ;;  %v10925_v39 = vld [vmem:[#allocation8 + $0x36c] sm:$0xf]  ;;  %v9843_v17 = vld [vmem:[#allocation8 + $0x378] sm:$0xf0] }
 0x32d   : > { %v12602_v24 = vadd.f32 %v4935_v29, %v4922_v61  ;;  %v10142_v3 = vor.u32 %v11128_v6, %v10139_v54  ;;  %v9998_v52 = vor.u32 %v11092_v23, %v9995_v30  ;;  %v11116_v25 = vld [vmem:[#allocation8 + $0x964] sm:$0xf]  ;;  %v10091_v9 = vld [vmem:[#allocation8 + $0x970] sm:$0xf0]  ;;  %v9846_v28 = vor.u32 %v10925_v39, %v9843_v17  ;;  %v9699_v29 = vld [vmem:[#allocation8 + $0x258] sm:$0xf0] }
 0x32e   : > { %v10094_v6 = vor.u32 %v11116_v25, %v10091_v9  ;;  %v10921_v54 = vld [vmem:[#allocation8 + $0x34c] sm:$0xf]  ;;  %v9827_v61 = vld [vmem:[#allocation8 + $0x358] sm:$0xf0]  ;;  %v9702_v30 = vor.u32 %v10889_v12, %v9699_v29  ;;  %v11166_v39 = vld [vmem:[#allocation8 + $0xaec] sm:$0xf0] }
 0x32f   : > { %5842 = vmatpush.bf16.msra.mxu2 %v9682_v18  ;;  %5856 = vmatpush.bf16.msra.mxu3 %v9810_v16  ;;  %v10123_v18 = vld [vmem:[#allocation8 + $0x9b0] sm:$0xf0]  ;;  %v9750_v16 = vor.u32 %v10901_v46, %v9747_v59  ;;  %v10033_v25 = vld [vmem:[#allocation8 + $0x8e8] sm:$0xf]  ;;  %v11103_v12 = vld [vmem:[#allocation8 + $0x8f4] sm:$0xf0] }
 0x330   : > { %6723 = vmatpush.bf16.msra.mxu0 %v9930_v13  ;;  %6737 = vmatpush.bf16.msra.mxu1 %v10058_v43  ;;  %v10126_v13 = vor.u32 %v11124_v62, %v10123_v18  ;;  %v10929_v43 = vld [vmem:[#allocation8 + $0x38c] sm:$0xf]  ;;  %v9947_v59 = vld [vmem:[#allocation8 + $0x850] sm:$0xf0]  ;;  %v9830_v62 = vor.u32 %v10921_v54, %v9827_v61  ;;  %v10161_v29 = vld [vmem:[#allocation8 + $0x9e8] sm:$0xf] }
 0x331   : > { %v9862_v48 = vor.u32 %v10929_v43, %v9859_v35  ;;  %v10885_v18 = vld [vmem:[#allocation8 + $0x22c] sm:$0xf]  ;;  %v9811_v43 = vld [vmem:[#allocation8 + $0x338] sm:$0xf0]  ;;  %v11076_v35 = vld [vmem:[#allocation8 + $0x824] sm:$0xf] }
 0x332   : > { %v4923_v31 = vpop.f32.mrf.mxu2  ;;  %v4937_v41 = vpop.f32.mrf.mxu3 }
 0x333   : > { %5843 = vmatpush.bf16.msra.mxu2 %v9666_v49  ;;  %5857 = vmatpush.bf16.msra.mxu3 %v9794_v7  ;;  %v4924_v63 = vadd.f32 %v4923_v31, %v12576_v11  ;;  %v11108_v31 = vld [vmem:[#allocation8 + $0x924] sm:$0xf] }
 0x334   : > { %6724 = vmatpush.bf16.msra.mxu0 %v9914_v34  ;;  %6738 = vmatpush.bf16.msra.mxu1 %v10042_v21  ;;  %v9715_v34 = vld [vmem:[#allocation8 + $0x278] sm:$0xf0] }
 0x335   : > { %v12610_v21 = vadd.f32 %v4937_v41, %v4924_v63  ;;  %v10059_v41 = vld [vmem:[#allocation8 + $0x930] sm:$0xf0]  ;;  %v10913_v63 = vld [vmem:[#allocation8 + $0x30c] sm:$0xf] }
 0x336   : > { %5844 = vmatmul.bf16.vlgmr.msra.gmra.mxu2 %v12520_v1  ;;  %5858 = vmatmul.bf16.vlgmr.msra.gmra.mxu3 %v12524_v19  ;;  %v5705_v14 = vpop.f32.mrf.mxu0  ;;  %v5719_v49 = vpop.f32.mrf.mxu1 }
 0x337   : > { %5892 = vmatpush.bf16.msrb.mxu2 %v9782_v4  ;;  %5906 = vmatpush.bf16.msrb.mxu3 %v9910_v44  ;;  %v5706_v7 = vadd.f32 %v5705_v14, %v12594_v47  ;;  %v9982_v4 = vor.u32 %v11088_v55, %v9979_v58  ;;  %v10110_v44 = vor.u32 %v11120_v33, %v10107_v0  ;;  %v9931_v55 = vld [vmem:[#allocation8 + $0x830] sm:$0xf0]  ;;  %v9667_v0 = vld [vmem:[#allocation8 + $0x218] sm:$0xf0] }
 0x338   : > { %6773 = vmatpush.bf16.msrb.mxu0 %v10030_v53  ;;  %6787 = vmatpush.bf16.msrb.mxu1 %v10158_v50  ;;  %v11084_v53 = vld [vmem:[#allocation8 + $0x864] sm:$0xf]  ;;  %v9963_v50 = vld [vmem:[#allocation8 + $0x870] sm:$0xf0]  ;;  %v9718_v47 = vor.u32 %v10893_v10, %v9715_v34  ;;  %v9795_v14 = vld [vmem:[#allocation8 + $0x318] sm:$0xf0] }
 0x339   : > { %6725 = vmatmul.bf16.vlgmr.msra.gmra.mxu0 %v12459_v51  ;;  %6739 = vmatmul.bf16.vlgmr.msra.gmra.mxu1 %v12471_v45  ;;  %v12612_v11 = vadd.f32 %v5719_v49, %v5706_v7  ;;  %v9966_v27 = vor.u32 %v11084_v53, %v9963_v50  ;;  %v9934_v49 = vor.u32 %v11076_v35, %v9931_v55  ;;  %v11104_v10 = vld [vmem:[#allocation8 + $0x904] sm:$0xf]  ;;  %v10409_v53 = vld [vmem:[#allocation8 + $0xbe0] sm:$0xf]  ;;  %v11198_v50 = vld [vmem:[#allocation8 + $0xbec] sm:$0xf0] }
 0x33a   : > { %v4991_v46 = vpop.f32.mrf.mxu3  ;;  %v10062_v7 = vor.u32 %v11108_v31, %v10059_v41  ;;  %v11190_v35 = vld [vmem:[#allocation8 + $0xbac] sm:$0xf0]  ;;  %v10001_v55 = vld [vmem:[#allocation8 + $0x8a8] sm:$0xf]  ;;  %v11095_v31 = vld [vmem:[#allocation8 + $0x8b4] sm:$0xf0] }
 0x33b   : > { %5893 = vmatpush.bf16.msrb.mxu2 %v9766_v57  ;;  %5907 = vmatpush.bf16.msrb.mxu3 %v9894_v32  ;;  %v11080_v57 = vld [vmem:[#allocation8 + $0x844] sm:$0xf]  ;;  %v4977_v32 = vpop.f32.mrf.mxu2  ;;  %v10129_v41 = vld [vmem:[#allocation8 + $0x9a8] sm:$0xf] }
 0x33c   : > { %6774 = vmatpush.bf16.msrb.mxu0 %v10014_v26  ;;  %6788 = vmatpush.bf16.msrb.mxu1 %v10142_v3  ;;  %v11112_v26 = vld [vmem:[#allocation8 + $0x944] sm:$0xf]  ;;  %v10075_v3 = vld [vmem:[#allocation8 + $0x950] sm:$0xf0]  ;;  %v4978_v42 = vadd.f32 %v4977_v32, %v12582_v15  ;;  %v9950_v60 = vor.u32 %v11080_v57, %v9947_v59  ;;  %v10410_v32 = vor.u32 %v11198_v50, %v10409_v53  ;;  %v11150_v53 = vld [vmem:[#allocation8 + $0xa6c] sm:$0xf0] }
 0x33d   : > { %v10034_v59 = vor.u32 %v11103_v12, %v10033_v25  ;;  %v9969_v12 = vld [vmem:[#allocation8 + $0x868] sm:$0xf] }
 0x33e   : > { %v5707_v37 = vpop.f32.mrf.mxu0  ;;  %v5721_v20 = vpop.f32.mrf.mxu1 }
 0x33f   : > { %5894 = vmatpush.bf16.msrb.mxu2 %v9750_v16  ;;  %5908 = vmatpush.bf16.msrb.mxu3 %v9878_v22  ;;  %v5708_v23 = vadd.f32 %v5707_v37, %v12599_v8  ;;  %v9683_v16 = vld [vmem:[#allocation8 + $0x238] sm:$0xf0]  ;;  %v12616_v22 = vadd.f32 %v4991_v46, %v4978_v42  ;;  %v10881_v8 = vld [vmem:[#allocation8 + $0x20c] sm:$0xf]  ;;  %v11162_v46 = vld [vmem:[#allocation8 + $0xacc] sm:$0xf0] }
 0x340   : > { %6775 = vmatpush.bf16.msrb.mxu0 %v9998_v52  ;;  %6789 = vmatpush.bf16.msrb.mxu1 %v10126_v13  ;;  %v10078_v52 = vor.u32 %v11112_v26, %v10075_v3  ;;  %v10917_v13 = vld [vmem:[#allocation8 + $0x32c] sm:$0xf]  ;;  %v9686_v58 = vor.u32 %v10885_v18, %v9683_v16  ;;  %v10393_v3 = vld [vmem:[#allocation8 + $0xbc0] sm:$0xf]  ;;  %v11194_v42 = vld [vmem:[#allocation8 + $0xbcc] sm:$0xf0] }
 0x341   : > { %v12618_v15 = vadd.f32 %v5721_v20, %v5708_v23  ;;  %v9814_v33 = vor.u32 %v10917_v13, %v9811_v43  ;;  %v10017_v37 = vld [vmem:[#allocation8 + $0x8c8] sm:$0xf]  ;;  %v11099_v23 = vld [vmem:[#allocation8 + $0x8d4] sm:$0xf0]  ;;  %v10394_v16 = vor.u32 %v11194_v42, %v10393_v3  ;;  %v10249_v20 = vld [vmem:[#allocation8 + $0xaa0] sm:$0xf] }
 0x342   : > { %v4993_v9 = vpop.f32.mrf.mxu3  ;;  %v10377_v43 = vld [vmem:[#allocation8 + $0xba0] sm:$0xf] }
 0x343   : > { %5895 = vmatpush.bf16.msrb.mxu2 %v9734_v38  ;;  %5909 = vmatpush.bf16.msrb.mxu3 %v9862_v48  ;;  %v11072_v38 = vld [vmem:[#allocation8 + $0x804] sm:$0xf]  ;;  %v9915_v48 = vld [vmem:[#allocation8 + $0x810] sm:$0xf0]  ;;  %v4979_v34 = vpop.f32.mrf.mxu2  ;;  %v10329_v42 = vld [vmem:[#allocation8 + $0xb40] sm:$0xf] }
 0x344   : > { %6776 = vmatpush.bf16.msrb.mxu0 %v9982_v4  ;;  %6790 = vmatpush.bf16.msrb.mxu1 %v10110_v44  ;;  %v10043_v4 = vld [vmem:[#allocation8 + $0x910] sm:$0xf0]  ;;  %v10281_v44 = vld [vmem:[#allocation8 + $0xae0] sm:$0xf]  ;;  %v4980_v17 = vadd.f32 %v4979_v34, %v12584_v2  ;;  %v9918_v54 = vor.u32 %v11072_v38, %v9915_v48  ;;  %v11091_v38 = vld [vmem:[#allocation8 + $0x894] sm:$0xf0] }
 0x345   : > { %v10046_v61 = vor.u32 %v11104_v10, %v10043_v4  ;;  %v10282_v57 = vor.u32 %v11166_v39, %v10281_v44  ;;  %v10265_v2 = vld [vmem:[#allocation8 + $0xac0] sm:$0xf]  ;;  %v10113_v48 = vld [vmem:[#allocation8 + $0x988] sm:$0xf]  ;;  %v11123_v10 = vld [vmem:[#allocation8 + $0x994] sm:$0xf0] }
 0x346   : > { %v10266_v18 = vor.u32 %v11162_v46, %v10265_v2  ;;  %v10201_v2 = vld [vmem:[#allocation8 + $0xa40] sm:$0xf]  ;;  %v11146_v46 = vld [vmem:[#allocation8 + $0xa4c] sm:$0xf0] }
 0x347   : > { %5896 = vmatpush.bf16.msrb.mxu2 %v9718_v47  ;;  %5910 = vmatpush.bf16.msrb.mxu3 %v9846_v28  ;;  %v9670_v47 = vor.u32 %v10881_v8, %v9667_v0  ;;  %v9798_v28 = vor.u32 %v10913_v63, %v9795_v14  ;;  %v11127_v8 = vld [vmem:[#allocation8 + $0x9b4] sm:$0xf0]  ;;  %v10233_v0 = vld [vmem:[#allocation8 + $0xa80] sm:$0xf]  ;;  %v11154_v63 = vld [vmem:[#allocation8 + $0xa8c] sm:$0xf0]  ;;  %v10002_v14 = vor.u32 %v11095_v31, %v10001_v55 }
 0x348   : > { %6777 = vmatpush.bf16.msrb.mxu0 %v9966_v27  ;;  %6791 = vmatpush.bf16.msrb.mxu1 %v10094_v6  ;;  %v11135_v27 = vld [vmem:[#allocation8 + $0x9f4] sm:$0xf0]  ;;  %v12621_v6 = vadd.f32 %v4993_v9, %v4980_v17  ;;  %v10234_v44 = vor.u32 %v11154_v63, %v10233_v0  ;;  %v10217_v17 = vld [vmem:[#allocation8 + $0xa60] sm:$0xf]  ;;  %v10114_v9 = vor.u32 %v11123_v10, %v10113_v48  ;;  %v10065_v63 = vld [vmem:[#allocation8 + $0x928] sm:$0xf] }
 0x349   : > { %v10162_v26 = vor.u32 %v11135_v27, %v10161_v29  ;;  %v11087_v29 = vld [vmem:[#allocation8 + $0x874] sm:$0xf0]  ;;  %v10097_v27 = vld [vmem:[#allocation8 + $0x968] sm:$0xf]  ;;  %v10297_v48 = vld [vmem:[#allocation8 + $0xb00] sm:$0xf] }
 0x34a   : > { %v11079_v0 = vld [vmem:[#allocation8 + $0x834] sm:$0xf0]  ;;  %v11170_v10 = vld [vmem:[#allocation8 + $0xb0c] sm:$0xf0] }
 0x34b   : > { %5897 = vmatpush.bf16.msrb.mxu2 %v9702_v30  ;;  %5911 = vmatpush.bf16.msrb.mxu3 %v9830_v62  ;;  %v10145_v30 = vld [vmem:[#allocation8 + $0x9c8] sm:$0xf]  ;;  %v11131_v62 = vld [vmem:[#allocation8 + $0x9d4] sm:$0xf0] }
 0x34c   : > { %6778 = vmatpush.bf16.msrb.mxu0 %v9950_v60  ;;  %6792 = vmatpush.bf16.msrb.mxu1 %v10078_v52  ;;  %v11158_v60 = vld [vmem:[#allocation8 + $0xaac] sm:$0xf0]  ;;  %v10018_v52 = vor.u32 %v11099_v23, %v10017_v37  ;;  %v10146_v13 = vor.u32 %v11131_v62, %v10145_v30  ;;  %v9953_v23 = vld [vmem:[#allocation8 + $0x848] sm:$0xf]  ;;  %v11083_v62 = vld [vmem:[#allocation8 + $0x854] sm:$0xf0] }
 0x34d   : > { %v11178_v37 = vld [vmem:[#allocation8 + $0xb4c] sm:$0xf0]  ;;  %v9954_v31 = vor.u32 %v11083_v62, %v9953_v23  ;;  %v10395_v62 = vld [vmem:[#allocation8 + $0xbd0] sm:$0xf0] }
 0x34f   : > { %5898 = vmatpush.bf16.msrb.mxu2 %v9686_v58  ;;  %5912 = vmatpush.bf16.msrb.mxu3 %v9814_v33  ;;  %v10250_v58 = vor.u32 %v11158_v60, %v10249_v20  ;;  %v10378_v33 = vor.u32 %v11190_v35, %v10377_v43  ;;  %v10185_v43 = vld [vmem:[#allocation8 + $0xa20] sm:$0xf]  ;;  %v11142_v35 = vld [vmem:[#allocation8 + $0xa2c] sm:$0xf0] }
 0x350   : > { %6779 = vmatpush.bf16.msrb.mxu0 %v9934_v49  ;;  %6793 = vmatpush.bf16.msrb.mxu1 %v10062_v7  ;;  %v10130_v49 = vor.u32 %v11127_v8, %v10129_v41  ;;  %v11186_v7 = vld [vmem:[#allocation8 + $0xb8c] sm:$0xf0]  ;;  %v10313_v8 = vld [vmem:[#allocation8 + $0xb20] sm:$0xf] }
 0x353   : > { %5899 = vmatpush.bf16.msrb.mxu2 %v9670_v47  ;;  %5913 = vmatpush.bf16.msrb.mxu3 %v9798_v28  ;;  %v10345_v47 = vld [vmem:[#allocation8 + $0xb60] sm:$0xf]  ;;  %v11182_v28 = vld [vmem:[#allocation8 + $0xb6c] sm:$0xf0] }
 0x354   : > { %6780 = vmatpush.bf16.msrb.mxu0 %v9918_v54  ;;  %6794 = vmatpush.bf16.msrb.mxu1 %v10046_v61  ;;  %v11119_v54 = vld [vmem:[#allocation8 + $0x974] sm:$0xf0] }
 0x356   : > { %5900 = vmatmul.bf16.vlgmr.msrb.gmra.mxu2 %v12520_v1  ;;  %5914 = vmatmul.bf16.vlgmr.msrb.gmra.mxu3 %v12524_v19  ;;  %v10361_v1 = vld [vmem:[#allocation8 + $0xb80] sm:$0xf]  ;;  %v9985_v19 = vld [vmem:[#allocation8 + $0x888] sm:$0xf]  ;;  %v5761_v34 = vpop.f32.mrf.mxu0  ;;  %v5775_v4 = vpop.f32.mrf.mxu1 }
 0x357   : > { %6745 = vmatpush.bf16.msra.mxu2 %v10282_v57  ;;  %6759 = vmatpush.bf16.msra.mxu3 %v10410_v32  ;;  %v10362_v39 = vor.u32 %v11186_v7, %v10361_v1  ;;  %v5762_v50 = vadd.f32 %v5761_v34, %v12602_v24  ;;  %v9986_v25 = vor.u32 %v11091_v38, %v9985_v19  ;;  %v10169_v1 = vld [vmem:[#allocation8 + $0xa00] sm:$0xf]  ;;  %v11138_v38 = vld [vmem:[#allocation8 + $0xa0c] sm:$0xf0] }
 0x358   : > { %6829 = vmatpush.bf16.msra.mxu0 %v10034_v59  ;;  %6843 = vmatpush.bf16.msra.mxu1 %v10162_v26  ;;  %v10218_v57 = vor.u32 %v11150_v53, %v10217_v17  ;;  %v10346_v32 = vor.u32 %v11182_v28, %v10345_v47  ;;  %v9970_v59 = vor.u32 %v11087_v29, %v9969_v12  ;;  %v10049_v17 = vld [vmem:[#allocation8 + $0x908] sm:$0xf]  ;;  %v11196_v28 = vld [vmem:[#allocation8 + $0xbe4] sm:$0xf]  ;;  %v10411_v12 = vld [vmem:[#allocation8 + $0xbf0] sm:$0xf0] }
 0x359   : > { %6781 = vmatmul.bf16.vlgmr.msrb.gmra.mxu0 %v12459_v51  ;;  %6795 = vmatmul.bf16.vlgmr.msrb.gmra.mxu1 %v12471_v45  ;;  %v12628_v61 = vadd.f32 %v5775_v4, %v5762_v50  ;;  %v10098_v24 = vor.u32 %v11119_v54, %v10097_v27  ;;  %v5033_v26 = vpop.f32.mrf.mxu2  ;;  %v5047_v3 = vpop.f32.mrf.mxu3  ;;  %v10186_v7 = vor.u32 %v11142_v35, %v10185_v43  ;;  %v11107_v50 = vld [vmem:[#allocation8 + $0x914] sm:$0xf0]  ;;  %v11101_v29 = vld [vmem:[#allocation8 + $0x8ec] sm:$0xf]  ;;  %v11156_v35 = vld [vmem:[#allocation8 + $0xaa4] sm:$0xf] }
 0x35a   : > { %v5034_v30 = vadd.f32 %v5033_v26, %v12590_v56  ;;  %v11174_v56 = vld [vmem:[#allocation8 + $0xb2c] sm:$0xf0]  ;;  %v10170_v54 = vor.u32 %v11138_v38, %v10169_v1  ;;  %v10414_v26 = vor.u32 %v11196_v28, %v10411_v12 }
 0x35b   : > { %6746 = vmatpush.bf16.msra.mxu2 %v10266_v18  ;;  %6760 = vmatpush.bf16.msra.mxu3 %v10394_v16  ;;  %v10081_v18 = vld [vmem:[#allocation8 + $0x948] sm:$0xf]  ;;  %v11115_v16 = vld [vmem:[#allocation8 + $0x954] sm:$0xf0]  ;;  %v10314_v19 = vor.u32 %v11174_v56, %v10313_v8  ;;  %v11188_v8 = vld [vmem:[#allocation8 + $0xba4] sm:$0xf] }
 0x35c   : > { %6830 = vmatpush.bf16.msra.mxu0 %v10018_v52  ;;  %6844 = vmatpush.bf16.msra.mxu1 %v10146_v13  ;;  %v12631_v20 = vadd.f32 %v5047_v3, %v5034_v30  ;;  %v10202_v52 = vor.u32 %v11146_v46, %v10201_v2  ;;  %v10330_v13 = vor.u32 %v11178_v37, %v10329_v42  ;;  %v11133_v2 = vld [vmem:[#allocation8 + $0x9ec] sm:$0xf]  ;;  %v10163_v46 = vld [vmem:[#allocation8 + $0x9f8] sm:$0xf0]  ;;  %v11160_v3 = vld [vmem:[#allocation8 + $0xac4] sm:$0xf] }
 0x35d   : > { %v10082_v41 = vor.u32 %v11115_v16, %v10081_v18  ;;  %v10267_v42 = vld [vmem:[#allocation8 + $0xad0] sm:$0xf0]  ;;  %v10166_v23 = vor.u32 %v11133_v2, %v10163_v46  ;;  %v11192_v30 = vld [vmem:[#allocation8 + $0xbc4] sm:$0xf]  ;;  %v11097_v18 = vld [vmem:[#allocation8 + $0x8cc] sm:$0xf] }
 0x35e   : > { %v5763_v60 = vpop.f32.mrf.mxu0  ;;  %v10019_v16 = vld [vmem:[#allocation8 + $0x8d8] sm:$0xf0]  ;;  %v10398_v43 = vor.u32 %v11192_v30, %v10395_v62  ;;  %v10379_v56 = vld [vmem:[#allocation8 + $0xbb0] sm:$0xf0]  ;;  %v11117_v46 = vld [vmem:[#allocation8 + $0x96c] sm:$0xf] }
 0x35f   : > { %6747 = vmatpush.bf16.msra.mxu2 %v10250_v58  ;;  %6761 = vmatpush.bf16.msra.mxu3 %v10378_v33  ;;  %v5764_v55 = vadd.f32 %v5763_v60, %v12610_v21  ;;  %v9937_v58 = vld [vmem:[#allocation8 + $0x828] sm:$0xf]  ;;  %v5777_v33 = vpop.f32.mrf.mxu1  ;;  %v11129_v60 = vld [vmem:[#allocation8 + $0x9cc] sm:$0xf]  ;;  %v10382_v1 = vor.u32 %v11188_v8, %v10379_v56  ;;  %v9971_v2 = vld [vmem:[#allocation8 + $0x878] sm:$0xf0] }
 0x360   : > { %6831 = vmatpush.bf16.msra.mxu0 %v10002_v14  ;;  %6845 = vmatpush.bf16.msra.mxu1 %v10130_v49  ;;  %v11111_v14 = vld [vmem:[#allocation8 + $0x934] sm:$0xf0]  ;;  %v9938_v21 = vor.u32 %v11079_v0, %v9937_v58  ;;  %v11093_v58 = vld [vmem:[#allocation8 + $0x8ac] sm:$0xf]  ;;  %v11176_v62 = vld [vmem:[#allocation8 + $0xb44] sm:$0xf] }
 0x361   : > { %v12634_v49 = vadd.f32 %v5777_v33, %v5764_v55  ;;  %v10066_v34 = vor.u32 %v11111_v14, %v10065_v63  ;;  %v5035_v4 = vpop.f32.mrf.mxu2  ;;  %v5049_v47 = vpop.f32.mrf.mxu3  ;;  %v10251_v55 = vld [vmem:[#allocation8 + $0xab0] sm:$0xf0]  ;;  %v10003_v33 = vld [vmem:[#allocation8 + $0x8b8] sm:$0xf0]  ;;  %v11125_v0 = vld [vmem:[#allocation8 + $0x9ac] sm:$0xf] }
 0x362   : > { %v5036_v53 = vadd.f32 %v5035_v4, %v12596_v36  ;;  %v10050_v36 = vor.u32 %v11107_v50, %v10049_v17  ;;  %v10131_v63 = vld [vmem:[#allocation8 + $0x9b8] sm:$0xf0]  ;;  %v10254_v14 = vor.u32 %v11156_v35, %v10251_v55  ;;  %v10006_v38 = vor.u32 %v11093_v58, %v10003_v33  ;;  %v11140_v8 = vld [vmem:[#allocation8 + $0xa24] sm:$0xf]  ;;  %v10187_v56 = vld [vmem:[#allocation8 + $0xa30] sm:$0xf0] }
 0x363   : > { %6748 = vmatpush.bf16.msra.mxu2 %v10234_v44  ;;  %6762 = vmatpush.bf16.msra.mxu3 %v10362_v39  ;;  %v9921_v44 = vld [vmem:[#allocation8 + $0x808] sm:$0xf]  ;;  %v11075_v39 = vld [vmem:[#allocation8 + $0x814] sm:$0xf0]  ;;  %v9987_v4 = vld [vmem:[#allocation8 + $0x898] sm:$0xf0] }
 0x364   : > { %6832 = vmatpush.bf16.msra.mxu0 %v9986_v25  ;;  %6846 = vmatpush.bf16.msra.mxu1 %v10114_v9  ;;  %v11164_v25 = vld [vmem:[#allocation8 + $0xae4] sm:$0xf]  ;;  %v10283_v9 = vld [vmem:[#allocation8 + $0xaf0] sm:$0xf0]  ;;  %v12637_v27 = vadd.f32 %v5049_v47, %v5036_v53 }
 0x365   : > { %v10219_v47 = vld [vmem:[#allocation8 + $0xa70] sm:$0xf0] }
 0x367   : > { %6749 = vmatpush.bf16.msra.mxu2 %v10218_v57  ;;  %6763 = vmatpush.bf16.msra.mxu3 %v10346_v32  ;;  %v10298_v57 = vor.u32 %v11170_v10, %v10297_v48  ;;  %v10035_v32 = vld [vmem:[#allocation8 + $0x8f8] sm:$0xf0]  ;;  %v10134_v48 = vor.u32 %v11125_v0, %v10131_v63  ;;  %v11184_v10 = vld [vmem:[#allocation8 + $0xb84] sm:$0xf] }
 0x368   : > { %6833 = vmatpush.bf16.msra.mxu0 %v9970_v59  ;;  %6847 = vmatpush.bf16.msra.mxu1 %v10098_v24  ;;  %v9922_v59 = vor.u32 %v11075_v39, %v9921_v44  ;;  %v10286_v24 = vor.u32 %v11164_v25, %v10283_v9  ;;  %v10038_v37 = vor.u32 %v11101_v29, %v10035_v32  ;;  %v11121_v44 = vld [vmem:[#allocation8 + $0x98c] sm:$0xf]  ;;  %v10115_v39 = vld [vmem:[#allocation8 + $0x998] sm:$0xf0]  ;;  %v11148_v9 = vld [vmem:[#allocation8 + $0xa64] sm:$0xf] }
 0x369   : > { %v10118_v29 = vor.u32 %v11121_v44, %v10115_v39  ;;  %v11085_v32 = vld [vmem:[#allocation8 + $0x86c] sm:$0xf]  ;;  %v11172_v63 = vld [vmem:[#allocation8 + $0xb24] sm:$0xf] }
 0x36a   : > { %v11168_v44 = vld [vmem:[#allocation8 + $0xb04] sm:$0xf] }
 0x36b   : > { %6750 = vmatpush.bf16.msra.mxu2 %v10202_v52  ;;  %6764 = vmatpush.bf16.msra.mxu3 %v10330_v13  ;;  %v10147_v52 = vld [vmem:[#allocation8 + $0x9d8] sm:$0xf0]  ;;  %v10270_v13 = vor.u32 %v11160_v3, %v10267_v42  ;;  %v11144_v3 = vld [vmem:[#allocation8 + $0xa44] sm:$0xf]  ;;  %v10203_v42 = vld [vmem:[#allocation8 + $0xa50] sm:$0xf0] }
 0x36c   : > { %6834 = vmatpush.bf16.msra.mxu0 %v9954_v31  ;;  %6848 = vmatpush.bf16.msra.mxu1 %v10082_v41  ;;  %v10022_v31 = vor.u32 %v11097_v18, %v10019_v16  ;;  %v10150_v41 = vor.u32 %v11129_v60, %v10147_v52  ;;  %v10331_v18 = vld [vmem:[#allocation8 + $0xb50] sm:$0xf0]  ;;  %v11081_v16 = vld [vmem:[#allocation8 + $0x84c] sm:$0xf]  ;;  %v9955_v52 = vld [vmem:[#allocation8 + $0x858] sm:$0xf0] }
 0x36d   : > { %v9958_v33 = vor.u32 %v11081_v16, %v9955_v52  ;;  %v11159_v16 = vld [vmem:[#allocation8 + $0xab4] sm:$0xf0] }
 0x36e   : > { %v11191_v52 = vld [vmem:[#allocation8 + $0xbb4] sm:$0xf0] }
 0x36f   : > { %6751 = vmatpush.bf16.msra.mxu2 %v10186_v7  ;;  %6765 = vmatpush.bf16.msra.mxu3 %v10314_v19  ;;  %v11152_v7 = vld [vmem:[#allocation8 + $0xa84] sm:$0xf]  ;;  %v10235_v19 = vld [vmem:[#allocation8 + $0xa90] sm:$0xf0] }
 0x370   : > { %6835 = vmatpush.bf16.msra.mxu0 %v9938_v21  ;;  %6849 = vmatpush.bf16.msra.mxu1 %v10066_v34  ;;  %v10363_v21 = vld [vmem:[#allocation8 + $0xb90] sm:$0xf0]  ;;  %v11089_v34 = vld [vmem:[#allocation8 + $0x88c] sm:$0xf]  ;;  %v10238_v50 = vor.u32 %v11152_v7, %v10235_v19  ;;  %v9939_v7 = vld [vmem:[#allocation8 + $0x838] sm:$0xf0] }
 0x371   : > { %v10366_v25 = vor.u32 %v11184_v10, %v10363_v21  ;;  %v9990_v12 = vor.u32 %v11089_v34, %v9987_v4  ;;  %v11109_v19 = vld [vmem:[#allocation8 + $0x92c] sm:$0xf]  ;;  %v10190_v10 = vor.u32 %v11140_v8, %v10187_v56  ;;  %v11136_v34 = vld [vmem:[#allocation8 + $0xa04] sm:$0xf]  ;;  %v10171_v4 = vld [vmem:[#allocation8 + $0xa10] sm:$0xf0] }
 0x372   : > { %v11187_v8 = vld [vmem:[#allocation8 + $0xb94] sm:$0xf0] }
 0x373   : > { %6752 = vmatpush.bf16.msra.mxu2 %v10170_v54  ;;  %6766 = vmatpush.bf16.msra.mxu3 %v10298_v57  ;;  %v11180_v54 = vld [vmem:[#allocation8 + $0xb64] sm:$0xf]  ;;  %v10347_v57 = vld [vmem:[#allocation8 + $0xb70] sm:$0xf0] }
 0x374   : > { %6836 = vmatpush.bf16.msra.mxu0 %v9922_v59  ;;  %6850 = vmatpush.bf16.msra.mxu1 %v10050_v36  ;;  %v10099_v59 = vld [vmem:[#allocation8 + $0x978] sm:$0xf0] }
 0x376   : > { %6753 = vmatmul.bf16.vlgmr.msra.gmra.mxu2 %v12553_v40  ;;  %6767 = vmatmul.bf16.vlgmr.msra.gmra.mxu3 %v12556_v5  ;;  %v5817_v17 = vpop.f32.mrf.mxu0  ;;  %v5831_v53 = vpop.f32.mrf.mxu1 }
 0x377   : > { %6801 = vmatpush.bf16.msrb.mxu2 %v10286_v24  ;;  %6815 = vmatpush.bf16.msrb.mxu3 %v10414_v26  ;;  %v5818_v28 = vadd.f32 %v5817_v17, %v12616_v22  ;;  %v10222_v24 = vor.u32 %v11148_v9, %v10219_v47  ;;  %v10350_v26 = vor.u32 %v11180_v54, %v10347_v57  ;;  %v11105_v47 = vld [vmem:[#allocation8 + $0x90c] sm:$0xf]  ;;  %v11167_v54 = vld [vmem:[#allocation8 + $0xaf4] sm:$0xf0]  ;;  %v10417_v57 = vld [vmem:[#allocation8 + $0xbe8] sm:$0xf] }
 0x378   : > { %6885 = vmatpush.bf16.msrb.mxu0 %v10038_v37  ;;  %6899 = vmatpush.bf16.msrb.mxu1 %v10166_v23  ;;  %v9974_v37 = vor.u32 %v11085_v32, %v9971_v2  ;;  %v10102_v22 = vor.u32 %v11117_v46, %v10099_v59  ;;  %v11199_v32 = vld [vmem:[#allocation8 + $0xbf4] sm:$0xf0]  ;;  %v10174_v46 = vor.u32 %v11136_v34, %v10171_v4  ;;  %v10337_v4 = vld [vmem:[#allocation8 + $0xb48] sm:$0xf] }
 0x379   : > { %6837 = vmatmul.bf16.vlgmr.msra.gmra.mxu0 %v12459_v51  ;;  %6851 = vmatmul.bf16.vlgmr.msra.gmra.mxu1 %v12471_v45  ;;  %v12644_v36 = vadd.f32 %v5831_v53, %v5818_v28  ;;  %v5733_v23 = vpop.f32.mrf.mxu2  ;;  %v5747_v30 = vpop.f32.mrf.mxu3  ;;  %v10299_v53 = vld [vmem:[#allocation8 + $0xb10] sm:$0xf0]  ;;  %v10051_v28 = vld [vmem:[#allocation8 + $0x918] sm:$0xf0]  ;;  %v11147_v34 = vld [vmem:[#allocation8 + $0xa54] sm:$0xf0] }
 0x37a   : > { %v5734_v60 = vadd.f32 %v5733_v23, %v12612_v11  ;;  %v10315_v11 = vld [vmem:[#allocation8 + $0xb30] sm:$0xf0]  ;;  %v10302_v59 = vor.u32 %v11168_v44, %v10299_v53  ;;  %v11195_v23 = vld [vmem:[#allocation8 + $0xbd4] sm:$0xf0] }
 0x37b   : > { %6802 = vmatpush.bf16.msrb.mxu2 %v10270_v13  ;;  %6816 = vmatpush.bf16.msrb.mxu3 %v10398_v43  ;;  %v11113_v13 = vld [vmem:[#allocation8 + $0x94c] sm:$0xf]  ;;  %v10083_v43 = vld [vmem:[#allocation8 + $0x958] sm:$0xf0]  ;;  %v10318_v21 = vor.u32 %v11172_v63, %v10315_v11  ;;  %v10225_v63 = vld [vmem:[#allocation8 + $0xa68] sm:$0xf] }
 0x37c   : > { %6886 = vmatpush.bf16.msrb.mxu0 %v10022_v31  ;;  %6900 = vmatpush.bf16.msrb.mxu1 %v10150_v41  ;;  %v12647_v35 = vadd.f32 %v5747_v30, %v5734_v60  ;;  %v10206_v31 = vor.u32 %v11144_v3, %v10203_v42  ;;  %v10334_v41 = vor.u32 %v11176_v62, %v10331_v18  ;;  %v10257_v18 = vld [vmem:[#allocation8 + $0xaa8] sm:$0xf]  ;;  %v11179_v44 = vld [vmem:[#allocation8 + $0xb54] sm:$0xf0] }
 0x37d   : > { %v10086_v0 = vor.u32 %v11113_v13, %v10083_v43  ;;  %v10418_v42 = vor.u32 %v11199_v32, %v10417_v57  ;;  %v10385_v60 = vld [vmem:[#allocation8 + $0xba8] sm:$0xf]  ;;  %v10258_v13 = vor.u32 %v11159_v16, %v10257_v18  ;;  %v10338_v53 = vor.u32 %v11179_v44, %v10337_v4  ;;  %v11139_v32 = vld [vmem:[#allocation8 + $0xa14] sm:$0xf0]  ;;  %v11161_v16 = vld [vmem:[#allocation8 + $0xacc] sm:$0xf] }
 0x37e   : > { %v5819_v55 = vpop.f32.mrf.mxu0  ;;  %v10386_v43 = vor.u32 %v11191_v52, %v10385_v60  ;;  %v10177_v57 = vld [vmem:[#allocation8 + $0xa08] sm:$0xf]  ;;  %v10275_v60 = vld [vmem:[#allocation8 + $0xad8] sm:$0xf0]  ;;  %v11193_v52 = vld [vmem:[#allocation8 + $0xbcc] sm:$0xf] }
 0x37f   : > { %6803 = vmatpush.bf16.msrb.mxu2 %v10254_v14  ;;  %6817 = vmatpush.bf16.msrb.mxu3 %v10382_v1  ;;  %v5820_v58 = vadd.f32 %v5819_v55, %v12621_v6  ;;  %v11077_v14 = vld [vmem:[#allocation8 + $0x82c] sm:$0xf]  ;;  %v5833_v1 = vpop.f32.mrf.mxu1  ;;  %v10241_v55 = vld [vmem:[#allocation8 + $0xa88] sm:$0xf]  ;;  %v10211_v4 = vld [vmem:[#allocation8 + $0xa58] sm:$0xf0] }
 0x380   : > { %6887 = vmatpush.bf16.msrb.mxu0 %v10006_v38  ;;  %6901 = vmatpush.bf16.msrb.mxu1 %v10134_v48  ;;  %v10067_v38 = vld [vmem:[#allocation8 + $0x938] sm:$0xf0]  ;;  %v9942_v6 = vor.u32 %v11077_v14, %v9939_v7  ;;  %v10353_v14 = vld [vmem:[#allocation8 + $0xb68] sm:$0xf]  ;;  %v11177_v44 = vld [vmem:[#allocation8 + $0xb4c] sm:$0xf] }
 0x381   : > { %v12650_v48 = vadd.f32 %v5833_v1, %v5820_v58  ;;  %v10070_v39 = vor.u32 %v11109_v19, %v10067_v38  ;;  %v5735_v17 = vpop.f32.mrf.mxu2  ;;  %v10209_v38 = vld [vmem:[#allocation8 + $0xa48] sm:$0xf] }
 0x382   : > { %v5736_v9 = vadd.f32 %v5735_v17, %v12618_v15  ;;  %v10273_v15 = vld [vmem:[#allocation8 + $0xac8] sm:$0xf]  ;;  %v10210_v17 = vor.u32 %v11147_v34, %v10209_v38  ;;  %v10355_v38 = vld [vmem:[#allocation8 + $0xb78] sm:$0xf0]  ;;  %v11145_v34 = vld [vmem:[#allocation8 + $0xa4c] sm:$0xf] }
 0x383   : > { %6804 = vmatpush.bf16.msrb.mxu2 %v10238_v50  ;;  %6818 = vmatpush.bf16.msrb.mxu3 %v10366_v25  ;;  %v11073_v50 = vld [vmem:[#allocation8 + $0x80c] sm:$0xf]  ;;  %v9923_v25 = vld [vmem:[#allocation8 + $0x818] sm:$0xf0] }
 0x384   : > { %6888 = vmatpush.bf16.msrb.mxu0 %v9990_v12  ;;  %6902 = vmatpush.bf16.msrb.mxu1 %v10118_v29  ;;  %v10289_v12 = vld [vmem:[#allocation8 + $0xae8] sm:$0xf]  ;;  %v5749_v29 = vpop.f32.mrf.mxu3 }
 0x385   : > { %v12653_v2 = vadd.f32 %v5749_v29, %v5736_v9  ;;  %v10290_v3 = vor.u32 %v11167_v54, %v10289_v12  ;;  %v11143_v9 = vld [vmem:[#allocation8 + $0xa34] sm:$0xf0] }
 0x387   : > { %6805 = vmatpush.bf16.msrb.mxu2 %v10222_v24  ;;  %6819 = vmatpush.bf16.msrb.mxu3 %v10350_v26  ;;  %v9926_v24 = vor.u32 %v11073_v50, %v9923_v25  ;;  %v10054_v26 = vor.u32 %v11105_v47, %v10051_v28  ;;  %v10193_v50 = vld [vmem:[#allocation8 + $0xa28] sm:$0xf]  ;;  %v11175_v28 = vld [vmem:[#allocation8 + $0xb34] sm:$0xf0] }
 0x388   : > { %6889 = vmatpush.bf16.msrb.mxu0 %v9974_v37  ;;  %6903 = vmatpush.bf16.msrb.mxu1 %v10102_v22  ;;  %v11163_v37 = vld [vmem:[#allocation8 + $0xad4] sm:$0xf0]  ;;  %v10401_v22 = vld [vmem:[#allocation8 + $0xbc8] sm:$0xf]  ;;  %v10194_v54 = vor.u32 %v11143_v9, %v10193_v50  ;;  %v10214_v50 = vor.u32 %v11145_v34, %v10211_v4  ;;  %v11141_v9 = vld [vmem:[#allocation8 + $0xa2c] sm:$0xf] }
 0x389   : > { %v10274_v30 = vor.u32 %v11163_v37, %v10273_v15  ;;  %v10402_v62 = vor.u32 %v11195_v23, %v10401_v22  ;;  %v10321_v47 = vld [vmem:[#allocation8 + $0xb28] sm:$0xf]  ;;  %v10419_v15 = vld [vmem:[#allocation8 + $0xbf8] sm:$0xf0]  ;;  %v10178_v23 = vor.u32 %v11139_v32, %v10177_v57  ;;  %v11137_v32 = vld [vmem:[#allocation8 + $0xa0c] sm:$0xf] }
 0x38b   : > { %6806 = vmatpush.bf16.msrb.mxu2 %v10206_v31  ;;  %6820 = vmatpush.bf16.msrb.mxu3 %v10334_v41  ;;  %v11155_v31 = vld [vmem:[#allocation8 + $0xa94] sm:$0xf0]  ;;  %v10369_v41 = vld [vmem:[#allocation8 + $0xb88] sm:$0xf] }
 0x38c   : > { %6890 = vmatpush.bf16.msrb.mxu0 %v9958_v33  ;;  %6904 = vmatpush.bf16.msrb.mxu1 %v10086_v0  ;;  %v10242_v33 = vor.u32 %v11155_v31, %v10241_v55  ;;  %v10370_v0 = vor.u32 %v11187_v8, %v10369_v41  ;;  %v11157_v55 = vld [vmem:[#allocation8 + $0xaac] sm:$0xf]  ;;  %v10259_v31 = vld [vmem:[#allocation8 + $0xab8] sm:$0xf0] }
 0x38d   : > { %v11189_v41 = vld [vmem:[#allocation8 + $0xbac] sm:$0xf]  ;;  %v10387_v8 = vld [vmem:[#allocation8 + $0xbb8] sm:$0xf0] }
 0x38f   : > { %6807 = vmatpush.bf16.msrb.mxu2 %v10190_v10  ;;  %6821 = vmatpush.bf16.msrb.mxu3 %v10318_v21 }
 0x390   : > { %6891 = vmatpush.bf16.msrb.mxu0 %v9942_v6  ;;  %6905 = vmatpush.bf16.msrb.mxu1 %v10070_v39 }
 0x393   : > { %6808 = vmatpush.bf16.msrb.mxu2 %v10174_v46  ;;  %6822 = vmatpush.bf16.msrb.mxu3 %v10302_v59  ;;  %v10305_v59 = vld [vmem:[#allocation8 + $0xb08] sm:$0xf] }
 0x394   : > { %6892 = vmatpush.bf16.msrb.mxu0 %v9926_v24  ;;  %6906 = vmatpush.bf16.msrb.mxu1 %v10054_v26  ;;  %v11171_v24 = vld [vmem:[#allocation8 + $0xb14] sm:$0xf0]  ;;  %v11165_v26 = vld [vmem:[#allocation8 + $0xaec] sm:$0xf] }
 0x396   : > { %6809 = vmatmul.bf16.vlgmr.msrb.gmra.mxu2 %v12553_v40  ;;  %6823 = vmatmul.bf16.vlgmr.msrb.gmra.mxu3 %v12556_v5  ;;  %v5873_v56 = vpop.f32.mrf.mxu0  ;;  %v5887_v58 = vpop.f32.mrf.mxu1 }
 0x397   : > { %6857 = vmatpush.bf16.msra.mxu2 %v10290_v3  ;;  %6871 = vmatpush.bf16.msra.mxu3 %v10418_v42  ;;  %v5874_v11 = vadd.f32 %v5873_v56, %v12631_v20  ;;  %v10291_v42 = vld [vmem:[#allocation8 + $0xaf8] sm:$0xf0]  ;;  %v10262_v56 = vor.u32 %v11157_v55, %v10259_v31 }
 0x398   : > { %6893 = vmatmul.bf16.vlgmr.msrb.gmra.mxu0 %v12459_v51  ;;  %6907 = vmatmul.bf16.vlgmr.msrb.gmra.mxu1 %v12471_v45  ;;  %v11151_v51 = vld [vmem:[#allocation8 + $0xa74] sm:$0xf0] }
 0x399   : > { %v11183_v45 = vld [vmem:[#allocation8 + $0xb74] sm:$0xf0]  ;;  %v12660_v1 = vadd.f32 %v5887_v58, %v5874_v11  ;;  %v10226_v7 = vor.u32 %v11151_v51, %v10225_v63  ;;  %v5789_v10 = vpop.f32.mrf.mxu2  ;;  %v5803_v21 = vpop.f32.mrf.mxu3  ;;  %v10390_v58 = vor.u32 %v11189_v41, %v10387_v8  ;;  %v11185_v63 = vld [vmem:[#allocation8 + $0xb8c] sm:$0xf]  ;;  %v10371_v11 = vld [vmem:[#allocation8 + $0xb98] sm:$0xf0] }
 0x39a   : > { %v10354_v19 = vor.u32 %v11183_v45, %v10353_v14  ;;  %v5790_v6 = vadd.f32 %v5789_v10, %v12628_v61  ;;  %v10322_v61 = vor.u32 %v11175_v28, %v10321_v47  ;;  %v10374_v14 = vor.u32 %v11185_v63, %v10371_v11  ;;  %v11149_v45 = vld [vmem:[#allocation8 + $0xa6c] sm:$0xf]  ;;  %v10195_v28 = vld [vmem:[#allocation8 + $0xa38] sm:$0xf0] }
 0x39b   : > { %6858 = vmatpush.bf16.msra.mxu2 %v10274_v30  ;;  %6872 = vmatpush.bf16.msra.mxu3 %v10402_v62  ;;  %v10306_v30 = vor.u32 %v11171_v24, %v10305_v59  ;;  %v10294_v62 = vor.u32 %v11165_v26, %v10291_v42  ;;  %v11169_v59 = vld [vmem:[#allocation8 + $0xb0c] sm:$0xf]  ;;  %v10307_v24 = vld [vmem:[#allocation8 + $0xb18] sm:$0xf0] }
 0x39c   : > { %v12663_v20 = vadd.f32 %v5803_v21, %v5790_v6  ;;  %v10339_v6 = vld [vmem:[#allocation8 + $0xb58] sm:$0xf0] }
 0x39e   : > { %v5875_v39 = vpop.f32.mrf.mxu0  ;;  %v5889_v12 = vpop.f32.mrf.mxu1 }
 0x39f   : > { %6859 = vmatpush.bf16.msra.mxu2 %v10258_v13  ;;  %6873 = vmatpush.bf16.msra.mxu3 %v10386_v43  ;;  %v5876_v25 = vadd.f32 %v5875_v39, %v12637_v27  ;;  %v11197_v27 = vld [vmem:[#allocation8 + $0xbec] sm:$0xf]  ;;  %v10403_v13 = vld [vmem:[#allocation8 + $0xbd8] sm:$0xf0] }
 0x3a0   : > { %v10422_v18 = vor.u32 %v11197_v27, %v10419_v15  ;;  %v10406_v43 = vor.u32 %v11193_v52, %v10403_v13  ;;  %v10310_v27 = vor.u32 %v11169_v59, %v10307_v24 }
 0x3a1   : > { %v12666_v29 = vadd.f32 %v5889_v12, %v5876_v25  ;;  %v5791_v46 = vpop.f32.mrf.mxu2  ;;  %v5805_v37 = vpop.f32.mrf.mxu3  ;;  %v10342_v25 = vor.u32 %v11177_v44, %v10339_v6  ;;  %v11173_v12 = vld [vmem:[#allocation8 + $0xb2c] sm:$0xf] }
 0x3a2   : > { %v5792_v3 = vadd.f32 %v5791_v46, %v12634_v49  ;;  %v10278_v49 = vor.u32 %v11161_v16, %v10275_v60  ;;  %v10179_v46 = vld [vmem:[#allocation8 + $0xa18] sm:$0xf0] }
 0x3a3   : > { %6860 = vmatpush.bf16.msra.mxu2 %v10242_v33  ;;  %6874 = vmatpush.bf16.msra.mxu3 %v10370_v0  ;;  %v11153_v33 = vld [vmem:[#allocation8 + $0xa8c] sm:$0xf]  ;;  %v10243_v0 = vld [vmem:[#allocation8 + $0xa98] sm:$0xf0]  ;;  %v10182_v42 = vor.u32 %v11137_v32, %v10179_v46  ;;  %v6949_v32 = vld [vmem:[#allocation12] sm:$0xf] }
 0x3a4   : > { %v12669_v22 = vadd.f32 %v5805_v37, %v5792_v3  ;;  %v10246_v51 = vor.u32 %v11153_v33, %v10243_v0 }
 0x3a7   : > { %6861 = vmatpush.bf16.msra.mxu2 %v10226_v7  ;;  %6875 = vmatpush.bf16.msra.mxu3 %v10354_v19  ;;  %v10227_v7 = vld [vmem:[#allocation8 + $0xa78] sm:$0xf0]  ;;  %v11181_v19 = vld [vmem:[#allocation8 + $0xb6c] sm:$0xf] }
 0x3a8   : > { %v10230_v10 = vor.u32 %v11149_v45, %v10227_v7  ;;  %v10358_v21 = vor.u32 %v11181_v19, %v10355_v38 }
 0x3ab   : > { %6862 = vmatpush.bf16.msra.mxu2 %v10210_v17  ;;  %6876 = vmatpush.bf16.msra.mxu3 %v10338_v53 }
 0x3af   : > { %6863 = vmatpush.bf16.msra.mxu2 %v10194_v54  ;;  %6877 = vmatpush.bf16.msra.mxu3 %v10322_v61  ;;  %v10323_v54 = vld [vmem:[#allocation8 + $0xb38] sm:$0xf0]  ;;  %v10198_v61 = vor.u32 %v11141_v9, %v10195_v28 }
 0x3b0   : > { %v10326_v57 = vor.u32 %v11173_v12, %v10323_v54 }
 0x3b3   : > { %6864 = vmatpush.bf16.msra.mxu2 %v10178_v23  ;;  %6878 = vmatpush.bf16.msra.mxu3 %v10306_v30 }
 0x3b6   : > { %6865 = vmatmul.bf16.vlgmr.msra.gmra.mxu2 %v12553_v40  ;;  %6879 = vmatmul.bf16.vlgmr.msra.gmra.mxu3 %v12556_v5  ;;  %v6726_v52 = vpop.f32.mrf.mxu0  ;;  %v6740_v13 = vpop.f32.mrf.mxu1 }
 0x3b7   : > { %6913 = vmatpush.bf16.msrb.mxu2 %v10294_v62  ;;  %6927 = vmatpush.bf16.msrb.mxu3 %v10422_v18  ;;  %v6741_v6 = vadd.f32 %v6740_v13, %v6726_v52 }
 0x3b9   : > { %v5845_v39 = vpop.f32.mrf.mxu2  ;;  %v5859_v17 = vpop.f32.mrf.mxu3 }
 0x3ba   : > { %v5846_v53 = vadd.f32 %v5845_v39, %v12644_v36 }
 0x3bb   : > { %6914 = vmatpush.bf16.msrb.mxu2 %v10278_v49  ;;  %6928 = vmatpush.bf16.msrb.mxu3 %v10406_v43 }
 0x3bc   : > { %v12674_v47 = vadd.f32 %v5859_v17, %v5846_v53 }
 0x3be   : > { %v6728_v55 = vpop.f32.mrf.mxu0 }
 0x3bf   : > { %6915 = vmatpush.bf16.msrb.mxu2 %v10262_v56  ;;  %6929 = vmatpush.bf16.msrb.mxu3 %v10390_v58 }
 0x3c1   : > { %v5847_v26 = vpop.f32.mrf.mxu2  ;;  %v5861_v3 = vpop.f32.mrf.mxu3 }
 0x3c2   : > { %v5848_v36 = vadd.f32 %v5847_v26, %v12650_v48 }
 0x3c3   : > { %6916 = vmatpush.bf16.msrb.mxu2 %v10246_v51  ;;  %6930 = vmatpush.bf16.msrb.mxu3 %v10374_v14 }
 0x3c4   : > { %v5862_v15 = vadd.f32 %v5861_v3, %v5848_v36 }
 0x3c7   : > { %6917 = vmatpush.bf16.msrb.mxu2 %v10230_v10  ;;  %6931 = vmatpush.bf16.msrb.mxu3 %v10358_v21 }
 0x3cb   : > { %6918 = vmatpush.bf16.msrb.mxu2 %v10214_v50  ;;  %6932 = vmatpush.bf16.msrb.mxu3 %v10342_v25 }
 0x3cf   : > { %6919 = vmatpush.bf16.msrb.mxu2 %v10198_v61  ;;  %6933 = vmatpush.bf16.msrb.mxu3 %v10326_v57 }
 0x3d3   : > { %6920 = vmatpush.bf16.msrb.mxu2 %v10182_v42  ;;  %6934 = vmatpush.bf16.msrb.mxu3 %v10310_v27  ;;  %v6953_v27 = vperm.slane %v6949_v32, 2 }
 0x3d6   : > { %6921 = vmatmul.bf16.vlgmr.msrb.gmra.mxu2 %v12553_v40  ;;  %6935 = vmatmul.bf16.vlgmr.msrb.gmra.mxu3 %v12556_v5  ;;  %v6742_v40 = vpop.f32.mrf.mxu1  ;;  %v6782_v5 = vpop.f32.mrf.mxu0 }
 0x3d7   : > { %v6743_v10 = vadd.f32 %v6742_v40, %v6728_v55 }
 0x3d9   : > { %v5901_v37 = vpop.f32.mrf.mxu2  ;;  %v5915_v23 = vpop.f32.mrf.mxu3 }
 0x3da   : > { %v5902_v30 = vadd.f32 %v5901_v37, %v12660_v1  ;;  %v6951_v37 = vperm.slane %v6949_v32, 0 }
 0x3dc   : > { %v12680_v62 = vadd.f32 %v5915_v23, %v5902_v30  ;;  %v6967_v30 = vld [vmem:[#allocation14] sm:$0xf] }
 0x3dd   : > { %v6970_v55 = vperm.slane %v6967_v30, 1 }
 0x3de   : > { %v6796_v41 = vpop.f32.mrf.mxu1  ;;  %v6784_v58 = vpop.f32.mrf.mxu0 }
 0x3df   : > { %v6797_v39 = vadd.f32 %v6796_v41, %v6782_v5 }
 0x3e1   : > { %v5903_v18 = vpop.f32.mrf.mxu2  ;;  %v5917_v16 = vpop.f32.mrf.mxu3 }
 0x3e2   : > { %v5904_v48 = vadd.f32 %v5903_v18, %v12666_v29 }
 0x3e4   : > { %v12683_v60 = vadd.f32 %v5917_v16, %v5904_v48  ;;  %v6952_v48 = vperm.slane %v6949_v32, 1 }
 0x3e6   : > { %v6798_v33 = vpop.f32.mrf.mxu1 }
 0x3e7   : > { %v6799_v21 = vadd.f32 %v6798_v33, %v6784_v58 }
 0x3f6   : > { %v6838_v63 = vpop.f32.mrf.mxu0  ;;  %v6852_v29 = vpop.f32.mrf.mxu1 }
 0x3f7   : > { %v6853_v34 = vadd.f32 %v6852_v29, %v6838_v63 }
 0x3f9   : > { %v6754_v49 = vpop.f32.mrf.mxu2  ;;  %v6768_v43 = vpop.f32.mrf.mxu3 }
 0x3fa   : > { %v6755_v25 = vadd.f32 %v6754_v49, %v6741_v6  ;;  %v6972_v6 = vperm.slane %v6967_v30, 3 }
 0x3fc   : > { %v6769_v57 = vadd.f32 %v6768_v43, %v6755_v25  ;;  %v6969_v43 = vperm.slane %v6967_v30, 0 }
 0x3fe   : > { %v6840_v45 = vpop.f32.mrf.mxu0  ;;  %v6854_v7 = vpop.f32.mrf.mxu1  ;;  %v6941_v23 = vadd.f32 %v6769_v57, %v12647_v35 }
 0x3ff   : > { %v6855_v38 = vadd.f32 %v6854_v7, %v6840_v45 }
 0x401   : > { %v6756_v31 = vpop.f32.mrf.mxu2  ;;  %v6770_v8 = vpop.f32.mrf.mxu3 }
 0x402   : > { %v6757_v44 = vadd.f32 %v6756_v31, %v6743_v10  ;;  %v6959_v31 = vmul.f32 %v6951_v37, %v6941_v23 }
 0x404   : > { %v6771_v12 = vadd.f32 %v6770_v8, %v6757_v44  ;;  %v12698_v58 = vadd.f32 %v6969_v43, %v6959_v31 }
 0x406   : > { %v6945_v24 = vadd.f32 %v6771_v12, %v12653_v2  ;;  %v6971_v2 = vperm.slane %v6967_v30, 2 }
 0x408   : > { %v6963_v52 = vmul.f32 %v6951_v37, %v6945_v24 }
 0x40a   : > { %v12692_v35 = vadd.f32 %v6969_v43, %v6963_v52 }
 0x40c   : > { %v6985_v29 = vadd.f32 %v12692_v35, %v12698_v58 }
 0x415   : > { %v6894_v26 = vpop.f32.mrf.mxu0  ;;  %v6908_v36 = vpop.f32.mrf.mxu1 }
 0x416   : > { %v6909_v13 = vadd.f32 %v6908_v36, %v6894_v26 }
 0x419   : > { %v6810_v56 = vpop.f32.mrf.mxu2  ;;  %v6824_v1 = vpop.f32.mrf.mxu3 }
 0x41a   : > { %v6811_v9 = vadd.f32 %v6810_v56, %v6797_v39 }
 0x41c   : > { %v6825_v46 = vadd.f32 %v6824_v1, %v6811_v9 }
 0x41d   : > { %v6896_v56 = vpop.f32.mrf.mxu0  ;;  %v6910_v1 = vpop.f32.mrf.mxu1 }
 0x41e   : > { %v6942_v18 = vadd.f32 %v6825_v46, %v12663_v20 }
 0x421   : > { %v6812_v0 = vpop.f32.mrf.mxu2  ;;  %v6826_v11 = vpop.f32.mrf.mxu3 }
 0x422   : > { %v6813_v17 = vadd.f32 %v6812_v0, %v6799_v21  ;;  %v6986_v21 = vrot.slane %v6985_v29, 4 }
 0x424   : > { %v6827_v54 = vadd.f32 %v6826_v11, %v6813_v17  ;;  %v6911_v11 = vadd.f32 %v6910_v1, %v6896_v56  ;;  %v7029_v56 = vld [vmem:[#allocation15] sm:$0x1] }
 0x426   : > { %v6946_v3 = vadd.f32 %v6827_v54, %v12669_v22 }
 0x439   : > { %v6866_v51 = vpop.f32.mrf.mxu2  ;;  %v6880_v14 = vpop.f32.mrf.mxu3 }
 0x43a   : > { %v6867_v53 = vadd.f32 %v6866_v51, %v6853_v34 }
 0x43c   : > { %v6881_v61 = vadd.f32 %v6880_v14, %v6867_v53 }
 0x43e   : > { %v6943_v42 = vadd.f32 %v6881_v61, %v12674_v47  ;;  %v6960_v47 = vmul.f32 %v6952_v48, %v6942_v18 }
 0x440   : > { %v6961_v49 = vmul.f32 %v6953_v27, %v6943_v42  ;;  %v12700_v33 = vadd.f32 %v6970_v55, %v6960_v47 }
 0x441   : > { %v6868_v19 = vpop.f32.mrf.mxu2  ;;  %v6882_v50 = vpop.f32.mrf.mxu3 }
 0x442   : > { %v6869_v4 = vadd.f32 %v6868_v19, %v6855_v38  ;;  %v12696_v20 = vadd.f32 %v6971_v2, %v6961_v49  ;;  %v6954_v19 = vperm.slane %v6949_v32, 3  ;;  %v7026_v49 = vld [vmem:[%s12792_s7 + $0x8] sm:$0xff] }
 0x444   : > { %v6883_v28 = vadd.f32 %v6882_v50, %v6869_v4  ;;  %v6987_v50 = vadd.f32 %v6986_v21, %v6985_v29  ;;  %v7057_v29 = vld [vmem:[#allocation18] sm:$0x1] }
 0x446   : > { %v6947_v59 = vadd.f32 %v6883_v28, %v5862_v15  ;;  %v6964_v15 = vmul.f32 %v6952_v48, %v6946_v3  ;;  %v6988_v54 = vrot.slane %v6987_v50, 2 }
 0x448   : > { %v6965_v16 = vmul.f32 %v6953_v27, %v6947_v59  ;;  %v12694_v8 = vadd.f32 %v6970_v55, %v6964_v15  ;;  %v6989_v46 = vadd.f32 %v6988_v54, %v6987_v50  ;;  %v7027_v15 = vld [vmem:[%s12792_s7 + $0x10] sm:$0xff]  ;;  %v7025_v55 = vld [vmem:[%s12792_s7] sm:$0xff] }
 0x44a   : > { %v12690_v5 = vadd.f32 %v6971_v2, %v6965_v16  ;;  %v6992_v51 = vadd.f32 %v12694_v8, %v12700_v33  ;;  %v6990_v36 = vrot.slane %v6989_v46, 1 }
 0x44c   : > { %v6999_v0 = vadd.f32 %v12690_v5, %v12696_v20  ;;  %v6993_v34 = vrot.slane %v6992_v51, 4  ;;  %v6991_v23 = vadd.f32 %v6990_v36, %v6989_v46 }
 0x44e   : > { %v7000_v45 = vrot.slane %v6999_v0, 4  ;;  %v6994_v25 = vadd.f32 %v6993_v34, %v6992_v51 }
 0x450   : > { %v7001_v17 = vadd.f32 %v7000_v45, %v6999_v0  ;;  %v6995_v61 = vrot.slane %v6994_v25, 2 }
 0x452   : > { %v7002_v12 = vrot.slane %v7001_v17, 2  ;;  %v6996_v59 = vadd.f32 %v6995_v61, %v6994_v25 }
 0x454   : > { %v7003_v32 = vadd.f32 %v7002_v12, %v7001_v17  ;;  %v6997_v3 = vrot.slane %v6996_v59, 1 }
 0x456   : > { %v6998_v30 = vadd.f32 %v6997_v3, %v6996_v59  ;;  %v11353_v3 = vld [vmem:[%s11976_s21] sm:$0xff] }
 0x459   : > { %v6922_v40 = vpop.f32.mrf.mxu2  ;;  %v6936_v22 = vpop.f32.mrf.mxu3 }
 0x45a   : > { %v6923_v41 = vadd.f32 %v6922_v40, %v6909_v13  ;;  %v7028_v13 = vld [vmem:[%s12792_s7 + $0x18] sm:$0xff]  ;;  %v7056_v40 = vld [vmem:[#allocation17 + $0x8] sm:$0xff] }
 0x45b   : > { %7046 = vmatpush.msra.mxu0 %v7028_v13  ;;  %7076 = vmatpush.msra.mxu1 %v7056_v40 }
 0x45c   : > { %v6937_v63 = vadd.f32 %v6936_v22, %v6923_v41  ;;  %v7055_v22 = vld [vmem:[#allocation17] sm:$0xff] }
 0x45d   : > { %7047 = vmatpush.msra.mxu0 %v7027_v15  ;;  %7077 = vmatpush.msra.mxu1 %v7055_v22 }
 0x45e   : > { %v6944_v7 = vadd.f32 %v6937_v63, %v12680_v62 }
 0x45f   : > { %7048 = vmatpush.msra.mxu0 %v7026_v49 }
 0x460   : > { %v6962_v44 = vmul.f32 %v6954_v19, %v6944_v7 }
 0x461   : > { %v6924_v14 = vpop.f32.mrf.mxu2  ;;  %v6938_v10 = vpop.f32.mrf.mxu3  ;;  %7049 = vmatpush.msra.mxu0 %v7025_v55 }
 0x462   : > { %v6925_v38 = vadd.f32 %v6924_v14, %v6911_v11  ;;  %v12710_v9 = vadd.f32 %v6972_v6, %v6962_v44 }
 0x464   : > { %v6939_v4 = vadd.f32 %v6938_v10, %v6925_v38 }
 0x466   : > { %v6948_v39 = vadd.f32 %v6939_v4, %v12683_v60  ;;  %v7004_v60 = vrot.slane %v7003_v32, 1 }
 0x468   : > { %v6966_v53 = vmul.f32 %v6954_v19, %v6948_v39  ;;  %v7005_v27 = vadd.f32 %v7004_v60, %v7003_v32 }
 0x46a   : > { %v12712_v28 = vadd.f32 %v6972_v6, %v6966_v53  ;;  %v7013_v48 = vadd.f32 %v7005_v27, %v6991_v23  ;;  %v11355_v27 = vld [vmem:[%s11976_s21 + $0x10] sm:$0xff] }
 0x46c   : > { %v7006_v62 = vadd.f32 %v12712_v28, %v12710_v9 }
 0x46e   : > { %v7007_v57 = vrot.slane %v7006_v62, 4 }
 0x470   : > { %v7008_v24 = vadd.f32 %v7007_v57, %v7006_v62 }
 0x472   : > { %v7009_v26 = vrot.slane %v7008_v24, 2 }
 0x474   : > { %v7010_v42 = vadd.f32 %v7009_v26, %v7008_v24 }
 0x476   : > { %v7011_v37 = vrot.slane %v7010_v42, 1 }
 0x478   : > { %v7012_v18 = vadd.f32 %v7011_v37, %v7010_v42  ;;  %v11354_v42 = vld [vmem:[%s11976_s21 + $0x8] sm:$0xff] }
 0x47a   : > { %v7014_v16 = vadd.f32 %v7012_v18, %v6998_v30  ;;  %v11358_v30 = vld [vmem:[%s11976_s21 + $0x28] sm:$0xff]  ;;  %v11359_v18 = vld [vmem:[%s11976_s21 + $0x30] sm:$0xff] }
 0x47c   : > { %v7015_v52 = vadd.f32 %v7014_v16, %v7013_v48 }
 0x47e   : > { %7016 = vrot.lane.b32.xlu0 %v7015_v52, %s11764_s25 }
 0x4f0   : > { %v7017_v2 = vpop.permute.xlu0 %7016 }
 0x4f1   : > { %v7020_v43 = vadd.f32 %v7017_v2, %v7015_v52  ;;  %v11360_v52 = vld [vmem:[%s11976_s21 + $0x38] sm:$0xff] }
 0x4f3   : > { %7021 = vrot.lane.b32.xlu0 %v7020_v43, %s11765_s3 }
 0x565   : > { %v7022_v31 = vpop.permute.xlu0 %7021 }
 0x566   : > { %v7023_v47 = vadd.f32 %v7022_v31, %v7020_v43 }
 0x568   : > { %v7024_v41 = vmul.f32 0.00390625, %v7023_v47 }
 0x56a   : > { %10423 = vmatmul.msk.f32.vlgmr.msra.gmra.mxu0 %vm7030_vm5, %v7024_v41 }
 0x5e7   : > { %v7051_v1 = vpop.f32.mrf.mxu0 }
 0x5e8   : > { %v7052_v0 = vadd.f32 %v7051_v1, %v7029_v56 }
 0x5ea   : > { %v7054_v63 = vmax.f32 %v7052_v0, 0.0 }
 0x5ec   : > { %10424 = vmatmul.msk.f32.vlgmr.msra.gmra.mxu1 %vm7058_vm6, %v7054_v63 }
 0x669   : > { %v7079_v11 = vpop.f32.mrf.mxu1 }
 0x66a   : > { %v7080_v51 = vadd.f32 %v7079_v11, %v7057_v29 }
 0x66c   : > { %v10425_v14 = vmul.f32 -1.442695, %v7080_v51 }
 0x66e   : > { %11348 = vpow2.f32 %v10425_v14 }
 0x674   : > { %v11349_v45 = vpop.eup %11348 }
 0x675   : > { %v7085_v7 = vadd.f32 1.0, %v11349_v45 }
 0x677   : > { %11350 = vrcp.f32 %v7085_v7  ;;  %v7097_v21 = vand.u32 2147483648, %v7085_v7  ;;  %v7095_v4 = vand.u32 2147483647, %v7085_v7  ;;  %vm7091_vm8 = vweird.f32 %v7085_v7 }
 0x679   : > { %v7098_v6 = vor.u32 1.1754944e-38, %v7097_v21  ;;  %vm7096_vm10 = vcmp.eq.f32.partialorder %v7095_v4, 8.507059e+37 }
 0x67d   : > { %v11351_v19 = vpop.eup %11350 }
 0x67e   : > { %v7087_v38 = vmul.f32 %v11351_v19, %v7085_v7  ;;  %vm7092_vm7 = vweird.f32 %v11351_v19 }
 0x67f   : > { %vm7093_vm9 = vmor %vm7091_vm8, %vm7092_vm7 }
 0x680   : > { %v7088_v10 = vsub.f32 1.0, %v7087_v38 }
 0x682   : > { %v7089_v34 = vmul.f32 %v11351_v19, %v7088_v10 }
 0x684   : > { %v7090_v44 = vadd.f32 %v11351_v19, %v7089_v34 }
 0x686   : > { %v7094_v39 = vsel %vm7093_vm9, %v11351_v19, %v7090_v44 }
 0x687   : > { %v7099_v17 = vsel %vm7096_vm10, %v7098_v6, %v7094_v39 }
 0x688   : > { %7108 = vrot.lane.b32.xlu2 %v7099_v17, %s11766_s22  ;;  %7102 = vrot.lane.b32.xlu1 %v7099_v17, %s11765_s3 }
 0x690   : > { %7105 = vrot.lane.b32.xlu1 %v7099_v17, %s11764_s25 }
 0x6e2   : > { %v7109_v12 = vpop.permute.xlu2 %7108 }
 0x6fa   : > { %v7103_v53 = vpop.permute.xlu1 %7102 }
 0x6fb   : > { %v7111_v50 = vsel %vm7030_vm5, %v7099_v17, %v7103_v53 }
 0x702   : > { %v7106_v25 = vpop.permute.xlu1 %7105 }
 0x703   : > { %v7113_v62 = vsel %vm7112_vm11, %v7111_v50, %v7106_v25 }
 0x704   : > { %v7115_v54 = vsel %vm7114_vm12, %v7113_v62, %v7109_v12 }
 0x705   : > { %v7116_v61 = vperm.slane %v7115_v54, 0 }
 0x707   : > { %v7117_v57 = vmul.f32 %v7116_v61, %v12698_v58  ;;  %v7118_v32 = vmul.f32 %v7116_v61, %v12700_v33  ;;  %v7119_v46 = vmul.f32 %v7116_v61, %v12696_v20  ;;  %v7120_v59 = vmul.f32 %v7116_v61, %v12710_v9  ;;  %v11356_v20 = vld [vmem:[%s11976_s21 + $0x18] sm:$0xff]  ;;  %v11357_v9 = vld [vmem:[%s11976_s21 + $0x20] sm:$0xff]  ;;  %s7150_s21 = scalar_lea.sflag [#allocation5], %s11970_s5 }
 0x708   : > { %v7121_v24 = vmul.f32 %v7116_v61, %v12692_v35  ;;  %v7122_v60 = vmul.f32 %v7116_v61, %v12694_v8  ;;  %v7123_v26 = vmul.f32 %v7116_v61, %v12690_v5  ;;  %v7124_v36 = vmul.f32 %v7116_v61, %v12712_v28 }
 0x709   : > { %v7125_v58 = vadd.f32 %v11353_v3, %v7117_v57  ;;  %v7126_v33 = vadd.f32 %v11354_v42, %v7118_v32  ;;  %v7127_v37 = vadd.f32 %v11355_v27, %v7119_v46  ;;  %v7128_v23 = vadd.f32 %v11356_v20, %v7120_v59 }
 0x70a   : > { %v7129_v35 = vadd.f32 %v11357_v9, %v7121_v24  ;;  %v7130_v8 = vadd.f32 %v11358_v30, %v7122_v60  ;;  %v7131_v48 = vadd.f32 %v11359_v18, %v7123_v26  ;;  %v7132_v13 = vadd.f32 %v11360_v52, %v7124_v36 }
 0x70b   : > { %v7133_v5 = vmax.f32 %v7125_v58, 0.0  ;;  %v7134_v16 = vmax.f32 %v7126_v33, 0.0  ;;  %v7135_v28 = vmax.f32 %v7127_v37, 0.0  ;;  %v7136_v15 = vmax.f32 %v7128_v23, 0.0 }
 0x70c   : > { %v7137_v49 = vmax.f32 %v7129_v35, 0.0  ;;  %v7138_v2 = vmax.f32 %v7130_v8, 0.0  ;;  %v7139_v43 = vmax.f32 %v7131_v48, 0.0  ;;  %v7140_v55 = vmax.f32 %v7132_v13, 0.0 }
 0x70d   : > { %7141 = vst [vmem:[%s543_s1] sm:$0xff] %v7133_v5 }
 0x70e   : > { %7142 = vst [vmem:[%s543_s1 + $0x8] sm:$0xff] %v7134_v16 }
 0x70f   : > { %7143 = vst [vmem:[%s543_s1 + $0x10] sm:$0xff] %v7135_v28 }
 0x710   : > { %7144 = vst [vmem:[%s543_s1 + $0x18] sm:$0xff] %v7136_v15 }
 0x711   : > { %7145 = vst [vmem:[%s543_s1 + $0x20] sm:$0xff] %v7137_v49 }
 0x712   : > { %7146 = vst [vmem:[%s543_s1 + $0x28] sm:$0xff] %v7138_v2 }
 0x713   : > { %7147 = vst [vmem:[%s543_s1 + $0x30] sm:$0xff] %v7139_v43 }
 0x714   : > { %7148 = vst [vmem:[%s543_s1 + $0x38] sm:$0xff] %v7140_v55 }
 0x715   : > { %11688 = shalt.err (!%p11685_p8)
}
 0x716   : > { %s11767_s5 = smov 512  }
 0x717   : > { %11239 = dma.vmem_to_hbm [thread:$0]  (%p11937_p13), %s7163_s24, 1024, %s7165_s29, %s7150_s21, %s11767_s5, %s11767_s5, %s11765_s3  }
 0x718 PF: > { %p11296_p9 = scmp.ge.s32.totalorder %s11747_s20, 2  ;;  %s7179_s4 = sand.u32 1, %s11735_s17  }
 0x719   : > { %s7180_s25 = scalar_lea.sflag [#allocation5], %s7179_s4 }
 0x71a   : > { %p11274_p10 = pnand %p11296_p9, %p11943_p4 }
 0x71c   : > { %p11275_p11 = pneg %p11274_p10 }
 0x71e   : > { %11730 = dma.done.wait (%p11275_p11), %s7180_s25, 1024  }
 0x71f   : > { %11732 = vsyncadd (%p11275_p11), %s7180_s25, 4294966272  ;;  %p29_p0 = scmp.ge.s32.totalorder %s11913_s13, 6   ;;  %s12831_s17 = smov %s11739_s18 }
 0x720   : > { %s12832_s18 = smov %s11743_s19  ;;  %s12833_s19 = smov %s11925_s16 }
 0x721   : > { %s12834_s20 = smov %s11913_s13  ;;  %31 = sbr.rel (!%p29_p0) target bundleno = 17 (0x11), region = 149 }
 0x726   :  { %7186 = vsyncpa [#allocation4], 1 }
 0x727   :  { %7188 = vsyncpa [#allocation4 + $0x1], 1 }
 0x728   :  { %7189 = vsyncpa [#allocation7], 1 }
 0x729   :  { %7190 = vsyncpa [#allocation10], 1 }
 0x72a   :  { %7191 = vsyncpa [#allocation13], 1 }
 0x72b   :  { %7192 = vsyncpa [#allocation16], 1 }
 0x72c   :  { %7193 = vsyncpa [#allocation19], 1 }
 0x72d   :  { %7194 = vsyncpa [#allocation5], 1 }
 0x72e   :  { %7196 = vsyncpa [#allocation5 + $0x1], 1 }

</bundles_post_ra>
